<compile_context>
chip_gen: v5e
topology: v5e:2x2
jax: 0.10.0
libtpu: 0.0.40
codegen_flags: <defaults>
</compile_context>

<pallas_src>
import functools

import jax
import jax.numpy as jnp
from jax.experimental import pallas as pl
from jax.experimental.pallas import tpu as pltpu

KSIZE = 5
STRIDE = 2
KK = KSIZE * KSIZE
LANE = 128            # lane width / padded channel count
MAX_ACC_ROWS = 128    # keep the layer-2 register accumulator <= 16 f32 vregs


def conv2d_size_out(size, kernel_size=KSIZE, stride=STRIDE):
    return (size - (kernel_size - 1) - 1) // stride + 1


# ------------------------------ Pallas kernel ------------------------------ #

def _qnet_fused_kernel(p_ref, w_ref, s_ref, o_ref, h1_ref, h2_ref, *,
                       H1e, W1e, H2, W2, H3, W3, NB):
    """Entire QNetExpMap forward for one batch block of NB samples.

    p_ref  : (4*H1e*W1e*NB, 128) bf16, unique layer-1 im2col rows, ordered
             (phase = (i1%2)*2 + j1%2, i1//2, j1//2, n).
    w_ref  : (1+2*KK+R, 128, 128) bf16: [w1 | w2 taps | w3 taps | fc4 per pos],
             BN scale folded in.
    s_ref  : (4, 1, 128) f32: [shift1, shift2, shift3, fc4 bias].
    h1_ref : (4, H1e, W1e, NB, 128) f32 scratch (phase-major layer-1 output).
    h2_ref : (H2*W2*NB, 128) f32 scratch, rows ordered (i2, j2, n).
    """
    mphase = H1e * W1e * NB
    s1 = s_ref[0]
    s2 = s_ref[1]
    s3 = s_ref[2]
    b4 = s_ref[3]
    w1 = w_ref[0]

    # ---- layer 1 (conv1+bn1+relu): one big matmul per input parity phase,
    # written once into the phase-major f32 scratch.
    for ph in range(4):
        x = p_ref[pl.ds(ph * mphase, mphase), :]                     # bf16
        h1 = jnp.dot(x, w1, preferred_element_type=jnp.float32)
        h1 = jnp.maximum(h1 + s1, 0.0)
        h1_ref[ph] = h1.reshape(H1e, W1e, NB, LANE)

    # ---- layer 2 (conv2+bn2+relu): for each tap (kh,kw) the needed layer-1
    # pixels are a CONTIGUOUS sub-block of one parity phase.  Accumulate in
    # registers over the 25 taps, chunked over output rows so the accumulator
    # stays small; store the activated result once per chunk.
    rows_per_i2 = W2 * NB
    chunk_i2 = max(1, MAX_ACC_ROWS // rows_per_i2)
    for i2a in range(0, H2, chunk_i2):
        ni2 = min(chunk_i2, H2 - i2a)
        rows = ni2 * rows_per_i2
        acc = jnp.zeros((rows, LANE), jnp.float32)
        for kh in range(KSIZE):
            for kw in range(KSIZE):
                ph = (kh % 2) * 2 + (kw % 2)
                lhs = h1_ref[ph, pl.ds(kh // 2 + i2a, ni2), pl.ds(kw // 2, W2)]
                lhs = lhs.reshape(rows, LANE).astype(jnp.bfloat16)
                acc = acc + jnp.dot(lhs, w_ref[1 + kh * KSIZE + kw],
                                    preferred_element_type=jnp.float32)
        h2_ref[pl.ds(i2a * rows_per_i2, rows), :] = jnp.maximum(acc + s2, 0.0)

    # ---- layer 3 (conv3+bn3+relu) + fc4, fused per conv3 output position:
    # each tap reads one contiguous (NB,128) row chunk of h2 (rows (i2,j2,n)).
    acc4 = jnp.zeros((NB, LANE), jnp.float32)
    for i3 in range(H3):
        for j3 in range(W3):
            acc3 = jnp.zeros((NB, LANE), jnp.float32)
            for kh in range(KSIZE):
                for kw in range(KSIZE):
                    pix = (2 * i3 + kh) * W2 + (2 * j3 + kw)
                    lhs = h2_ref[pl.ds(pix * NB, NB), :].astype(jnp.bfloat16)
                    acc3 = acc3 + jnp.dot(lhs, w_ref[1 + KK + kh * KSIZE + kw],
                                          preferred_element_type=jnp.float32)
            h3 = jnp.maximum(acc3 + s3, 0.0).astype(jnp.bfloat16)
            r = i3 * W3 + j3
            acc4 = acc4 + jnp.dot(h3, w_ref[1 + 2 * KK + r],
                                  preferred_element_type=jnp.float32)
    o_ref[...] = acc4 + b4


# ----------------- unique, phase-major im2col rows (no gather) --------------- #

def _build_patches(x, H1, W1, H1e, W1e, NB):
    """x: (N_pad, H, W, 3) f32 with N_pad % NB == 0.

    Returns (n_blocks * 4*H1e*W1e*NB, 128) bf16: unique layer-1 im2col rows,
    zero-padded 75 -> 128 lanes, ordered (block, i1%2, j1%2, i1//2, j1//2, n).
    Built entirely with static strided slices / transpose (no gather).
    """
    n_pad = x.shape[0]
    cols = []
    for kh in range(KSIZE):
        for kw in range(KSIZE):
            cols.append(x[:, kh:kh + STRIDE * H1:STRIDE,
                          kw:kw + STRIDE * W1:STRIDE, :])
    p1 = jnp.concatenate(cols, axis=-1)                    # (N_pad,H1,W1,75)
    k1 = p1.shape[-1]
    p1 = jnp.pad(p1, ((0, 0), (0, 2 * H1e - H1), (0, 2 * W1e - W1),
                      (0, LANE - k1)))                     # lane + odd-phase pad
    p1 = p1.reshape(n_pad // NB, NB, H1e, 2, W1e, 2, LANE)
    p1 = jnp.transpose(p1, (0, 3, 5, 2, 4, 1, 6))          # (blk,pi,pj,i1h,j1h,n,c)
    return p1.reshape(-1, LANE).astype(jnp.bfloat16)


# -------------------- one-time parameter folding / padding ------------------ #

def prepare_params(params, feature_size, eps=1e-5):
    """Fold conv bias + inference BatchNorm into (scaled weight, shift), pad
    every contraction/channel dim to 128 lanes, cast weights to bf16, and
    stack everything into one weight operand + one shift operand."""
    H1, W1 = conv2d_size_out(feature_size[0]), conv2d_size_out(feature_size[1])
    H2, W2 = conv2d_size_out(H1), conv2d_size_out(W1)
    H3, W3 = conv2d_size_out(H2), conv2d_size_out(W2)
    R = H3 * W3

    def fold(layer):
        w, b, gamma, beta, mean, var = layer
        scale = gamma / jnp.sqrt(var + eps)
        return w * scale, (b - mean) * scale + beta        # scale folded into weights

    def pad_taps(w):                                       # (T,k,c) -> (T,128,128)
        t, k, c = w.shape
        return jnp.zeros((t, LANE, LANE), jnp.float32).at[:, :k, :c].set(w)

    def pad_vec(v):                                        # (c,) -> (1,128)
        return jnp.zeros((1, LANE), jnp.float32).at[0, :v.shape[0]].set(v)

    w1, s1 = fold(params["layer1"])                        # (5,5,3,32)
    w2, s2 = fold(params["layer2"])                        # (5,5,32,64)
    w3, s3 = fold(params["layer3"])                        # (5,5,64,128)

    w1p = pad_taps(w1.reshape(1, -1, w1.shape[-1]))                    # (1,128,128)
    w2p = pad_taps(w2.reshape(KK, w2.shape[2], w2.shape[3]))           # (25,128,128)
    w3p = pad_taps(w3.reshape(KK, w3.shape[2], w3.shape[3]))           # (25,128,128)
    c3 = w3.shape[-1]
    # PyTorch flattens NCHW: fc4 input index = c*R + r -> split per position r.
    w4r = params["fc4_w"].reshape(c3, R, -1).transpose(1, 0, 2)        # (R,128,3)
    w4p = pad_taps(w4r)

    wstack = jnp.concatenate([w1p, w2p, w3p, w4p], axis=0).astype(jnp.bfloat16)
    shifts = jnp.stack([pad_vec(s1), pad_vec(s2), pad_vec(s3),
                        pad_vec(params["fc4_b"])], axis=0)             # (4,1,128)
    return {"wstack": wstack, "shifts": shifts}


# --------------------------------- forward ---------------------------------- #

@jax.jit
def qnet_forward(prepped, maps):
    n, h, w, _ = maps.shape
    H1, W1 = conv2d_size_out(h), conv2d_size_out(w)
    H2, W2 = conv2d_size_out(H1), conv2d_size_out(W1)
    H3, W3 = conv2d_size_out(H2), conv2d_size_out(W2)
    H1e, W1e = -(-H1 // 2), -(-W1 // 2)                    # parity-phase grid size

    NB = 8 if n <= 8 else 32                               # bigger M at larger batch
    n_blocks = pl.cdiv(n, NB)
    n_pad = n_blocks * NB
    patch_rows = 4 * H1e * W1e * NB                        # unique rows per block
    nw = prepped["wstack"].shape[0]

    x = jnp.pad(maps.astype(jnp.float32),
                ((0, n_pad - n), (0, 0), (0, 0), (0, 0)))
    patches = _build_patches(x, H1, W1, H1e, W1e, NB)      # (blocks*patch_rows,128)

    kernel = functools.partial(_qnet_fused_kernel, H1e=H1e, W1e=W1e,
                               H2=H2, W2=W2, H3=H3, W3=W3, NB=NB)

    out = pl.pallas_call(
        kernel,
        out_shape=jax.ShapeDtypeStruct((n_pad, LANE), jnp.float32),
        grid_spec=pltpu.PrefetchScalarGridSpec(
            num_scalar_prefetch=0,
            grid=(n_blocks,),
            in_specs=[
                pl.BlockSpec((patch_rows, LANE), lambda b: (b, 0)),    # im2col rows
                pl.BlockSpec((nw, LANE, LANE), lambda b: (0, 0, 0)),   # stacked weights
                pl.BlockSpec((4, 1, LANE), lambda b: (0, 0, 0)),       # shifts / bias
            ],
            out_specs=pl.BlockSpec((NB, LANE), lambda b: (b, 0)),
            scratch_shapes=[
                pltpu.VMEM((4, H1e, W1e, NB, LANE), jnp.float32),      # phase-major h1
                pltpu.VMEM((H2 * W2 * NB, LANE), jnp.float32),         # h2 activations
            ],
        ),
        compiler_params=pltpu.CompilerParams(
            dimension_semantics=("parallel",),             # shard blocks across TCs
            vmem_limit_bytes=32 * 1024 * 1024,
        ),
    )(patches, prepped["wstack"], prepped["shifts"])

    return out[:n, :3]                                     # drop batch/lane padding


# --------------------------- pure-JAX reference ------------------------------ #

def qnet_reference(params, maps, eps=1e-5):
    def block(x, layer):
        w, b, gamma, beta, mean, var = layer
        y = jax.lax.conv_general_dilated(
            x, w, window_strides=(STRIDE, STRIDE), padding="VALID",
            dimension_numbers=("NHWC", "HWIO", "NHWC")) + b
        y = (y - mean) / jnp.sqrt(var + eps) * gamma + beta
        return jnp.maximum(y, 0.0)

    h = block(block(block(maps, params["layer1"]), params["layer2"]),
              params["layer3"])
    h_flat = jnp.transpose(h, (0, 3, 1, 2)).reshape(h.shape[0], -1)  # NCHW flatten
    return h_flat @ params["fc4_w"] + params["fc4_b"]


# --------------------------- deterministic init ------------------------------ #

def init_params(key, feature_size=(32, 32)):
    convw = conv2d_size_out(conv2d_size_out(conv2d_size_out(feature_size[0])))
    convh = conv2d_size_out(conv2d_size_out(conv2d_size_out(feature_size[1])))
    linear_input_size = convw * convh * 128

    def conv_layer(k, cin, cout):
        kw_, kb, kg, kbe, km, kv = jax.random.split(k, 6)
        return (
            jax.random.normal(kw_, (KSIZE, KSIZE, cin, cout), jnp.float32) * 0.05,
            jax.random.normal(kb, (cout,), jnp.float32) * 0.05,
            1.0 + 0.1 * jax.random.normal(kg, (cout,), jnp.float32),
            0.1 * jax.random.normal(kbe, (cout,), jnp.float32),
            0.05 * jax.random.normal(km, (cout,), jnp.float32),
            1.0 + 0.1 * jax.nn.softplus(jax.random.normal(kv, (cout,), jnp.float32)),
        )

    k1, k2, k3, k4w, k4b = jax.random.split(key, 5)
    return {
        "layer1": conv_layer(k1, 3, 32),
        "layer2": conv_layer(k2, 32, 64),
        "layer3": conv_layer(k3, 64, 128),
        "fc4_w": jax.random.normal(k4w, (linear_input_size, 3), jnp.float32) * 0.02,
        "fc4_b": jax.random.normal(k4b, (3,), jnp.float32) * 0.02,
    }


if __name__ == "__main__":
    key = jax.random.PRNGKey(0)
    k_params, k_maps = jax.random.split(key)

    feature_size = (32, 32)          # 32 -> 14 -> 5 -> 1
    batch = 2
    params = init_params(k_params, feature_size)
    prepped = prepare_params(params, feature_size)   # one-time fold/pad/bf16/stack

    # Equivalent of `np.array([x['map'] for x in s])`: (N, H, W, 3) float32.
    maps = jax.random.uniform(
        k_maps, (batch, feature_size[0], feature_size[1], 3), jnp.float32)

    q_out = jax.block_until_ready(qnet_forward(prepped, maps))
    assert q_out.shape == (batch, 3) and q_out.dtype == jnp.float32

    q_ref = qnet_reference(params, maps)
    assert jnp.allclose(q_out, q_ref, atol=5e-2, rtol=5e-2), (q_out, q_ref)
    print("KERNEL_OK")
</pallas_src>

<mosaic_0001>
module attributes {stable_mosaic.version = 11 : i64} {
  func.func @_qnet_fused_kernel(%arg0: i32, %arg1: memref<1568x128xbf16, #tpu.memory_space<vmem>>, %arg2: memref<52x128x128xbf16, #tpu.memory_space<vmem>>, %arg3: memref<4x1x128xf32, #tpu.memory_space<vmem>>, %arg4: memref<8x128xf32, #tpu.memory_space<vmem>>, %arg5: memref<4x7x7x8x128xf32, #tpu.memory_space<vmem>>, %arg6: memref<200x128xf32, #tpu.memory_space<vmem>>) attributes {dimension_semantics = [#tpu.dimension_semantics<parallel>], iteration_bounds = array<i64: 1>, scalar_prefetch = 0 : i64, scratch_operands = 2 : i64, tpu.core_type = #tpu.core_type<tc>, window_params = [{transform_indices = @transform_0, window_bounds = array<i64: 1568, 128>}, {pipeline_mode = #tpu.pipeline_mode<synchronous>, transform_indices = @transform_1, window_bounds = array<i64: 52, 128, 128>}, {pipeline_mode = #tpu.pipeline_mode<synchronous>, transform_indices = @transform_2, window_bounds = array<i64: 4, 1, 128>}, {transform_indices = @transform_3, window_bounds = array<i64: 8, 128>}]} {
    %c0 = arith.constant 0 : index
    %c0_0 = arith.constant 0 : index
    %c0_1 = arith.constant 0 : index
    %0 = vector.load %arg3[%c0, %c0_0, %c0_1] : memref<4x1x128xf32, #tpu.memory_space<vmem>>, vector<1x1x128xf32>
    %1 = vector.shape_cast %0 : vector<1x1x128xf32> to vector<1x128xf32>
    %c1 = arith.constant 1 : index
    %c0_2 = arith.constant 0 : index
    %c0_3 = arith.constant 0 : index
    %2 = vector.load %arg3[%c1, %c0_2, %c0_3] : memref<4x1x128xf32, #tpu.memory_space<vmem>>, vector<1x1x128xf32>
    %3 = vector.shape_cast %2 : vector<1x1x128xf32> to vector<1x128xf32>
    %c2 = arith.constant 2 : index
    %c0_4 = arith.constant 0 : index
    %c0_5 = arith.constant 0 : index
    %4 = vector.load %arg3[%c2, %c0_4, %c0_5] : memref<4x1x128xf32, #tpu.memory_space<vmem>>, vector<1x1x128xf32>
    %5 = vector.shape_cast %4 : vector<1x1x128xf32> to vector<1x128xf32>
    %c3 = arith.constant 3 : index
    %c0_6 = arith.constant 0 : index
    %c0_7 = arith.constant 0 : index
    %6 = vector.load %arg3[%c3, %c0_6, %c0_7] : memref<4x1x128xf32, #tpu.memory_space<vmem>>, vector<1x1x128xf32>
    %7 = vector.shape_cast %6 : vector<1x1x128xf32> to vector<1x128xf32>
    %c0_8 = arith.constant 0 : index
    %c0_9 = arith.constant 0 : index
    %c0_10 = arith.constant 0 : index
    %8 = vector.load %arg2[%c0_8, %c0_9, %c0_10] : memref<52x128x128xbf16, #tpu.memory_space<vmem>>, vector<1x128x128xbf16>
    %9 = vector.shape_cast %8 : vector<1x128x128xbf16> to vector<128x128xbf16>
    %c0_11 = arith.constant 0 : index
    %c0_12 = arith.constant 0 : index
    %10 = vector.load %arg1[%c0_11, %c0_12] : memref<1568x128xbf16, #tpu.memory_space<vmem>>, vector<392x128xbf16>
    %cst = arith.constant dense<0.000000e+00> : vector<392x128xf32>
    %11 = tpu.matmul %10, %9, %cst {dimension_numbers = #tpu.dot_dimension_numbers<[1], [0], [0], [1], [0, 0, 1, 1], [], []>} : vector<392x128xbf16>, vector<128x128xbf16>, vector<392x128xf32> -> vector<392x128xf32>
    %12 = vector.broadcast %1 : vector<1x128xf32> to vector<392x128xf32>
    %13 = arith.addf %11, %12 : vector<392x128xf32>
    %cst_13 = arith.constant 0.000000e+00 : f32
    %14 = vector.broadcast %cst_13 : f32 to vector<392x128xf32>
    %15 = arith.maximumf %13, %14 : vector<392x128xf32>
    %16 = vector.shape_cast %15 : vector<392x128xf32> to vector<7x7x8x128xf32>
    %c0_14 = arith.constant 0 : index
    %c0_15 = arith.constant 0 : index
    %c0_16 = arith.constant 0 : index
    %c0_17 = arith.constant 0 : index
    %c0_18 = arith.constant 0 : index
    %17 = vector.load %arg5[%c0_14, %c0_15, %c0_16, %c0_17, %c0_18] : memref<4x7x7x8x128xf32, #tpu.memory_space<vmem>>, vector<1x7x7x8x128xf32>
    %18 = vector.shape_cast %17 : vector<1x7x7x8x128xf32> to vector<7x7x8x128xf32>
    %19 = vector.shape_cast %16 : vector<7x7x8x128xf32> to vector<1x7x7x8x128xf32>
    tpu.vector_store %arg5[%c0_14, %c0_15, %c0_16, %c0_17, %c0_18], %19 {strides = array<i32>} : memref<4x7x7x8x128xf32, #tpu.memory_space<vmem>>, vector<1x7x7x8x128xf32>,
    %c392 = arith.constant 392 : index
    %c0_19 = arith.constant 0 : index
    %20 = vector.load %arg1[%c392, %c0_19] : memref<1568x128xbf16, #tpu.memory_space<vmem>>, vector<392x128xbf16>
    %cst_20 = arith.constant dense<0.000000e+00> : vector<392x128xf32>
    %21 = tpu.matmul %20, %9, %cst_20 {dimension_numbers = #tpu.dot_dimension_numbers<[1], [0], [0], [1], [0, 0, 1, 1], [], []>} : vector<392x128xbf16>, vector<128x128xbf16>, vector<392x128xf32> -> vector<392x128xf32>
    %22 = vector.broadcast %1 : vector<1x128xf32> to vector<392x128xf32>
    %23 = arith.addf %21, %22 : vector<392x128xf32>
    %cst_21 = arith.constant 0.000000e+00 : f32
    %24 = vector.broadcast %cst_21 : f32 to vector<392x128xf32>
    %25 = arith.maximumf %23, %24 : vector<392x128xf32>
    %26 = vector.shape_cast %25 : vector<392x128xf32> to vector<7x7x8x128xf32>
    %c1_22 = arith.constant 1 : index
    %c0_23 = arith.constant 0 : index
    %c0_24 = arith.constant 0 : index
    %c0_25 = arith.constant 0 : index
    %c0_26 = arith.constant 0 : index
    %27 = vector.load %arg5[%c1_22, %c0_23, %c0_24, %c0_25, %c0_26] : memref<4x7x7x8x128xf32, #tpu.memory_space<vmem>>, vector<1x7x7x8x128xf32>
    %28 = vector.shape_cast %27 : vector<1x7x7x8x128xf32> to vector<7x7x8x128xf32>
    %29 = vector.shape_cast %26 : vector<7x7x8x128xf32> to vector<1x7x7x8x128xf32>
    tpu.vector_store %arg5[%c1_22, %c0_23, %c0_24, %c0_25, %c0_26], %29 {strides = array<i32>} : memref<4x7x7x8x128xf32, #tpu.memory_space<vmem>>, vector<1x7x7x8x128xf32>,
    %c784 = arith.constant 784 : index
    %c0_27 = arith.constant 0 : index
    %30 = vector.load %arg1[%c784, %c0_27] : memref<1568x128xbf16, #tpu.memory_space<vmem>>, vector<392x128xbf16>
    %cst_28 = arith.constant dense<0.000000e+00> : vector<392x128xf32>
    %31 = tpu.matmul %30, %9, %cst_28 {dimension_numbers = #tpu.dot_dimension_numbers<[1], [0], [0], [1], [0, 0, 1, 1], [], []>} : vector<392x128xbf16>, vector<128x128xbf16>, vector<392x128xf32> -> vector<392x128xf32>
    %32 = vector.broadcast %1 : vector<1x128xf32> to vector<392x128xf32>
    %33 = arith.addf %31, %32 : vector<392x128xf32>
    %cst_29 = arith.constant 0.000000e+00 : f32
    %34 = vector.broadcast %cst_29 : f32 to vector<392x128xf32>
    %35 = arith.maximumf %33, %34 : vector<392x128xf32>
    %36 = vector.shape_cast %35 : vector<392x128xf32> to vector<7x7x8x128xf32>
    %c2_30 = arith.constant 2 : index
    %c0_31 = arith.constant 0 : index
    %c0_32 = arith.constant 0 : index
    %c0_33 = arith.constant 0 : index
    %c0_34 = arith.constant 0 : index
    %37 = vector.load %arg5[%c2_30, %c0_31, %c0_32, %c0_33, %c0_34] : memref<4x7x7x8x128xf32, #tpu.memory_space<vmem>>, vector<1x7x7x8x128xf32>
    %38 = vector.shape_cast %37 : vector<1x7x7x8x128xf32> to vector<7x7x8x128xf32>
    %39 = vector.shape_cast %36 : vector<7x7x8x128xf32> to vector<1x7x7x8x128xf32>
    tpu.vector_store %arg5[%c2_30, %c0_31, %c0_32, %c0_33, %c0_34], %39 {strides = array<i32>} : memref<4x7x7x8x128xf32, #tpu.memory_space<vmem>>, vector<1x7x7x8x128xf32>,
    %c1176 = arith.constant 1176 : index
    %c0_35 = arith.constant 0 : index
    %40 = vector.load %arg1[%c1176, %c0_35] : memref<1568x128xbf16, #tpu.memory_space<vmem>>, vector<392x128xbf16>
    %cst_36 = arith.constant dense<0.000000e+00> : vector<392x128xf32>
    %41 = tpu.matmul %40, %9, %cst_36 {dimension_numbers = #tpu.dot_dimension_numbers<[1], [0], [0], [1], [0, 0, 1, 1], [], []>} : vector<392x128xbf16>, vector<128x128xbf16>, vector<392x128xf32> -> vector<392x128xf32>
    %42 = vector.broadcast %1 : vector<1x128xf32> to vector<392x128xf32>
    %43 = arith.addf %41, %42 : vector<392x128xf32>
    %cst_37 = arith.constant 0.000000e+00 : f32
    %44 = vector.broadcast %cst_37 : f32 to vector<392x128xf32>
    %45 = arith.maximumf %43, %44 : vector<392x128xf32>
    %46 = vector.shape_cast %45 : vector<392x128xf32> to vector<7x7x8x128xf32>
    %c3_38 = arith.constant 3 : index
    %c0_39 = arith.constant 0 : index
    %c0_40 = arith.constant 0 : index
    %c0_41 = arith.constant 0 : index
    %c0_42 = arith.constant 0 : index
    %47 = vector.load %arg5[%c3_38, %c0_39, %c0_40, %c0_41, %c0_42] : memref<4x7x7x8x128xf32, #tpu.memory_space<vmem>>, vector<1x7x7x8x128xf32>
    %48 = vector.shape_cast %47 : vector<1x7x7x8x128xf32> to vector<7x7x8x128xf32>
    %49 = vector.shape_cast %46 : vector<7x7x8x128xf32> to vector<1x7x7x8x128xf32>
    tpu.vector_store %arg5[%c3_38, %c0_39, %c0_40, %c0_41, %c0_42], %49 {strides = array<i32>} : memref<4x7x7x8x128xf32, #tpu.memory_space<vmem>>, vector<1x7x7x8x128xf32>,
    %cst_43 = arith.constant 0.000000e+00 : f32
    %50 = vector.broadcast %cst_43 : f32 to vector<120x128xf32>
    %c0_44 = arith.constant 0 : index
    %c0_45 = arith.constant 0 : index
    %c0_46 = arith.constant 0 : index
    %c0_47 = arith.constant 0 : index
    %c0_48 = arith.constant 0 : index
    %51 = vector.load %arg5[%c0_44, %c0_45, %c0_46, %c0_47, %c0_48] : memref<4x7x7x8x128xf32, #tpu.memory_space<vmem>>, vector<1x3x5x8x128xf32>
    %52 = vector.shape_cast %51 : vector<1x3x5x8x128xf32> to vector<3x5x8x128xf32>
    %53 = vector.shape_cast %52 : vector<3x5x8x128xf32> to vector<120x128xf32>
    %54 = arith.truncf %53 : vector<120x128xf32> to vector<120x128xbf16>
    %c1_49 = arith.constant 1 : index
    %c0_50 = arith.constant 0 : index
    %c0_51 = arith.constant 0 : index
    %55 = vector.load %arg2[%c1_49, %c0_50, %c0_51] : memref<52x128x128xbf16, #tpu.memory_space<vmem>>, vector<1x128x128xbf16>
    %56 = vector.shape_cast %55 : vector<1x128x128xbf16> to vector<128x128xbf16>
    %cst_52 = arith.constant dense<0.000000e+00> : vector<120x128xf32>
    %57 = tpu.matmul %54, %56, %cst_52 {dimension_numbers = #tpu.dot_dimension_numbers<[1], [0], [0], [1], [0, 0, 1, 1], [], []>} : vector<120x128xbf16>, vector<128x128xbf16>, vector<120x128xf32> -> vector<120x128xf32>
    %58 = arith.addf %50, %57 : vector<120x128xf32>
    %c1_53 = arith.constant 1 : index
    %c0_54 = arith.constant 0 : index
    %c0_55 = arith.constant 0 : index
    %c0_56 = arith.constant 0 : index
    %c0_57 = arith.constant 0 : index
    %59 = vector.load %arg5[%c1_53, %c0_54, %c0_55, %c0_56, %c0_57] : memref<4x7x7x8x128xf32, #tpu.memory_space<vmem>>, vector<1x3x5x8x128xf32>
    %60 = vector.shape_cast %59 : vector<1x3x5x8x128xf32> to vector<3x5x8x128xf32>
    %61 = vector.shape_cast %60 : vector<3x5x8x128xf32> to vector<120x128xf32>
    %62 = arith.truncf %61 : vector<120x128xf32> to vector<120x128xbf16>
    %c2_58 = arith.constant 2 : index
    %c0_59 = arith.constant 0 : index
    %c0_60 = arith.constant 0 : index
    %63 = vector.load %arg2[%c2_58, %c0_59, %c0_60] : memref<52x128x128xbf16, #tpu.memory_space<vmem>>, vector<1x128x128xbf16>
    %64 = vector.shape_cast %63 : vector<1x128x128xbf16> to vector<128x128xbf16>
    %cst_61 = arith.constant dense<0.000000e+00> : vector<120x128xf32>
    %65 = tpu.matmul %62, %64, %cst_61 {dimension_numbers = #tpu.dot_dimension_numbers<[1], [0], [0], [1], [0, 0, 1, 1], [], []>} : vector<120x128xbf16>, vector<128x128xbf16>, vector<120x128xf32> -> vector<120x128xf32>
    %66 = arith.addf %58, %65 : vector<120x128xf32>
    %c0_62 = arith.constant 0 : index
    %c0_63 = arith.constant 0 : index
    %c1_64 = arith.constant 1 : index
    %c0_65 = arith.constant 0 : index
    %c0_66 = arith.constant 0 : index
    %67 = vector.load %arg5[%c0_62, %c0_63, %c1_64, %c0_65, %c0_66] : memref<4x7x7x8x128xf32, #tpu.memory_space<vmem>>, vector<1x3x5x8x128xf32>
    %68 = vector.shape_cast %67 : vector<1x3x5x8x128xf32> to vector<3x5x8x128xf32>
    %69 = vector.shape_cast %68 : vector<3x5x8x128xf32> to vector<120x128xf32>
    %70 = arith.truncf %69 : vector<120x128xf32> to vector<120x128xbf16>
    %c3_67 = arith.constant 3 : index
    %c0_68 = arith.constant 0 : index
    %c0_69 = arith.constant 0 : index
    %71 = vector.load %arg2[%c3_67, %c0_68, %c0_69] : memref<52x128x128xbf16, #tpu.memory_space<vmem>>, vector<1x128x128xbf16>
    %72 = vector.shape_cast %71 : vector<1x128x128xbf16> to vector<128x128xbf16>
    %cst_70 = arith.constant dense<0.000000e+00> : vector<120x128xf32>
    %73 = tpu.matmul %70, %72, %cst_70 {dimension_numbers = #tpu.dot_dimension_numbers<[1], [0], [0], [1], [0, 0, 1, 1], [], []>} : vector<120x128xbf16>, vector<128x128xbf16>, vector<120x128xf32> -> vector<120x128xf32>
    %74 = arith.addf %66, %73 : vector<120x128xf32>
    %c1_71 = arith.constant 1 : index
    %c0_72 = arith.constant 0 : index
    %c1_73 = arith.constant 1 : index
    %c0_74 = arith.constant 0 : index
    %c0_75 = arith.constant 0 : index
    %75 = vector.load %arg5[%c1_71, %c0_72, %c1_73, %c0_74, %c0_75] : memref<4x7x7x8x128xf32, #tpu.memory_space<vmem>>, vector<1x3x5x8x128xf32>
    %76 = vector.shape_cast %75 : vector<1x3x5x8x128xf32> to vector<3x5x8x128xf32>
    %77 = vector.shape_cast %76 : vector<3x5x8x128xf32> to vector<120x128xf32>
    %78 = arith.truncf %77 : vector<120x128xf32> to vector<120x128xbf16>
    %c4 = arith.constant 4 : index
    %c0_76 = arith.constant 0 : index
    %c0_77 = arith.constant 0 : index
    %79 = vector.load %arg2[%c4, %c0_76, %c0_77] : memref<52x128x128xbf16, #tpu.memory_space<vmem>>, vector<1x128x128xbf16>
    %80 = vector.shape_cast %79 : vector<1x128x128xbf16> to vector<128x128xbf16>
    %cst_78 = arith.constant dense<0.000000e+00> : vector<120x128xf32>
    %81 = tpu.matmul %78, %80, %cst_78 {dimension_numbers = #tpu.dot_dimension_numbers<[1], [0], [0], [1], [0, 0, 1, 1], [], []>} : vector<120x128xbf16>, vector<128x128xbf16>, vector<120x128xf32> -> vector<120x128xf32>
    %82 = arith.addf %74, %81 : vector<120x128xf32>
    %c0_79 = arith.constant 0 : index
    %c0_80 = arith.constant 0 : index
    %c2_81 = arith.constant 2 : index
    %c0_82 = arith.constant 0 : index
    %c0_83 = arith.constant 0 : index
    %83 = vector.load %arg5[%c0_79, %c0_80, %c2_81, %c0_82, %c0_83] : memref<4x7x7x8x128xf32, #tpu.memory_space<vmem>>, vector<1x3x5x8x128xf32>
    %84 = vector.shape_cast %83 : vector<1x3x5x8x128xf32> to vector<3x5x8x128xf32>
    %85 = vector.shape_cast %84 : vector<3x5x8x128xf32> to vector<120x128xf32>
    %86 = arith.truncf %85 : vector<120x128xf32> to vector<120x128xbf16>
    %c5 = arith.constant 5 : index
    %c0_84 = arith.constant 0 : index
    %c0_85 = arith.constant 0 : index
    %87 = vector.load %arg2[%c5, %c0_84, %c0_85] : memref<52x128x128xbf16, #tpu.memory_space<vmem>>, vector<1x128x128xbf16>
    %88 = vector.shape_cast %87 : vector<1x128x128xbf16> to vector<128x128xbf16>
    %cst_86 = arith.constant dense<0.000000e+00> : vector<120x128xf32>
    %89 = tpu.matmul %86, %88, %cst_86 {dimension_numbers = #tpu.dot_dimension_numbers<[1], [0], [0], [1], [0, 0, 1, 1], [], []>} : vector<120x128xbf16>, vector<128x128xbf16>, vector<120x128xf32> -> vector<120x128xf32>
    %90 = arith.addf %82, %89 : vector<120x128xf32>
    %c2_87 = arith.constant 2 : index
    %c0_88 = arith.constant 0 : index
    %c0_89 = arith.constant 0 : index
    %c0_90 = arith.constant 0 : index
    %c0_91 = arith.constant 0 : index
    %91 = vector.load %arg5[%c2_87, %c0_88, %c0_89, %c0_90, %c0_91] : memref<4x7x7x8x128xf32, #tpu.memory_space<vmem>>, vector<1x3x5x8x128xf32>
    %92 = vector.shape_cast %91 : vector<1x3x5x8x128xf32> to vector<3x5x8x128xf32>
    %93 = vector.shape_cast %92 : vector<3x5x8x128xf32> to vector<120x128xf32>
    %94 = arith.truncf %93 : vector<120x128xf32> to vector<120x128xbf16>
    %c6 = arith.constant 6 : index
    %c0_92 = arith.constant 0 : index
    %c0_93 = arith.constant 0 : index
    %95 = vector.load %arg2[%c6, %c0_92, %c0_93] : memref<52x128x128xbf16, #tpu.memory_space<vmem>>, vector<1x128x128xbf16>
    %96 = vector.shape_cast %95 : vector<1x128x128xbf16> to vector<128x128xbf16>
    %cst_94 = arith.constant dense<0.000000e+00> : vector<120x128xf32>
    %97 = tpu.matmul %94, %96, %cst_94 {dimension_numbers = #tpu.dot_dimension_numbers<[1], [0], [0], [1], [0, 0, 1, 1], [], []>} : vector<120x128xbf16>, vector<128x128xbf16>, vector<120x128xf32> -> vector<120x128xf32>
    %98 = arith.addf %90, %97 : vector<120x128xf32>
    %c3_95 = arith.constant 3 : index
    %c0_96 = arith.constant 0 : index
    %c0_97 = arith.constant 0 : index
    %c0_98 = arith.constant 0 : index
    %c0_99 = arith.constant 0 : index
    %99 = vector.load %arg5[%c3_95, %c0_96, %c0_97, %c0_98, %c0_99] : memref<4x7x7x8x128xf32, #tpu.memory_space<vmem>>, vector<1x3x5x8x128xf32>
    %100 = vector.shape_cast %99 : vector<1x3x5x8x128xf32> to vector<3x5x8x128xf32>
    %101 = vector.shape_cast %100 : vector<3x5x8x128xf32> to vector<120x128xf32>
    %102 = arith.truncf %101 : vector<120x128xf32> to vector<120x128xbf16>
    %c7 = arith.constant 7 : index
    %c0_100 = arith.constant 0 : index
    %c0_101 = arith.constant 0 : index
    %103 = vector.load %arg2[%c7, %c0_100, %c0_101] : memref<52x128x128xbf16, #tpu.memory_space<vmem>>, vector<1x128x128xbf16>
    %104 = vector.shape_cast %103 : vector<1x128x128xbf16> to vector<128x128xbf16>
    %cst_102 = arith.constant dense<0.000000e+00> : vector<120x128xf32>
    %105 = tpu.matmul %102, %104, %cst_102 {dimension_numbers = #tpu.dot_dimension_numbers<[1], [0], [0], [1], [0, 0, 1, 1], [], []>} : vector<120x128xbf16>, vector<128x128xbf16>, vector<120x128xf32> -> vector<120x128xf32>
    %106 = arith.addf %98, %105 : vector<120x128xf32>
    %c2_103 = arith.constant 2 : index
    %c0_104 = arith.constant 0 : index
    %c1_105 = arith.constant 1 : index
    %c0_106 = arith.constant 0 : index
    %c0_107 = arith.constant 0 : index
    %107 = vector.load %arg5[%c2_103, %c0_104, %c1_105, %c0_106, %c0_107] : memref<4x7x7x8x128xf32, #tpu.memory_space<vmem>>, vector<1x3x5x8x128xf32>
    %108 = vector.shape_cast %107 : vector<1x3x5x8x128xf32> to vector<3x5x8x128xf32>
    %109 = vector.shape_cast %108 : vector<3x5x8x128xf32> to vector<120x128xf32>
    %110 = arith.truncf %109 : vector<120x128xf32> to vector<120x128xbf16>
    %c8 = arith.constant 8 : index
    %c0_108 = arith.constant 0 : index
    %c0_109 = arith.constant 0 : index
    %111 = vector.load %arg2[%c8, %c0_108, %c0_109] : memref<52x128x128xbf16, #tpu.memory_space<vmem>>, vector<1x128x128xbf16>
    %112 = vector.shape_cast %111 : vector<1x128x128xbf16> to vector<128x128xbf16>
    %cst_110 = arith.constant dense<0.000000e+00> : vector<120x128xf32>
    %113 = tpu.matmul %110, %112, %cst_110 {dimension_numbers = #tpu.dot_dimension_numbers<[1], [0], [0], [1], [0, 0, 1, 1], [], []>} : vector<120x128xbf16>, vector<128x128xbf16>, vector<120x128xf32> -> vector<120x128xf32>
    %114 = arith.addf %106, %113 : vector<120x128xf32>
    %c3_111 = arith.constant 3 : index
    %c0_112 = arith.constant 0 : index
    %c1_113 = arith.constant 1 : index
    %c0_114 = arith.constant 0 : index
    %c0_115 = arith.constant 0 : index
    %115 = vector.load %arg5[%c3_111, %c0_112, %c1_113, %c0_114, %c0_115] : memref<4x7x7x8x128xf32, #tpu.memory_space<vmem>>, vector<1x3x5x8x128xf32>
    %116 = vector.shape_cast %115 : vector<1x3x5x8x128xf32> to vector<3x5x8x128xf32>
    %117 = vector.shape_cast %116 : vector<3x5x8x128xf32> to vector<120x128xf32>
    %118 = arith.truncf %117 : vector<120x128xf32> to vector<120x128xbf16>
    %c9 = arith.constant 9 : index
    %c0_116 = arith.constant 0 : index
    %c0_117 = arith.constant 0 : index
    %119 = vector.load %arg2[%c9, %c0_116, %c0_117] : memref<52x128x128xbf16, #tpu.memory_space<vmem>>, vector<1x128x128xbf16>
    %120 = vector.shape_cast %119 : vector<1x128x128xbf16> to vector<128x128xbf16>
    %cst_118 = arith.constant dense<0.000000e+00> : vector<120x128xf32>
    %121 = tpu.matmul %118, %120, %cst_118 {dimension_numbers = #tpu.dot_dimension_numbers<[1], [0], [0], [1], [0, 0, 1, 1], [], []>} : vector<120x128xbf16>, vector<128x128xbf16>, vector<120x128xf32> -> vector<120x128xf32>
    %122 = arith.addf %114, %121 : vector<120x128xf32>
    %c2_119 = arith.constant 2 : index
    %c0_120 = arith.constant 0 : index
    %c2_121 = arith.constant 2 : index
    %c0_122 = arith.constant 0 : index
    %c0_123 = arith.constant 0 : index
    %123 = vector.load %arg5[%c2_119, %c0_120, %c2_121, %c0_122, %c0_123] : memref<4x7x7x8x128xf32, #tpu.memory_space<vmem>>, vector<1x3x5x8x128xf32>
    %124 = vector.shape_cast %123 : vector<1x3x5x8x128xf32> to vector<3x5x8x128xf32>
    %125 = vector.shape_cast %124 : vector<3x5x8x128xf32> to vector<120x128xf32>
    %126 = arith.truncf %125 : vector<120x128xf32> to vector<120x128xbf16>
    %c10 = arith.constant 10 : index
    %c0_124 = arith.constant 0 : index
    %c0_125 = arith.constant 0 : index
    %127 = vector.load %arg2[%c10, %c0_124, %c0_125] : memref<52x128x128xbf16, #tpu.memory_space<vmem>>, vector<1x128x128xbf16>
    %128 = vector.shape_cast %127 : vector<1x128x128xbf16> to vector<128x128xbf16>
    %cst_126 = arith.constant dense<0.000000e+00> : vector<120x128xf32>
    %129 = tpu.matmul %126, %128, %cst_126 {dimension_numbers = #tpu.dot_dimension_numbers<[1], [0], [0], [1], [0, 0, 1, 1], [], []>} : vector<120x128xbf16>, vector<128x128xbf16>, vector<120x128xf32> -> vector<120x128xf32>
    %130 = arith.addf %122, %129 : vector<120x128xf32>
    %c0_127 = arith.constant 0 : index
    %c1_128 = arith.constant 1 : index
    %c0_129 = arith.constant 0 : index
    %c0_130 = arith.constant 0 : index
    %c0_131 = arith.constant 0 : index
    %131 = vector.load %arg5[%c0_127, %c1_128, %c0_129, %c0_130, %c0_131] : memref<4x7x7x8x128xf32, #tpu.memory_space<vmem>>, vector<1x3x5x8x128xf32>
    %132 = vector.shape_cast %131 : vector<1x3x5x8x128xf32> to vector<3x5x8x128xf32>
    %133 = vector.shape_cast %132 : vector<3x5x8x128xf32> to vector<120x128xf32>
    %134 = arith.truncf %133 : vector<120x128xf32> to vector<120x128xbf16>
    %c11 = arith.constant 11 : index
    %c0_132 = arith.constant 0 : index
    %c0_133 = arith.constant 0 : index
    %135 = vector.load %arg2[%c11, %c0_132, %c0_133] : memref<52x128x128xbf16, #tpu.memory_space<vmem>>, vector<1x128x128xbf16>
    %136 = vector.shape_cast %135 : vector<1x128x128xbf16> to vector<128x128xbf16>
    %cst_134 = arith.constant dense<0.000000e+00> : vector<120x128xf32>
    %137 = tpu.matmul %134, %136, %cst_134 {dimension_numbers = #tpu.dot_dimension_numbers<[1], [0], [0], [1], [0, 0, 1, 1], [], []>} : vector<120x128xbf16>, vector<128x128xbf16>, vector<120x128xf32> -> vector<120x128xf32>
    %138 = arith.addf %130, %137 : vector<120x128xf32>
    %c1_135 = arith.constant 1 : index
    %c1_136 = arith.constant 1 : index
    %c0_137 = arith.constant 0 : index
    %c0_138 = arith.constant 0 : index
    %c0_139 = arith.constant 0 : index
    %139 = vector.load %arg5[%c1_135, %c1_136, %c0_137, %c0_138, %c0_139] : memref<4x7x7x8x128xf32, #tpu.memory_space<vmem>>, vector<1x3x5x8x128xf32>
    %140 = vector.shape_cast %139 : vector<1x3x5x8x128xf32> to vector<3x5x8x128xf32>
    %141 = vector.shape_cast %140 : vector<3x5x8x128xf32> to vector<120x128xf32>
    %142 = arith.truncf %141 : vector<120x128xf32> to vector<120x128xbf16>
    %c12 = arith.constant 12 : index
    %c0_140 = arith.constant 0 : index
    %c0_141 = arith.constant 0 : index
    %143 = vector.load %arg2[%c12, %c0_140, %c0_141] : memref<52x128x128xbf16, #tpu.memory_space<vmem>>, vector<1x128x128xbf16>
    %144 = vector.shape_cast %143 : vector<1x128x128xbf16> to vector<128x128xbf16>
    %cst_142 = arith.constant dense<0.000000e+00> : vector<120x128xf32>
    %145 = tpu.matmul %142, %144, %cst_142 {dimension_numbers = #tpu.dot_dimension_numbers<[1], [0], [0], [1], [0, 0, 1, 1], [], []>} : vector<120x128xbf16>, vector<128x128xbf16>, vector<120x128xf32> -> vector<120x128xf32>
    %146 = arith.addf %138, %145 : vector<120x128xf32>
    %c0_143 = arith.constant 0 : index
    %c1_144 = arith.constant 1 : index
    %c1_145 = arith.constant 1 : index
    %c0_146 = arith.constant 0 : index
    %c0_147 = arith.constant 0 : index
    %147 = vector.load %arg5[%c0_143, %c1_144, %c1_145, %c0_146, %c0_147] : memref<4x7x7x8x128xf32, #tpu.memory_space<vmem>>, vector<1x3x5x8x128xf32>
    %148 = vector.shape_cast %147 : vector<1x3x5x8x128xf32> to vector<3x5x8x128xf32>
    %149 = vector.shape_cast %148 : vector<3x5x8x128xf32> to vector<120x128xf32>
    %150 = arith.truncf %149 : vector<120x128xf32> to vector<120x128xbf16>
    %c13 = arith.constant 13 : index
    %c0_148 = arith.constant 0 : index
    %c0_149 = arith.constant 0 : index
    %151 = vector.load %arg2[%c13, %c0_148, %c0_149] : memref<52x128x128xbf16, #tpu.memory_space<vmem>>, vector<1x128x128xbf16>
    %152 = vector.shape_cast %151 : vector<1x128x128xbf16> to vector<128x128xbf16>
    %cst_150 = arith.constant dense<0.000000e+00> : vector<120x128xf32>
    %153 = tpu.matmul %150, %152, %cst_150 {dimension_numbers = #tpu.dot_dimension_numbers<[1], [0], [0], [1], [0, 0, 1, 1], [], []>} : vector<120x128xbf16>, vector<128x128xbf16>, vector<120x128xf32> -> vector<120x128xf32>
    %154 = arith.addf %146, %153 : vector<120x128xf32>
    %c1_151 = arith.constant 1 : index
    %c1_152 = arith.constant 1 : index
    %c1_153 = arith.constant 1 : index
    %c0_154 = arith.constant 0 : index
    %c0_155 = arith.constant 0 : index
    %155 = vector.load %arg5[%c1_151, %c1_152, %c1_153, %c0_154, %c0_155] : memref<4x7x7x8x128xf32, #tpu.memory_space<vmem>>, vector<1x3x5x8x128xf32>
    %156 = vector.shape_cast %155 : vector<1x3x5x8x128xf32> to vector<3x5x8x128xf32>
    %157 = vector.shape_cast %156 : vector<3x5x8x128xf32> to vector<120x128xf32>
    %158 = arith.truncf %157 : vector<120x128xf32> to vector<120x128xbf16>
    %c14 = arith.constant 14 : index
    %c0_156 = arith.constant 0 : index
    %c0_157 = arith.constant 0 : index
    %159 = vector.load %arg2[%c14, %c0_156, %c0_157] : memref<52x128x128xbf16, #tpu.memory_space<vmem>>, vector<1x128x128xbf16>
    %160 = vector.shape_cast %159 : vector<1x128x128xbf16> to vector<128x128xbf16>
    %cst_158 = arith.constant dense<0.000000e+00> : vector<120x128xf32>
    %161 = tpu.matmul %158, %160, %cst_158 {dimension_numbers = #tpu.dot_dimension_numbers<[1], [0], [0], [1], [0, 0, 1, 1], [], []>} : vector<120x128xbf16>, vector<128x128xbf16>, vector<120x128xf32> -> vector<120x128xf32>
    %162 = arith.addf %154, %161 : vector<120x128xf32>
    %c0_159 = arith.constant 0 : index
    %c1_160 = arith.constant 1 : index
    %c2_161 = arith.constant 2 : index
    %c0_162 = arith.constant 0 : index
    %c0_163 = arith.constant 0 : index
    %163 = vector.load %arg5[%c0_159, %c1_160, %c2_161, %c0_162, %c0_163] : memref<4x7x7x8x128xf32, #tpu.memory_space<vmem>>, vector<1x3x5x8x128xf32>
    %164 = vector.shape_cast %163 : vector<1x3x5x8x128xf32> to vector<3x5x8x128xf32>
    %165 = vector.shape_cast %164 : vector<3x5x8x128xf32> to vector<120x128xf32>
    %166 = arith.truncf %165 : vector<120x128xf32> to vector<120x128xbf16>
    %c15 = arith.constant 15 : index
    %c0_164 = arith.constant 0 : index
    %c0_165 = arith.constant 0 : index
    %167 = vector.load %arg2[%c15, %c0_164, %c0_165] : memref<52x128x128xbf16, #tpu.memory_space<vmem>>, vector<1x128x128xbf16>
    %168 = vector.shape_cast %167 : vector<1x128x128xbf16> to vector<128x128xbf16>
    %cst_166 = arith.constant dense<0.000000e+00> : vector<120x128xf32>
    %169 = tpu.matmul %166, %168, %cst_166 {dimension_numbers = #tpu.dot_dimension_numbers<[1], [0], [0], [1], [0, 0, 1, 1], [], []>} : vector<120x128xbf16>, vector<128x128xbf16>, vector<120x128xf32> -> vector<120x128xf32>
    %170 = arith.addf %162, %169 : vector<120x128xf32>
    %c2_167 = arith.constant 2 : index
    %c1_168 = arith.constant 1 : index
    %c0_169 = arith.constant 0 : index
    %c0_170 = arith.constant 0 : index
    %c0_171 = arith.constant 0 : index
    %171 = vector.load %arg5[%c2_167, %c1_168, %c0_169, %c0_170, %c0_171] : memref<4x7x7x8x128xf32, #tpu.memory_space<vmem>>, vector<1x3x5x8x128xf32>
    %172 = vector.shape_cast %171 : vector<1x3x5x8x128xf32> to vector<3x5x8x128xf32>
    %173 = vector.shape_cast %172 : vector<3x5x8x128xf32> to vector<120x128xf32>
    %174 = arith.truncf %173 : vector<120x128xf32> to vector<120x128xbf16>
    %c16 = arith.constant 16 : index
    %c0_172 = arith.constant 0 : index
    %c0_173 = arith.constant 0 : index
    %175 = vector.load %arg2[%c16, %c0_172, %c0_173] : memref<52x128x128xbf16, #tpu.memory_space<vmem>>, vector<1x128x128xbf16>
    %176 = vector.shape_cast %175 : vector<1x128x128xbf16> to vector<128x128xbf16>
    %cst_174 = arith.constant dense<0.000000e+00> : vector<120x128xf32>
    %177 = tpu.matmul %174, %176, %cst_174 {dimension_numbers = #tpu.dot_dimension_numbers<[1], [0], [0], [1], [0, 0, 1, 1], [], []>} : vector<120x128xbf16>, vector<128x128xbf16>, vector<120x128xf32> -> vector<120x128xf32>
    %178 = arith.addf %170, %177 : vector<120x128xf32>
    %c3_175 = arith.constant 3 : index
    %c1_176 = arith.constant 1 : index
    %c0_177 = arith.constant 0 : index
    %c0_178 = arith.constant 0 : index
    %c0_179 = arith.constant 0 : index
    %179 = vector.load %arg5[%c3_175, %c1_176, %c0_177, %c0_178, %c0_179] : memref<4x7x7x8x128xf32, #tpu.memory_space<vmem>>, vector<1x3x5x8x128xf32>
    %180 = vector.shape_cast %179 : vector<1x3x5x8x128xf32> to vector<3x5x8x128xf32>
    %181 = vector.shape_cast %180 : vector<3x5x8x128xf32> to vector<120x128xf32>
    %182 = arith.truncf %181 : vector<120x128xf32> to vector<120x128xbf16>
    %c17 = arith.constant 17 : index
    %c0_180 = arith.constant 0 : index
    %c0_181 = arith.constant 0 : index
    %183 = vector.load %arg2[%c17, %c0_180, %c0_181] : memref<52x128x128xbf16, #tpu.memory_space<vmem>>, vector<1x128x128xbf16>
    %184 = vector.shape_cast %183 : vector<1x128x128xbf16> to vector<128x128xbf16>
    %cst_182 = arith.constant dense<0.000000e+00> : vector<120x128xf32>
    %185 = tpu.matmul %182, %184, %cst_182 {dimension_numbers = #tpu.dot_dimension_numbers<[1], [0], [0], [1], [0, 0, 1, 1], [], []>} : vector<120x128xbf16>, vector<128x128xbf16>, vector<120x128xf32> -> vector<120x128xf32>
    %186 = arith.addf %178, %185 : vector<120x128xf32>
    %c2_183 = arith.constant 2 : index
    %c1_184 = arith.constant 1 : index
    %c1_185 = arith.constant 1 : index
    %c0_186 = arith.constant 0 : index
    %c0_187 = arith.constant 0 : index
    %187 = vector.load %arg5[%c2_183, %c1_184, %c1_185, %c0_186, %c0_187] : memref<4x7x7x8x128xf32, #tpu.memory_space<vmem>>, vector<1x3x5x8x128xf32>
    %188 = vector.shape_cast %187 : vector<1x3x5x8x128xf32> to vector<3x5x8x128xf32>
    %189 = vector.shape_cast %188 : vector<3x5x8x128xf32> to vector<120x128xf32>
    %190 = arith.truncf %189 : vector<120x128xf32> to vector<120x128xbf16>
    %c18 = arith.constant 18 : index
    %c0_188 = arith.constant 0 : index
    %c0_189 = arith.constant 0 : index
    %191 = vector.load %arg2[%c18, %c0_188, %c0_189] : memref<52x128x128xbf16, #tpu.memory_space<vmem>>, vector<1x128x128xbf16>
    %192 = vector.shape_cast %191 : vector<1x128x128xbf16> to vector<128x128xbf16>
    %cst_190 = arith.constant dense<0.000000e+00> : vector<120x128xf32>
    %193 = tpu.matmul %190, %192, %cst_190 {dimension_numbers = #tpu.dot_dimension_numbers<[1], [0], [0], [1], [0, 0, 1, 1], [], []>} : vector<120x128xbf16>, vector<128x128xbf16>, vector<120x128xf32> -> vector<120x128xf32>
    %194 = arith.addf %186, %193 : vector<120x128xf32>
    %c3_191 = arith.constant 3 : index
    %c1_192 = arith.constant 1 : index
    %c1_193 = arith.constant 1 : index
    %c0_194 = arith.constant 0 : index
    %c0_195 = arith.constant 0 : index
    %195 = vector.load %arg5[%c3_191, %c1_192, %c1_193, %c0_194, %c0_195] : memref<4x7x7x8x128xf32, #tpu.memory_space<vmem>>, vector<1x3x5x8x128xf32>
    %196 = vector.shape_cast %195 : vector<1x3x5x8x128xf32> to vector<3x5x8x128xf32>
    %197 = vector.shape_cast %196 : vector<3x5x8x128xf32> to vector<120x128xf32>
    %198 = arith.truncf %197 : vector<120x128xf32> to vector<120x128xbf16>
    %c19 = arith.constant 19 : index
    %c0_196 = arith.constant 0 : index
    %c0_197 = arith.constant 0 : index
    %199 = vector.load %arg2[%c19, %c0_196, %c0_197] : memref<52x128x128xbf16, #tpu.memory_space<vmem>>, vector<1x128x128xbf16>
    %200 = vector.shape_cast %199 : vector<1x128x128xbf16> to vector<128x128xbf16>
    %cst_198 = arith.constant dense<0.000000e+00> : vector<120x128xf32>
    %201 = tpu.matmul %198, %200, %cst_198 {dimension_numbers = #tpu.dot_dimension_numbers<[1], [0], [0], [1], [0, 0, 1, 1], [], []>} : vector<120x128xbf16>, vector<128x128xbf16>, vector<120x128xf32> -> vector<120x128xf32>
    %202 = arith.addf %194, %201 : vector<120x128xf32>
    %c2_199 = arith.constant 2 : index
    %c1_200 = arith.constant 1 : index
    %c2_201 = arith.constant 2 : index
    %c0_202 = arith.constant 0 : index
    %c0_203 = arith.constant 0 : index
    %203 = vector.load %arg5[%c2_199, %c1_200, %c2_201, %c0_202, %c0_203] : memref<4x7x7x8x128xf32, #tpu.memory_space<vmem>>, vector<1x3x5x8x128xf32>
    %204 = vector.shape_cast %203 : vector<1x3x5x8x128xf32> to vector<3x5x8x128xf32>
    %205 = vector.shape_cast %204 : vector<3x5x8x128xf32> to vector<120x128xf32>
    %206 = arith.truncf %205 : vector<120x128xf32> to vector<120x128xbf16>
    %c20 = arith.constant 20 : index
    %c0_204 = arith.constant 0 : index
    %c0_205 = arith.constant 0 : index
    %207 = vector.load %arg2[%c20, %c0_204, %c0_205] : memref<52x128x128xbf16, #tpu.memory_space<vmem>>, vector<1x128x128xbf16>
    %208 = vector.shape_cast %207 : vector<1x128x128xbf16> to vector<128x128xbf16>
    %cst_206 = arith.constant dense<0.000000e+00> : vector<120x128xf32>
    %209 = tpu.matmul %206, %208, %cst_206 {dimension_numbers = #tpu.dot_dimension_numbers<[1], [0], [0], [1], [0, 0, 1, 1], [], []>} : vector<120x128xbf16>, vector<128x128xbf16>, vector<120x128xf32> -> vector<120x128xf32>
    %210 = arith.addf %202, %209 : vector<120x128xf32>
    %c0_207 = arith.constant 0 : index
    %c2_208 = arith.constant 2 : index
    %c0_209 = arith.constant 0 : index
    %c0_210 = arith.constant 0 : index
    %c0_211 = arith.constant 0 : index
    %211 = vector.load %arg5[%c0_207, %c2_208, %c0_209, %c0_210, %c0_211] : memref<4x7x7x8x128xf32, #tpu.memory_space<vmem>>, vector<1x3x5x8x128xf32>
    %212 = vector.shape_cast %211 : vector<1x3x5x8x128xf32> to vector<3x5x8x128xf32>
    %213 = vector.shape_cast %212 : vector<3x5x8x128xf32> to vector<120x128xf32>
    %214 = arith.truncf %213 : vector<120x128xf32> to vector<120x128xbf16>
    %c21 = arith.constant 21 : index
    %c0_212 = arith.constant 0 : index
    %c0_213 = arith.constant 0 : index
    %215 = vector.load %arg2[%c21, %c0_212, %c0_213] : memref<52x128x128xbf16, #tpu.memory_space<vmem>>, vector<1x128x128xbf16>
    %216 = vector.shape_cast %215 : vector<1x128x128xbf16> to vector<128x128xbf16>
    %cst_214 = arith.constant dense<0.000000e+00> : vector<120x128xf32>
    %217 = tpu.matmul %214, %216, %cst_214 {dimension_numbers = #tpu.dot_dimension_numbers<[1], [0], [0], [1], [0, 0, 1, 1], [], []>} : vector<120x128xbf16>, vector<128x128xbf16>, vector<120x128xf32> -> vector<120x128xf32>
    %218 = arith.addf %210, %217 : vector<120x128xf32>
    %c1_215 = arith.constant 1 : index
    %c2_216 = arith.constant 2 : index
    %c0_217 = arith.constant 0 : index
    %c0_218 = arith.constant 0 : index
    %c0_219 = arith.constant 0 : index
    %219 = vector.load %arg5[%c1_215, %c2_216, %c0_217, %c0_218, %c0_219] : memref<4x7x7x8x128xf32, #tpu.memory_space<vmem>>, vector<1x3x5x8x128xf32>
    %220 = vector.shape_cast %219 : vector<1x3x5x8x128xf32> to vector<3x5x8x128xf32>
    %221 = vector.shape_cast %220 : vector<3x5x8x128xf32> to vector<120x128xf32>
    %222 = arith.truncf %221 : vector<120x128xf32> to vector<120x128xbf16>
    %c22 = arith.constant 22 : index
    %c0_220 = arith.constant 0 : index
    %c0_221 = arith.constant 0 : index
    %223 = vector.load %arg2[%c22, %c0_220, %c0_221] : memref<52x128x128xbf16, #tpu.memory_space<vmem>>, vector<1x128x128xbf16>
    %224 = vector.shape_cast %223 : vector<1x128x128xbf16> to vector<128x128xbf16>
    %cst_222 = arith.constant dense<0.000000e+00> : vector<120x128xf32>
    %225 = tpu.matmul %222, %224, %cst_222 {dimension_numbers = #tpu.dot_dimension_numbers<[1], [0], [0], [1], [0, 0, 1, 1], [], []>} : vector<120x128xbf16>, vector<128x128xbf16>, vector<120x128xf32> -> vector<120x128xf32>
    %226 = arith.addf %218, %225 : vector<120x128xf32>
    %c0_223 = arith.constant 0 : index
    %c2_224 = arith.constant 2 : index
    %c1_225 = arith.constant 1 : index
    %c0_226 = arith.constant 0 : index
    %c0_227 = arith.constant 0 : index
    %227 = vector.load %arg5[%c0_223, %c2_224, %c1_225, %c0_226, %c0_227] : memref<4x7x7x8x128xf32, #tpu.memory_space<vmem>>, vector<1x3x5x8x128xf32>
    %228 = vector.shape_cast %227 : vector<1x3x5x8x128xf32> to vector<3x5x8x128xf32>
    %229 = vector.shape_cast %228 : vector<3x5x8x128xf32> to vector<120x128xf32>
    %230 = arith.truncf %229 : vector<120x128xf32> to vector<120x128xbf16>
    %c23 = arith.constant 23 : index
    %c0_228 = arith.constant 0 : index
    %c0_229 = arith.constant 0 : index
    %231 = vector.load %arg2[%c23, %c0_228, %c0_229] : memref<52x128x128xbf16, #tpu.memory_space<vmem>>, vector<1x128x128xbf16>
    %232 = vector.shape_cast %231 : vector<1x128x128xbf16> to vector<128x128xbf16>
    %cst_230 = arith.constant dense<0.000000e+00> : vector<120x128xf32>
    %233 = tpu.matmul %230, %232, %cst_230 {dimension_numbers = #tpu.dot_dimension_numbers<[1], [0], [0], [1], [0, 0, 1, 1], [], []>} : vector<120x128xbf16>, vector<128x128xbf16>, vector<120x128xf32> -> vector<120x128xf32>
    %234 = arith.addf %226, %233 : vector<120x128xf32>
    %c1_231 = arith.constant 1 : index
    %c2_232 = arith.constant 2 : index
    %c1_233 = arith.constant 1 : index
    %c0_234 = arith.constant 0 : index
    %c0_235 = arith.constant 0 : index
    %235 = vector.load %arg5[%c1_231, %c2_232, %c1_233, %c0_234, %c0_235] : memref<4x7x7x8x128xf32, #tpu.memory_space<vmem>>, vector<1x3x5x8x128xf32>
    %236 = vector.shape_cast %235 : vector<1x3x5x8x128xf32> to vector<3x5x8x128xf32>
    %237 = vector.shape_cast %236 : vector<3x5x8x128xf32> to vector<120x128xf32>
    %238 = arith.truncf %237 : vector<120x128xf32> to vector<120x128xbf16>
    %c24 = arith.constant 24 : index
    %c0_236 = arith.constant 0 : index
    %c0_237 = arith.constant 0 : index
    %239 = vector.load %arg2[%c24, %c0_236, %c0_237] : memref<52x128x128xbf16, #tpu.memory_space<vmem>>, vector<1x128x128xbf16>
    %240 = vector.shape_cast %239 : vector<1x128x128xbf16> to vector<128x128xbf16>
    %cst_238 = arith.constant dense<0.000000e+00> : vector<120x128xf32>
    %241 = tpu.matmul %238, %240, %cst_238 {dimension_numbers = #tpu.dot_dimension_numbers<[1], [0], [0], [1], [0, 0, 1, 1], [], []>} : vector<120x128xbf16>, vector<128x128xbf16>, vector<120x128xf32> -> vector<120x128xf32>
    %242 = arith.addf %234, %241 : vector<120x128xf32>
    %c0_239 = arith.constant 0 : index
    %c2_240 = arith.constant 2 : index
    %c2_241 = arith.constant 2 : index
    %c0_242 = arith.constant 0 : index
    %c0_243 = arith.constant 0 : index
    %243 = vector.load %arg5[%c0_239, %c2_240, %c2_241, %c0_242, %c0_243] : memref<4x7x7x8x128xf32, #tpu.memory_space<vmem>>, vector<1x3x5x8x128xf32>
    %244 = vector.shape_cast %243 : vector<1x3x5x8x128xf32> to vector<3x5x8x128xf32>
    %245 = vector.shape_cast %244 : vector<3x5x8x128xf32> to vector<120x128xf32>
    %246 = arith.truncf %245 : vector<120x128xf32> to vector<120x128xbf16>
    %c25 = arith.constant 25 : index
    %c0_244 = arith.constant 0 : index
    %c0_245 = arith.constant 0 : index
    %247 = vector.load %arg2[%c25, %c0_244, %c0_245] : memref<52x128x128xbf16, #tpu.memory_space<vmem>>, vector<1x128x128xbf16>
    %248 = vector.shape_cast %247 : vector<1x128x128xbf16> to vector<128x128xbf16>
    %cst_246 = arith.constant dense<0.000000e+00> : vector<120x128xf32>
    %249 = tpu.matmul %246, %248, %cst_246 {dimension_numbers = #tpu.dot_dimension_numbers<[1], [0], [0], [1], [0, 0, 1, 1], [], []>} : vector<120x128xbf16>, vector<128x128xbf16>, vector<120x128xf32> -> vector<120x128xf32>
    %250 = arith.addf %242, %249 : vector<120x128xf32>
    %251 = vector.broadcast %3 : vector<1x128xf32> to vector<120x128xf32>
    %252 = arith.addf %250, %251 : vector<120x128xf32>
    %cst_247 = arith.constant 0.000000e+00 : f32
    %253 = vector.broadcast %cst_247 : f32 to vector<120x128xf32>
    %254 = arith.maximumf %252, %253 : vector<120x128xf32>
    %c0_248 = arith.constant 0 : index
    %c0_249 = arith.constant 0 : index
    %255 = vector.load %arg6[%c0_248, %c0_249] : memref<200x128xf32, #tpu.memory_space<vmem>>, vector<120x128xf32>
    tpu.vector_store %arg6[%c0_248, %c0_249], %254 {strides = array<i32>} : memref<200x128xf32, #tpu.memory_space<vmem>>, vector<120x128xf32>,
    %cst_250 = arith.constant 0.000000e+00 : f32
    %256 = vector.broadcast %cst_250 : f32 to vector<80x128xf32>
    %c0_251 = arith.constant 0 : index
    %c3_252 = arith.constant 3 : index
    %c0_253 = arith.constant 0 : index
    %c0_254 = arith.constant 0 : index
    %c0_255 = arith.constant 0 : index
    %257 = vector.load %arg5[%c0_251, %c3_252, %c0_253, %c0_254, %c0_255] : memref<4x7x7x8x128xf32, #tpu.memory_space<vmem>>, vector<1x2x5x8x128xf32>
    %258 = vector.shape_cast %257 : vector<1x2x5x8x128xf32> to vector<2x5x8x128xf32>
    %259 = vector.shape_cast %258 : vector<2x5x8x128xf32> to vector<80x128xf32>
    %260 = arith.truncf %259 : vector<80x128xf32> to vector<80x128xbf16>
    %c1_256 = arith.constant 1 : index
    %c0_257 = arith.constant 0 : index
    %c0_258 = arith.constant 0 : index
    %261 = vector.load %arg2[%c1_256, %c0_257, %c0_258] : memref<52x128x128xbf16, #tpu.memory_space<vmem>>, vector<1x128x128xbf16>
    %262 = vector.shape_cast %261 : vector<1x128x128xbf16> to vector<128x128xbf16>
    %cst_259 = arith.constant dense<0.000000e+00> : vector<80x128xf32>
    %263 = tpu.matmul %260, %262, %cst_259 {dimension_numbers = #tpu.dot_dimension_numbers<[1], [0], [0], [1], [0, 0, 1, 1], [], []>} : vector<80x128xbf16>, vector<128x128xbf16>, vector<80x128xf32> -> vector<80x128xf32>
    %264 = arith.addf %256, %263 : vector<80x128xf32>
    %c1_260 = arith.constant 1 : index
    %c3_261 = arith.constant 3 : index
    %c0_262 = arith.constant 0 : index
    %c0_263 = arith.constant 0 : index
    %c0_264 = arith.constant 0 : index
    %265 = vector.load %arg5[%c1_260, %c3_261, %c0_262, %c0_263, %c0_264] : memref<4x7x7x8x128xf32, #tpu.memory_space<vmem>>, vector<1x2x5x8x128xf32>
    %266 = vector.shape_cast %265 : vector<1x2x5x8x128xf32> to vector<2x5x8x128xf32>
    %267 = vector.shape_cast %266 : vector<2x5x8x128xf32> to vector<80x128xf32>
    %268 = arith.truncf %267 : vector<80x128xf32> to vector<80x128xbf16>
    %c2_265 = arith.constant 2 : index
    %c0_266 = arith.constant 0 : index
    %c0_267 = arith.constant 0 : index
    %269 = vector.load %arg2[%c2_265, %c0_266, %c0_267] : memref<52x128x128xbf16, #tpu.memory_space<vmem>>, vector<1x128x128xbf16>
    %270 = vector.shape_cast %269 : vector<1x128x128xbf16> to vector<128x128xbf16>
    %cst_268 = arith.constant dense<0.000000e+00> : vector<80x128xf32>
    %271 = tpu.matmul %268, %270, %cst_268 {dimension_numbers = #tpu.dot_dimension_numbers<[1], [0], [0], [1], [0, 0, 1, 1], [], []>} : vector<80x128xbf16>, vector<128x128xbf16>, vector<80x128xf32> -> vector<80x128xf32>
    %272 = arith.addf %264, %271 : vector<80x128xf32>
    %c0_269 = arith.constant 0 : index
    %c3_270 = arith.constant 3 : index
    %c1_271 = arith.constant 1 : index
    %c0_272 = arith.constant 0 : index
    %c0_273 = arith.constant 0 : index
    %273 = vector.load %arg5[%c0_269, %c3_270, %c1_271, %c0_272, %c0_273] : memref<4x7x7x8x128xf32, #tpu.memory_space<vmem>>, vector<1x2x5x8x128xf32>
    %274 = vector.shape_cast %273 : vector<1x2x5x8x128xf32> to vector<2x5x8x128xf32>
    %275 = vector.shape_cast %274 : vector<2x5x8x128xf32> to vector<80x128xf32>
    %276 = arith.truncf %275 : vector<80x128xf32> to vector<80x128xbf16>
    %c3_274 = arith.constant 3 : index
    %c0_275 = arith.constant 0 : index
    %c0_276 = arith.constant 0 : index
    %277 = vector.load %arg2[%c3_274, %c0_275, %c0_276] : memref<52x128x128xbf16, #tpu.memory_space<vmem>>, vector<1x128x128xbf16>
    %278 = vector.shape_cast %277 : vector<1x128x128xbf16> to vector<128x128xbf16>
    %cst_277 = arith.constant dense<0.000000e+00> : vector<80x128xf32>
    %279 = tpu.matmul %276, %278, %cst_277 {dimension_numbers = #tpu.dot_dimension_numbers<[1], [0], [0], [1], [0, 0, 1, 1], [], []>} : vector<80x128xbf16>, vector<128x128xbf16>, vector<80x128xf32> -> vector<80x128xf32>
    %280 = arith.addf %272, %279 : vector<80x128xf32>
    %c1_278 = arith.constant 1 : index
    %c3_279 = arith.constant 3 : index
    %c1_280 = arith.constant 1 : index
    %c0_281 = arith.constant 0 : index
    %c0_282 = arith.constant 0 : index
    %281 = vector.load %arg5[%c1_278, %c3_279, %c1_280, %c0_281, %c0_282] : memref<4x7x7x8x128xf32, #tpu.memory_space<vmem>>, vector<1x2x5x8x128xf32>
    %282 = vector.shape_cast %281 : vector<1x2x5x8x128xf32> to vector<2x5x8x128xf32>
    %283 = vector.shape_cast %282 : vector<2x5x8x128xf32> to vector<80x128xf32>
    %284 = arith.truncf %283 : vector<80x128xf32> to vector<80x128xbf16>
    %c4_283 = arith.constant 4 : index
    %c0_284 = arith.constant 0 : index
    %c0_285 = arith.constant 0 : index
    %285 = vector.load %arg2[%c4_283, %c0_284, %c0_285] : memref<52x128x128xbf16, #tpu.memory_space<vmem>>, vector<1x128x128xbf16>
    %286 = vector.shape_cast %285 : vector<1x128x128xbf16> to vector<128x128xbf16>
    %cst_286 = arith.constant dense<0.000000e+00> : vector<80x128xf32>
    %287 = tpu.matmul %284, %286, %cst_286 {dimension_numbers = #tpu.dot_dimension_numbers<[1], [0], [0], [1], [0, 0, 1, 1], [], []>} : vector<80x128xbf16>, vector<128x128xbf16>, vector<80x128xf32> -> vector<80x128xf32>
    %288 = arith.addf %280, %287 : vector<80x128xf32>
    %c0_287 = arith.constant 0 : index
    %c3_288 = arith.constant 3 : index
    %c2_289 = arith.constant 2 : index
    %c0_290 = arith.constant 0 : index
    %c0_291 = arith.constant 0 : index
    %289 = vector.load %arg5[%c0_287, %c3_288, %c2_289, %c0_290, %c0_291] : memref<4x7x7x8x128xf32, #tpu.memory_space<vmem>>, vector<1x2x5x8x128xf32>
    %290 = vector.shape_cast %289 : vector<1x2x5x8x128xf32> to vector<2x5x8x128xf32>
    %291 = vector.shape_cast %290 : vector<2x5x8x128xf32> to vector<80x128xf32>
    %292 = arith.truncf %291 : vector<80x128xf32> to vector<80x128xbf16>
    %c5_292 = arith.constant 5 : index
    %c0_293 = arith.constant 0 : index
    %c0_294 = arith.constant 0 : index
    %293 = vector.load %arg2[%c5_292, %c0_293, %c0_294] : memref<52x128x128xbf16, #tpu.memory_space<vmem>>, vector<1x128x128xbf16>
    %294 = vector.shape_cast %293 : vector<1x128x128xbf16> to vector<128x128xbf16>
    %cst_295 = arith.constant dense<0.000000e+00> : vector<80x128xf32>
    %295 = tpu.matmul %292, %294, %cst_295 {dimension_numbers = #tpu.dot_dimension_numbers<[1], [0], [0], [1], [0, 0, 1, 1], [], []>} : vector<80x128xbf16>, vector<128x128xbf16>, vector<80x128xf32> -> vector<80x128xf32>
    %296 = arith.addf %288, %295 : vector<80x128xf32>
    %c2_296 = arith.constant 2 : index
    %c3_297 = arith.constant 3 : index
    %c0_298 = arith.constant 0 : index
    %c0_299 = arith.constant 0 : index
    %c0_300 = arith.constant 0 : index
    %297 = vector.load %arg5[%c2_296, %c3_297, %c0_298, %c0_299, %c0_300] : memref<4x7x7x8x128xf32, #tpu.memory_space<vmem>>, vector<1x2x5x8x128xf32>
    %298 = vector.shape_cast %297 : vector<1x2x5x8x128xf32> to vector<2x5x8x128xf32>
    %299 = vector.shape_cast %298 : vector<2x5x8x128xf32> to vector<80x128xf32>
    %300 = arith.truncf %299 : vector<80x128xf32> to vector<80x128xbf16>
    %c6_301 = arith.constant 6 : index
    %c0_302 = arith.constant 0 : index
    %c0_303 = arith.constant 0 : index
    %301 = vector.load %arg2[%c6_301, %c0_302, %c0_303] : memref<52x128x128xbf16, #tpu.memory_space<vmem>>, vector<1x128x128xbf16>
    %302 = vector.shape_cast %301 : vector<1x128x128xbf16> to vector<128x128xbf16>
    %cst_304 = arith.constant dense<0.000000e+00> : vector<80x128xf32>
    %303 = tpu.matmul %300, %302, %cst_304 {dimension_numbers = #tpu.dot_dimension_numbers<[1], [0], [0], [1], [0, 0, 1, 1], [], []>} : vector<80x128xbf16>, vector<128x128xbf16>, vector<80x128xf32> -> vector<80x128xf32>
    %304 = arith.addf %296, %303 : vector<80x128xf32>
    %c3_305 = arith.constant 3 : index
    %c3_306 = arith.constant 3 : index
    %c0_307 = arith.constant 0 : index
    %c0_308 = arith.constant 0 : index
    %c0_309 = arith.constant 0 : index
    %305 = vector.load %arg5[%c3_305, %c3_306, %c0_307, %c0_308, %c0_309] : memref<4x7x7x8x128xf32, #tpu.memory_space<vmem>>, vector<1x2x5x8x128xf32>
    %306 = vector.shape_cast %305 : vector<1x2x5x8x128xf32> to vector<2x5x8x128xf32>
    %307 = vector.shape_cast %306 : vector<2x5x8x128xf32> to vector<80x128xf32>
    %308 = arith.truncf %307 : vector<80x128xf32> to vector<80x128xbf16>
    %c7_310 = arith.constant 7 : index
    %c0_311 = arith.constant 0 : index
    %c0_312 = arith.constant 0 : index
    %309 = vector.load %arg2[%c7_310, %c0_311, %c0_312] : memref<52x128x128xbf16, #tpu.memory_space<vmem>>, vector<1x128x128xbf16>
    %310 = vector.shape_cast %309 : vector<1x128x128xbf16> to vector<128x128xbf16>
    %cst_313 = arith.constant dense<0.000000e+00> : vector<80x128xf32>
    %311 = tpu.matmul %308, %310, %cst_313 {dimension_numbers = #tpu.dot_dimension_numbers<[1], [0], [0], [1], [0, 0, 1, 1], [], []>} : vector<80x128xbf16>, vector<128x128xbf16>, vector<80x128xf32> -> vector<80x128xf32>
    %312 = arith.addf %304, %311 : vector<80x128xf32>
    %c2_314 = arith.constant 2 : index
    %c3_315 = arith.constant 3 : index
    %c1_316 = arith.constant 1 : index
    %c0_317 = arith.constant 0 : index
    %c0_318 = arith.constant 0 : index
    %313 = vector.load %arg5[%c2_314, %c3_315, %c1_316, %c0_317, %c0_318] : memref<4x7x7x8x128xf32, #tpu.memory_space<vmem>>, vector<1x2x5x8x128xf32>
    %314 = vector.shape_cast %313 : vector<1x2x5x8x128xf32> to vector<2x5x8x128xf32>
    %315 = vector.shape_cast %314 : vector<2x5x8x128xf32> to vector<80x128xf32>
    %316 = arith.truncf %315 : vector<80x128xf32> to vector<80x128xbf16>
    %c8_319 = arith.constant 8 : index
    %c0_320 = arith.constant 0 : index
    %c0_321 = arith.constant 0 : index
    %317 = vector.load %arg2[%c8_319, %c0_320, %c0_321] : memref<52x128x128xbf16, #tpu.memory_space<vmem>>, vector<1x128x128xbf16>
    %318 = vector.shape_cast %317 : vector<1x128x128xbf16> to vector<128x128xbf16>
    %cst_322 = arith.constant dense<0.000000e+00> : vector<80x128xf32>
    %319 = tpu.matmul %316, %318, %cst_322 {dimension_numbers = #tpu.dot_dimension_numbers<[1], [0], [0], [1], [0, 0, 1, 1], [], []>} : vector<80x128xbf16>, vector<128x128xbf16>, vector<80x128xf32> -> vector<80x128xf32>
    %320 = arith.addf %312, %319 : vector<80x128xf32>
    %c3_323 = arith.constant 3 : index
    %c3_324 = arith.constant 3 : index
    %c1_325 = arith.constant 1 : index
    %c0_326 = arith.constant 0 : index
    %c0_327 = arith.constant 0 : index
    %321 = vector.load %arg5[%c3_323, %c3_324, %c1_325, %c0_326, %c0_327] : memref<4x7x7x8x128xf32, #tpu.memory_space<vmem>>, vector<1x2x5x8x128xf32>
    %322 = vector.shape_cast %321 : vector<1x2x5x8x128xf32> to vector<2x5x8x128xf32>
    %323 = vector.shape_cast %322 : vector<2x5x8x128xf32> to vector<80x128xf32>
    %324 = arith.truncf %323 : vector<80x128xf32> to vector<80x128xbf16>
    %c9_328 = arith.constant 9 : index
    %c0_329 = arith.constant 0 : index
    %c0_330 = arith.constant 0 : index
    %325 = vector.load %arg2[%c9_328, %c0_329, %c0_330] : memref<52x128x128xbf16, #tpu.memory_space<vmem>>, vector<1x128x128xbf16>
    %326 = vector.shape_cast %325 : vector<1x128x128xbf16> to vector<128x128xbf16>
    %cst_331 = arith.constant dense<0.000000e+00> : vector<80x128xf32>
    %327 = tpu.matmul %324, %326, %cst_331 {dimension_numbers = #tpu.dot_dimension_numbers<[1], [0], [0], [1], [0, 0, 1, 1], [], []>} : vector<80x128xbf16>, vector<128x128xbf16>, vector<80x128xf32> -> vector<80x128xf32>
    %328 = arith.addf %320, %327 : vector<80x128xf32>
    %c2_332 = arith.constant 2 : index
    %c3_333 = arith.constant 3 : index
    %c2_334 = arith.constant 2 : index
    %c0_335 = arith.constant 0 : index
    %c0_336 = arith.constant 0 : index
    %329 = vector.load %arg5[%c2_332, %c3_333, %c2_334, %c0_335, %c0_336] : memref<4x7x7x8x128xf32, #tpu.memory_space<vmem>>, vector<1x2x5x8x128xf32>
    %330 = vector.shape_cast %329 : vector<1x2x5x8x128xf32> to vector<2x5x8x128xf32>
    %331 = vector.shape_cast %330 : vector<2x5x8x128xf32> to vector<80x128xf32>
    %332 = arith.truncf %331 : vector<80x128xf32> to vector<80x128xbf16>
    %c10_337 = arith.constant 10 : index
    %c0_338 = arith.constant 0 : index
    %c0_339 = arith.constant 0 : index
    %333 = vector.load %arg2[%c10_337, %c0_338, %c0_339] : memref<52x128x128xbf16, #tpu.memory_space<vmem>>, vector<1x128x128xbf16>
    %334 = vector.shape_cast %333 : vector<1x128x128xbf16> to vector<128x128xbf16>
    %cst_340 = arith.constant dense<0.000000e+00> : vector<80x128xf32>
    %335 = tpu.matmul %332, %334, %cst_340 {dimension_numbers = #tpu.dot_dimension_numbers<[1], [0], [0], [1], [0, 0, 1, 1], [], []>} : vector<80x128xbf16>, vector<128x128xbf16>, vector<80x128xf32> -> vector<80x128xf32>
    %336 = arith.addf %328, %335 : vector<80x128xf32>
    %c0_341 = arith.constant 0 : index
    %c4_342 = arith.constant 4 : index
    %c0_343 = arith.constant 0 : index
    %c0_344 = arith.constant 0 : index
    %c0_345 = arith.constant 0 : index
    %337 = vector.load %arg5[%c0_341, %c4_342, %c0_343, %c0_344, %c0_345] : memref<4x7x7x8x128xf32, #tpu.memory_space<vmem>>, vector<1x2x5x8x128xf32>
    %338 = vector.shape_cast %337 : vector<1x2x5x8x128xf32> to vector<2x5x8x128xf32>
    %339 = vector.shape_cast %338 : vector<2x5x8x128xf32> to vector<80x128xf32>
    %340 = arith.truncf %339 : vector<80x128xf32> to vector<80x128xbf16>
    %c11_346 = arith.constant 11 : index
    %c0_347 = arith.constant 0 : index
    %c0_348 = arith.constant 0 : index
    %341 = vector.load %arg2[%c11_346, %c0_347, %c0_348] : memref<52x128x128xbf16, #tpu.memory_space<vmem>>, vector<1x128x128xbf16>
    %342 = vector.shape_cast %341 : vector<1x128x128xbf16> to vector<128x128xbf16>
    %cst_349 = arith.constant dense<0.000000e+00> : vector<80x128xf32>
    %343 = tpu.matmul %340, %342, %cst_349 {dimension_numbers = #tpu.dot_dimension_numbers<[1], [0], [0], [1], [0, 0, 1, 1], [], []>} : vector<80x128xbf16>, vector<128x128xbf16>, vector<80x128xf32> -> vector<80x128xf32>
    %344 = arith.addf %336, %343 : vector<80x128xf32>
    %c1_350 = arith.constant 1 : index
    %c4_351 = arith.constant 4 : index
    %c0_352 = arith.constant 0 : index
    %c0_353 = arith.constant 0 : index
    %c0_354 = arith.constant 0 : index
    %345 = vector.load %arg5[%c1_350, %c4_351, %c0_352, %c0_353, %c0_354] : memref<4x7x7x8x128xf32, #tpu.memory_space<vmem>>, vector<1x2x5x8x128xf32>
    %346 = vector.shape_cast %345 : vector<1x2x5x8x128xf32> to vector<2x5x8x128xf32>
    %347 = vector.shape_cast %346 : vector<2x5x8x128xf32> to vector<80x128xf32>
    %348 = arith.truncf %347 : vector<80x128xf32> to vector<80x128xbf16>
    %c12_355 = arith.constant 12 : index
    %c0_356 = arith.constant 0 : index
    %c0_357 = arith.constant 0 : index
    %349 = vector.load %arg2[%c12_355, %c0_356, %c0_357] : memref<52x128x128xbf16, #tpu.memory_space<vmem>>, vector<1x128x128xbf16>
    %350 = vector.shape_cast %349 : vector<1x128x128xbf16> to vector<128x128xbf16>
    %cst_358 = arith.constant dense<0.000000e+00> : vector<80x128xf32>
    %351 = tpu.matmul %348, %350, %cst_358 {dimension_numbers = #tpu.dot_dimension_numbers<[1], [0], [0], [1], [0, 0, 1, 1], [], []>} : vector<80x128xbf16>, vector<128x128xbf16>, vector<80x128xf32> -> vector<80x128xf32>
    %352 = arith.addf %344, %351 : vector<80x128xf32>
    %c0_359 = arith.constant 0 : index
    %c4_360 = arith.constant 4 : index
    %c1_361 = arith.constant 1 : index
    %c0_362 = arith.constant 0 : index
    %c0_363 = arith.constant 0 : index
    %353 = vector.load %arg5[%c0_359, %c4_360, %c1_361, %c0_362, %c0_363] : memref<4x7x7x8x128xf32, #tpu.memory_space<vmem>>, vector<1x2x5x8x128xf32>
    %354 = vector.shape_cast %353 : vector<1x2x5x8x128xf32> to vector<2x5x8x128xf32>
    %355 = vector.shape_cast %354 : vector<2x5x8x128xf32> to vector<80x128xf32>
    %356 = arith.truncf %355 : vector<80x128xf32> to vector<80x128xbf16>
    %c13_364 = arith.constant 13 : index
    %c0_365 = arith.constant 0 : index
    %c0_366 = arith.constant 0 : index
    %357 = vector.load %arg2[%c13_364, %c0_365, %c0_366] : memref<52x128x128xbf16, #tpu.memory_space<vmem>>, vector<1x128x128xbf16>
    %358 = vector.shape_cast %357 : vector<1x128x128xbf16> to vector<128x128xbf16>
    %cst_367 = arith.constant dense<0.000000e+00> : vector<80x128xf32>
    %359 = tpu.matmul %356, %358, %cst_367 {dimension_numbers = #tpu.dot_dimension_numbers<[1], [0], [0], [1], [0, 0, 1, 1], [], []>} : vector<80x128xbf16>, vector<128x128xbf16>, vector<80x128xf32> -> vector<80x128xf32>
    %360 = arith.addf %352, %359 : vector<80x128xf32>
    %c1_368 = arith.constant 1 : index
    %c4_369 = arith.constant 4 : index
    %c1_370 = arith.constant 1 : index
    %c0_371 = arith.constant 0 : index
    %c0_372 = arith.constant 0 : index
    %361 = vector.load %arg5[%c1_368, %c4_369, %c1_370, %c0_371, %c0_372] : memref<4x7x7x8x128xf32, #tpu.memory_space<vmem>>, vector<1x2x5x8x128xf32>
    %362 = vector.shape_cast %361 : vector<1x2x5x8x128xf32> to vector<2x5x8x128xf32>
    %363 = vector.shape_cast %362 : vector<2x5x8x128xf32> to vector<80x128xf32>
    %364 = arith.truncf %363 : vector<80x128xf32> to vector<80x128xbf16>
    %c14_373 = arith.constant 14 : index
    %c0_374 = arith.constant 0 : index
    %c0_375 = arith.constant 0 : index
    %365 = vector.load %arg2[%c14_373, %c0_374, %c0_375] : memref<52x128x128xbf16, #tpu.memory_space<vmem>>, vector<1x128x128xbf16>
    %366 = vector.shape_cast %365 : vector<1x128x128xbf16> to vector<128x128xbf16>
    %cst_376 = arith.constant dense<0.000000e+00> : vector<80x128xf32>
    %367 = tpu.matmul %364, %366, %cst_376 {dimension_numbers = #tpu.dot_dimension_numbers<[1], [0], [0], [1], [0, 0, 1, 1], [], []>} : vector<80x128xbf16>, vector<128x128xbf16>, vector<80x128xf32> -> vector<80x128xf32>
    %368 = arith.addf %360, %367 : vector<80x128xf32>
    %c0_377 = arith.constant 0 : index
    %c4_378 = arith.constant 4 : index
    %c2_379 = arith.constant 2 : index
    %c0_380 = arith.constant 0 : index
    %c0_381 = arith.constant 0 : index
    %369 = vector.load %arg5[%c0_377, %c4_378, %c2_379, %c0_380, %c0_381] : memref<4x7x7x8x128xf32, #tpu.memory_space<vmem>>, vector<1x2x5x8x128xf32>
    %370 = vector.shape_cast %369 : vector<1x2x5x8x128xf32> to vector<2x5x8x128xf32>
    %371 = vector.shape_cast %370 : vector<2x5x8x128xf32> to vector<80x128xf32>
    %372 = arith.truncf %371 : vector<80x128xf32> to vector<80x128xbf16>
    %c15_382 = arith.constant 15 : index
    %c0_383 = arith.constant 0 : index
    %c0_384 = arith.constant 0 : index
    %373 = vector.load %arg2[%c15_382, %c0_383, %c0_384] : memref<52x128x128xbf16, #tpu.memory_space<vmem>>, vector<1x128x128xbf16>
    %374 = vector.shape_cast %373 : vector<1x128x128xbf16> to vector<128x128xbf16>
    %cst_385 = arith.constant dense<0.000000e+00> : vector<80x128xf32>
    %375 = tpu.matmul %372, %374, %cst_385 {dimension_numbers = #tpu.dot_dimension_numbers<[1], [0], [0], [1], [0, 0, 1, 1], [], []>} : vector<80x128xbf16>, vector<128x128xbf16>, vector<80x128xf32> -> vector<80x128xf32>
    %376 = arith.addf %368, %375 : vector<80x128xf32>
    %c2_386 = arith.constant 2 : index
    %c4_387 = arith.constant 4 : index
    %c0_388 = arith.constant 0 : index
    %c0_389 = arith.constant 0 : index
    %c0_390 = arith.constant 0 : index
    %377 = vector.load %arg5[%c2_386, %c4_387, %c0_388, %c0_389, %c0_390] : memref<4x7x7x8x128xf32, #tpu.memory_space<vmem>>, vector<1x2x5x8x128xf32>
    %378 = vector.shape_cast %377 : vector<1x2x5x8x128xf32> to vector<2x5x8x128xf32>
    %379 = vector.shape_cast %378 : vector<2x5x8x128xf32> to vector<80x128xf32>
    %380 = arith.truncf %379 : vector<80x128xf32> to vector<80x128xbf16>
    %c16_391 = arith.constant 16 : index
    %c0_392 = arith.constant 0 : index
    %c0_393 = arith.constant 0 : index
    %381 = vector.load %arg2[%c16_391, %c0_392, %c0_393] : memref<52x128x128xbf16, #tpu.memory_space<vmem>>, vector<1x128x128xbf16>
    %382 = vector.shape_cast %381 : vector<1x128x128xbf16> to vector<128x128xbf16>
    %cst_394 = arith.constant dense<0.000000e+00> : vector<80x128xf32>
    %383 = tpu.matmul %380, %382, %cst_394 {dimension_numbers = #tpu.dot_dimension_numbers<[1], [0], [0], [1], [0, 0, 1, 1], [], []>} : vector<80x128xbf16>, vector<128x128xbf16>, vector<80x128xf32> -> vector<80x128xf32>
    %384 = arith.addf %376, %383 : vector<80x128xf32>
    %c3_395 = arith.constant 3 : index
    %c4_396 = arith.constant 4 : index
    %c0_397 = arith.constant 0 : index
    %c0_398 = arith.constant 0 : index
    %c0_399 = arith.constant 0 : index
    %385 = vector.load %arg5[%c3_395, %c4_396, %c0_397, %c0_398, %c0_399] : memref<4x7x7x8x128xf32, #tpu.memory_space<vmem>>, vector<1x2x5x8x128xf32>
    %386 = vector.shape_cast %385 : vector<1x2x5x8x128xf32> to vector<2x5x8x128xf32>
    %387 = vector.shape_cast %386 : vector<2x5x8x128xf32> to vector<80x128xf32>
    %388 = arith.truncf %387 : vector<80x128xf32> to vector<80x128xbf16>
    %c17_400 = arith.constant 17 : index
    %c0_401 = arith.constant 0 : index
    %c0_402 = arith.constant 0 : index
    %389 = vector.load %arg2[%c17_400, %c0_401, %c0_402] : memref<52x128x128xbf16, #tpu.memory_space<vmem>>, vector<1x128x128xbf16>
    %390 = vector.shape_cast %389 : vector<1x128x128xbf16> to vector<128x128xbf16>
    %cst_403 = arith.constant dense<0.000000e+00> : vector<80x128xf32>
    %391 = tpu.matmul %388, %390, %cst_403 {dimension_numbers = #tpu.dot_dimension_numbers<[1], [0], [0], [1], [0, 0, 1, 1], [], []>} : vector<80x128xbf16>, vector<128x128xbf16>, vector<80x128xf32> -> vector<80x128xf32>
    %392 = arith.addf %384, %391 : vector<80x128xf32>
    %c2_404 = arith.constant 2 : index
    %c4_405 = arith.constant 4 : index
    %c1_406 = arith.constant 1 : index
    %c0_407 = arith.constant 0 : index
    %c0_408 = arith.constant 0 : index
    %393 = vector.load %arg5[%c2_404, %c4_405, %c1_406, %c0_407, %c0_408] : memref<4x7x7x8x128xf32, #tpu.memory_space<vmem>>, vector<1x2x5x8x128xf32>
    %394 = vector.shape_cast %393 : vector<1x2x5x8x128xf32> to vector<2x5x8x128xf32>
    %395 = vector.shape_cast %394 : vector<2x5x8x128xf32> to vector<80x128xf32>
    %396 = arith.truncf %395 : vector<80x128xf32> to vector<80x128xbf16>
    %c18_409 = arith.constant 18 : index
    %c0_410 = arith.constant 0 : index
    %c0_411 = arith.constant 0 : index
    %397 = vector.load %arg2[%c18_409, %c0_410, %c0_411] : memref<52x128x128xbf16, #tpu.memory_space<vmem>>, vector<1x128x128xbf16>
    %398 = vector.shape_cast %397 : vector<1x128x128xbf16> to vector<128x128xbf16>
    %cst_412 = arith.constant dense<0.000000e+00> : vector<80x128xf32>
    %399 = tpu.matmul %396, %398, %cst_412 {dimension_numbers = #tpu.dot_dimension_numbers<[1], [0], [0], [1], [0, 0, 1, 1], [], []>} : vector<80x128xbf16>, vector<128x128xbf16>, vector<80x128xf32> -> vector<80x128xf32>
    %400 = arith.addf %392, %399 : vector<80x128xf32>
    %c3_413 = arith.constant 3 : index
    %c4_414 = arith.constant 4 : index
    %c1_415 = arith.constant 1 : index
    %c0_416 = arith.constant 0 : index
    %c0_417 = arith.constant 0 : index
    %401 = vector.load %arg5[%c3_413, %c4_414, %c1_415, %c0_416, %c0_417] : memref<4x7x7x8x128xf32, #tpu.memory_space<vmem>>, vector<1x2x5x8x128xf32>
    %402 = vector.shape_cast %401 : vector<1x2x5x8x128xf32> to vector<2x5x8x128xf32>
    %403 = vector.shape_cast %402 : vector<2x5x8x128xf32> to vector<80x128xf32>
    %404 = arith.truncf %403 : vector<80x128xf32> to vector<80x128xbf16>
    %c19_418 = arith.constant 19 : index
    %c0_419 = arith.constant 0 : index
    %c0_420 = arith.constant 0 : index
    %405 = vector.load %arg2[%c19_418, %c0_419, %c0_420] : memref<52x128x128xbf16, #tpu.memory_space<vmem>>, vector<1x128x128xbf16>
    %406 = vector.shape_cast %405 : vector<1x128x128xbf16> to vector<128x128xbf16>
    %cst_421 = arith.constant dense<0.000000e+00> : vector<80x128xf32>
    %407 = tpu.matmul %404, %406, %cst_421 {dimension_numbers = #tpu.dot_dimension_numbers<[1], [0], [0], [1], [0, 0, 1, 1], [], []>} : vector<80x128xbf16>, vector<128x128xbf16>, vector<80x128xf32> -> vector<80x128xf32>
    %408 = arith.addf %400, %407 : vector<80x128xf32>
    %c2_422 = arith.constant 2 : index
    %c4_423 = arith.constant 4 : index
    %c2_424 = arith.constant 2 : index
    %c0_425 = arith.constant 0 : index
    %c0_426 = arith.constant 0 : index
    %409 = vector.load %arg5[%c2_422, %c4_423, %c2_424, %c0_425, %c0_426] : memref<4x7x7x8x128xf32, #tpu.memory_space<vmem>>, vector<1x2x5x8x128xf32>
    %410 = vector.shape_cast %409 : vector<1x2x5x8x128xf32> to vector<2x5x8x128xf32>
    %411 = vector.shape_cast %410 : vector<2x5x8x128xf32> to vector<80x128xf32>
    %412 = arith.truncf %411 : vector<80x128xf32> to vector<80x128xbf16>
    %c20_427 = arith.constant 20 : index
    %c0_428 = arith.constant 0 : index
    %c0_429 = arith.constant 0 : index
    %413 = vector.load %arg2[%c20_427, %c0_428, %c0_429] : memref<52x128x128xbf16, #tpu.memory_space<vmem>>, vector<1x128x128xbf16>
    %414 = vector.shape_cast %413 : vector<1x128x128xbf16> to vector<128x128xbf16>
    %cst_430 = arith.constant dense<0.000000e+00> : vector<80x128xf32>
    %415 = tpu.matmul %412, %414, %cst_430 {dimension_numbers = #tpu.dot_dimension_numbers<[1], [0], [0], [1], [0, 0, 1, 1], [], []>} : vector<80x128xbf16>, vector<128x128xbf16>, vector<80x128xf32> -> vector<80x128xf32>
    %416 = arith.addf %408, %415 : vector<80x128xf32>
    %c0_431 = arith.constant 0 : index
    %c5_432 = arith.constant 5 : index
    %c0_433 = arith.constant 0 : index
    %c0_434 = arith.constant 0 : index
    %c0_435 = arith.constant 0 : index
    %417 = vector.load %arg5[%c0_431, %c5_432, %c0_433, %c0_434, %c0_435] : memref<4x7x7x8x128xf32, #tpu.memory_space<vmem>>, vector<1x2x5x8x128xf32>
    %418 = vector.shape_cast %417 : vector<1x2x5x8x128xf32> to vector<2x5x8x128xf32>
    %419 = vector.shape_cast %418 : vector<2x5x8x128xf32> to vector<80x128xf32>
    %420 = arith.truncf %419 : vector<80x128xf32> to vector<80x128xbf16>
    %c21_436 = arith.constant 21 : index
    %c0_437 = arith.constant 0 : index
    %c0_438 = arith.constant 0 : index
    %421 = vector.load %arg2[%c21_436, %c0_437, %c0_438] : memref<52x128x128xbf16, #tpu.memory_space<vmem>>, vector<1x128x128xbf16>
    %422 = vector.shape_cast %421 : vector<1x128x128xbf16> to vector<128x128xbf16>
    %cst_439 = arith.constant dense<0.000000e+00> : vector<80x128xf32>
    %423 = tpu.matmul %420, %422, %cst_439 {dimension_numbers = #tpu.dot_dimension_numbers<[1], [0], [0], [1], [0, 0, 1, 1], [], []>} : vector<80x128xbf16>, vector<128x128xbf16>, vector<80x128xf32> -> vector<80x128xf32>
    %424 = arith.addf %416, %423 : vector<80x128xf32>
    %c1_440 = arith.constant 1 : index
    %c5_441 = arith.constant 5 : index
    %c0_442 = arith.constant 0 : index
    %c0_443 = arith.constant 0 : index
    %c0_444 = arith.constant 0 : index
    %425 = vector.load %arg5[%c1_440, %c5_441, %c0_442, %c0_443, %c0_444] : memref<4x7x7x8x128xf32, #tpu.memory_space<vmem>>, vector<1x2x5x8x128xf32>
    %426 = vector.shape_cast %425 : vector<1x2x5x8x128xf32> to vector<2x5x8x128xf32>
    %427 = vector.shape_cast %426 : vector<2x5x8x128xf32> to vector<80x128xf32>
    %428 = arith.truncf %427 : vector<80x128xf32> to vector<80x128xbf16>
    %c22_445 = arith.constant 22 : index
    %c0_446 = arith.constant 0 : index
    %c0_447 = arith.constant 0 : index
    %429 = vector.load %arg2[%c22_445, %c0_446, %c0_447] : memref<52x128x128xbf16, #tpu.memory_space<vmem>>, vector<1x128x128xbf16>
    %430 = vector.shape_cast %429 : vector<1x128x128xbf16> to vector<128x128xbf16>
    %cst_448 = arith.constant dense<0.000000e+00> : vector<80x128xf32>
    %431 = tpu.matmul %428, %430, %cst_448 {dimension_numbers = #tpu.dot_dimension_numbers<[1], [0], [0], [1], [0, 0, 1, 1], [], []>} : vector<80x128xbf16>, vector<128x128xbf16>, vector<80x128xf32> -> vector<80x128xf32>
    %432 = arith.addf %424, %431 : vector<80x128xf32>
    %c0_449 = arith.constant 0 : index
    %c5_450 = arith.constant 5 : index
    %c1_451 = arith.constant 1 : index
    %c0_452 = arith.constant 0 : index
    %c0_453 = arith.constant 0 : index
    %433 = vector.load %arg5[%c0_449, %c5_450, %c1_451, %c0_452, %c0_453] : memref<4x7x7x8x128xf32, #tpu.memory_space<vmem>>, vector<1x2x5x8x128xf32>
    %434 = vector.shape_cast %433 : vector<1x2x5x8x128xf32> to vector<2x5x8x128xf32>
    %435 = vector.shape_cast %434 : vector<2x5x8x128xf32> to vector<80x128xf32>
    %436 = arith.truncf %435 : vector<80x128xf32> to vector<80x128xbf16>
    %c23_454 = arith.constant 23 : index
    %c0_455 = arith.constant 0 : index
    %c0_456 = arith.constant 0 : index
    %437 = vector.load %arg2[%c23_454, %c0_455, %c0_456] : memref<52x128x128xbf16, #tpu.memory_space<vmem>>, vector<1x128x128xbf16>
    %438 = vector.shape_cast %437 : vector<1x128x128xbf16> to vector<128x128xbf16>
    %cst_457 = arith.constant dense<0.000000e+00> : vector<80x128xf32>
    %439 = tpu.matmul %436, %438, %cst_457 {dimension_numbers = #tpu.dot_dimension_numbers<[1], [0], [0], [1], [0, 0, 1, 1], [], []>} : vector<80x128xbf16>, vector<128x128xbf16>, vector<80x128xf32> -> vector<80x128xf32>
    %440 = arith.addf %432, %439 : vector<80x128xf32>
    %c1_458 = arith.constant 1 : index
    %c5_459 = arith.constant 5 : index
    %c1_460 = arith.constant 1 : index
    %c0_461 = arith.constant 0 : index
    %c0_462 = arith.constant 0 : index
    %441 = vector.load %arg5[%c1_458, %c5_459, %c1_460, %c0_461, %c0_462] : memref<4x7x7x8x128xf32, #tpu.memory_space<vmem>>, vector<1x2x5x8x128xf32>
    %442 = vector.shape_cast %441 : vector<1x2x5x8x128xf32> to vector<2x5x8x128xf32>
    %443 = vector.shape_cast %442 : vector<2x5x8x128xf32> to vector<80x128xf32>
    %444 = arith.truncf %443 : vector<80x128xf32> to vector<80x128xbf16>
    %c24_463 = arith.constant 24 : index
    %c0_464 = arith.constant 0 : index
    %c0_465 = arith.constant 0 : index
    %445 = vector.load %arg2[%c24_463, %c0_464, %c0_465] : memref<52x128x128xbf16, #tpu.memory_space<vmem>>, vector<1x128x128xbf16>
    %446 = vector.shape_cast %445 : vector<1x128x128xbf16> to vector<128x128xbf16>
    %cst_466 = arith.constant dense<0.000000e+00> : vector<80x128xf32>
    %447 = tpu.matmul %444, %446, %cst_466 {dimension_numbers = #tpu.dot_dimension_numbers<[1], [0], [0], [1], [0, 0, 1, 1], [], []>} : vector<80x128xbf16>, vector<128x128xbf16>, vector<80x128xf32> -> vector<80x128xf32>
    %448 = arith.addf %440, %447 : vector<80x128xf32>
    %c0_467 = arith.constant 0 : index
    %c5_468 = arith.constant 5 : index
    %c2_469 = arith.constant 2 : index
    %c0_470 = arith.constant 0 : index
    %c0_471 = arith.constant 0 : index
    %449 = vector.load %arg5[%c0_467, %c5_468, %c2_469, %c0_470, %c0_471] : memref<4x7x7x8x128xf32, #tpu.memory_space<vmem>>, vector<1x2x5x8x128xf32>
    %450 = vector.shape_cast %449 : vector<1x2x5x8x128xf32> to vector<2x5x8x128xf32>
    %451 = vector.shape_cast %450 : vector<2x5x8x128xf32> to vector<80x128xf32>
    %452 = arith.truncf %451 : vector<80x128xf32> to vector<80x128xbf16>
    %c25_472 = arith.constant 25 : index
    %c0_473 = arith.constant 0 : index
    %c0_474 = arith.constant 0 : index
    %453 = vector.load %arg2[%c25_472, %c0_473, %c0_474] : memref<52x128x128xbf16, #tpu.memory_space<vmem>>, vector<1x128x128xbf16>
    %454 = vector.shape_cast %453 : vector<1x128x128xbf16> to vector<128x128xbf16>
    %cst_475 = arith.constant dense<0.000000e+00> : vector<80x128xf32>
    %455 = tpu.matmul %452, %454, %cst_475 {dimension_numbers = #tpu.dot_dimension_numbers<[1], [0], [0], [1], [0, 0, 1, 1], [], []>} : vector<80x128xbf16>, vector<128x128xbf16>, vector<80x128xf32> -> vector<80x128xf32>
    %456 = arith.addf %448, %455 : vector<80x128xf32>
    %457 = vector.broadcast %3 : vector<1x128xf32> to vector<80x128xf32>
    %458 = arith.addf %456, %457 : vector<80x128xf32>
    %cst_476 = arith.constant 0.000000e+00 : f32
    %459 = vector.broadcast %cst_476 : f32 to vector<80x128xf32>
    %460 = arith.maximumf %458, %459 : vector<80x128xf32>
    %c120 = arith.constant 120 : index
    %c0_477 = arith.constant 0 : index
    %461 = vector.load %arg6[%c120, %c0_477] : memref<200x128xf32, #tpu.memory_space<vmem>>, vector<80x128xf32>
    tpu.vector_store %arg6[%c120, %c0_477], %460 {strides = array<i32>} : memref<200x128xf32, #tpu.memory_space<vmem>>, vector<80x128xf32>,
    %cst_478 = arith.constant 0.000000e+00 : f32
    %462 = vector.broadcast %cst_478 : f32 to vector<8x128xf32>
    %cst_479 = arith.constant 0.000000e+00 : f32
    %463 = vector.broadcast %cst_479 : f32 to vector<8x128xf32>
    %c0_480 = arith.constant 0 : index
    %c0_481 = arith.constant 0 : index
    %464 = vector.load %arg6[%c0_480, %c0_481] : memref<200x128xf32, #tpu.memory_space<vmem>>, vector<8x128xf32>
    %465 = arith.truncf %464 : vector<8x128xf32> to vector<8x128xbf16>
    %c26 = arith.constant 26 : index
    %c0_482 = arith.constant 0 : index
    %c0_483 = arith.constant 0 : index
    %466 = vector.load %arg2[%c26, %c0_482, %c0_483] : memref<52x128x128xbf16, #tpu.memory_space<vmem>>, vector<1x128x128xbf16>
    %467 = vector.shape_cast %466 : vector<1x128x128xbf16> to vector<128x128xbf16>
    %cst_484 = arith.constant dense<0.000000e+00> : vector<8x128xf32>
    %468 = tpu.matmul %465, %467, %cst_484 {dimension_numbers = #tpu.dot_dimension_numbers<[1], [0], [0], [1], [0, 0, 1, 1], [], []>} : vector<8x128xbf16>, vector<128x128xbf16>, vector<8x128xf32> -> vector<8x128xf32>
    %469 = arith.addf %463, %468 : vector<8x128xf32>
    %c8_485 = arith.constant 8 : index
    %c0_486 = arith.constant 0 : index
    %470 = vector.load %arg6[%c8_485, %c0_486] : memref<200x128xf32, #tpu.memory_space<vmem>>, vector<8x128xf32>
    %471 = arith.truncf %470 : vector<8x128xf32> to vector<8x128xbf16>
    %c27 = arith.constant 27 : index
    %c0_487 = arith.constant 0 : index
    %c0_488 = arith.constant 0 : index
    %472 = vector.load %arg2[%c27, %c0_487, %c0_488] : memref<52x128x128xbf16, #tpu.memory_space<vmem>>, vector<1x128x128xbf16>
    %473 = vector.shape_cast %472 : vector<1x128x128xbf16> to vector<128x128xbf16>
    %cst_489 = arith.constant dense<0.000000e+00> : vector<8x128xf32>
    %474 = tpu.matmul %471, %473, %cst_489 {dimension_numbers = #tpu.dot_dimension_numbers<[1], [0], [0], [1], [0, 0, 1, 1], [], []>} : vector<8x128xbf16>, vector<128x128xbf16>, vector<8x128xf32> -> vector<8x128xf32>
    %475 = arith.addf %469, %474 : vector<8x128xf32>
    %c16_490 = arith.constant 16 : index
    %c0_491 = arith.constant 0 : index
    %476 = vector.load %arg6[%c16_490, %c0_491] : memref<200x128xf32, #tpu.memory_space<vmem>>, vector<8x128xf32>
    %477 = arith.truncf %476 : vector<8x128xf32> to vector<8x128xbf16>
    %c28 = arith.constant 28 : index
    %c0_492 = arith.constant 0 : index
    %c0_493 = arith.constant 0 : index
    %478 = vector.load %arg2[%c28, %c0_492, %c0_493] : memref<52x128x128xbf16, #tpu.memory_space<vmem>>, vector<1x128x128xbf16>
    %479 = vector.shape_cast %478 : vector<1x128x128xbf16> to vector<128x128xbf16>
    %cst_494 = arith.constant dense<0.000000e+00> : vector<8x128xf32>
    %480 = tpu.matmul %477, %479, %cst_494 {dimension_numbers = #tpu.dot_dimension_numbers<[1], [0], [0], [1], [0, 0, 1, 1], [], []>} : vector<8x128xbf16>, vector<128x128xbf16>, vector<8x128xf32> -> vector<8x128xf32>
    %481 = arith.addf %475, %480 : vector<8x128xf32>
    %c24_495 = arith.constant 24 : index
    %c0_496 = arith.constant 0 : index
    %482 = vector.load %arg6[%c24_495, %c0_496] : memref<200x128xf32, #tpu.memory_space<vmem>>, vector<8x128xf32>
    %483 = arith.truncf %482 : vector<8x128xf32> to vector<8x128xbf16>
    %c29 = arith.constant 29 : index
    %c0_497 = arith.constant 0 : index
    %c0_498 = arith.constant 0 : index
    %484 = vector.load %arg2[%c29, %c0_497, %c0_498] : memref<52x128x128xbf16, #tpu.memory_space<vmem>>, vector<1x128x128xbf16>
    %485 = vector.shape_cast %484 : vector<1x128x128xbf16> to vector<128x128xbf16>
    %cst_499 = arith.constant dense<0.000000e+00> : vector<8x128xf32>
    %486 = tpu.matmul %483, %485, %cst_499 {dimension_numbers = #tpu.dot_dimension_numbers<[1], [0], [0], [1], [0, 0, 1, 1], [], []>} : vector<8x128xbf16>, vector<128x128xbf16>, vector<8x128xf32> -> vector<8x128xf32>
    %487 = arith.addf %481, %486 : vector<8x128xf32>
    %c32 = arith.constant 32 : index
    %c0_500 = arith.constant 0 : index
    %488 = vector.load %arg6[%c32, %c0_500] : memref<200x128xf32, #tpu.memory_space<vmem>>, vector<8x128xf32>
    %489 = arith.truncf %488 : vector<8x128xf32> to vector<8x128xbf16>
    %c30 = arith.constant 30 : index
    %c0_501 = arith.constant 0 : index
    %c0_502 = arith.constant 0 : index
    %490 = vector.load %arg2[%c30, %c0_501, %c0_502] : memref<52x128x128xbf16, #tpu.memory_space<vmem>>, vector<1x128x128xbf16>
    %491 = vector.shape_cast %490 : vector<1x128x128xbf16> to vector<128x128xbf16>
    %cst_503 = arith.constant dense<0.000000e+00> : vector<8x128xf32>
    %492 = tpu.matmul %489, %491, %cst_503 {dimension_numbers = #tpu.dot_dimension_numbers<[1], [0], [0], [1], [0, 0, 1, 1], [], []>} : vector<8x128xbf16>, vector<128x128xbf16>, vector<8x128xf32> -> vector<8x128xf32>
    %493 = arith.addf %487, %492 : vector<8x128xf32>
    %c40 = arith.constant 40 : index
    %c0_504 = arith.constant 0 : index
    %494 = vector.load %arg6[%c40, %c0_504] : memref<200x128xf32, #tpu.memory_space<vmem>>, vector<8x128xf32>
    %495 = arith.truncf %494 : vector<8x128xf32> to vector<8x128xbf16>
    %c31 = arith.constant 31 : index
    %c0_505 = arith.constant 0 : index
    %c0_506 = arith.constant 0 : index
    %496 = vector.load %arg2[%c31, %c0_505, %c0_506] : memref<52x128x128xbf16, #tpu.memory_space<vmem>>, vector<1x128x128xbf16>
    %497 = vector.shape_cast %496 : vector<1x128x128xbf16> to vector<128x128xbf16>
    %cst_507 = arith.constant dense<0.000000e+00> : vector<8x128xf32>
    %498 = tpu.matmul %495, %497, %cst_507 {dimension_numbers = #tpu.dot_dimension_numbers<[1], [0], [0], [1], [0, 0, 1, 1], [], []>} : vector<8x128xbf16>, vector<128x128xbf16>, vector<8x128xf32> -> vector<8x128xf32>
    %499 = arith.addf %493, %498 : vector<8x128xf32>
    %c48 = arith.constant 48 : index
    %c0_508 = arith.constant 0 : index
    %500 = vector.load %arg6[%c48, %c0_508] : memref<200x128xf32, #tpu.memory_space<vmem>>, vector<8x128xf32>
    %501 = arith.truncf %500 : vector<8x128xf32> to vector<8x128xbf16>
    %c32_509 = arith.constant 32 : index
    %c0_510 = arith.constant 0 : index
    %c0_511 = arith.constant 0 : index
    %502 = vector.load %arg2[%c32_509, %c0_510, %c0_511] : memref<52x128x128xbf16, #tpu.memory_space<vmem>>, vector<1x128x128xbf16>
    %503 = vector.shape_cast %502 : vector<1x128x128xbf16> to vector<128x128xbf16>
    %cst_512 = arith.constant dense<0.000000e+00> : vector<8x128xf32>
    %504 = tpu.matmul %501, %503, %cst_512 {dimension_numbers = #tpu.dot_dimension_numbers<[1], [0], [0], [1], [0, 0, 1, 1], [], []>} : vector<8x128xbf16>, vector<128x128xbf16>, vector<8x128xf32> -> vector<8x128xf32>
    %505 = arith.addf %499, %504 : vector<8x128xf32>
    %c56 = arith.constant 56 : index
    %c0_513 = arith.constant 0 : index
    %506 = vector.load %arg6[%c56, %c0_513] : memref<200x128xf32, #tpu.memory_space<vmem>>, vector<8x128xf32>
    %507 = arith.truncf %506 : vector<8x128xf32> to vector<8x128xbf16>
    %c33 = arith.constant 33 : index
    %c0_514 = arith.constant 0 : index
    %c0_515 = arith.constant 0 : index
    %508 = vector.load %arg2[%c33, %c0_514, %c0_515] : memref<52x128x128xbf16, #tpu.memory_space<vmem>>, vector<1x128x128xbf16>
    %509 = vector.shape_cast %508 : vector<1x128x128xbf16> to vector<128x128xbf16>
    %cst_516 = arith.constant dense<0.000000e+00> : vector<8x128xf32>
    %510 = tpu.matmul %507, %509, %cst_516 {dimension_numbers = #tpu.dot_dimension_numbers<[1], [0], [0], [1], [0, 0, 1, 1], [], []>} : vector<8x128xbf16>, vector<128x128xbf16>, vector<8x128xf32> -> vector<8x128xf32>
    %511 = arith.addf %505, %510 : vector<8x128xf32>
    %c64 = arith.constant 64 : index
    %c0_517 = arith.constant 0 : index
    %512 = vector.load %arg6[%c64, %c0_517] : memref<200x128xf32, #tpu.memory_space<vmem>>, vector<8x128xf32>
    %513 = arith.truncf %512 : vector<8x128xf32> to vector<8x128xbf16>
    %c34 = arith.constant 34 : index
    %c0_518 = arith.constant 0 : index
    %c0_519 = arith.constant 0 : index
    %514 = vector.load %arg2[%c34, %c0_518, %c0_519] : memref<52x128x128xbf16, #tpu.memory_space<vmem>>, vector<1x128x128xbf16>
    %515 = vector.shape_cast %514 : vector<1x128x128xbf16> to vector<128x128xbf16>
    %cst_520 = arith.constant dense<0.000000e+00> : vector<8x128xf32>
    %516 = tpu.matmul %513, %515, %cst_520 {dimension_numbers = #tpu.dot_dimension_numbers<[1], [0], [0], [1], [0, 0, 1, 1], [], []>} : vector<8x128xbf16>, vector<128x128xbf16>, vector<8x128xf32> -> vector<8x128xf32>
    %517 = arith.addf %511, %516 : vector<8x128xf32>
    %c72 = arith.constant 72 : index
    %c0_521 = arith.constant 0 : index
    %518 = vector.load %arg6[%c72, %c0_521] : memref<200x128xf32, #tpu.memory_space<vmem>>, vector<8x128xf32>
    %519 = arith.truncf %518 : vector<8x128xf32> to vector<8x128xbf16>
    %c35 = arith.constant 35 : index
    %c0_522 = arith.constant 0 : index
    %c0_523 = arith.constant 0 : index
    %520 = vector.load %arg2[%c35, %c0_522, %c0_523] : memref<52x128x128xbf16, #tpu.memory_space<vmem>>, vector<1x128x128xbf16>
    %521 = vector.shape_cast %520 : vector<1x128x128xbf16> to vector<128x128xbf16>
    %cst_524 = arith.constant dense<0.000000e+00> : vector<8x128xf32>
    %522 = tpu.matmul %519, %521, %cst_524 {dimension_numbers = #tpu.dot_dimension_numbers<[1], [0], [0], [1], [0, 0, 1, 1], [], []>} : vector<8x128xbf16>, vector<128x128xbf16>, vector<8x128xf32> -> vector<8x128xf32>
    %523 = arith.addf %517, %522 : vector<8x128xf32>
    %c80 = arith.constant 80 : index
    %c0_525 = arith.constant 0 : index
    %524 = vector.load %arg6[%c80, %c0_525] : memref<200x128xf32, #tpu.memory_space<vmem>>, vector<8x128xf32>
    %525 = arith.truncf %524 : vector<8x128xf32> to vector<8x128xbf16>
    %c36 = arith.constant 36 : index
    %c0_526 = arith.constant 0 : index
    %c0_527 = arith.constant 0 : index
    %526 = vector.load %arg2[%c36, %c0_526, %c0_527] : memref<52x128x128xbf16, #tpu.memory_space<vmem>>, vector<1x128x128xbf16>
    %527 = vector.shape_cast %526 : vector<1x128x128xbf16> to vector<128x128xbf16>
    %cst_528 = arith.constant dense<0.000000e+00> : vector<8x128xf32>
    %528 = tpu.matmul %525, %527, %cst_528 {dimension_numbers = #tpu.dot_dimension_numbers<[1], [0], [0], [1], [0, 0, 1, 1], [], []>} : vector<8x128xbf16>, vector<128x128xbf16>, vector<8x128xf32> -> vector<8x128xf32>
    %529 = arith.addf %523, %528 : vector<8x128xf32>
    %c88 = arith.constant 88 : index
    %c0_529 = arith.constant 0 : index
    %530 = vector.load %arg6[%c88, %c0_529] : memref<200x128xf32, #tpu.memory_space<vmem>>, vector<8x128xf32>
    %531 = arith.truncf %530 : vector<8x128xf32> to vector<8x128xbf16>
    %c37 = arith.constant 37 : index
    %c0_530 = arith.constant 0 : index
    %c0_531 = arith.constant 0 : index
    %532 = vector.load %arg2[%c37, %c0_530, %c0_531] : memref<52x128x128xbf16, #tpu.memory_space<vmem>>, vector<1x128x128xbf16>
    %533 = vector.shape_cast %532 : vector<1x128x128xbf16> to vector<128x128xbf16>
    %cst_532 = arith.constant dense<0.000000e+00> : vector<8x128xf32>
    %534 = tpu.matmul %531, %533, %cst_532 {dimension_numbers = #tpu.dot_dimension_numbers<[1], [0], [0], [1], [0, 0, 1, 1], [], []>} : vector<8x128xbf16>, vector<128x128xbf16>, vector<8x128xf32> -> vector<8x128xf32>
    %535 = arith.addf %529, %534 : vector<8x128xf32>
    %c96 = arith.constant 96 : index
    %c0_533 = arith.constant 0 : index
    %536 = vector.load %arg6[%c96, %c0_533] : memref<200x128xf32, #tpu.memory_space<vmem>>, vector<8x128xf32>
    %537 = arith.truncf %536 : vector<8x128xf32> to vector<8x128xbf16>
    %c38 = arith.constant 38 : index
    %c0_534 = arith.constant 0 : index
    %c0_535 = arith.constant 0 : index
    %538 = vector.load %arg2[%c38, %c0_534, %c0_535] : memref<52x128x128xbf16, #tpu.memory_space<vmem>>, vector<1x128x128xbf16>
    %539 = vector.shape_cast %538 : vector<1x128x128xbf16> to vector<128x128xbf16>
    %cst_536 = arith.constant dense<0.000000e+00> : vector<8x128xf32>
    %540 = tpu.matmul %537, %539, %cst_536 {dimension_numbers = #tpu.dot_dimension_numbers<[1], [0], [0], [1], [0, 0, 1, 1], [], []>} : vector<8x128xbf16>, vector<128x128xbf16>, vector<8x128xf32> -> vector<8x128xf32>
    %541 = arith.addf %535, %540 : vector<8x128xf32>
    %c104 = arith.constant 104 : index
    %c0_537 = arith.constant 0 : index
    %542 = vector.load %arg6[%c104, %c0_537] : memref<200x128xf32, #tpu.memory_space<vmem>>, vector<8x128xf32>
    %543 = arith.truncf %542 : vector<8x128xf32> to vector<8x128xbf16>
    %c39 = arith.constant 39 : index
    %c0_538 = arith.constant 0 : index
    %c0_539 = arith.constant 0 : index
    %544 = vector.load %arg2[%c39, %c0_538, %c0_539] : memref<52x128x128xbf16, #tpu.memory_space<vmem>>, vector<1x128x128xbf16>
    %545 = vector.shape_cast %544 : vector<1x128x128xbf16> to vector<128x128xbf16>
    %cst_540 = arith.constant dense<0.000000e+00> : vector<8x128xf32>
    %546 = tpu.matmul %543, %545, %cst_540 {dimension_numbers = #tpu.dot_dimension_numbers<[1], [0], [0], [1], [0, 0, 1, 1], [], []>} : vector<8x128xbf16>, vector<128x128xbf16>, vector<8x128xf32> -> vector<8x128xf32>
    %547 = arith.addf %541, %546 : vector<8x128xf32>
    %c112 = arith.constant 112 : index
    %c0_541 = arith.constant 0 : index
    %548 = vector.load %arg6[%c112, %c0_541] : memref<200x128xf32, #tpu.memory_space<vmem>>, vector<8x128xf32>
    %549 = arith.truncf %548 : vector<8x128xf32> to vector<8x128xbf16>
    %c40_542 = arith.constant 40 : index
    %c0_543 = arith.constant 0 : index
    %c0_544 = arith.constant 0 : index
    %550 = vector.load %arg2[%c40_542, %c0_543, %c0_544] : memref<52x128x128xbf16, #tpu.memory_space<vmem>>, vector<1x128x128xbf16>
    %551 = vector.shape_cast %550 : vector<1x128x128xbf16> to vector<128x128xbf16>
    %cst_545 = arith.constant dense<0.000000e+00> : vector<8x128xf32>
    %552 = tpu.matmul %549, %551, %cst_545 {dimension_numbers = #tpu.dot_dimension_numbers<[1], [0], [0], [1], [0, 0, 1, 1], [], []>} : vector<8x128xbf16>, vector<128x128xbf16>, vector<8x128xf32> -> vector<8x128xf32>
    %553 = arith.addf %547, %552 : vector<8x128xf32>
    %c120_546 = arith.constant 120 : index
    %c0_547 = arith.constant 0 : index
    %554 = vector.load %arg6[%c120_546, %c0_547] : memref<200x128xf32, #tpu.memory_space<vmem>>, vector<8x128xf32>
    %555 = arith.truncf %554 : vector<8x128xf32> to vector<8x128xbf16>
    %c41 = arith.constant 41 : index
    %c0_548 = arith.constant 0 : index
    %c0_549 = arith.constant 0 : index
    %556 = vector.load %arg2[%c41, %c0_548, %c0_549] : memref<52x128x128xbf16, #tpu.memory_space<vmem>>, vector<1x128x128xbf16>
    %557 = vector.shape_cast %556 : vector<1x128x128xbf16> to vector<128x128xbf16>
    %cst_550 = arith.constant dense<0.000000e+00> : vector<8x128xf32>
    %558 = tpu.matmul %555, %557, %cst_550 {dimension_numbers = #tpu.dot_dimension_numbers<[1], [0], [0], [1], [0, 0, 1, 1], [], []>} : vector<8x128xbf16>, vector<128x128xbf16>, vector<8x128xf32> -> vector<8x128xf32>
    %559 = arith.addf %553, %558 : vector<8x128xf32>
    %c128 = arith.constant 128 : index
    %c0_551 = arith.constant 0 : index
    %560 = vector.load %arg6[%c128, %c0_551] : memref<200x128xf32, #tpu.memory_space<vmem>>, vector<8x128xf32>
    %561 = arith.truncf %560 : vector<8x128xf32> to vector<8x128xbf16>
    %c42 = arith.constant 42 : index
    %c0_552 = arith.constant 0 : index
    %c0_553 = arith.constant 0 : index
    %562 = vector.load %arg2[%c42, %c0_552, %c0_553] : memref<52x128x128xbf16, #tpu.memory_space<vmem>>, vector<1x128x128xbf16>
    %563 = vector.shape_cast %562 : vector<1x128x128xbf16> to vector<128x128xbf16>
    %cst_554 = arith.constant dense<0.000000e+00> : vector<8x128xf32>
    %564 = tpu.matmul %561, %563, %cst_554 {dimension_numbers = #tpu.dot_dimension_numbers<[1], [0], [0], [1], [0, 0, 1, 1], [], []>} : vector<8x128xbf16>, vector<128x128xbf16>, vector<8x128xf32> -> vector<8x128xf32>
    %565 = arith.addf %559, %564 : vector<8x128xf32>
    %c136 = arith.constant 136 : index
    %c0_555 = arith.constant 0 : index
    %566 = vector.load %arg6[%c136, %c0_555] : memref<200x128xf32, #tpu.memory_space<vmem>>, vector<8x128xf32>
    %567 = arith.truncf %566 : vector<8x128xf32> to vector<8x128xbf16>
    %c43 = arith.constant 43 : index
    %c0_556 = arith.constant 0 : index
    %c0_557 = arith.constant 0 : index
    %568 = vector.load %arg2[%c43, %c0_556, %c0_557] : memref<52x128x128xbf16, #tpu.memory_space<vmem>>, vector<1x128x128xbf16>
    %569 = vector.shape_cast %568 : vector<1x128x128xbf16> to vector<128x128xbf16>
    %cst_558 = arith.constant dense<0.000000e+00> : vector<8x128xf32>
    %570 = tpu.matmul %567, %569, %cst_558 {dimension_numbers = #tpu.dot_dimension_numbers<[1], [0], [0], [1], [0, 0, 1, 1], [], []>} : vector<8x128xbf16>, vector<128x128xbf16>, vector<8x128xf32> -> vector<8x128xf32>
    %571 = arith.addf %565, %570 : vector<8x128xf32>
    %c144 = arith.constant 144 : index
    %c0_559 = arith.constant 0 : index
    %572 = vector.load %arg6[%c144, %c0_559] : memref<200x128xf32, #tpu.memory_space<vmem>>, vector<8x128xf32>
    %573 = arith.truncf %572 : vector<8x128xf32> to vector<8x128xbf16>
    %c44 = arith.constant 44 : index
    %c0_560 = arith.constant 0 : index
    %c0_561 = arith.constant 0 : index
    %574 = vector.load %arg2[%c44, %c0_560, %c0_561] : memref<52x128x128xbf16, #tpu.memory_space<vmem>>, vector<1x128x128xbf16>
    %575 = vector.shape_cast %574 : vector<1x128x128xbf16> to vector<128x128xbf16>
    %cst_562 = arith.constant dense<0.000000e+00> : vector<8x128xf32>
    %576 = tpu.matmul %573, %575, %cst_562 {dimension_numbers = #tpu.dot_dimension_numbers<[1], [0], [0], [1], [0, 0, 1, 1], [], []>} : vector<8x128xbf16>, vector<128x128xbf16>, vector<8x128xf32> -> vector<8x128xf32>
    %577 = arith.addf %571, %576 : vector<8x128xf32>
    %c152 = arith.constant 152 : index
    %c0_563 = arith.constant 0 : index
    %578 = vector.load %arg6[%c152, %c0_563] : memref<200x128xf32, #tpu.memory_space<vmem>>, vector<8x128xf32>
    %579 = arith.truncf %578 : vector<8x128xf32> to vector<8x128xbf16>
    %c45 = arith.constant 45 : index
    %c0_564 = arith.constant 0 : index
    %c0_565 = arith.constant 0 : index
    %580 = vector.load %arg2[%c45, %c0_564, %c0_565] : memref<52x128x128xbf16, #tpu.memory_space<vmem>>, vector<1x128x128xbf16>
    %581 = vector.shape_cast %580 : vector<1x128x128xbf16> to vector<128x128xbf16>
    %cst_566 = arith.constant dense<0.000000e+00> : vector<8x128xf32>
    %582 = tpu.matmul %579, %581, %cst_566 {dimension_numbers = #tpu.dot_dimension_numbers<[1], [0], [0], [1], [0, 0, 1, 1], [], []>} : vector<8x128xbf16>, vector<128x128xbf16>, vector<8x128xf32> -> vector<8x128xf32>
    %583 = arith.addf %577, %582 : vector<8x128xf32>
    %c160 = arith.constant 160 : index
    %c0_567 = arith.constant 0 : index
    %584 = vector.load %arg6[%c160, %c0_567] : memref<200x128xf32, #tpu.memory_space<vmem>>, vector<8x128xf32>
    %585 = arith.truncf %584 : vector<8x128xf32> to vector<8x128xbf16>
    %c46 = arith.constant 46 : index
    %c0_568 = arith.constant 0 : index
    %c0_569 = arith.constant 0 : index
    %586 = vector.load %arg2[%c46, %c0_568, %c0_569] : memref<52x128x128xbf16, #tpu.memory_space<vmem>>, vector<1x128x128xbf16>
    %587 = vector.shape_cast %586 : vector<1x128x128xbf16> to vector<128x128xbf16>
    %cst_570 = arith.constant dense<0.000000e+00> : vector<8x128xf32>
    %588 = tpu.matmul %585, %587, %cst_570 {dimension_numbers = #tpu.dot_dimension_numbers<[1], [0], [0], [1], [0, 0, 1, 1], [], []>} : vector<8x128xbf16>, vector<128x128xbf16>, vector<8x128xf32> -> vector<8x128xf32>
    %589 = arith.addf %583, %588 : vector<8x128xf32>
    %c168 = arith.constant 168 : index
    %c0_571 = arith.constant 0 : index
    %590 = vector.load %arg6[%c168, %c0_571] : memref<200x128xf32, #tpu.memory_space<vmem>>, vector<8x128xf32>
    %591 = arith.truncf %590 : vector<8x128xf32> to vector<8x128xbf16>
    %c47 = arith.constant 47 : index
    %c0_572 = arith.constant 0 : index
    %c0_573 = arith.constant 0 : index
    %592 = vector.load %arg2[%c47, %c0_572, %c0_573] : memref<52x128x128xbf16, #tpu.memory_space<vmem>>, vector<1x128x128xbf16>
    %593 = vector.shape_cast %592 : vector<1x128x128xbf16> to vector<128x128xbf16>
    %cst_574 = arith.constant dense<0.000000e+00> : vector<8x128xf32>
    %594 = tpu.matmul %591, %593, %cst_574 {dimension_numbers = #tpu.dot_dimension_numbers<[1], [0], [0], [1], [0, 0, 1, 1], [], []>} : vector<8x128xbf16>, vector<128x128xbf16>, vector<8x128xf32> -> vector<8x128xf32>
    %595 = arith.addf %589, %594 : vector<8x128xf32>
    %c176 = arith.constant 176 : index
    %c0_575 = arith.constant 0 : index
    %596 = vector.load %arg6[%c176, %c0_575] : memref<200x128xf32, #tpu.memory_space<vmem>>, vector<8x128xf32>
    %597 = arith.truncf %596 : vector<8x128xf32> to vector<8x128xbf16>
    %c48_576 = arith.constant 48 : index
    %c0_577 = arith.constant 0 : index
    %c0_578 = arith.constant 0 : index
    %598 = vector.load %arg2[%c48_576, %c0_577, %c0_578] : memref<52x128x128xbf16, #tpu.memory_space<vmem>>, vector<1x128x128xbf16>
    %599 = vector.shape_cast %598 : vector<1x128x128xbf16> to vector<128x128xbf16>
    %cst_579 = arith.constant dense<0.000000e+00> : vector<8x128xf32>
    %600 = tpu.matmul %597, %599, %cst_579 {dimension_numbers = #tpu.dot_dimension_numbers<[1], [0], [0], [1], [0, 0, 1, 1], [], []>} : vector<8x128xbf16>, vector<128x128xbf16>, vector<8x128xf32> -> vector<8x128xf32>
    %601 = arith.addf %595, %600 : vector<8x128xf32>
    %c184 = arith.constant 184 : index
    %c0_580 = arith.constant 0 : index
    %602 = vector.load %arg6[%c184, %c0_580] : memref<200x128xf32, #tpu.memory_space<vmem>>, vector<8x128xf32>
    %603 = arith.truncf %602 : vector<8x128xf32> to vector<8x128xbf16>
    %c49 = arith.constant 49 : index
    %c0_581 = arith.constant 0 : index
    %c0_582 = arith.constant 0 : index
    %604 = vector.load %arg2[%c49, %c0_581, %c0_582] : memref<52x128x128xbf16, #tpu.memory_space<vmem>>, vector<1x128x128xbf16>
    %605 = vector.shape_cast %604 : vector<1x128x128xbf16> to vector<128x128xbf16>
    %cst_583 = arith.constant dense<0.000000e+00> : vector<8x128xf32>
    %606 = tpu.matmul %603, %605, %cst_583 {dimension_numbers = #tpu.dot_dimension_numbers<[1], [0], [0], [1], [0, 0, 1, 1], [], []>} : vector<8x128xbf16>, vector<128x128xbf16>, vector<8x128xf32> -> vector<8x128xf32>
    %607 = arith.addf %601, %606 : vector<8x128xf32>
    %c192 = arith.constant 192 : index
    %c0_584 = arith.constant 0 : index
    %608 = vector.load %arg6[%c192, %c0_584] : memref<200x128xf32, #tpu.memory_space<vmem>>, vector<8x128xf32>
    %609 = arith.truncf %608 : vector<8x128xf32> to vector<8x128xbf16>
    %c50 = arith.constant 50 : index
    %c0_585 = arith.constant 0 : index
    %c0_586 = arith.constant 0 : index
    %610 = vector.load %arg2[%c50, %c0_585, %c0_586] : memref<52x128x128xbf16, #tpu.memory_space<vmem>>, vector<1x128x128xbf16>
    %611 = vector.shape_cast %610 : vector<1x128x128xbf16> to vector<128x128xbf16>
    %cst_587 = arith.constant dense<0.000000e+00> : vector<8x128xf32>
    %612 = tpu.matmul %609, %611, %cst_587 {dimension_numbers = #tpu.dot_dimension_numbers<[1], [0], [0], [1], [0, 0, 1, 1], [], []>} : vector<8x128xbf16>, vector<128x128xbf16>, vector<8x128xf32> -> vector<8x128xf32>
    %613 = arith.addf %607, %612 : vector<8x128xf32>
    %614 = vector.broadcast %5 : vector<1x128xf32> to vector<8x128xf32>
    %615 = arith.addf %613, %614 : vector<8x128xf32>
    %cst_588 = arith.constant 0.000000e+00 : f32
    %616 = vector.broadcast %cst_588 : f32 to vector<8x128xf32>
    %617 = arith.maximumf %615, %616 : vector<8x128xf32>
    %618 = arith.truncf %617 : vector<8x128xf32> to vector<8x128xbf16>
    %c51 = arith.constant 51 : index
    %c0_589 = arith.constant 0 : index
    %c0_590 = arith.constant 0 : index
    %619 = vector.load %arg2[%c51, %c0_589, %c0_590] : memref<52x128x128xbf16, #tpu.memory_space<vmem>>, vector<1x128x128xbf16>
    %620 = vector.shape_cast %619 : vector<1x128x128xbf16> to vector<128x128xbf16>
    %cst_591 = arith.constant dense<0.000000e+00> : vector<8x128xf32>
    %621 = tpu.matmul %618, %620, %cst_591 {dimension_numbers = #tpu.dot_dimension_numbers<[1], [0], [0], [1], [0, 0, 1, 1], [], []>} : vector<8x128xbf16>, vector<128x128xbf16>, vector<8x128xf32> -> vector<8x128xf32>
    %622 = arith.addf %462, %621 : vector<8x128xf32>
    %623 = vector.broadcast %7 : vector<1x128xf32> to vector<8x128xf32>
    %624 = arith.addf %622, %623 : vector<8x128xf32>
    %c0_592 = arith.constant 0 : index
    %c0_593 = arith.constant 0 : index
    %625 = vector.load %arg4[%c0_592, %c0_593] : memref<8x128xf32, #tpu.memory_space<vmem>>, vector<8x128xf32>
    tpu.vector_store %arg4[%c0_592, %c0_593], %624 {strides = array<i32>} : memref<8x128xf32, #tpu.memory_space<vmem>>, vector<8x128xf32>,
    return
  }
  func.func @transform_0(%arg0: i32) -> (i32, i32) {
    %c0_i32 = arith.constant 0 : i32
    %c0_i32_0 = arith.constant 0 : i32
    return %arg0, %c0_i32 : i32, i32
  }
  func.func @transform_1(%arg0: i32) -> (i32, i32, i32) {
    %c0_i32 = arith.constant 0 : i32
    %c0_i32_0 = arith.constant 0 : i32
    %c0_i32_1 = arith.constant 0 : i32
    %c0_i32_2 = arith.constant 0 : i32
    return %c0_i32, %c0_i32_0, %c0_i32_1 : i32, i32, i32
  }
  func.func @transform_2(%arg0: i32) -> (i32, i32, i32) {
    %c0_i32 = arith.constant 0 : i32
    %c0_i32_0 = arith.constant 0 : i32
    %c0_i32_1 = arith.constant 0 : i32
    %c0_i32_2 = arith.constant 0 : i32
    return %c0_i32, %c0_i32_0, %c0_i32_1 : i32, i32, i32
  }
  func.func @transform_3(%arg0: i32) -> (i32, i32) {
    %c0_i32 = arith.constant 0 : i32
    %c0_i32_0 = arith.constant 0 : i32
    return %arg0, %c0_i32 : i32, i32
  }
}

</mosaic_0001>

<bundles_post_ra>
// kernel: qnet_forward.1
= control target key start
LH: loop header
LB: loop body
LE: loop exit
PB: predicated region body
PF: predicated region fallthrough
CT: control target
= control target key end

     0   :  { %s19675_s1 = inlined_call_operand.vmem [shape: bf16[52,128,128], index: 1, kind: input, shape index: {}]   ;;  %s19676_s2 = inlined_call_operand.vmem [shape: f32[4,1,128], index: 2, kind: input, shape index: {}]   ;;  %s19677_s0 = inlined_call_operand.vmem [shape: bf16[1568,128], index: 0, kind: input, shape index: {}]   ;;  %s19678_s3 = inlined_call_operand.vmem [shape: f32[8,128], index: 3, kind: output, shape index: {}]  }
   0x1   :  { %v14916_v0 = vld [vmem:[%s19675_s1 + $0x38] sm:$0xff]  ;;  %v14915_v1 = vld [vmem:[%s19675_s1 + $0x30] sm:$0xff]  ;;  %v14914_v2 = vld [vmem:[%s19675_s1 + $0x28] sm:$0xff] }
   0x2   :  { %285 = vmatpush.bf16.msra.mxu0 %v14916_v0  ;;  %713 = vmatpush.bf16.msra.mxu1 %v14916_v0  ;;  %v14913_v3 = vld [vmem:[%s19675_s1 + $0x20] sm:$0xff]  ;;  %v14912_v4 = vld [vmem:[%s19675_s1 + $0x18] sm:$0xff]  ;;  %v14911_v5 = vld [vmem:[%s19675_s1 + $0x10] sm:$0xff] }
   0x3   :  { %1142 = vmatpush.bf16.msra.mxu2 %v14916_v0  ;;  %1571 = vmatpush.bf16.msra.mxu3 %v14916_v0  ;;  %v14910_v6 = vld [vmem:[%s19675_s1 + $0x8] sm:$0xff]  ;;  %v14909_v7 = vld [vmem:[%s19675_s1] sm:$0xff]  ;;  %v15036_v8 = vld [vmem:[%s19675_s1 + $0xf8] sm:$0xff] }
   0x4   :  { %v15020_v9 = vld [vmem:[%s19675_s1 + $0x78] sm:$0xff]  ;;  %v14917_v10 = vld [vmem:[%s19677_s0] sm:$0xff]  ;;  %v14965_v12 = vld [vmem:[%s19677_s0 + $0x188] sm:$0xff] }
   0x5   :  { %v14941_v11 = vld [vmem:[%s19677_s0 + $0xc4] sm:$0xff]  ;;  %v14989_v13 = vld [vmem:[%s19677_s0 + $0x24c] sm:$0xff]  ;;  %v15028_v14 = vld [vmem:[%s19675_s1 + $0xb8] sm:$0xff] }
   0x6   :  { %286 = vmatpush.bf16.msra.mxu0 %v14915_v1  ;;  %714 = vmatpush.bf16.msra.mxu1 %v14915_v1  ;;  %v14918_v15 = vld [vmem:[%s19677_s0 + $0x8] sm:$0xff]  ;;  %v14966_v17 = vld [vmem:[%s19677_s0 + $0x190] sm:$0xff]  ;;  %v14967_v23 = vld [vmem:[%s19677_s0 + $0x198] sm:$0xff] }
   0x7   :  { %1143 = vmatpush.bf16.msra.mxu2 %v14915_v1  ;;  %1572 = vmatpush.bf16.msra.mxu3 %v14915_v1  ;;  %v14942_v16 = vld [vmem:[%s19677_s0 + $0xcc] sm:$0xff]  ;;  %v14990_v18 = vld [vmem:[%s19677_s0 + $0x254] sm:$0xff]  ;;  %v14991_v24 = vld [vmem:[%s19677_s0 + $0x25c] sm:$0xff] }
   0x8   :  { %v15035_v19 = vld [vmem:[%s19675_s1 + $0xf0] sm:$0xff]  ;;  %v15044_v25 = vld [vmem:[%s19675_s1 + $0x138] sm:$0xff]  ;;  %v14968_v28 = vld [vmem:[%s19677_s0 + $0x1a0] sm:$0xff] }
   0x9   :  { %v15019_v20 = vld [vmem:[%s19675_s1 + $0x70] sm:$0xff]  ;;  %v14920_v26 = vld [vmem:[%s19677_s0 + $0x18] sm:$0xff]  ;;  %v14992_v29 = vld [vmem:[%s19677_s0 + $0x264] sm:$0xff] }
   0xa   :  { %287 = vmatpush.bf16.msra.mxu0 %v14914_v2  ;;  %715 = vmatpush.bf16.msra.mxu1 %v14914_v2  ;;  %v14919_v21 = vld [vmem:[%s19677_s0 + $0x10] sm:$0xff]  ;;  %v14944_v27 = vld [vmem:[%s19677_s0 + $0xdc] sm:$0xff]  ;;  %v14945_v32 = vld [vmem:[%s19677_s0 + $0xe4] sm:$0xff] }
   0xb   :  { %1144 = vmatpush.bf16.msra.mxu2 %v14914_v2  ;;  %1573 = vmatpush.bf16.msra.mxu3 %v14914_v2  ;;  %v14943_v22 = vld [vmem:[%s19677_s0 + $0xd4] sm:$0xff]  ;;  %v14921_v31 = vld [vmem:[%s19677_s0 + $0x20] sm:$0xff]  ;;  %v14969_v33 = vld [vmem:[%s19677_s0 + $0x1a8] sm:$0xff] }
   0xc   :  { %v15027_v30 = vld [vmem:[%s19675_s1 + $0xb0] sm:$0xff]  ;;  %v15034_v35 = vld [vmem:[%s19675_s1 + $0xe8] sm:$0xff]  ;;  %v14971_v44 = vld [vmem:[%s19677_s0 + $0x1b8] sm:$0xff] }
   0xd   :  { %v14993_v34 = vld [vmem:[%s19677_s0 + $0x26c] sm:$0xff]  ;;  %v14994_v40 = vld [vmem:[%s19677_s0 + $0x274] sm:$0xff]  ;;  %v14995_v45 = vld [vmem:[%s19677_s0 + $0x27c] sm:$0xff] }
   0xe   :  { %288 = vmatpush.bf16.msra.mxu0 %v14913_v3  ;;  %716 = vmatpush.bf16.msra.mxu1 %v14913_v3  ;;  %v15018_v36 = vld [vmem:[%s19675_s1 + $0x68] sm:$0xff]  ;;  %v14970_v39 = vld [vmem:[%s19677_s0 + $0x1b0] sm:$0xff]  ;;  %v14924_v47 = vld [vmem:[%s19677_s0 + $0x38] sm:$0xff] }
   0xf   :  { %1145 = vmatpush.bf16.msra.mxu2 %v14913_v3  ;;  %1574 = vmatpush.bf16.msra.mxu3 %v14913_v3  ;;  %v14922_v37 = vld [vmem:[%s19677_s0 + $0x28] sm:$0xff]  ;;  %v15043_v41 = vld [vmem:[%s19675_s1 + $0x130] sm:$0xff]  ;;  %v14948_v48 = vld [vmem:[%s19677_s0 + $0xfc] sm:$0xff] }
  0x10   :  { %v14946_v38 = vld [vmem:[%s19677_s0 + $0xec] sm:$0xff]  ;;  %v14947_v43 = vld [vmem:[%s19677_s0 + $0xf4] sm:$0xff]  ;;  %v14972_v49 = vld [vmem:[%s19677_s0 + $0x1c0] sm:$0xff] }
  0x11   :  { %v14923_v42 = vld [vmem:[%s19677_s0 + $0x30] sm:$0xff]  ;;  %v15026_v46 = vld [vmem:[%s19675_s1 + $0xa8] sm:$0xff]  ;;  %v15033_v51 = vld [vmem:[%s19675_s1 + $0xe0] sm:$0xff] }
  0x12   :  { %289 = vmatpush.bf16.msra.mxu0 %v14912_v4  ;;  %717 = vmatpush.bf16.msra.mxu1 %v14912_v4  ;;  %v14996_v50 = vld [vmem:[%s19677_s0 + $0x284] sm:$0xff]  ;;  %v14997_v58 = vld [vmem:[%s19677_s0 + $0x28c] sm:$0xff]  ;;  %v15821_v59 = vld [vmem:[%s19676_s2] ss:$0 sm:$0xff] }
  0x13   :  { %1146 = vmatpush.bf16.msra.mxu2 %v14912_v4  ;;  %1575 = vmatpush.bf16.msra.mxu3 %v14912_v4  ;;  %v15017_v52 = vld [vmem:[%s19675_s1 + $0x60] sm:$0xff]  ;;  %v14973_v57 = vld [vmem:[%s19677_s0 + $0x1c8] sm:$0xff] }
  0x14   :  { %v14925_v53 = vld [vmem:[%s19677_s0 + $0x40] sm:$0xff] }
  0x15   :  { %v14949_v54 = vld [vmem:[%s19677_s0 + $0x104] sm:$0xff] }
  0x16   :  { %290 = vmatpush.bf16.msra.mxu0 %v14911_v5  ;;  %718 = vmatpush.bf16.msra.mxu1 %v14911_v5 }
  0x17   :  { %1147 = vmatpush.bf16.msra.mxu2 %v14911_v5  ;;  %1576 = vmatpush.bf16.msra.mxu3 %v14911_v5 }
  0x1a   :  { %291 = vmatpush.bf16.msra.mxu0 %v14910_v6  ;;  %719 = vmatpush.bf16.msra.mxu1 %v14910_v6 }
  0x1b   :  { %1148 = vmatpush.bf16.msra.mxu2 %v14910_v6  ;;  %1577 = vmatpush.bf16.msra.mxu3 %v14910_v6 }
  0x1e   :  { %292 = vmatpush.bf16.msra.mxu0 %v14909_v7  ;;  %720 = vmatpush.bf16.msra.mxu1 %v14909_v7 }
  0x1f   :  { %1149 = vmatpush.bf16.msra.mxu2 %v14909_v7  ;;  %1578 = vmatpush.bf16.msra.mxu3 %v14909_v7 }
  0x21   :  { %293 = vmatmul.bf16.vlgmr.msra.gmra.mxu0 %v14917_v10  ;;  %721 = vmatmul.bf16.vlgmr.msra.gmra.mxu1 %v14941_v11 }
  0x22   :  { %2027 = vmatpush.bf16.msrb.mxu1 %v15020_v9  ;;  %1150 = vmatmul.bf16.vlgmr.msra.gmra.mxu2 %v14965_v12 }
  0x23   :  { %2164 = vmatpush.bf16.msrb.mxu2 %v15036_v8  ;;  %1579 = vmatmul.bf16.vlgmr.msra.gmra.mxu3 %v14989_v13 }
  0x24   :  { %1931 = vmatpush.bf16.msrb.mxu0 %v15028_v14  ;;  %2316 = vmatpush.bf16.msrb.mxu3 %v15044_v25  ;;  %v14926_v14 = vld [vmem:[%s19677_s0 + $0x48] sm:$0xff] }
  0x26   :  { %2028 = vmatpush.bf16.msrb.mxu1 %v15019_v20 }
  0x27   :  { %2165 = vmatpush.bf16.msrb.mxu2 %v15035_v19 }
  0x28   :  { %1932 = vmatpush.bf16.msrb.mxu0 %v15027_v30  ;;  %2317 = vmatpush.bf16.msrb.mxu3 %v15043_v41  ;;  %v15042_v30 = vld [vmem:[%s19675_s1 + $0x128] sm:$0xff] }
  0x2a   :  { %2029 = vmatpush.bf16.msrb.mxu1 %v15018_v36 }
  0x2b   :  { %2166 = vmatpush.bf16.msrb.mxu2 %v15034_v35 }
  0x2c   :  { %1933 = vmatpush.bf16.msrb.mxu0 %v15026_v46  ;;  %2318 = vmatpush.bf16.msrb.mxu3 %v15042_v30 }
  0x2e   :  { %2030 = vmatpush.bf16.msrb.mxu1 %v15017_v52 }
  0x2f   :  { %2167 = vmatpush.bf16.msrb.mxu2 %v15033_v51 }
  0x31   :  { %298 = vmatmul.bf16.gmra.mxu0 %v14918_v15  ;;  %726 = vmatmul.bf16.gmra.mxu1 %v14942_v16  ;;  %v14950_v15 = vld [vmem:[%s19677_s0 + $0x10c] sm:$0xff] }
  0x32   :  { %1155 = vmatmul.bf16.gmra.mxu2 %v14966_v17 }
  0x33   :  { %1584 = vmatmul.bf16.gmra.mxu3 %v14990_v18 }
  0x41   :  { %303 = vmatmul.bf16.gmra.mxu0 %v14919_v21  ;;  %731 = vmatmul.bf16.gmra.mxu1 %v14943_v22  ;;  %v14974_v21 = vld [vmem:[%s19677_s0 + $0x1d0] sm:$0xff] }
  0x42   :  { %1160 = vmatmul.bf16.gmra.mxu2 %v14967_v23  ;;  %v14998_v22 = vld [vmem:[%s19677_s0 + $0x294] sm:$0xff] }
  0x43   :  { %1589 = vmatmul.bf16.gmra.mxu3 %v14991_v24 }
  0x51   :  { %308 = vmatmul.bf16.gmra.mxu0 %v14920_v26  ;;  %736 = vmatmul.bf16.gmra.mxu1 %v14944_v27 }
  0x52   :  { %1165 = vmatmul.bf16.gmra.mxu2 %v14968_v28 }
  0x53   :  { %1594 = vmatmul.bf16.gmra.mxu3 %v14992_v29 }
  0x61   :  { %313 = vmatmul.bf16.gmra.mxu0 %v14921_v31  ;;  %741 = vmatmul.bf16.gmra.mxu1 %v14945_v32 }
  0x62   :  { %1170 = vmatmul.bf16.gmra.mxu2 %v14969_v33 }
  0x63   :  { %1599 = vmatmul.bf16.gmra.mxu3 %v14993_v34 }
  0x71   :  { %318 = vmatmul.bf16.gmra.mxu0 %v14922_v37  ;;  %746 = vmatmul.bf16.gmra.mxu1 %v14946_v38 }
  0x72   :  { %1175 = vmatmul.bf16.gmra.mxu2 %v14970_v39 }
  0x73   :  { %1604 = vmatmul.bf16.gmra.mxu3 %v14994_v40 }
  0x81   :  { %323 = vmatmul.bf16.gmra.mxu0 %v14923_v42  ;;  %751 = vmatmul.bf16.gmra.mxu1 %v14947_v43 }
  0x82   :  { %1180 = vmatmul.bf16.gmra.mxu2 %v14971_v44 }
  0x83   :  { %1609 = vmatmul.bf16.gmra.mxu3 %v14995_v45 }
  0x91   :  { %328 = vmatmul.bf16.gmra.mxu0 %v14924_v47  ;;  %756 = vmatmul.bf16.gmra.mxu1 %v14948_v48  ;;  %v15025_v47 = vld [vmem:[%s19675_s1 + $0xa0] sm:$0xff] }
  0x92   :  { %1185 = vmatmul.bf16.gmra.mxu2 %v14972_v49  ;;  %1934 = vmatpush.bf16.msrb.mxu0 %v15025_v47 }
  0x93   :  { %1614 = vmatmul.bf16.gmra.mxu3 %v14996_v50 }
  0x9e   :  { %v294_v55 = vpop.f32.mrf.mxu0  ;;  %v722_v56 = vpop.f32.mrf.mxu1 }
  0x9f   :  { %v295_v60 = vadd.f32 %v15821_v59, %v294_v55  ;;  %v723_v61 = vadd.f32 %v15821_v59, %v722_v56  ;;  %v14951_v55 = vld [vmem:[%s19677_s0 + $0x114] sm:$0xff] }
  0xa1   :  { %333 = vmatmul.bf16.gmra.mxu0 %v14925_v53  ;;  %761 = vmatmul.bf16.gmra.mxu1 %v14949_v54  ;;  %v418_v2 = vmax.f32 %v295_v60, 0.0  ;;  %v846_v5 = vmax.f32 %v723_v61, 0.0  ;;  %v14927_v54 = vld [vmem:[%s19677_s0 + $0x50] sm:$0xff]  ;;  %v14975_v61 = vld [vmem:[%s19677_s0 + $0x1d8] sm:$0xff] }
  0xa2   :  { %1190 = vmatmul.bf16.gmra.mxu2 %v14973_v57 }
  0xa3   :  { %1619 = vmatmul.bf16.gmra.mxu3 %v14997_v58 }
  0xa5   :  { %v1151_v62 = vpop.f32.mrf.mxu2 }
  0xa6   :  { %v1580_v63 = vpop.f32.mrf.mxu3  ;;  %v296_v0 = vpop.f32.mrf.mxu0  ;;  %v1152_v11 = vadd.f32 %v15821_v59, %v1151_v62  ;;  %v14999_v62 = vld [vmem:[%s19677_s0 + $0x29c] sm:$0xff] }
  0xa7   :  { %v724_v1 = vpop.f32.mrf.mxu1  ;;  %v297_v3 = vadd.f32 %v15821_v59, %v296_v0  ;;  %v1581_v8 = vadd.f32 %v15821_v59, %v1580_v63 }
  0xa8   :  { %v725_v4 = vadd.f32 %v15821_v59, %v724_v1  ;;  %v1275_v25 = vmax.f32 %v1152_v11, 0.0 }
  0xa9   :  { %v419_v6 = vmax.f32 %v297_v3, 0.0  ;;  %v1704_v16 = vmax.f32 %v1581_v8, 0.0 }
  0xaa   :  { %v847_v7 = vmax.f32 %v725_v4, 0.0 }
  0xab   :  { %v15828_v9 = vpack.c.bf16 %v419_v6, %v418_v2 }
  0xac   :  { %v15830_v10 = vpack.c.bf16 %v847_v7, %v846_v5 }
  0xad   :  { %v1153_v12 = vpop.f32.mrf.mxu2 }
  0xae   :  { %v1582_v13 = vpop.f32.mrf.mxu3  ;;  %v1154_v17 = vadd.f32 %v15821_v59, %v1153_v12  ;;  %v299_v19 = vpop.f32.mrf.mxu0 }
  0xaf   :  { %v1583_v18 = vadd.f32 %v15821_v59, %v1582_v13  ;;  %v727_v20 = vpop.f32.mrf.mxu1  ;;  %v300_v23 = vadd.f32 %v15821_v59, %v299_v19 }
  0xb0   :  { %v728_v24 = vadd.f32 %v15821_v59, %v727_v20  ;;  %v1276_v26 = vmax.f32 %v1154_v17, 0.0 }
  0xb1   :  { %v1705_v27 = vmax.f32 %v1583_v18, 0.0  ;;  %v420_v28 = vmax.f32 %v300_v23, 0.0  ;;  %338 = vmatmul.bf16.gmra.mxu0 %v14926_v14  ;;  %766 = vmatmul.bf16.gmra.mxu1 %v14950_v15 }
  0xb2   :  { %v848_v29 = vmax.f32 %v728_v24, 0.0  ;;  %v15852_v31 = vpack.c.bf16 %v1276_v26, %v1275_v25  ;;  %1195 = vmatmul.bf16.gmra.mxu2 %v14974_v21 }
  0xb3   :  { %v15854_v32 = vpack.c.bf16 %v1705_v27, %v1704_v16  ;;  %1624 = vmatmul.bf16.gmra.mxu3 %v14998_v22  ;;  %v15856_v33 = vpack.c.bf16 %v420_v28, %v419_v6  ;;  %v15032_v22 = vld [vmem:[%s19675_s1 + $0xd8] sm:$0xff] }
  0xb4   :  { %v15858_v34 = vpack.c.bf16 %v848_v29, %v847_v7  ;;  %2168 = vmatpush.bf16.msrb.mxu2 %v15032_v22 }
  0xb5   :  { %v1156_v35 = vpop.f32.mrf.mxu2 }
  0xb6   :  { %v1585_v36 = vpop.f32.mrf.mxu3  ;;  %v1157_v37 = vadd.f32 %v15821_v59, %v1156_v35  ;;  %v301_v39 = vpop.f32.mrf.mxu0 }
  0xb7   :  { %v1586_v38 = vadd.f32 %v15821_v59, %v1585_v36  ;;  %v729_v40 = vpop.f32.mrf.mxu1  ;;  %v302_v41 = vadd.f32 %v15821_v59, %v301_v39  ;;  %v14976_v36 = vld [vmem:[%s19677_s0 + $0x1e0] sm:$0xff]  ;;  %v15016_v39 = vld [vmem:[%s19675_s1 + $0x58] sm:$0xff] }
  0xb8   :  { %v730_v42 = vadd.f32 %v15821_v59, %v729_v40  ;;  %v1277_v43 = vmax.f32 %v1157_v37, 0.0  ;;  %v15000_v37 = vld [vmem:[%s19677_s0 + $0x2a4] sm:$0xff]  ;;  %2031 = vmatpush.bf16.msrb.mxu1 %v15016_v39 }
  0xb9   :  { %v1706_v44 = vmax.f32 %v1586_v38, 0.0  ;;  %v421_v45 = vmax.f32 %v302_v41, 0.0 }
  0xba   :  { %v849_v46 = vmax.f32 %v730_v42, 0.0  ;;  %v15867_v48 = vpack.c.bf16 %v1277_v43, %v1276_v26 }
  0xbb   :  { %v15869_v49 = vpack.c.bf16 %v1706_v44, %v1705_v27  ;;  %v15873_v51 = vpack.c.bf16 %v421_v45, %v420_v28  ;;  %v14928_v27 = vld [vmem:[%s19677_s0 + $0x58] sm:$0xff] }
  0xbc   :  { %v15871_v50 = vpack.c.bf16 %v849_v46, %v848_v29  ;;  %v14952_v28 = vld [vmem:[%s19677_s0 + $0x11c] sm:$0xff] }
  0xbd   :  { %19800 = vst [vmem:[#allocation4_spill] sm:$0xff] %v15869_v49  ;;  %v1158_v52 = vpop.f32.mrf.mxu2 }
  0xbe   :  { %v1587_v53 = vpop.f32.mrf.mxu3  ;;  %v1159_v56 = vadd.f32 %v15821_v59, %v1158_v52  ;;  %v304_v58 = vpop.f32.mrf.mxu0 }
  0xbf   :  { %v1588_v57 = vadd.f32 %v15821_v59, %v1587_v53  ;;  %v732_v60 = vpop.f32.mrf.mxu1  ;;  %v305_v63 = vadd.f32 %v15821_v59, %v304_v58  ;;  %v14929_v58 = vld [vmem:[%s19677_s0 + $0x60] sm:$0xff] }
  0xc0   :  { %v733_v0 = vadd.f32 %v15821_v59, %v732_v60  ;;  %v1278_v1 = vmax.f32 %v1159_v56, 0.0  ;;  %v14953_v60 = vld [vmem:[%s19677_s0 + $0x124] sm:$0xff] }
  0xc1   :  { %v1707_v2 = vmax.f32 %v1588_v57, 0.0  ;;  %v422_v3 = vmax.f32 %v305_v63, 0.0  ;;  %343 = vmatmul.bf16.gmra.mxu0 %v14927_v54  ;;  %771 = vmatmul.bf16.gmra.mxu1 %v14951_v55 }
  0xc2   :  { %v850_v4 = vmax.f32 %v733_v0, 0.0  ;;  %1200 = vmatmul.bf16.gmra.mxu2 %v14975_v61  ;;  %v15891_v5 = vpack.c.bf16 %v1278_v1, %v1277_v43 }
  0xc3   :  { %1629 = vmatmul.bf16.gmra.mxu3 %v14999_v62  ;;  %v15893_v6 = vpack.c.bf16 %v1707_v2, %v1706_v44  ;;  %v15897_v8 = vpack.c.bf16 %v422_v3, %v421_v45 }
  0xc4   :  { %v15895_v7 = vpack.c.bf16 %v850_v4, %v849_v46 }
  0xc5   :  { %v1161_v11 = vpop.f32.mrf.mxu2 }
  0xc6   :  { %v1590_v12 = vpop.f32.mrf.mxu3  ;;  %v1162_v13 = vadd.f32 %v15821_v59, %v1161_v11  ;;  %v306_v15 = vpop.f32.mrf.mxu0 }
  0xc7   :  { %v15901_v14 = vadd.f32 %v15821_v59, %v1590_v12  ;;  %v734_v16 = vpop.f32.mrf.mxu1  ;;  %v15904_v17 = vadd.f32 %v15821_v59, %v306_v15 }
  0xc8   :  { %v1279_v18 = vmax.f32 %v1162_v13, 0.0  ;;  %v735_v55 = vadd.f32 %v15821_v59, %v734_v16 }
  0xc9   :  { %v1708_v19 = vmax.f32 %v15901_v14, 0.0  ;;  %v423_v20 = vmax.f32 %v15904_v17, 0.0 }
  0xca   :  { %v15913_v23 = vpack.c.bf16 %v1279_v18, %v1278_v1  ;;  %v14977_v1 = vld [vmem:[%s19677_s0 + $0x1e8] sm:$0xff]  ;;  %v851_v13 = vmax.f32 %v735_v55, 0.0 }
  0xcb   :  { %v15908_v21 = vpack.c.bf16 %v1708_v19, %v1707_v2  ;;  %v15915_v24 = vpack.c.bf16 %v423_v20, %v422_v3  ;;  %v15001_v2 = vld [vmem:[%s19677_s0 + $0x2ac] sm:$0xff] }
  0xcc   :  { %19802 = vst [vmem:[#allocation6_spill] sm:$0xff] %v15913_v23 }
  0xcd   :  { %19801 = vst [vmem:[#allocation5_spill] sm:$0xff] %v15908_v21  ;;  %v1163_v25 = vpop.f32.mrf.mxu2 }
  0xce   :  { %v1592_v26 = vpop.f32.mrf.mxu3  ;;  %v15924_v29 = vadd.f32 %v15821_v59, %v1163_v25  ;;  %v309_v30 = vpop.f32.mrf.mxu0 }
  0xcf   :  { %v737_v35 = vpop.f32.mrf.mxu1 }
  0xd0   :  { %v1280_v38 = vmax.f32 %v15924_v29, 0.0  ;;  %v14930_v29 = vld [vmem:[%s19677_s0 + $0x68] sm:$0xff] }
  0xd1   :  { %348 = vmatmul.bf16.gmra.mxu0 %v14928_v27  ;;  %776 = vmatmul.bf16.gmra.mxu1 %v14952_v28  ;;  %v15041_v27 = vld [vmem:[%s19675_s1 + $0x120] sm:$0xff] }
  0xd2   :  { %1205 = vmatmul.bf16.gmra.mxu2 %v14976_v36  ;;  %v15938_v40 = vpack.c.bf16 %v1280_v38, %v1279_v18  ;;  %v1593_v36 = vadd.f32 %v15821_v59, %v1592_v26  ;;  %2319 = vmatpush.bf16.msrb.mxu3 %v15041_v27 }
  0xd3   :  { %1634 = vmatmul.bf16.gmra.mxu3 %v15000_v37  ;;  %v310_v37 = vadd.f32 %v15821_v59, %v309_v30 }
  0xd4   :  { %19803 = vst [vmem:[#allocation7_spill] sm:$0xff] %v15938_v40 }
  0xd5   :  { %v15940_v41 = vpop.f32.mrf.mxu2  ;;  %v424_v55 = vmax.f32 %v310_v37, 0.0 }
  0xd6   :  { %v1595_v42 = vpop.f32.mrf.mxu3  ;;  %v311_v43 = vpop.f32.mrf.mxu0 }
  0xd7   :  { %v739_v44 = vpop.f32.mrf.mxu1  ;;  %v312_v45 = vadd.f32 %v15821_v59, %v311_v43 }
  0xd8   :  { %v740_v46 = vadd.f32 %v15821_v59, %v739_v44 }
  0xd9   :  { %v425_v47 = vmax.f32 %v312_v45, 0.0 }
  0xda   :  { %v853_v52 = vmax.f32 %v740_v46, 0.0  ;;  %v1709_v46 = vmax.f32 %v1593_v36, 0.0 }
  0xdb   :  { %v15946_v54 = vpack.c.bf16 %v425_v47, %v422_v3 }
  0xdc   :  { %v15944_v53 = vpack.c.bf16 %v853_v52, %v850_v4 }
  0xdd   :  { %v1168_v56 = vpop.f32.mrf.mxu2 }
  0xde   :  { %v1597_v57 = vpop.f32.mrf.mxu3  ;;  %v1169_v61 = vadd.f32 %v15821_v59, %v1168_v56  ;;  %v314_v63 = vpop.f32.mrf.mxu0 }
  0xdf   :  { %v1598_v62 = vadd.f32 %v15821_v59, %v1597_v57  ;;  %v742_v0 = vpop.f32.mrf.mxu1  ;;  %v315_v3 = vadd.f32 %v15821_v59, %v314_v63 }
  0xe0   :  { %v743_v4 = vadd.f32 %v15821_v59, %v742_v0  ;;  %v1282_v11 = vmax.f32 %v1169_v61, 0.0 }
  0xe1   :  { %v1711_v12 = vmax.f32 %v1598_v62, 0.0  ;;  %v426_v14 = vmax.f32 %v315_v3, 0.0  ;;  %353 = vmatmul.bf16.gmra.mxu0 %v14929_v58  ;;  %781 = vmatmul.bf16.gmra.mxu1 %v14953_v60  ;;  %v15024_v58 = vld [vmem:[%s19675_s1 + $0x98] sm:$0xff] }
  0xe2   :  { %v854_v15 = vmax.f32 %v743_v4, 0.0  ;;  %1210 = vmatmul.bf16.gmra.mxu2 %v14977_v1  ;;  %v15965_v16 = vpack.c.bf16 %v1282_v11, %v1279_v18  ;;  %v1167_v1 = vadd.f32 %v15821_v59, %v15940_v41  ;;  %1935 = vmatpush.bf16.msrb.mxu0 %v15024_v58  ;;  %v14978_v41 = vld [vmem:[%s19677_s0 + $0x1f0] sm:$0xff] }
  0xe3   :  { %1639 = vmatmul.bf16.gmra.mxu3 %v15001_v2  ;;  %v15967_v17 = vpack.c.bf16 %v1711_v12, %v1708_v19  ;;  %v15969_v22 = vpack.c.bf16 %v426_v14, %v425_v47  ;;  %v15976_v28 = vpack.c.bf16 %v426_v14, %v423_v20 }
  0xe4   :  { %19804 = vst [vmem:[#allocation8_spill] sm:$0xff] %v15965_v16  ;;  %v15971_v25 = vpack.c.bf16 %v854_v15, %v853_v52  ;;  %v15978_v35 = vpack.c.bf16 %v854_v15, %v851_v13  ;;  %v1281_v36 = vmax.f32 %v1167_v1, 0.0 }
  0xe5   :  { %19805 = vst [vmem:[#allocation9_spill] sm:$0xff] %v15967_v17  ;;  %v1171_v18 = vpop.f32.mrf.mxu2 }
  0xe6   :  { %19806 = vst [vmem:[#allocation10_spill] sm:$0xff] %v15969_v22  ;;  %v1600_v39 = vpop.f32.mrf.mxu3  ;;  %v1172_v19 = vadd.f32 %v15821_v59, %v1171_v18  ;;  %v316_v43 = vpop.f32.mrf.mxu0 }
  0xe7   :  { %19807 = vst [vmem:[#allocation11_spill] sm:$0xff] %v15971_v25  ;;  %v1601_v42 = vadd.f32 %v15821_v59, %v1600_v39  ;;  %v744_v44 = vpop.f32.mrf.mxu1  ;;  %v317_v45 = vadd.f32 %v15821_v59, %v316_v43 }
  0xe8   :  { %v745_v20 = vadd.f32 %v15821_v59, %v744_v44  ;;  %v1283_v47 = vmax.f32 %v1172_v19, 0.0 }
  0xe9   :  { %v1712_v52 = vmax.f32 %v1601_v42, 0.0  ;;  %v427_v26 = vmax.f32 %v317_v45, 0.0 }
  0xea   :  { %v855_v56 = vmax.f32 %v745_v20, 0.0  ;;  %v15986_v30 = vpack.c.bf16 %v1283_v47, %v1282_v11  ;;  %v15995_v60 = vpack.c.bf16 %v1283_v47, %v1280_v38  ;;  %v14954_v38 = vld [vmem:[%s19677_s0 + $0x12c] sm:$0xff] }
  0xeb   :  { %v15988_v57 = vpack.c.bf16 %v1712_v52, %v1711_v12  ;;  %v15997_v61 = vpack.c.bf16 %v1712_v52, %v1709_v46  ;;  %v16001_v63 = vpack.c.bf16 %v427_v26, %v426_v14  ;;  %v16003_v0 = vpack.c.bf16 %v427_v26, %v424_v55  ;;  %v15002_v14 = vld [vmem:[%s19677_s0 + $0x2b4] sm:$0xff] }
  0xec   :  { %19808 = vst [vmem:[#allocation12_spill] sm:$0xff] %v15986_v30  ;;  %v15999_v62 = vpack.c.bf16 %v855_v56, %v854_v15 }
  0xed   :  { %19809 = vst [vmem:[#allocation13_spill] sm:$0xff] %v15988_v57  ;;  %v1173_v2 = vpop.f32.mrf.mxu2 }
  0xee   :  { %19810 = vst [vmem:[#allocation14_spill] sm:$0xff] %v15995_v60  ;;  %v1602_v3 = vpop.f32.mrf.mxu3  ;;  %v1174_v4 = vadd.f32 %v15821_v59, %v1173_v2  ;;  %v319_v12 = vpop.f32.mrf.mxu0 }
  0xef   :  { %19811 = vst [vmem:[#allocation15_spill] sm:$0xff] %v15997_v61  ;;  %v1603_v11 = vadd.f32 %v15821_v59, %v1602_v3  ;;  %v747_v13 = vpop.f32.mrf.mxu1  ;;  %v320_v15 = vadd.f32 %v15821_v59, %v319_v12  ;;  %v15031_v12 = vld [vmem:[%s19675_s1 + $0xd0] sm:$0xff] }
  0xf0   :  { %19812 = vst [vmem:[#allocation16_spill] sm:$0xff] %v16003_v0  ;;  %v748_v27 = vadd.f32 %v15821_v59, %v747_v13  ;;  %v1284_v37 = vmax.f32 %v1174_v4, 0.0  ;;  %2169 = vmatpush.bf16.msrb.mxu2 %v15031_v12 }
  0xf1   :  { %v1713_v18 = vmax.f32 %v1603_v11, 0.0  ;;  %v428_v39 = vmax.f32 %v320_v15, 0.0  ;;  %358 = vmatmul.bf16.gmra.mxu0 %v14930_v29  ;;  %786 = vmatmul.bf16.gmra.mxu1 %v14954_v38 }
  0xf2   :  { %v856_v19 = vmax.f32 %v748_v27, 0.0  ;;  %1215 = vmatmul.bf16.gmra.mxu2 %v14978_v41  ;;  %v16023_v42 = vpack.c.bf16 %v1284_v37, %v1283_v47  ;;  %v16027_v44 = vpack.c.bf16 %v1284_v37, %v1281_v36  ;;  %v14931_v27 = vld [vmem:[%s19677_s0 + $0x70] sm:$0xff] }
  0xf3   :  { %1644 = vmatmul.bf16.gmra.mxu3 %v15002_v14  ;;  %v16025_v43 = vpack.c.bf16 %v1713_v18, %v1712_v52  ;;  %v16029_v45 = vpack.c.bf16 %v428_v39, %v427_v26  ;;  %v14955_v36 = vld [vmem:[%s19677_s0 + $0x134] sm:$0xff] }
  0xf4   :  { %19813 = vst [vmem:[#allocation17_spill] sm:$0xff] %v16023_v42  ;;  %v16031_v20 = vpack.c.bf16 %v856_v19, %v855_v56 }
  0xf5   :  { %19814 = vst [vmem:[#allocation18_spill] sm:$0xff] %v16025_v43  ;;  %v1176_v46 = vpop.f32.mrf.mxu2 }
  0xf6   :  { %19815 = vst [vmem:[#allocation19_spill] sm:$0xff] %v16027_v44  ;;  %v1605_v55 = vpop.f32.mrf.mxu3  ;;  %v1177_v58 = vadd.f32 %v15821_v59, %v1176_v46  ;;  %v321_v2 = vpop.f32.mrf.mxu0 }
  0xf7   :  { %v1606_v1 = vadd.f32 %v15821_v59, %v1605_v55  ;;  %v749_v3 = vpop.f32.mrf.mxu1  ;;  %v322_v29 = vadd.f32 %v15821_v59, %v321_v2  ;;  %v15003_v55 = vld [vmem:[%s19677_s0 + $0x2bc] sm:$0xff] }
  0xf8   :  { %v750_v47 = vadd.f32 %v15821_v59, %v749_v3  ;;  %v1285_v52 = vmax.f32 %v1177_v58, 0.0 }
  0xf9   :  { %v1714_v38 = vmax.f32 %v1606_v1, 0.0  ;;  %v16037_v4 = vmax.f32 %v322_v29, 0.0 }
  0xfa   :  { %v16039_v26 = vmax.f32 %v750_v47, 0.0  ;;  %v16041_v56 = vpack.c.bf16 %v1285_v52, %v1284_v37 }
  0xfb   :  { %v16043_v11 = vpack.c.bf16 %v1714_v38, %v1713_v18  ;;  %v16052_v41 = vpack.c.bf16 %v16037_v4, %v428_v39  ;;  %v14979_v39 = vld [vmem:[%s19677_s0 + $0x1f8] sm:$0xff] }
  0xfc   :  { %19816 = vst [vmem:[#allocation20_spill] sm:$0xff] %v16041_v56  ;;  %v16049_v13 = vpack.c.bf16 %v16039_v26, %v856_v19 }
  0xfd   :  { %19817 = vst [vmem:[#allocation21_spill] sm:$0xff] %v16043_v11  ;;  %v1178_v14 = vpop.f32.mrf.mxu2 }
  0xfe   :  { %v1607_v15 = vpop.f32.mrf.mxu3  ;;  %v1179_v37 = vadd.f32 %v15821_v59, %v1178_v14  ;;  %v324_v19 = vpop.f32.mrf.mxu0 }
  0xff   :  { %v1608_v18 = vadd.f32 %v15821_v59, %v1607_v15  ;;  %v752_v46 = vpop.f32.mrf.mxu1  ;;  %v325_v58 = vadd.f32 %v15821_v59, %v324_v19 }
 0x100   :  { %v16070_v1 = vadd.f32 %v15821_v59, %v752_v46  ;;  %v1286_v2 = vmax.f32 %v1179_v37, 0.0  ;;  %v15015_v37 = vld [vmem:[%s19675_s1 + $0x50] sm:$0xff] }
 0x101   :  { %v1715_v3 = vmax.f32 %v1608_v18, 0.0  ;;  %v16072_v29 = vmax.f32 %v325_v58, 0.0  ;;  %363 = vmatmul.bf16.gmra.mxu0 %v14931_v27  ;;  %791 = vmatmul.bf16.gmra.mxu1 %v14955_v36 }
 0x102   :  { %v19679_v47 = vmax.f32 %v16070_v1, 0.0  ;;  %1220 = vmatmul.bf16.gmra.mxu2 %v14979_v39  ;;  %v16075_v12 = vpack.c.bf16 %v1286_v2, %v1285_v52  ;;  %2032 = vmatpush.bf16.msrb.mxu1 %v15015_v37 }
 0x103   :  { %19818 = vst [vmem:[#allocation22_spill] sm:$0xff] %v16072_v29  ;;  %1649 = vmatmul.bf16.gmra.mxu3 %v15003_v55  ;;  %v16077_v14 = vpack.c.bf16 %v1715_v3, %v1714_v38  ;;  %v16089_v18 = vpack.c.bf16 %v16072_v29, %v16037_v4 }
 0x104   :  { %19819 = vst [vmem:[#allocation23_spill] sm:$0xff] %v16075_v12  ;;  %v16082_v15 = vpack.c.bf16 %v19679_v47, %v16039_v26 }
 0x105   :  { %19820 = vst [vmem:[#allocation24_spill] sm:$0xff] %v16077_v14  ;;  %v1181_v27 = vpop.f32.mrf.mxu2 }
 0x106   :  { %v1610_v36 = vpop.f32.mrf.mxu3  ;;  %v1182_v52 = vadd.f32 %v15821_v59, %v1181_v27  ;;  %v326_v19 = vpop.f32.mrf.mxu0 }
 0x107   :  { %v16093_v38 = vadd.f32 %v15821_v59, %v1610_v36  ;;  %v754_v46 = vpop.f32.mrf.mxu1  ;;  %v16096_v39 = vadd.f32 %v15821_v59, %v326_v19 }
 0x108   :  { %v16098_v55 = vmax.f32 %v1182_v52, 0.0  ;;  %v14932_v52 = vld [vmem:[%s19677_s0 + $0x78] sm:$0xff] }
 0x109   :  { %v19680_v58 = vmax.f32 %v16093_v38, 0.0  ;;  %v19681_v47 = vmax.f32 %v16096_v39, 0.0  ;;  %v14956_v46 = vld [vmem:[%s19677_s0 + $0x13c] sm:$0xff] }
 0x10a   :  { %19821 = vst [vmem:[#allocation25_spill] sm:$0xff] %v16098_v55  ;;  %v16107_v37 = vpack.c.bf16 %v16098_v55, %v1286_v2 }
 0x10b   :  { %v16104_v57 = vpack.c.bf16 %v19680_v58, %v1715_v3  ;;  %v16112_v27 = vpack.c.bf16 %v19681_v47, %v16072_v29  ;;  %v14980_v47 = vld [vmem:[%s19677_s0 + $0x200] sm:$0xff] }
 0x10c   :  { %19823 = vst [vmem:[#allocation27_spill] sm:$0xff] %v16107_v37 }
 0x10d   :  { %19822 = vst [vmem:[#allocation26_spill] sm:$0xff] %v16104_v57  ;;  %v1183_v36 = vpop.f32.mrf.mxu2 }
 0x10e   :  { %19824 = vst [vmem:[#allocation28_spill] sm:$0xff] %v16112_v27  ;;  %v1612_v19 = vpop.f32.mrf.mxu3  ;;  %v16121_v58 = vadd.f32 %v15821_v59, %v1183_v36  ;;  %v329_v30 = vpop.f32.mrf.mxu0  ;;  %v15040_v36 = vld [vmem:[%s19675_s1 + $0x118] sm:$0xff] }
 0x10f   :  { %v757_v57 = vpop.f32.mrf.mxu1  ;;  %v15004_v19 = vld [vmem:[%s19677_s0 + $0x2c4] sm:$0xff]  ;;  %v330_v11 = vadd.f32 %v15821_v59, %v329_v30  ;;  %2320 = vmatpush.bf16.msrb.mxu3 %v15040_v36 }
 0x110   :  { %v758_v44 = vadd.f32 %v15821_v59, %v757_v57  ;;  %v19683_v61 = vmax.f32 %v16121_v58, 0.0 }
 0x111   :  { %v432_v40 = vmax.f32 %v330_v11, 0.0  ;;  %368 = vmatmul.bf16.gmra.mxu0 %v14932_v52  ;;  %796 = vmatmul.bf16.gmra.mxu1 %v14956_v46 }
 0x112   :  { %v860_v21 = vmax.f32 %v758_v44, 0.0  ;;  %1225 = vmatmul.bf16.gmra.mxu2 %v14980_v47  ;;  %v16138_v25 = vpack.c.bf16 %v19683_v61, %v16098_v55 }
 0x113   :  { %1654 = vmatmul.bf16.gmra.mxu3 %v15004_v19  ;;  %v16141_v30 = vpack.c.bf16 %v432_v40, %v16037_v4 }
 0x114   :  { %19825 = vst [vmem:[#allocation29_spill] sm:$0xff] %v16138_v25  ;;  %v16144_v57 = vpack.c.bf16 %v860_v21, %v16039_v26 }
 0x115   :  { %19826 = vst [vmem:[#allocation30_spill] sm:$0xff] %v16141_v30  ;;  %v1186_v44 = vpop.f32.mrf.mxu2 }
 0x116   :  { %19827 = vst [vmem:[#allocation31_spill] sm:$0xff] %v16144_v57  ;;  %v1615_v11 = vpop.f32.mrf.mxu3  ;;  %v1187_v47 = vadd.f32 %v15821_v59, %v1186_v44  ;;  %v331_v46 = vpop.f32.mrf.mxu0 }
 0x117   :  { %v1616_v52 = vadd.f32 %v15821_v59, %v1615_v11  ;;  %v759_v19 = vpop.f32.mrf.mxu1  ;;  %v332_v22 = vadd.f32 %v15821_v59, %v331_v46  ;;  %v19833_v46 = vmax.f32 %v16070_v1, 0.0  ;;  %v14981_v1 = vld [vmem:[%s19677_s0 + $0x208] sm:$0xff] }
 0x118   :  { %v760_v61 = vadd.f32 %v15821_v59, %v759_v19  ;;  %v1289_v25 = vmax.f32 %v1187_v47, 0.0 }
 0x119   :  { %v1718_v49 = vmax.f32 %v1616_v52, 0.0  ;;  %v16150_v4 = vmax.f32 %v332_v22, 0.0 }
 0x11a   :  { %v861_v30 = vmax.f32 %v760_v61, 0.0  ;;  %v16152_v26 = vpack.c.bf16 %v1289_v25, %v1286_v2  ;;  %v14933_v61 = vld [vmem:[%s19677_s0 + $0x80] sm:$0xff] }
 0x11b   :  { %19828 = vst [vmem:[#allocation32_spill] sm:$0xff] %v16150_v4  ;;  %v16154_v36 = vpack.c.bf16 %v1718_v49, %v1715_v3  ;;  %v16159_v44 = vpack.c.bf16 %v16150_v4, %v432_v40 }
 0x11c   :  { %19829 = vst [vmem:[#allocation33_spill] sm:$0xff] %v16152_v26  ;;  %v16156_v57 = vpack.c.bf16 %v861_v30, %v860_v21  ;;  %v16165_v19 = vpack.c.bf16 %v861_v30, %v19833_v46  ;;  %v14957_v21 = vld [vmem:[%s19677_s0 + $0x144] sm:$0xff]  ;;  %v15005_v46 = vld [vmem:[%s19677_s0 + $0x2cc] sm:$0xff] }
 0x11d   :  { %19830 = vst [vmem:[#allocation34_spill] sm:$0xff] %v16154_v36  ;;  %v1188_v47 = vpop.f32.mrf.mxu2 }
 0x11e   :  { %19831 = vst [vmem:[#allocation35_spill] sm:$0xff] %v16156_v57  ;;  %v1617_v22 = vpop.f32.mrf.mxu3  ;;  %v1189_v40 = vadd.f32 %v15821_v59, %v1188_v47  ;;  %v334_v3 = vpop.f32.mrf.mxu0  ;;  %v15023_v47 = vld [vmem:[%s19675_s1 + $0x90] sm:$0xff] }
 0x11f   :  { %19832 = vst [vmem:[#allocation36_spill] sm:$0xff] %v16159_v44  ;;  %v1618_v2 = vadd.f32 %v15821_v59, %v1617_v22  ;;  %v762_v52 = vpop.f32.mrf.mxu1  ;;  %v335_v11 = vadd.f32 %v15821_v59, %v334_v3  ;;  %1936 = vmatpush.bf16.msrb.mxu0 %v15023_v47 }
 0x120   :  { %19834 = vst [vmem:[#allocation37_spill] sm:$0xff] %v16165_v19  ;;  %v763_v36 = vadd.f32 %v15821_v59, %v762_v52  ;;  %v16183_v26 = vmax.f32 %v1189_v40, 0.0 }
 0x121   :  { %v1719_v19 = vmax.f32 %v1618_v2, 0.0  ;;  %v434_v22 = vmax.f32 %v335_v11, 0.0  ;;  %373 = vmatmul.bf16.gmra.mxu0 %v14933_v61  ;;  %801 = vmatmul.bf16.gmra.mxu1 %v14957_v21  ;;  %v19842_v61 = vmax.f32 %v16093_v38, 0.0 }
 0x122   :  { %19835 = vst [vmem:[#allocation38_spill] sm:$0xff] %v16183_v26  ;;  %v862_v29 = vmax.f32 %v763_v36, 0.0  ;;  %1230 = vmatmul.bf16.gmra.mxu2 %v14981_v1  ;;  %v16189_v37 = vpack.c.bf16 %v16183_v26, %v1289_v25  ;;  %v19840_v36 = vmax.f32 %v16096_v39, 0.0 }
 0x123   :  { %1659 = vmatmul.bf16.gmra.mxu3 %v15005_v46  ;;  %v16191_v14 = vpack.c.bf16 %v1719_v19, %v1718_v49  ;;  %v16198_v2 = vpack.c.bf16 %v434_v22, %v16150_v4  ;;  %v16206_v21 = vpack.c.bf16 %v1719_v19, %v19842_v61  ;;  %v19846_v61 = vmax.f32 %v16121_v58, 0.0 }
 0x124   :  { %19836 = vst [vmem:[#allocation39_spill] sm:$0xff] %v16189_v37  ;;  %v16195_v3 = vpack.c.bf16 %v862_v29, %v861_v30  ;;  %v16202_v11 = vpack.c.bf16 %v434_v22, %v19840_v36 }
 0x125   :  { %19837 = vst [vmem:[#allocation40_spill] sm:$0xff] %v16191_v14  ;;  %v1191_v25 = vpop.f32.mrf.mxu2 }
 0x126   :  { %19838 = vst [vmem:[#allocation41_spill] sm:$0xff] %v16195_v3  ;;  %v1620_v49 = vpop.f32.mrf.mxu3  ;;  %v1192_v52 = vadd.f32 %v15821_v59, %v1191_v25  ;;  %v336_v30 = vpop.f32.mrf.mxu0 }
 0x127   :  { %19839 = vst [vmem:[#allocation42_spill] sm:$0xff] %v16198_v2  ;;  %v1621_v1 = vadd.f32 %v15821_v59, %v1620_v49  ;;  %v764_v46 = vpop.f32.mrf.mxu1  ;;  %v337_v47 = vadd.f32 %v15821_v59, %v336_v30 }
 0x128   :  { %19841 = vst [vmem:[#allocation43_spill] sm:$0xff] %v16202_v11  ;;  %v765_v40 = vadd.f32 %v15821_v59, %v764_v46  ;;  %v1291_v55 = vmax.f32 %v1192_v52, 0.0  ;;  %v14934_v52 = vld [vmem:[%s19677_s0 + $0x88] sm:$0xff] }
 0x129   :  { %19843 = vst [vmem:[#allocation44_spill] sm:$0xff] %v16206_v21  ;;  %v1720_v39 = vmax.f32 %v1621_v1, 0.0  ;;  %v435_v36 = vmax.f32 %v337_v47, 0.0 }
 0x12a   :  { %v863_v11 = vmax.f32 %v765_v40, 0.0  ;;  %v16215_v38 = vpack.c.bf16 %v1291_v55, %v16183_v26  ;;  %v16219_v25 = vpack.c.bf16 %v1291_v55, %v19846_v61 }
 0x12b   :  { %v16212_v4 = vpack.c.bf16 %v1720_v39, %v1719_v19  ;;  %v16221_v49 = vpack.c.bf16 %v435_v36, %v434_v22  ;;  %v14958_v19 = vld [vmem:[%s19677_s0 + $0x14c] sm:$0xff]  ;;  %v15006_v22 = vld [vmem:[%s19677_s0 + $0x2d4] sm:$0xff] }
 0x12c   :  { %19845 = vst [vmem:[#allocation46_spill] sm:$0xff] %v16215_v38  ;;  %v16223_v21 = vpack.c.bf16 %v863_v11, %v862_v29  ;;  %v14982_v29 = vld [vmem:[%s19677_s0 + $0x210] sm:$0xff] }
 0x12d   :  { %19844 = vst [vmem:[#allocation45_spill] sm:$0xff] %v16212_v4  ;;  %v1193_v30 = vpop.f32.mrf.mxu2 }
 0x12e   :  { %19847 = vst [vmem:[#allocation47_spill] sm:$0xff] %v16219_v25  ;;  %v1622_v14 = vpop.f32.mrf.mxu3  ;;  %v1194_v40 = vadd.f32 %v15821_v59, %v1193_v30  ;;  %v339_v1 = vpop.f32.mrf.mxu0 }
 0x12f   :  { %v1623_v58 = vadd.f32 %v15821_v59, %v1622_v14  ;;  %v767_v46 = vpop.f32.mrf.mxu1  ;;  %v340_v47 = vadd.f32 %v15821_v59, %v339_v1  ;;  %v15030_v14 = vld [vmem:[%s19675_s1 + $0xc8] sm:$0xff] }
 0x130   :  { %v768_v61 = vadd.f32 %v15821_v59, %v767_v46  ;;  %v1292_v25 = vmax.f32 %v1194_v40, 0.0  ;;  %v15014_v1 = vld [vmem:[%s19675_s1 + $0x48] sm:$0xff]  ;;  %2170 = vmatpush.bf16.msrb.mxu2 %v15030_v14 }
 0x131   :  { %v1721_v26 = vmax.f32 %v1623_v58, 0.0  ;;  %v16244_v30 = vmax.f32 %v340_v47, 0.0  ;;  %378 = vmatmul.bf16.gmra.mxu0 %v14934_v52  ;;  %806 = vmatmul.bf16.gmra.mxu1 %v14958_v19 }
 0x132   :  { %v16246_v4 = vmax.f32 %v768_v61, 0.0  ;;  %1235 = vmatmul.bf16.gmra.mxu2 %v14982_v29  ;;  %v16251_v38 = vpack.c.bf16 %v1292_v25, %v1291_v55  ;;  %2033 = vmatpush.bf16.msrb.mxu1 %v15014_v1 }
 0x133   :  { %1664 = vmatmul.bf16.gmra.mxu3 %v15006_v22  ;;  %v16253_v40 = vpack.c.bf16 %v1721_v26, %v1720_v39  ;;  %v16256_v58 = vpack.c.bf16 %v16244_v30, %v435_v36 }
 0x134   :  { %19848 = vst [vmem:[#allocation48_spill] sm:$0xff] %v16251_v38  ;;  %v16259_v46 = vpack.c.bf16 %v16246_v4, %v863_v11 }
 0x135   :  { %19849 = vst [vmem:[#allocation49_spill] sm:$0xff] %v16253_v40  ;;  %v1196_v52 = vpop.f32.mrf.mxu2 }
 0x136   :  { %19850 = vst [vmem:[#allocation50_spill] sm:$0xff] %v16259_v46  ;;  %v1625_v19 = vpop.f32.mrf.mxu3  ;;  %v1197_v29 = vadd.f32 %v15821_v59, %v1196_v52  ;;  %v341_v47 = vpop.f32.mrf.mxu0 }
 0x137   :  { %v1626_v22 = vadd.f32 %v15821_v59, %v1625_v19  ;;  %v769_v61 = vpop.f32.mrf.mxu1  ;;  %v342_v55 = vadd.f32 %v15821_v59, %v341_v47 }
 0x138   :  { %v770_v39 = vadd.f32 %v15821_v59, %v769_v61  ;;  %v16265_v14 = vmax.f32 %v1197_v29, 0.0  ;;  %v14935_v61 = vld [vmem:[%s19677_s0 + $0x90] sm:$0xff]  ;;  %v14983_v29 = vld [vmem:[%s19677_s0 + $0x218] sm:$0xff] }
 0x139   :  { %v16267_v36 = vmax.f32 %v1626_v22, 0.0  ;;  %v16269_v40 = vmax.f32 %v342_v55, 0.0 }
 0x13a   :  { %19851 = vst [vmem:[#allocation51_spill] sm:$0xff] %v16265_v14  ;;  %v16271_v11 = vmax.f32 %v770_v39, 0.0  ;;  %v16274_v1 = vpack.c.bf16 %v16265_v14, %v1292_v25  ;;  %v14959_v25 = vld [vmem:[%s19677_s0 + $0x154] sm:$0xff] }
 0x13b   :  { %19852 = vst [vmem:[#allocation52_spill] sm:$0xff] %v16267_v36  ;;  %v16277_v52 = vpack.c.bf16 %v16267_v36, %v1721_v26  ;;  %v16281_v19 = vpack.c.bf16 %v16269_v40, %v16244_v30  ;;  %v15022_v36 = vld [vmem:[%s19675_s1 + $0x88] sm:$0xff] }
 0x13c   :  { %19853 = vst [vmem:[#allocation53_spill] sm:$0xff] %v16274_v1  ;;  %v15007_v1 = vld [vmem:[%s19677_s0 + $0x2dc] sm:$0xff]  ;;  %1937 = vmatpush.bf16.msrb.mxu0 %v15022_v36 }
 0x13d   :  { %19854 = vst [vmem:[#allocation54_spill] sm:$0xff] %v16277_v52  ;;  %v1198_v47 = vpop.f32.mrf.mxu2 }
 0x13e   :  { %19855 = vst [vmem:[#allocation55_spill] sm:$0xff] %v16281_v19  ;;  %v1627_v22 = vpop.f32.mrf.mxu3  ;;  %v1199_v26 = vadd.f32 %v15821_v59, %v1198_v47  ;;  %v344_v39 = vpop.f32.mrf.mxu0 }
 0x13f   :  { %v1628_v55 = vadd.f32 %v15821_v59, %v1627_v22  ;;  %v772_v52 = vpop.f32.mrf.mxu1  ;;  %v345_v38 = vadd.f32 %v15821_v59, %v344_v39  ;;  %v15039_v22 = vld [vmem:[%s19675_s1 + $0x110] sm:$0xff] }
 0x140   :  { %v16300_v19 = vmax.f32 %v1199_v26, 0.0  ;;  %2321 = vmatpush.bf16.msrb.mxu3 %v15039_v22  ;;  %v15008_v22 = vld [vmem:[%s19677_s0 + $0x2e4] sm:$0xff] }
 0x141   :  { %v16302_v37 = vmax.f32 %v1628_v55, 0.0  ;;  %v16304_v12 = vmax.f32 %v345_v38, 0.0  ;;  %383 = vmatmul.bf16.gmra.mxu0 %v14935_v61  ;;  %811 = vmatmul.bf16.gmra.mxu1 %v14959_v25 }
 0x142   :  { %19856 = vst [vmem:[#allocation56_spill] sm:$0xff] %v16300_v19  ;;  %1240 = vmatmul.bf16.gmra.mxu2 %v14983_v29  ;;  %v16308_v52 = vpack.c.bf16 %v16300_v19, %v16265_v14 }
 0x143   :  { %19857 = vst [vmem:[#allocation57_spill] sm:$0xff] %v16302_v37  ;;  %1669 = vmatmul.bf16.gmra.mxu3 %v15007_v1 }
 0x144   :  { %19858 = vst [vmem:[#allocation58_spill] sm:$0xff] %v16304_v12 }
 0x145   :  { %19859 = vst [vmem:[#allocation59_spill] sm:$0xff] %v16308_v52  ;;  %v1201_v26 = vpop.f32.mrf.mxu2 }
 0x146   :  { %v1630_v39 = vpop.f32.mrf.mxu3  ;;  %v1202_v55 = vadd.f32 %v15821_v59, %v1201_v26  ;;  %v346_v38 = vpop.f32.mrf.mxu0 }
 0x147   :  { %v774_v27 = vpop.f32.mrf.mxu1  ;;  %v347_v61 = vadd.f32 %v15821_v59, %v346_v38 }
 0x148   :  { %v775_v1 = vadd.f32 %v15821_v59, %v774_v27  ;;  %v16317_v29 = vmax.f32 %v1202_v55, 0.0  ;;  %v14936_v55 = vld [vmem:[%s19677_s0 + $0x98] sm:$0xff] }
 0x149   :  { %v439_v25 = vmax.f32 %v347_v61, 0.0  ;;  %v14960_v61 = vld [vmem:[%s19677_s0 + $0x15c] sm:$0xff] }
 0x14a   :  { %19860 = vst [vmem:[#allocation60_spill] sm:$0xff] %v16317_v29  ;;  %v867_v52 = vmax.f32 %v775_v1, 0.0 }
 0x14b   :  { %v16325_v39 = vpack.c.bf16 %v439_v25, %v16244_v30 }
 0x14c   :  { %v16328_v26 = vpack.c.bf16 %v867_v52, %v16246_v4 }
 0x14d   :  { %19861 = vst [vmem:[#allocation61_spill] sm:$0xff] %v16325_v39  ;;  %v1203_v38 = vpop.f32.mrf.mxu2  ;;  %v14984_v39 = vld [vmem:[%s19677_s0 + $0x220] sm:$0xff] }
 0x14e   :  { %19862 = vst [vmem:[#allocation62_spill] sm:$0xff] %v16328_v26  ;;  %v1632_v27 = vpop.f32.mrf.mxu3  ;;  %v349_v1 = vpop.f32.mrf.mxu0 }
 0x14f   :  { %v777_v47 = vpop.f32.mrf.mxu1  ;;  %v350_v26 = vadd.f32 %v15821_v59, %v349_v1  ;;  %v1633_v14 = vadd.f32 %v15821_v59, %v1632_v27 }
 0x150   :  { %v778_v37 = vadd.f32 %v15821_v59, %v777_v47 }
 0x151   :  { %v16344_v29 = vmax.f32 %v350_v26, 0.0  ;;  %388 = vmatmul.bf16.gmra.mxu0 %v14936_v55  ;;  %816 = vmatmul.bf16.gmra.mxu1 %v14960_v61  ;;  %v1204_v55 = vadd.f32 %v15821_v59, %v1203_v38  ;;  %v1725_v27 = vmax.f32 %v1633_v14, 0.0 }
 0x152   :  { %v16346_v19 = vmax.f32 %v778_v37, 0.0  ;;  %1245 = vmatmul.bf16.gmra.mxu2 %v14984_v39 }
 0x153   :  { %19863 = vst [vmem:[#allocation63_spill] sm:$0xff] %v16344_v29  ;;  %1674 = vmatmul.bf16.gmra.mxu3 %v15008_v22  ;;  %v16353_v56 = vpack.c.bf16 %v16344_v29, %v439_v25 }
 0x154   :  { %19864 = vst [vmem:[#allocation64_spill] sm:$0xff] %v16346_v19  ;;  %v16356_v47 = vpack.c.bf16 %v16346_v19, %v867_v52 }
 0x155   :  { %19865 = vst [vmem:[#allocation65_spill] sm:$0xff] %v16353_v56  ;;  %v1206_v61 = vpop.f32.mrf.mxu2  ;;  %v1296_v56 = vmax.f32 %v1204_v55, 0.0 }
 0x156   :  { %19866 = vst [vmem:[#allocation66_spill] sm:$0xff] %v16356_v47  ;;  %v1635_v1 = vpop.f32.mrf.mxu3  ;;  %v1207_v39 = vadd.f32 %v15821_v59, %v1206_v61  ;;  %v351_v25 = vpop.f32.mrf.mxu0 }
 0x157   :  { %v1636_v36 = vadd.f32 %v15821_v59, %v1635_v1  ;;  %v779_v22 = vpop.f32.mrf.mxu1  ;;  %v352_v52 = vadd.f32 %v15821_v59, %v351_v25  ;;  %v15009_v1 = vld [vmem:[%s19677_s0 + $0x2ec] sm:$0xff] }
 0x158   :  { %v780_v47 = vadd.f32 %v15821_v59, %v779_v22  ;;  %v1297_v37 = vmax.f32 %v1207_v39, 0.0 }
 0x159   :  { %v1726_v43 = vmax.f32 %v1636_v36, 0.0  ;;  %v16367_v42 = vmax.f32 %v352_v52, 0.0  ;;  %v14985_v52 = vld [vmem:[%s19677_s0 + $0x228] sm:$0xff] }
 0x15a   :  { %v869_v26 = vmax.f32 %v780_v47, 0.0  ;;  %v16369_v38 = vpack.c.bf16 %v1297_v37, %v1296_v56  ;;  %v14937_v47 = vld [vmem:[%s19677_s0 + $0xa0] sm:$0xff] }
 0x15b   :  { %19867 = vst [vmem:[#allocation67_spill] sm:$0xff] %v16367_v42  ;;  %v16371_v60 = vpack.c.bf16 %v1726_v43, %v1725_v27  ;;  %v16375_v14 = vpack.c.bf16 %v16367_v42, %v16344_v29  ;;  %v14961_v56 = vld [vmem:[%s19677_s0 + $0x164] sm:$0xff] }
 0x15c   :  { %19868 = vst [vmem:[#allocation68_spill] sm:$0xff] %v16369_v38  ;;  %v16378_v61 = vpack.c.bf16 %v869_v26, %v16346_v19 }
 0x15d   :  { %19869 = vst [vmem:[#allocation69_spill] sm:$0xff] %v16371_v60  ;;  %v1208_v55 = vpop.f32.mrf.mxu2 }
 0x15e   :  { %19870 = vst [vmem:[#allocation70_spill] sm:$0xff] %v16375_v14  ;;  %v1637_v39 = vpop.f32.mrf.mxu3  ;;  %v1209_v27 = vadd.f32 %v15821_v59, %v1208_v55  ;;  %v354_v25 = vpop.f32.mrf.mxu0 }
 0x15f   :  { %19871 = vst [vmem:[#allocation71_spill] sm:$0xff] %v16378_v61  ;;  %v1638_v36 = vadd.f32 %v15821_v59, %v1637_v39  ;;  %v782_v22 = vpop.f32.mrf.mxu1  ;;  %v355_v19 = vadd.f32 %v15821_v59, %v354_v25 }
 0x160   :  { %v783_v29 = vadd.f32 %v15821_v59, %v782_v22  ;;  %v1298_v60 = vmax.f32 %v1209_v27, 0.0  ;;  %v15029_v59 = vld [vmem:[%s19675_s1 + $0xc0] sm:$0xff] }
 0x161   :  { %v1727_v38 = vmax.f32 %v1638_v36, 0.0  ;;  %v442_v61 = vmax.f32 %v355_v19, 0.0  ;;  %393 = vmatmul.bf16.gmra.mxu0 %v14937_v47  ;;  %821 = vmatmul.bf16.gmra.mxu1 %v14961_v56  ;;  %v15013_v19 = vld [vmem:[%s19675_s1 + $0x40] sm:$0xff] }
 0x162   :  { %v870_v55 = vmax.f32 %v783_v29, 0.0  ;;  %1250 = vmatmul.bf16.gmra.mxu2 %v14985_v52  ;;  %v16398_v39 = vpack.c.bf16 %v1298_v60, %v1297_v37  ;;  %2034 = vmatpush.bf16.msrb.mxu1 %v15013_v19 }
 0x163   :  { %1679 = vmatmul.bf16.gmra.mxu3 %v15009_v1  ;;  %v16400_v14 = vpack.c.bf16 %v1727_v38, %v1726_v43  ;;  %v16403_v12 = vpack.c.bf16 %v442_v61, %v16367_v42  ;;  %2171 = vmatpush.bf16.msrb.mxu2 %v15029_v59  ;;  %v16416_v43 = vld [vmem:[%s19676_s2] ss:$0 sm:$0xff] }
 0x164   :  { %19872 = vst [vmem:[#allocation72_spill] sm:$0xff] %v16398_v39  ;;  %v16405_v17 = vpack.c.bf16 %v870_v55, %v869_v26 }
 0x165   :  { %19873 = vst [vmem:[#allocation73_spill] sm:$0xff] %v16400_v14  ;;  %v1211_v29 = vpop.f32.mrf.mxu2 }
 0x166   :  { %19874 = vst [vmem:[#allocation74_spill] sm:$0xff] %v16403_v12  ;;  %v1640_v47 = vpop.f32.mrf.mxu3  ;;  %v1212_v37 = vadd.f32 %v16416_v43, %v1211_v29  ;;  %v356_v1 = vpop.f32.mrf.mxu0 }
 0x167   :  { %19875 = vst [vmem:[#allocation75_spill] sm:$0xff] %v16405_v17  ;;  %v1641_v26 = vadd.f32 %v16416_v43, %v1640_v47  ;;  %v784_v56 = vpop.f32.mrf.mxu1  ;;  %v357_v27 = vadd.f32 %v16416_v43, %v356_v1 }
 0x168   :  { %v785_v36 = vadd.f32 %v16416_v43, %v784_v56  ;;  %v1299_v25 = vmax.f32 %v1212_v37, 0.0  ;;  %v14938_v37 = vld [vmem:[%s19677_s0 + $0xa8] sm:$0xff] }
 0x169   :  { %v1728_v22 = vmax.f32 %v1641_v26, 0.0  ;;  %v16422_v52 = vmax.f32 %v357_v27, 0.0  ;;  %v14962_v26 = vld [vmem:[%s19677_s0 + $0x16c] sm:$0xff]  ;;  %v15010_v27 = vld [vmem:[%s19677_s0 + $0x2f4] sm:$0xff] }
 0x16a   :  { %v16424_v59 = vmax.f32 %v785_v36, 0.0  ;;  %v16426_v19 = vpack.c.bf16 %v1299_v25, %v1298_v60 }
 0x16b   :  { %19876 = vst [vmem:[#allocation76_spill] sm:$0xff] %v16422_v52  ;;  %v16428_v42 = vpack.c.bf16 %v1728_v22, %v1727_v38  ;;  %v16431_v29 = vpack.c.bf16 %v16422_v52, %v442_v61 }
 0x16c   :  { %19877 = vst [vmem:[#allocation77_spill] sm:$0xff] %v16424_v59  ;;  %v16434_v47 = vpack.c.bf16 %v16424_v59, %v870_v55  ;;  %v14986_v55 = vld [vmem:[%s19677_s0 + $0x230] sm:$0xff] }
 0x16d   :  { %19878 = vst [vmem:[#allocation78_spill] sm:$0xff] %v16426_v19  ;;  %v1213_v14 = vpop.f32.mrf.mxu2 }
 0x16e   :  { %19879 = vst [vmem:[#allocation79_spill] sm:$0xff] %v16428_v42  ;;  %v1642_v1 = vpop.f32.mrf.mxu3  ;;  %v1214_v60 = vadd.f32 %v16416_v43, %v1213_v14  ;;  %v359_v56 = vpop.f32.mrf.mxu0 }
 0x16f   :  { %19880 = vst [vmem:[#allocation80_spill] sm:$0xff] %v16431_v29  ;;  %v1643_v38 = vadd.f32 %v16416_v43, %v1642_v1  ;;  %v787_v61 = vpop.f32.mrf.mxu1  ;;  %v360_v36 = vadd.f32 %v16416_v43, %v359_v56 }
 0x170   :  { %19881 = vst [vmem:[#allocation81_spill] sm:$0xff] %v16434_v47  ;;  %v788_v42 = vadd.f32 %v16416_v43, %v787_v61  ;;  %v16452_v39 = vmax.f32 %v1214_v60, 0.0 }
 0x171   :  { %v16454_v19 = vmax.f32 %v1643_v38, 0.0  ;;  %v16456_v14 = vmax.f32 %v360_v36, 0.0  ;;  %398 = vmatmul.bf16.gmra.mxu0 %v14938_v37  ;;  %826 = vmatmul.bf16.gmra.mxu1 %v14962_v26  ;;  %v15038_v36 = vld [vmem:[%s19675_s1 + $0x108] sm:$0xff]  ;;  %v15011_v38 = vld [vmem:[%s19677_s0 + $0x2fc] sm:$0xff] }
 0x172   :  { %19882 = vst [vmem:[#allocation82_spill] sm:$0xff] %v16452_v39  ;;  %v16458_v1 = vmax.f32 %v788_v42, 0.0  ;;  %1255 = vmatmul.bf16.gmra.mxu2 %v14986_v55  ;;  %v16461_v47 = vpack.c.bf16 %v16452_v39, %v1299_v25  ;;  %2322 = vmatpush.bf16.msrb.mxu3 %v15038_v36  ;;  %v15021_v36 = vld [vmem:[%s19675_s1 + $0x80] sm:$0xff] }
 0x173   :  { %19883 = vst [vmem:[#allocation83_spill] sm:$0xff] %v16454_v19  ;;  %1684 = vmatmul.bf16.gmra.mxu3 %v15010_v27  ;;  %v16464_v29 = vpack.c.bf16 %v16454_v19, %v1728_v22  ;;  %v16468_v60 = vpack.c.bf16 %v16456_v14, %v16422_v52  ;;  %1938 = vmatpush.bf16.msrb.mxu0 %v15021_v36 }
 0x174   :  { %19884 = vst [vmem:[#allocation84_spill] sm:$0xff] %v16456_v14 }
 0x175   :  { %19885 = vst [vmem:[#allocation85_spill] sm:$0xff] %v16458_v1  ;;  %v1216_v56 = vpop.f32.mrf.mxu2 }
 0x176   :  { %19886 = vst [vmem:[#allocation86_spill] sm:$0xff] %v16461_v47  ;;  %v1645_v42 = vpop.f32.mrf.mxu3  ;;  %v1217_v37 = vadd.f32 %v16416_v43, %v1216_v56  ;;  %v361_v26 = vpop.f32.mrf.mxu0 }
 0x177   :  { %19887 = vst [vmem:[#allocation87_spill] sm:$0xff] %v16464_v29  ;;  %v789_v61 = vpop.f32.mrf.mxu1  ;;  %v362_v55 = vadd.f32 %v16416_v43, %v361_v26  ;;  %v14963_v26 = vld [vmem:[%s19677_s0 + $0x174] sm:$0xff]  ;;  %v1646_v36 = vadd.f32 %v16416_v43, %v1645_v42 }
 0x178   :  { %19888 = vst [vmem:[#allocation88_spill] sm:$0xff] %v16468_v60  ;;  %v16474_v25 = vmax.f32 %v1217_v37, 0.0  ;;  %v14939_v37 = vld [vmem:[%s19677_s0 + $0xb0] sm:$0xff]  ;;  %v14987_v29 = vld [vmem:[%s19677_s0 + $0x238] sm:$0xff] }
 0x179   :  { %v16476_v27 = vmax.f32 %v362_v55, 0.0 }
 0x17a   :  { %19889 = vst [vmem:[#allocation89_spill] sm:$0xff] %v16474_v25  ;;  %v16480_v22 = vpack.c.bf16 %v16474_v25, %v16452_v39 }
 0x17b   :  { %19890 = vst [vmem:[#allocation90_spill] sm:$0xff] %v16476_v27 }
 0x17c   :  { %19891 = vst [vmem:[#allocation91_spill] sm:$0xff] %v16480_v22 }
 0x17d   :  { %v16487_v56 = vpop.f32.mrf.mxu2 }
 0x17e   :  { %v1647_v61 = vpop.f32.mrf.mxu3  ;;  %v364_v55 = vpop.f32.mrf.mxu0 }
 0x17f   :  { %v792_v22 = vpop.f32.mrf.mxu1  ;;  %v365_v61 = vadd.f32 %v16416_v43, %v364_v55 }
 0x180   :  { %v793_v47 = vadd.f32 %v16416_v43, %v792_v22 }
 0x181   :  { %v446_v60 = vmax.f32 %v365_v61, 0.0  ;;  %403 = vmatmul.bf16.gmra.mxu0 %v14939_v37  ;;  %831 = vmatmul.bf16.gmra.mxu1 %v14963_v26 }
 0x182   :  { %v874_v17 = vmax.f32 %v793_v47, 0.0  ;;  %1260 = vmatmul.bf16.gmra.mxu2 %v14987_v29 }
 0x183   :  { %1689 = vmatmul.bf16.gmra.mxu3 %v15011_v38  ;;  %v16507_v12 = vpack.c.bf16 %v446_v60, %v16422_v52 }
 0x184   :  { %v16510_v16 = vpack.c.bf16 %v874_v17, %v16424_v59 }
 0x185   :  { %19892 = vst [vmem:[#allocation92_spill] sm:$0xff] %v16507_v12  ;;  %v1221_v55 = vpop.f32.mrf.mxu2 }
 0x186   :  { %19893 = vst [vmem:[#allocation93_spill] sm:$0xff] %v16510_v16  ;;  %v1650_v0 = vpop.f32.mrf.mxu3  ;;  %v1222_v22 = vadd.f32 %v16416_v43, %v1221_v55  ;;  %v366_v37 = vpop.f32.mrf.mxu0 }
 0x187   :  { %v1651_v47 = vadd.f32 %v16416_v43, %v1650_v0  ;;  %v794_v29 = vpop.f32.mrf.mxu1  ;;  %v367_v38 = vadd.f32 %v16416_v43, %v366_v37 }
 0x188   :  { %v795_v26 = vadd.f32 %v16416_v43, %v794_v29  ;;  %v1303_v61 = vmax.f32 %v1222_v22, 0.0 }
 0x189   :  { %v1732_v23 = vmax.f32 %v1651_v47, 0.0  ;;  %v16516_v52 = vmax.f32 %v367_v38, 0.0  ;;  %v14940_v38 = vld [vmem:[%s19677_s0 + $0xb8] sm:$0xff] }
 0x18a   :  { %v16518_v12 = vmax.f32 %v795_v26, 0.0  ;;  %v16522_v16 = vpack.c.bf16 %v1303_v61, %v16452_v39 }
 0x18b   :  { %19894 = vst [vmem:[#allocation94_spill] sm:$0xff] %v16516_v52  ;;  %v16525_v55 = vpack.c.bf16 %v1732_v23, %v16454_v19  ;;  %v16528_v0 = vpack.c.bf16 %v16516_v52, %v446_v60  ;;  %v14964_v60 = vld [vmem:[%s19677_s0 + $0x17c] sm:$0xff] }
 0x18c   :  { %19895 = vst [vmem:[#allocation95_spill] sm:$0xff] %v16518_v12  ;;  %v16531_v37 = vpack.c.bf16 %v16518_v12, %v874_v17  ;;  %v15037_v17 = vld [vmem:[%s19675_s1 + $0x100] sm:$0xff] }
 0x18d   :  { %19896 = vst [vmem:[#allocation96_spill] sm:$0xff] %v16522_v16  ;;  %v1223_v29 = vpop.f32.mrf.mxu2  ;;  %v14988_v16 = vld [vmem:[%s19677_s0 + $0x240] sm:$0xff]  ;;  %2323 = vmatpush.bf16.msrb.mxu3 %v15037_v17 }
 0x18e   :  { %19897 = vst [vmem:[#allocation97_spill] sm:$0xff] %v16525_v55  ;;  %v1652_v42 = vpop.f32.mrf.mxu3  ;;  %v1224_v26 = vadd.f32 %v16416_v43, %v1223_v29  ;;  %v369_v55 = vpop.f32.mrf.mxu0 }
 0x18f   :  { %19898 = vst [vmem:[#allocation98_spill] sm:$0xff] %v16528_v0  ;;  %v1653_v22 = vadd.f32 %v16416_v43, %v1652_v42  ;;  %v797_v47 = vpop.f32.mrf.mxu1  ;;  %v16554_v0 = vmax.f32 %v1646_v36, 0.0  ;;  %v370_v19 = vadd.f32 %v16416_v43, %v369_v55  ;;  %v15068_v55 = vld [vmem:[%s19675_s1 + $0x1f8] sm:$0xff] }
 0x190   :  { %19899 = vst [vmem:[#allocation99_spill] sm:$0xff] %v16531_v37  ;;  %v15012_v37 = vld [vmem:[%s19677_s0 + $0x304] sm:$0xff]  ;;  %v798_v39 = vadd.f32 %v16416_v43, %v797_v47  ;;  %v16558_v29 = vmax.f32 %v1224_v26, 0.0  ;;  %2770 = vmatpush.bf16.msra.mxu2 %v15068_v55 }
 0x191   :  { %19900 = vst [vmem:[#allocation100_spill] sm:$0xff] %v16554_v0  ;;  %v16560_v42 = vmax.f32 %v1653_v22, 0.0  ;;  %v16562_v1 = vmax.f32 %v370_v19, 0.0  ;;  %408 = vmatmul.bf16.gmra.mxu0 %v14940_v38  ;;  %836 = vmatmul.bf16.gmra.mxu1 %v14964_v60  ;;  %v85_v38 = vld [vmem:[%s19677_s0 + $0xc0] sm:$0xf] }
 0x192   :  { %19901 = vst [vmem:[#allocation101_spill] sm:$0xff] %v16558_v29  ;;  %v876_v14 = vmax.f32 %v798_v39, 0.0  ;;  %v16565_v59 = vpack.c.bf16 %v16558_v29, %v1303_v61  ;;  %1265 = vmatmul.bf16.gmra.mxu2 %v14988_v16  ;;  %v1219_v61 = vadd.f32 %v16416_v43, %v16487_v56  ;;  %v564_v16 = vld [vmem:[%s19677_s0 + $0x184] sm:$0xf]  ;;  %v993_v56 = vld [vmem:[%s19677_s0 + $0x248] sm:$0xf] }
 0x193   :  { %19902 = vst [vmem:[#allocation102_spill] sm:$0xff] %v16560_v42  ;;  %v16568_v36 = vpack.c.bf16 %v16560_v42, %v1732_v23  ;;  %1694 = vmatmul.bf16.gmra.mxu3 %v15012_v37  ;;  %v16580_v39 = vpack.c.bf16 %v16562_v1, %v16516_v52  ;;  %v1091_v0 = vunpack.c.l.b16 %v993_v56 }
 0x194   :  { %19903 = vst [vmem:[#allocation103_spill] sm:$0xff] %v16562_v1  ;;  %v16576_v19 = vpack.c.bf16 %v876_v14, %v16518_v12  ;;  %v186_v12 = vunpack.c.l.b16 %v85_v38 }
 0x195   :  { %19904 = vst [vmem:[#allocation104_spill] sm:$0xff] %v16565_v59  ;;  %v1226_v37 = vpop.f32.mrf.mxu2 }
 0x196   :  { %19905 = vst [vmem:[#allocation105_spill] sm:$0xff] %v16568_v36  ;;  %v1655_v47 = vpop.f32.mrf.mxu3  ;;  %v1227_v60 = vadd.f32 %v16416_v43, %v1226_v37  ;;  %v371_v26 = vpop.f32.mrf.mxu0  ;;  %v1422_v37 = vld [vmem:[%s19677_s0 + $0x30c] sm:$0xf]  ;;  %v16604_v36 = vmax.f32 %v1219_v61, 0.0  ;;  %v211_v56 = vpack.c.b16 %v186_v12, %v186_v12 }
 0x197   :  { %19906 = vst [vmem:[#allocation106_spill] sm:$0xff] %v16576_v19  ;;  %v1656_v17 = vadd.f32 %v16416_v43, %v1655_v47  ;;  %v799_v22 = vpop.f32.mrf.mxu1  ;;  %v372_v55 = vadd.f32 %v16416_v43, %v371_v26  ;;  %v1520_v26 = vunpack.c.l.b16 %v1422_v37 }
 0x198   :  { %19907 = vst [vmem:[#allocation107_spill] sm:$0xff] %v16580_v39  ;;  %v800_v23 = vadd.f32 %v16416_v43, %v799_v22  ;;  %v16606_v47 = vmax.f32 %v1227_v60, 0.0  ;;  %v662_v39 = vunpack.c.l.b16 %v564_v16  ;;  %v15060_v22 = vld [vmem:[%s19675_s1 + $0x1b8] sm:$0xff] }
 0x199   :  { %v1734_v59 = vmax.f32 %v1656_v17, 0.0  ;;  %v449_v52 = vmax.f32 %v372_v55, 0.0  ;;  %2619 = vmatpush.bf16.msra.mxu1 %v15060_v22  ;;  %v1545_v27 = vpack.c.b16 %v1520_v26, %v1520_v26 }
 0x19a   :  { %19908 = vst [vmem:[#allocation108_spill] sm:$0xff] %v16606_v47  ;;  %v877_v19 = vmax.f32 %v800_v23, 0.0  ;;  %v16616_v61 = vpack.c.bf16 %v16606_v47, %v16558_v29  ;;  %v687_v55 = vpack.c.b16 %v662_v39, %v662_v39 }
 0x19b   :  { %v16609_v25 = vpack.c.bf16 %v1734_v59, %v16560_v42  ;;  %v16621_v38 = vpack.c.bf16 %v449_v52, %v16562_v1 }
 0x19c   :  { %19910 = vst [vmem:[#allocation110_spill] sm:$0xff] %v16616_v61  ;;  %v16623_v23 = vpack.c.bf16 %v877_v19, %v876_v14  ;;  %v1116_v61 = vpack.c.b16 %v1091_v0, %v1091_v0 }
 0x19d   :  { %19909 = vst [vmem:[#allocation109_spill] sm:$0xff] %v16609_v25  ;;  %v1228_v16 = vpop.f32.mrf.mxu2 }
 0x19e   :  { %19911 = vst [vmem:[#allocation111_spill] sm:$0xff] %v16621_v38  ;;  %v1657_v17 = vpop.f32.mrf.mxu3  ;;  %v1229_v37 = vadd.f32 %v16416_v43, %v1228_v16  ;;  %v374_v25 = vpop.f32.mrf.mxu0 }
 0x19f   :  { %19912 = vst [vmem:[#allocation112_spill] sm:$0xff] %v16623_v23  ;;  %v1658_v42 = vadd.f32 %v16416_v43, %v1657_v17  ;;  %v802_v29 = vpop.f32.mrf.mxu1  ;;  %v375_v60 = vadd.f32 %v16416_v43, %v374_v25  ;;  %v15067_v25 = vld [vmem:[%s19675_s1 + $0x1f0] sm:$0xff] }
 0x1a0   :  { %v803_v1 = vadd.f32 %v16416_v43, %v802_v29  ;;  %v1306_v38 = vmax.f32 %v1229_v37, 0.0  ;;  %2771 = vmatpush.bf16.msra.mxu2 %v15067_v25 }
 0x1a1   :  { %v1735_v14 = vmax.f32 %v1658_v42, 0.0  ;;  %v16629_v23 = vmax.f32 %v375_v60, 0.0  ;;  %413 = vmatmul.bf16.gmra.mxu0 %v211_v56  ;;  %841 = vmatmul.bf16.gmra.mxu1 %v687_v55 }
 0x1a2   :  { %v16631_v22 = vmax.f32 %v803_v1, 0.0  ;;  %1270 = vmatmul.bf16.gmra.mxu2 %v1116_v61  ;;  %v16634_v12 = vpack.c.bf16 %v1306_v38, %v16606_v47 }
 0x1a3   :  { %19913 = vst [vmem:[#allocation113_spill] sm:$0xff] %v16629_v23  ;;  %1699 = vmatmul.bf16.gmra.mxu3 %v1545_v27  ;;  %v16636_v39 = vpack.c.bf16 %v1735_v14, %v1734_v59  ;;  %v16642_v0 = vpack.c.bf16 %v16629_v23, %v449_v52 }
 0x1a4   :  { %19914 = vst [vmem:[#allocation114_spill] sm:$0xff] %v16631_v22  ;;  %v16645_v29 = vpack.c.bf16 %v16631_v22, %v877_v19  ;;  %v15059_v19 = vld [vmem:[%s19675_s1 + $0x1b0] sm:$0xff] }
 0x1a5   :  { %19915 = vst [vmem:[#allocation115_spill] sm:$0xff] %v16634_v12  ;;  %v1231_v1 = vpop.f32.mrf.mxu2  ;;  %2620 = vmatpush.bf16.msra.mxu1 %v15059_v19 }
 0x1a6   :  { %19916 = vst [vmem:[#allocation116_spill] sm:$0xff] %v16636_v39  ;;  %v1660_v42 = vpop.f32.mrf.mxu3  ;;  %v1232_v27 = vadd.f32 %v16416_v43, %v1231_v1  ;;  %v376_v61 = vpop.f32.mrf.mxu0 }
 0x1a7   :  { %19917 = vst [vmem:[#allocation117_spill] sm:$0xff] %v16642_v0  ;;  %v1661_v26 = vadd.f32 %v16416_v43, %v1660_v42  ;;  %v804_v59 = vpop.f32.mrf.mxu1  ;;  %v377_v60 = vadd.f32 %v16416_v43, %v376_v61  ;;  %v20001_v0 = vld [vmem:[#allocation5_spill] sm:$0xff] }
 0x1a8   :  { %19918 = vst [vmem:[#allocation118_spill] sm:$0xff] %v16645_v29  ;;  %v805_v16 = vadd.f32 %v16416_v43, %v804_v59  ;;  %v1307_v17 = vmax.f32 %v1232_v27, 0.0 }
 0x1a9   :  { %v1736_v56 = vmax.f32 %v1661_v26, 0.0  ;;  %v16651_v52 = vmax.f32 %v377_v60, 0.0 }
 0x1aa   :  { %v16653_v55 = vmax.f32 %v805_v16, 0.0  ;;  %v16658_v37 = vpack.c.bf16 %v1307_v17, %v1306_v38 }
 0x1ab   :  { %19919 = vst [vmem:[#allocation119_spill] sm:$0xff] %v16651_v52  ;;  %v16660_v25 = vpack.c.bf16 %v1736_v56, %v1735_v14  ;;  %v16664_v1 = vpack.c.bf16 %v16651_v52, %v16629_v23 }
 0x1ac   :  { %19920 = vst [vmem:[#allocation120_spill] sm:$0xff] %v16653_v55 }
 0x1ad   :  { %19921 = vst [vmem:[#allocation121_spill] sm:$0xff] %v16658_v37  ;;  %v1233_v27 = vpop.f32.mrf.mxu2 }
 0x1ae   :  { %19922 = vst [vmem:[#allocation122_spill] sm:$0xff] %v16660_v25  ;;  %v1662_v26 = vpop.f32.mrf.mxu3  ;;  %v1234_v61 = vadd.f32 %v16416_v43, %v1233_v27  ;;  %v379_v60 = vpop.f32.mrf.mxu0 }
 0x1af   :  { %19923 = vst [vmem:[#allocation123_spill] sm:$0xff] %v16664_v1  ;;  %v16670_v59 = vadd.f32 %v16416_v43, %v1662_v26  ;;  %v807_v38 = vpop.f32.mrf.mxu1  ;;  %v380_v14 = vadd.f32 %v16416_v43, %v379_v60  ;;  %v15066_v26 = vld [vmem:[%s19675_s1 + $0x1e8] sm:$0xff] }
 0x1b0   :  { %v16673_v16 = vmax.f32 %v1234_v61, 0.0  ;;  %2772 = vmatpush.bf16.msra.mxu2 %v15066_v26  ;;  %v15058_v26 = vld [vmem:[%s19675_s1 + $0x1a8] sm:$0xff] }
 0x1b1   :  { %v19764_v39 = vmax.f32 %v16670_v59, 0.0  ;;  %v16676_v12 = vmax.f32 %v380_v14, 0.0  ;;  %1939 = vmatmul.bf16.vlgmr.msrb.gmra.mxu0 %v15830_v10  ;;  %2035 = vmatmul.bf16.vlgmr.msrb.gmra.mxu1 %v15828_v9  ;;  %v15052_v10 = vld [vmem:[%s19675_s1 + $0x178] sm:$0xff] }
 0x1b2   :  { %2172 = vmatmul.bf16.vlgmr.msrb.gmra.mxu2 %v15856_v33  ;;  %v16683_v19 = vpack.c.bf16 %v16673_v16, %v1307_v17  ;;  %2468 = vmatpush.bf16.msra.mxu0 %v15052_v10 }
 0x1b3   :  { %19924 = vst [vmem:[#allocation124_spill] sm:$0xff] %v16676_v12  ;;  %2324 = vmatmul.bf16.vlgmr.msrb.gmra.mxu3 %v15858_v34  ;;  %v16687_v27 = vpack.c.bf16 %v19764_v39, %v1736_v56  ;;  %2621 = vmatpush.bf16.msra.mxu1 %v15058_v26 }
 0x1b4   :  { %19925 = vst [vmem:[#allocation125_spill] sm:$0xff] %v16683_v19 }
 0x1b5   :  { %19926 = vst [vmem:[#allocation126_spill] sm:$0xff] %v16687_v27  ;;  %v1236_v33 = vpop.f32.mrf.mxu2 }
 0x1b6   :  { %v1665_v34 = vpop.f32.mrf.mxu3  ;;  %v16698_v61 = vadd.f32 %v16416_v43, %v1236_v33  ;;  %v381_v60 = vpop.f32.mrf.mxu0 }
 0x1b7   :  { %v809_v38 = vpop.f32.mrf.mxu1  ;;  %v382_v14 = vadd.f32 %v16416_v43, %v381_v60 }
 0x1b8   :  { %v810_v42 = vadd.f32 %v16416_v43, %v809_v38  ;;  %v19766_v39 = vmax.f32 %v16698_v61, 0.0 }
 0x1b9   :  { %v453_v27 = vmax.f32 %v382_v14, 0.0 }
 0x1ba   :  { %v881_v19 = vmax.f32 %v810_v42, 0.0  ;;  %v16706_v9 = vpack.c.bf16 %v19766_v39, %v16673_v16 }
 0x1bb   :  { %v16712_v10 = vpack.c.bf16 %v453_v27, %v16629_v23 }
 0x1bc   :  { %19927 = vst [vmem:[#allocation127_spill] sm:$0xff] %v16706_v9  ;;  %v16715_v33 = vpack.c.bf16 %v881_v19, %v16631_v22  ;;  %v15123_v22 = vld [vmem:[%s19675_s1 + $0x3b0] sm:$0xff] }
 0x1bd   :  { %19928 = vst [vmem:[#allocation128_spill] sm:$0xff] %v16712_v10  ;;  %v1238_v34 = vpop.f32.mrf.mxu2 }
 0x1be   :  { %19929 = vst [vmem:[#allocation129_spill] sm:$0xff] %v16715_v33  ;;  %v1667_v60 = vpop.f32.mrf.mxu3  ;;  %v1239_v42 = vadd.f32 %v16416_v43, %v1238_v34  ;;  %v384_v14 = vpop.f32.mrf.mxu0 }
 0x1bf   :  { %v1668_v38 = vadd.f32 %v16416_v43, %v1667_v60  ;;  %v812_v39 = vpop.f32.mrf.mxu1  ;;  %v385_v9 = vadd.f32 %v16416_v43, %v384_v14 }
 0x1c0   :  { %v813_v47 = vadd.f32 %v16416_v43, %v812_v39  ;;  %v1310_v25 = vmax.f32 %v1239_v42, 0.0 }
 0x1c1   :  { %v1739_v37 = vmax.f32 %v1668_v38, 0.0  ;;  %v16721_v1 = vmax.f32 %v385_v9, 0.0  ;;  %1944 = vmatmul.bf16.gmra.mxu0 %v15871_v50  ;;  %2040 = vmatmul.bf16.gmra.mxu1 %v15873_v51  ;;  %v15065_v50 = vld [vmem:[%s19675_s1 + $0x1e0] sm:$0xff] }
 0x1c2   :  { %v16723_v10 = vmax.f32 %v813_v47, 0.0  ;;  %2177 = vmatmul.bf16.gmra.mxu2 %v15897_v8  ;;  %v16729_v26 = vpack.c.bf16 %v1310_v25, %v1307_v17  ;;  %v15051_v8 = vld [vmem:[%s19675_s1 + $0x170] sm:$0xff] }
 0x1c3   :  { %19930 = vst [vmem:[#allocation130_spill] sm:$0xff] %v16721_v1  ;;  %2329 = vmatmul.bf16.gmra.mxu3 %v15895_v7  ;;  %v16731_v34 = vpack.c.bf16 %v1739_v37, %v1736_v56  ;;  %v16734_v39 = vpack.c.bf16 %v16721_v1, %v453_v27  ;;  %2773 = vmatpush.bf16.msra.mxu2 %v15065_v50  ;;  %v19938_v50 = vmax.f32 %v16670_v59, 0.0 }
 0x1c4   :  { %19931 = vst [vmem:[#allocation131_spill] sm:$0xff] %v16723_v10  ;;  %v16737_v9 = vpack.c.bf16 %v16723_v10, %v881_v19  ;;  %2469 = vmatpush.bf16.msra.mxu0 %v15051_v8 }
 0x1c5   :  { %19932 = vst [vmem:[#allocation132_spill] sm:$0xff] %v16729_v26  ;;  %v1241_v17 = vpop.f32.mrf.mxu2 }
 0x1c6   :  { %19933 = vst [vmem:[#allocation133_spill] sm:$0xff] %v16731_v34  ;;  %v1670_v56 = vpop.f32.mrf.mxu3  ;;  %v1242_v37 = vadd.f32 %v16416_v43, %v1241_v17  ;;  %v386_v19 = vpop.f32.mrf.mxu0  ;;  %v15057_v17 = vld [vmem:[%s19675_s1 + $0x1a0] sm:$0xff] }
 0x1c7   :  { %19934 = vst [vmem:[#allocation134_spill] sm:$0xff] %v16734_v39  ;;  %v1671_v25 = vadd.f32 %v16416_v43, %v1670_v56  ;;  %v814_v27 = vpop.f32.mrf.mxu1  ;;  %v387_v60 = vadd.f32 %v16416_v43, %v386_v19  ;;  %2622 = vmatpush.bf16.msra.mxu1 %v15057_v17 }
 0x1c8   :  { %19935 = vst [vmem:[#allocation135_spill] sm:$0xff] %v16737_v9  ;;  %v815_v42 = vadd.f32 %v16416_v43, %v814_v27  ;;  %v1311_v38 = vmax.f32 %v1242_v37, 0.0 }
 0x1c9   :  { %v1740_v14 = vmax.f32 %v1671_v25, 0.0  ;;  %v16753_v7 = vmax.f32 %v387_v60, 0.0 }
 0x1ca   :  { %v883_v9 = vmax.f32 %v815_v42, 0.0  ;;  %v16756_v47 = vpack.c.bf16 %v1311_v38, %v16673_v16 }
 0x1cb   :  { %19936 = vst [vmem:[#allocation136_spill] sm:$0xff] %v16753_v7  ;;  %v16760_v8 = vpack.c.bf16 %v1740_v14, %v19938_v50  ;;  %v16767_v56 = vpack.c.bf16 %v16753_v7, %v16721_v1 }
 0x1cc   :  { %19937 = vst [vmem:[#allocation137_spill] sm:$0xff] %v16756_v47  ;;  %v16770_v37 = vpack.c.bf16 %v883_v9, %v16723_v10  ;;  %v15132_v10 = vld [vmem:[%s19675_s1 + $0x3f8] sm:$0xff] }
 0x1cd   :  { %19939 = vst [vmem:[#allocation138_spill] sm:$0xff] %v16760_v8  ;;  %v1243_v16 = vpop.f32.mrf.mxu2 }
 0x1ce   :  { %19940 = vst [vmem:[#allocation139_spill] sm:$0xff] %v16767_v56  ;;  %v1672_v19 = vpop.f32.mrf.mxu3  ;;  %v1244_v59 = vadd.f32 %v16416_v43, %v1243_v16  ;;  %v389_v60 = vpop.f32.mrf.mxu0 }
 0x1cf   :  { %19941 = vst [vmem:[#allocation140_spill] sm:$0xff] %v16770_v37  ;;  %v1673_v27 = vadd.f32 %v16416_v43, %v1672_v19  ;;  %v817_v42 = vpop.f32.mrf.mxu1  ;;  %v390_v50 = vadd.f32 %v16416_v43, %v389_v60  ;;  %v19944_v19 = vmax.f32 %v16698_v61, 0.0  ;;  %v15056_v61 = vld [vmem:[%s19675_s1 + $0x198] sm:$0xff]  ;;  %v19993_v37 = vld [vmem:[#allocation53_spill] sm:$0xff] }
 0x1d0   :  { %v818_v39 = vadd.f32 %v16416_v43, %v817_v42  ;;  %v1312_v8 = vmax.f32 %v1244_v59, 0.0  ;;  %2623 = vmatpush.bf16.msra.mxu1 %v15056_v61 }
 0x1d1   :  { %v1741_v47 = vmax.f32 %v1673_v27, 0.0  ;;  %v456_v34 = vmax.f32 %v390_v50, 0.0  ;;  %1949 = vmatmul.bf16.gmra.mxu0 %v15944_v53  ;;  %2045 = vmatmul.bf16.gmra.mxu1 %v15946_v54  ;;  %v15064_v53 = vld [vmem:[%s19675_s1 + $0x1d8] sm:$0xff]  ;;  %v15050_v54 = vld [vmem:[%s19675_s1 + $0x168] sm:$0xff] }
 0x1d2   :  { %v884_v26 = vmax.f32 %v818_v39, 0.0  ;;  %2182 = vmatmul.bf16.gmra.mxu2 %v15976_v28  ;;  %v16782_v17 = vpack.c.bf16 %v1312_v8, %v1311_v38  ;;  %v16788_v60 = vpack.c.bf16 %v1312_v8, %v19944_v19  ;;  %2470 = vmatpush.bf16.msra.mxu0 %v15050_v54  ;;  %v15076_v54 = vld [vmem:[%s19675_s1 + $0x238] sm:$0xff] }
 0x1d3   :  { %2334 = vmatmul.bf16.gmra.mxu3 %v15978_v35  ;;  %v16784_v16 = vpack.c.bf16 %v1741_v47, %v1740_v14  ;;  %v16791_v59 = vpack.c.bf16 %v456_v34, %v16753_v7  ;;  %2774 = vmatpush.bf16.msra.mxu2 %v15064_v53 }
 0x1d4   :  { %19942 = vst [vmem:[#allocation141_spill] sm:$0xff] %v16782_v17  ;;  %v16793_v39 = vpack.c.bf16 %v884_v26, %v883_v9  ;;  %2922 = vmatpush.bf16.msra.mxu3 %v15076_v54 }
 0x1d5   :  { %19943 = vst [vmem:[#allocation142_spill] sm:$0xff] %v16784_v16  ;;  %v1246_v28 = vpop.f32.mrf.mxu2 }
 0x1d6   :  { %19945 = vst [vmem:[#allocation143_spill] sm:$0xff] %v16788_v60  ;;  %v1675_v35 = vpop.f32.mrf.mxu3  ;;  %v1247_v38 = vadd.f32 %v16416_v43, %v1246_v28  ;;  %v391_v14 = vpop.f32.mrf.mxu0 }
 0x1d7   :  { %19946 = vst [vmem:[#allocation144_spill] sm:$0xff] %v16791_v59  ;;  %v1676_v9 = vadd.f32 %v16416_v43, %v1675_v35  ;;  %v819_v27 = vpop.f32.mrf.mxu1  ;;  %v392_v42 = vadd.f32 %v16416_v43, %v391_v14 }
 0x1d8   :  { %19947 = vst [vmem:[#allocation145_spill] sm:$0xff] %v16793_v39  ;;  %v820_v50 = vadd.f32 %v16416_v43, %v819_v27  ;;  %v1313_v19 = vmax.f32 %v1247_v38, 0.0 }
 0x1d9   :  { %v1742_v25 = vmax.f32 %v1676_v9, 0.0  ;;  %v16808_v60 = vmax.f32 %v392_v42, 0.0 }
 0x1da   :  { %v16810_v53 = vmax.f32 %v820_v50, 0.0  ;;  %v16815_v28 = vpack.c.bf16 %v1313_v19, %v1312_v8 }
 0x1db   :  { %v16817_v35 = vpack.c.bf16 %v1742_v25, %v1741_v47  ;;  %v16820_v14 = vpack.c.bf16 %v16808_v60, %v456_v34 }
 0x1dc   :  { %19948 = vst [vmem:[#allocation146_spill] sm:$0xff] %v16815_v28  ;;  %v16823_v61 = vpack.c.bf16 %v16810_v53, %v884_v26 }
 0x1dd   :  { %19949 = vst [vmem:[#allocation147_spill] sm:$0xff] %v16817_v35  ;;  %v1248_v38 = vpop.f32.mrf.mxu2 }
 0x1de   :  { %19950 = vst [vmem:[#allocation148_spill] sm:$0xff] %v16820_v14  ;;  %v1677_v9 = vpop.f32.mrf.mxu3  ;;  %v1249_v27 = vadd.f32 %v16416_v43, %v1248_v38  ;;  %v394_v50 = vpop.f32.mrf.mxu0 }
 0x1df   :  { %19951 = vst [vmem:[#allocation149_spill] sm:$0xff] %v16823_v61  ;;  %v1678_v42 = vadd.f32 %v16416_v43, %v1677_v9  ;;  %v822_v16 = vpop.f32.mrf.mxu1  ;;  %v395_v8 = vadd.f32 %v16416_v43, %v394_v50 }
 0x1e0   :  { %v16829_v47 = vadd.f32 %v16416_v43, %v822_v16  ;;  %v1314_v54 = vmax.f32 %v1249_v27, 0.0  ;;  %v15063_v27 = vld [vmem:[%s19675_s1 + $0x1d0] sm:$0xff] }
 0x1e1   :  { %v1743_v35 = vmax.f32 %v1678_v42, 0.0  ;;  %v16831_v34 = vmax.f32 %v395_v8, 0.0  ;;  %1954 = vmatmul.bf16.gmra.mxu0 %v15999_v62  ;;  %2050 = vmatmul.bf16.gmra.mxu1 %v16001_v63  ;;  %v15049_v42 = vld [vmem:[%s19675_s1 + $0x160] sm:$0xff]  ;;  %v15055_v8 = vld [vmem:[%s19675_s1 + $0x190] sm:$0xff] }
 0x1e2   :  { %v19771_v26 = vmax.f32 %v16829_v47, 0.0  ;;  %2187 = vmatmul.bf16.gmra.mxu2 %v16029_v45  ;;  %v16838_v38 = vpack.c.bf16 %v1314_v54, %v1313_v19  ;;  %2471 = vmatpush.bf16.msra.mxu0 %v15049_v42 }
 0x1e3   :  { %2339 = vmatmul.bf16.gmra.mxu3 %v16031_v20  ;;  %v16840_v9 = vpack.c.bf16 %v1743_v35, %v1742_v25  ;;  %v16855_v50 = vpack.c.bf16 %v16831_v34, %v16808_v60  ;;  %2775 = vmatpush.bf16.msra.mxu2 %v15063_v27  ;;  %v15075_v27 = vld [vmem:[%s19675_s1 + $0x230] sm:$0xff] }
 0x1e4   :  { %19952 = vst [vmem:[#allocation150_spill] sm:$0xff] %v16838_v38  ;;  %v16845_v16 = vpack.c.bf16 %v19771_v26, %v16810_v53  ;;  %2624 = vmatpush.bf16.msra.mxu1 %v15055_v8  ;;  %2923 = vmatpush.bf16.msra.mxu3 %v15075_v27 }
 0x1e5   :  { %19953 = vst [vmem:[#allocation151_spill] sm:$0xff] %v16840_v9  ;;  %v1251_v19 = vpop.f32.mrf.mxu2 }
 0x1e6   :  { %19954 = vst [vmem:[#allocation152_spill] sm:$0xff] %v16845_v16  ;;  %v1680_v25 = vpop.f32.mrf.mxu3  ;;  %v1252_v26 = vadd.f32 %v16416_v43, %v1251_v19  ;;  %v396_v38 = vpop.f32.mrf.mxu0 }
 0x1e7   :  { %19955 = vst [vmem:[#allocation153_spill] sm:$0xff] %v16855_v50  ;;  %v1681_v9 = vadd.f32 %v16416_v43, %v1680_v25  ;;  %v824_v28 = vpop.f32.mrf.mxu1  ;;  %v16863_v17 = vadd.f32 %v16416_v43, %v396_v38 }
 0x1e8   :  { %v1315_v7 = vmax.f32 %v1252_v26, 0.0 }
 0x1e9   :  { %v1744_v16 = vmax.f32 %v1681_v9, 0.0  ;;  %v459_v50 = vmax.f32 %v16863_v17, 0.0 }
 0x1ea   :  { %v16869_v42 = vpack.c.bf16 %v1315_v7, %v1314_v54 }
 0x1eb   :  { %v16871_v61 = vpack.c.bf16 %v1744_v16, %v1743_v35  ;;  %v16874_v19 = vpack.c.bf16 %v459_v50, %v16831_v34 }
 0x1ec   :  { %19956 = vst [vmem:[#allocation154_spill] sm:$0xff] %v16869_v42  ;;  %v15085_v42 = vld [vmem:[%s19675_s1 + $0x280] sm:$0xff] }
 0x1ed   :  { %19957 = vst [vmem:[#allocation155_spill] sm:$0xff] %v16871_v61  ;;  %v1253_v28 = vpop.f32.mrf.mxu2 }
 0x1ee   :  { %19958 = vst [vmem:[#allocation156_spill] sm:$0xff] %v16874_v19  ;;  %v1682_v38 = vpop.f32.mrf.mxu3  ;;  %v1254_v25 = vadd.f32 %v16416_v43, %v1253_v28  ;;  %v399_v26 = vpop.f32.mrf.mxu0  ;;  %v15062_v28 = vld [vmem:[%s19675_s1 + $0x1c8] sm:$0xff] }
 0x1ef   :  { %v827_v9 = vpop.f32.mrf.mxu1  ;;  %v400_v17 = vadd.f32 %v16416_v43, %v399_v26  ;;  %v15048_v38 = vld [vmem:[%s19675_s1 + $0x158] sm:$0xff]  ;;  %2776 = vmatpush.bf16.msra.mxu2 %v15062_v28 }
 0x1f0   :  { %v828_v8 = vadd.f32 %v16416_v43, %v827_v9  ;;  %v1316_v39 = vmax.f32 %v1254_v25, 0.0  ;;  %2472 = vmatpush.bf16.msra.mxu0 %v15048_v38 }
 0x1f1   :  { %v460_v59 = vmax.f32 %v400_v17, 0.0  ;;  %1959 = vmatmul.bf16.gmra.mxu0 %v16049_v13  ;;  %2055 = vmatmul.bf16.gmra.mxu1 %v16052_v41  ;;  %v15074_v17 = vld [vmem:[%s19675_s1 + $0x228] sm:$0xff] }
 0x1f2   :  { %v888_v54 = vmax.f32 %v828_v8, 0.0  ;;  %2192 = vmatmul.bf16.gmra.mxu2 %v16089_v18  ;;  %v16883_v35 = vpack.c.bf16 %v1316_v39, %v1315_v7  ;;  %2924 = vmatpush.bf16.msra.mxu3 %v15074_v17 }
 0x1f3   :  { %2344 = vmatmul.bf16.gmra.mxu3 %v16082_v15  ;;  %v16886_v16 = vpack.c.bf16 %v460_v59, %v16808_v60  ;;  %v15054_v15 = vld [vmem:[%s19675_s1 + $0x188] sm:$0xff] }
 0x1f4   :  { %19959 = vst [vmem:[#allocation157_spill] sm:$0xff] %v16883_v35  ;;  %v16889_v27 = vpack.c.bf16 %v888_v54, %v16810_v53  ;;  %2625 = vmatpush.bf16.msra.mxu1 %v15054_v15  ;;  %v19963_v54 = vmax.f32 %v16829_v47, 0.0  ;;  %v15072_v47 = vld [vmem:[%s19675_s1 + $0x218] sm:$0xff] }
 0x1f5   :  { %19960 = vst [vmem:[#allocation158_spill] sm:$0xff] %v16886_v16  ;;  %v1256_v25 = vpop.f32.mrf.mxu2  ;;  %v19989_v16 = vld [vmem:[#allocation46_spill] sm:$0xff] }
 0x1f6   :  { %19961 = vst [vmem:[#allocation159_spill] sm:$0xff] %v16889_v27  ;;  %v1685_v26 = vpop.f32.mrf.mxu3  ;;  %v401_v7 = vpop.f32.mrf.mxu0  ;;  %v19987_v27 = vld [vmem:[#allocation39_spill] sm:$0xff] }
 0x1f7   :  { %v829_v60 = vpop.f32.mrf.mxu1  ;;  %v402_v59 = vadd.f32 %v16416_v43, %v401_v7  ;;  %v15073_v26 = vld [vmem:[%s19675_s1 + $0x220] sm:$0xff] }
 0x1f8   :  { %v830_v39 = vadd.f32 %v16416_v43, %v829_v60  ;;  %2925 = vmatpush.bf16.msra.mxu3 %v15073_v26 }
 0x1f9   :  { %v461_v53 = vmax.f32 %v402_v59, 0.0 }
 0x1fa   :  { %v889_v9 = vmax.f32 %v830_v39, 0.0 }
 0x1fb   :  { %v16906_v8 = vpack.c.bf16 %v461_v53, %v16831_v34 }
 0x1fc   :  { %v16910_v28 = vpack.c.bf16 %v889_v9, %v19963_v54  ;;  %v15061_v54 = vld [vmem:[%s19675_s1 + $0x1c0] sm:$0xff]  ;;  %2926 = vmatpush.bf16.msra.mxu3 %v15072_v47 }
 0x1fd   :  { %19962 = vst [vmem:[#allocation160_spill] sm:$0xff] %v16906_v8  ;;  %v1258_v38 = vpop.f32.mrf.mxu2  ;;  %2777 = vmatpush.bf16.msra.mxu2 %v15061_v54  ;;  %v15070_v54 = vld [vmem:[%s19675_s1 + $0x208] sm:$0xff] }
 0x1fe   :  { %19964 = vst [vmem:[#allocation161_spill] sm:$0xff] %v16910_v28  ;;  %v1687_v25 = vpop.f32.mrf.mxu3  ;;  %v404_v15 = vpop.f32.mrf.mxu0  ;;  %v15047_v38 = vld [vmem:[%s19675_s1 + $0x150] sm:$0xff] }
 0x1ff   :  { %v832_v7 = vpop.f32.mrf.mxu1  ;;  %v405_v60 = vadd.f32 %v16416_v43, %v404_v15  ;;  %2473 = vmatpush.bf16.msra.mxu0 %v15047_v38 }
 0x200   :  { %v833_v59 = vadd.f32 %v16416_v43, %v832_v7 }
 0x201   :  { %v462_v39 = vmax.f32 %v405_v60, 0.0  ;;  %1964 = vmatmul.bf16.gmra.mxu0 %v16156_v57  ;;  %2060 = vmatmul.bf16.gmra.mxu1 %v16159_v44  ;;  %v15071_v60 = vld [vmem:[%s19675_s1 + $0x210] sm:$0xff]  ;;  %v20018_v57 = vld [vmem:[#allocation57_spill] sm:$0xff] }
 0x202   :  { %v890_v34 = vmax.f32 %v833_v59, 0.0  ;;  %2197 = vmatmul.bf16.gmra.mxu2 %v16198_v2  ;;  %2927 = vmatpush.bf16.msra.mxu3 %v15071_v60 }
 0x203   :  { %2349 = vmatmul.bf16.gmra.mxu3 %v16195_v3  ;;  %v16932_v25 = vpack.c.bf16 %v462_v39, %v461_v53  ;;  %v16934_v26 = vpack.c.bf16 %v462_v39, %v459_v50  ;;  %v15046_v53 = vld [vmem:[%s19675_s1 + $0x148] sm:$0xff] }
 0x204   :  { %v16924_v17 = vpack.c.bf16 %v890_v34, %v889_v9  ;;  %v15053_v9 = vld [vmem:[%s19675_s1 + $0x180] sm:$0xff]  ;;  %2474 = vmatpush.bf16.msra.mxu0 %v15046_v53 }
 0x205   :  { %19966 = vst [vmem:[#allocation163_spill] sm:$0xff] %v16932_v25  ;;  %v1261_v15 = vpop.f32.mrf.mxu2  ;;  %2626 = vmatpush.bf16.msra.mxu1 %v15053_v9  ;;  %v15069_v9 = vld [vmem:[%s19675_s1 + $0x200] sm:$0xff]  ;;  %v15106_v25 = vld [vmem:[%s19675_s1 + $0x328] sm:$0xff] }
 0x206   :  { %19965 = vst [vmem:[#allocation162_spill] sm:$0xff] %v16924_v17  ;;  %v1690_v7 = vpop.f32.mrf.mxu3  ;;  %v406_v59 = vpop.f32.mrf.mxu0  ;;  %2928 = vmatpush.bf16.msra.mxu3 %v15070_v54  ;;  %v15086_v17 = vld [vmem:[%s19675_s1 + $0x288] sm:$0xff] }
 0x207   :  { %19967 = vst [vmem:[#allocation164_spill] sm:$0xff] %v16934_v26  ;;  %v834_v47 = vpop.f32.mrf.mxu1  ;;  %v407_v50 = vadd.f32 %v16416_v43, %v406_v59  ;;  %v15045_v59 = vld [vmem:[%s19675_s1 + $0x140] sm:$0xff] }
 0x208   :  { %v835_v15 = vadd.f32 %v16416_v43, %v834_v47  ;;  %2475 = vmatpush.bf16.msra.mxu0 %v15045_v59 }
 0x209   :  { %v463_v38 = vmax.f32 %v407_v50, 0.0 }
 0x20a   :  { %v891_v7 = vmax.f32 %v835_v15, 0.0  ;;  %2929 = vmatpush.bf16.msra.mxu3 %v15069_v9 }
 0x20b   :  { %v16950_v26 = vpack.c.bf16 %v463_v38, %v462_v39 }
 0x20c   :  { %v16952_v28 = vpack.c.bf16 %v891_v7, %v890_v34 }
 0x20d   :  { %19968 = vst [vmem:[#allocation165_spill] sm:$0xff] %v16950_v26  ;;  %v1263_v8 = vpop.f32.mrf.mxu2 }
 0x20e   :  { %19969 = vst [vmem:[#allocation166_spill] sm:$0xff] %v16952_v28  ;;  %v1692_v35 = vpop.f32.mrf.mxu3  ;;  %v409_v60 = vpop.f32.mrf.mxu0 }
 0x20f   :  { %v837_v47 = vpop.f32.mrf.mxu1  ;;  %v410_v50 = vadd.f32 %v16416_v43, %v409_v60  ;;  %v15100_v35 = vld [vmem:[%s19675_s1 + $0x2f8] sm:$0xff] }
 0x210   :  { %v838_v53 = vadd.f32 %v16416_v43, %v837_v47  ;;  %3378 = vmatpush.bf16.msrb.mxu2 %v15100_v35 }
 0x211   :  { %v464_v39 = vmax.f32 %v410_v50, 0.0  ;;  %1969 = vmatmul.bf16.gmra.mxu0 %v16223_v21  ;;  %2065 = vmatmul.bf16.gmra.mxu1 %v16221_v49 }
 0x212   :  { %v892_v34 = vmax.f32 %v838_v53, 0.0  ;;  %2202 = vmatmul.bf16.gmra.mxu2 %v16256_v58  ;;  %v15092_v53 = vld [vmem:[%s19675_s1 + $0x2b8] sm:$0xff] }
 0x213   :  { %2354 = vmatmul.bf16.gmra.mxu3 %v16259_v46  ;;  %v16969_v8 = vpack.c.bf16 %v464_v39, %v463_v38  ;;  %3226 = vmatpush.bf16.msrb.mxu1 %v15092_v53 }
 0x214   :  { %v16971_v15 = vpack.c.bf16 %v892_v34, %v891_v7 }
 0x215   :  { %19970 = vst [vmem:[#allocation167_spill] sm:$0xff] %v16969_v8  ;;  %v1266_v54 = vpop.f32.mrf.mxu2 }
 0x216   :  { %19971 = vst [vmem:[#allocation168_spill] sm:$0xff] %v16971_v15  ;;  %v1695_v59 = vpop.f32.mrf.mxu3  ;;  %v411_v9 = vpop.f32.mrf.mxu0 }
 0x217   :  { %v839_v60 = vpop.f32.mrf.mxu1  ;;  %v412_v47 = vadd.f32 %v16416_v43, %v411_v9  ;;  %v1865_v9 = vpack.c.bf16 %v16246_v4, %v16246_v4 }
 0x218   :  { %v840_v50 = vadd.f32 %v16416_v43, %v839_v60  ;;  %v1825_v60 = vpack.c.bf16 %v16244_v30, %v16244_v30 }
 0x219   :  { %v465_v28 = vmax.f32 %v412_v47, 0.0  ;;  %v2098_v47 = vpack.c.bf16 %v16269_v40, %v16269_v40 }
 0x21a   :  { %v893_v26 = vmax.f32 %v840_v50, 0.0 }
 0x21b   :  { %v16978_v38 = vpack.c.bf16 %v465_v28, %v464_v39  ;;  %v2250_v39 = vpack.c.bf16 %v16271_v11, %v16271_v11 }
 0x21c   :  { %v16980_v7 = vpack.c.bf16 %v893_v26, %v892_v34 }
 0x21d   :  { %19972 = vst [vmem:[#allocation169_spill] sm:$0xff] %v16978_v38  ;;  %v1268_v35 = vpop.f32.mrf.mxu2 }
 0x21e   :  { %19973 = vst [vmem:[#allocation170_spill] sm:$0xff] %v16980_v7  ;;  %v1697_v54 = vpop.f32.mrf.mxu3  ;;  %v414_v59 = vpop.f32.mrf.mxu0  ;;  %v15091_v35 = vld [vmem:[%s19675_s1 + $0x2b0] sm:$0xff] }
 0x21f   :  { %v842_v15 = vpop.f32.mrf.mxu1  ;;  %v415_v8 = vadd.f32 %v16416_v43, %v414_v59  ;;  %v15099_v43 = vld [vmem:[%s19675_s1 + $0x2f0] sm:$0xff]  ;;  %3227 = vmatpush.bf16.msrb.mxu1 %v15091_v35 }
 0x220   :  { %3379 = vmatpush.bf16.msrb.mxu2 %v15099_v43 }
 0x221   :  { %v466_v26 = vmax.f32 %v415_v8, 0.0  ;;  %1974 = vmatmul.bf16.gmra.mxu0 %v1865_v9  ;;  %2070 = vmatmul.bf16.gmra.mxu1 %v1825_v60 }
 0x222   :  { %2207 = vmatmul.bf16.gmra.mxu2 %v2098_v47  ;;  %v15084_v47 = vld [vmem:[%s19675_s1 + $0x278] sm:$0xff] }
 0x223   :  { %2359 = vmatmul.bf16.gmra.mxu3 %v2250_v39  ;;  %v16994_v34 = vpack.c.bf16 %v466_v26, %v465_v28  ;;  %v15098_v28 = vld [vmem:[%s19675_s1 + $0x2e8] sm:$0xff]  ;;  %3074 = vmatpush.bf16.msrb.mxu0 %v15084_v47 }
 0x224   :  { %3380 = vmatpush.bf16.msrb.mxu2 %v15098_v28  ;;  %v15083_v28 = vld [vmem:[%s19675_s1 + $0x270] sm:$0xff] }
 0x225   :  { %19974 = vst [vmem:[#allocation171_spill] sm:$0xff] %v16994_v34  ;;  %v1271_v15 = vpop.f32.mrf.mxu2 }
 0x226   :  { %v1700_v30 = vpop.f32.mrf.mxu3  ;;  %v416_v50 = vpop.f32.mrf.mxu0 }
 0x227   :  { %v844_v53 = vpop.f32.mrf.mxu1  ;;  %3075 = vmatpush.bf16.msrb.mxu0 %v15083_v28  ;;  %v19979_v28 = vld [vmem:[#allocation14_spill] sm:$0xff] }
 0x22d   :  { %v1273_v8 = vpop.f32.mrf.mxu2 }
 0x22e   :  { %v1702_v54 = vpop.f32.mrf.mxu3  ;;  %v1940_v59 = vpop.f32.mrf.mxu0 }
 0x22f   :  { %v2036_v9 = vpop.f32.mrf.mxu1 }
 0x230   :  { %v2037_v60 = vadd.f32 %v2036_v9, %v1940_v59  ;;  %v19975_v9 = vld [vmem:[#allocation6_spill] sm:$0xff] }
 0x231   :  { %2476 = vmatmul.bf16.vlgmr.msra.gmra.mxu0 %v15873_v51  ;;  %2627 = vmatmul.bf16.vlgmr.msra.gmra.mxu1 %v15852_v31 }
 0x232   :  { %2778 = vmatmul.bf16.vlgmr.msra.gmra.mxu2 %v15854_v32  ;;  %v15090_v32 = vld [vmem:[%s19675_s1 + $0x2a8] sm:$0xff] }
 0x233   :  { %2930 = vmatmul.bf16.vlgmr.msra.gmra.mxu3 %v15867_v48  ;;  %3228 = vmatpush.bf16.msrb.mxu1 %v15090_v32 }
 0x235   :  { %v2173_v39 = vpop.f32.mrf.mxu2 }
 0x236   :  { %v2325_v26 = vpop.f32.mrf.mxu3  ;;  %v2212_v43 = vadd.f32 %v2173_v39, %v2037_v60  ;;  %v1942_v51 = vpop.f32.mrf.mxu0  ;;  %v15097_v60 = vld [vmem:[%s19675_s1 + $0x2e0] sm:$0xff] }
 0x237   :  { %v2038_v15 = vpop.f32.mrf.mxu1  ;;  %3381 = vmatpush.bf16.msrb.mxu2 %v15097_v60  ;;  %v19978_v60 = vld [vmem:[#allocation9_spill] sm:$0xff] }
 0x238   :  { %v2039_v31 = vadd.f32 %v2038_v15, %v1942_v51  ;;  %v17009_v30 = vadd.f32 %v2325_v26, %v2212_v43 }
 0x23d   :  { %v2175_v48 = vpop.f32.mrf.mxu2 }
 0x23e   :  { %v2327_v50 = vpop.f32.mrf.mxu3  ;;  %v2213_v53 = vadd.f32 %v2175_v48, %v2039_v31  ;;  %v1945_v35 = vpop.f32.mrf.mxu0 }
 0x23f   :  { %v2041_v8 = vpop.f32.mrf.mxu1 }
 0x240   :  { %v2042_v54 = vadd.f32 %v2041_v8, %v1945_v35  ;;  %v17014_v59 = vadd.f32 %v2327_v50, %v2213_v53 }
 0x241   :  { %2481 = vmatmul.bf16.gmra.mxu0 %v15915_v24  ;;  %2632 = vmatmul.bf16.gmra.mxu1 %v15891_v5 }
 0x242   :  { %2783 = vmatmul.bf16.gmra.mxu2 %v15893_v6  ;;  %v15089_v6 = vld [vmem:[%s19675_s1 + $0x2a0] sm:$0xff] }
 0x243   :  { %2935 = vmatmul.bf16.gmra.mxu3 %v19975_v9  ;;  %3229 = vmatpush.bf16.msrb.mxu1 %v15089_v6  ;;  %v19976_v9 = vld [vmem:[#allocation16_spill] sm:$0xff] }
 0x245   :  { %v2178_v47 = vpop.f32.mrf.mxu2 }
 0x246   :  { %v2330_v39 = vpop.f32.mrf.mxu3  ;;  %v2214_v26 = vadd.f32 %v2178_v47, %v2042_v54  ;;  %v1947_v24 = vpop.f32.mrf.mxu0  ;;  %v19977_v54 = vld [vmem:[#allocation8_spill] sm:$0xff]  ;;  %v15096_v47 = vld [vmem:[%s19675_s1 + $0x2d8] sm:$0xff] }
 0x247   :  { %v2043_v43 = vpop.f32.mrf.mxu1  ;;  %3382 = vmatpush.bf16.msrb.mxu2 %v15096_v47 }
 0x248   :  { %v2044_v51 = vadd.f32 %v2043_v43, %v1947_v24  ;;  %v17026_v15 = vadd.f32 %v2330_v39, %v2214_v26  ;;  %v15082_v39 = vld [vmem:[%s19675_s1 + $0x268] sm:$0xff] }
 0x249   :  { %3076 = vmatpush.bf16.msrb.mxu0 %v15082_v39  ;;  %v19980_v39 = vld [vmem:[#allocation17_spill] sm:$0xff] }
 0x24d   :  { %v2180_v31 = vpop.f32.mrf.mxu2 }
 0x24e   :  { %v2332_v32 = vpop.f32.mrf.mxu3  ;;  %v2215_v48 = vadd.f32 %v2180_v31, %v2044_v51  ;;  %v1950_v50 = vpop.f32.mrf.mxu0 }
 0x24f   :  { %v2046_v53 = vpop.f32.mrf.mxu1 }
 0x250   :  { %v2047_v35 = vadd.f32 %v2046_v53, %v1950_v50  ;;  %v17031_v8 = vadd.f32 %v2332_v32, %v2215_v48  ;;  %v15088_v48 = vld [vmem:[%s19675_s1 + $0x298] sm:$0xff] }
 0x251   :  { %2486 = vmatmul.bf16.gmra.mxu0 %v19976_v9  ;;  %2637 = vmatmul.bf16.gmra.mxu1 %v19977_v54  ;;  %v15108_v50 = vld [vmem:[%s19675_s1 + $0x338] sm:$0xff] }
 0x252   :  { %2788 = vmatmul.bf16.gmra.mxu2 %v19978_v60  ;;  %3230 = vmatpush.bf16.msrb.mxu1 %v15088_v48 }
 0x253   :  { %2940 = vmatmul.bf16.gmra.mxu3 %v19979_v28 }
 0x254   :  { %3530 = vmatpush.bf16.msrb.mxu3 %v15108_v50 }
 0x255   :  { %v2183_v26 = vpop.f32.mrf.mxu2 }
 0x256   :  { %v2335_v24 = vpop.f32.mrf.mxu3  ;;  %v2216_v43 = vadd.f32 %v2183_v26, %v2047_v35  ;;  %v1952_v51 = vpop.f32.mrf.mxu0  ;;  %v19981_v26 = vld [vmem:[#allocation18_spill] sm:$0xff] }
 0x257   :  { %v2048_v6 = vpop.f32.mrf.mxu1 }
 0x258   :  { %v2049_v31 = vadd.f32 %v2048_v6, %v1952_v51  ;;  %v17043_v32 = vadd.f32 %v2335_v24, %v2216_v43  ;;  %v19982_v24 = vld [vmem:[#allocation20_spill] sm:$0xff]  ;;  %v15095_v43 = vld [vmem:[%s19675_s1 + $0x2d0] sm:$0xff] }
 0x259   :  { %v15081_v51 = vld [vmem:[%s19675_s1 + $0x260] sm:$0xff]  ;;  %3383 = vmatpush.bf16.msrb.mxu2 %v15095_v43 }
 0x25a   :  { %3077 = vmatpush.bf16.msrb.mxu0 %v15081_v51 }
 0x25d   :  { %v2185_v53 = vpop.f32.mrf.mxu2 }
 0x25e   :  { %v2337_v9 = vpop.f32.mrf.mxu3  ;;  %v2217_v54 = vadd.f32 %v2185_v53, %v2049_v31  ;;  %v1955_v60 = vpop.f32.mrf.mxu0 }
 0x25f   :  { %v2051_v35 = vpop.f32.mrf.mxu1 }
 0x260   :  { %v2052_v28 = vadd.f32 %v2051_v35, %v1955_v60  ;;  %v17051_v47 = vadd.f32 %v2337_v9, %v2217_v54  ;;  %v15087_v60 = vld [vmem:[%s19675_s1 + $0x290] sm:$0xff] }
 0x261   :  { %2491 = vmatmul.bf16.gmra.mxu0 %v16052_v41  ;;  %2642 = vmatmul.bf16.gmra.mxu1 %v19980_v39  ;;  %v15107_v35 = vld [vmem:[%s19675_s1 + $0x330] sm:$0xff] }
 0x262   :  { %2793 = vmatmul.bf16.gmra.mxu2 %v19981_v26  ;;  %3231 = vmatpush.bf16.msrb.mxu1 %v15087_v60  ;;  %v15094_v60 = vld [vmem:[%s19675_s1 + $0x2c8] sm:$0xff] }
 0x263   :  { %2945 = vmatmul.bf16.gmra.mxu3 %v19982_v24  ;;  %3384 = vmatpush.bf16.msrb.mxu2 %v15094_v60 }
 0x264   :  { %3531 = vmatpush.bf16.msrb.mxu3 %v15107_v35 }
 0x265   :  { %v2188_v6 = vpop.f32.mrf.mxu2 }
 0x266   :  { %v2340_v31 = vpop.f32.mrf.mxu3  ;;  %v2218_v48 = vadd.f32 %v2188_v6, %v2052_v28  ;;  %v1957_v50 = vpop.f32.mrf.mxu0  ;;  %3232 = vmatpush.bf16.msrb.mxu1 %v15086_v17  ;;  %v15104_v17 = vld [vmem:[%s19675_s1 + $0x318] sm:$0xff] }
 0x267   :  { %v2053_v53 = vpop.f32.mrf.mxu1 }
 0x268   :  { %v2054_v9 = vadd.f32 %v2053_v53, %v1957_v50  ;;  %v17063_v54 = vadd.f32 %v2340_v31, %v2218_v48  ;;  %v19983_v31 = vld [vmem:[#allocation28_spill] sm:$0xff]  ;;  %v19984_v48 = vld [vmem:[#allocation23_spill] sm:$0xff]  ;;  %3532 = vmatpush.bf16.msrb.mxu3 %v15106_v25 }
 0x269   :  { %v19985_v50 = vld [vmem:[#allocation24_spill] sm:$0xff]  ;;  %v19986_v53 = vld [vmem:[#allocation27_spill] sm:$0xff] }
 0x26a   :  { %v19988_v25 = vld [vmem:[#allocation40_spill] sm:$0xff]  ;;  %3233 = vmatpush.bf16.msrb.mxu1 %v15085_v42  ;;  %v19990_v42 = vld [vmem:[#allocation55_spill] sm:$0xff] }
 0x26d   :  { %v2190_v43 = vpop.f32.mrf.mxu2 }
 0x26e   :  { %v2342_v51 = vpop.f32.mrf.mxu3  ;;  %v2219_v34 = vadd.f32 %v2190_v43, %v2054_v9  ;;  %v1960_v7 = vpop.f32.mrf.mxu0  ;;  %v15080_v9 = vld [vmem:[%s19675_s1 + $0x258] sm:$0xff] }
 0x26f   :  { %v2056_v28 = vpop.f32.mrf.mxu1  ;;  %3078 = vmatpush.bf16.msrb.mxu0 %v15080_v9 }
 0x270   :  { %v2057_v6 = vadd.f32 %v2056_v28, %v1960_v7  ;;  %v17071_v38 = vadd.f32 %v2342_v51, %v2219_v34 }
 0x271   :  { %2496 = vmatmul.bf16.gmra.mxu0 %v19983_v31  ;;  %2647 = vmatmul.bf16.gmra.mxu1 %v19984_v48 }
 0x272   :  { %2798 = vmatmul.bf16.gmra.mxu2 %v19985_v50 }
 0x273   :  { %2950 = vmatmul.bf16.gmra.mxu3 %v19986_v53 }
 0x275   :  { %v2193_v7 = vpop.f32.mrf.mxu2 }
 0x276   :  { %v2345_v34 = vpop.f32.mrf.mxu3  ;;  %v2220_v35 = vadd.f32 %v2193_v7, %v2057_v6  ;;  %v1962_v43 = vpop.f32.mrf.mxu0  ;;  %v15105_v6 = vld [vmem:[%s19675_s1 + $0x320] sm:$0xff] }
 0x277   :  { %v2058_v51 = vpop.f32.mrf.mxu1  ;;  %3533 = vmatpush.bf16.msrb.mxu3 %v15105_v6  ;;  %v15103_v6 = vld [vmem:[%s19675_s1 + $0x310] sm:$0xff] }
 0x278   :  { %v2059_v28 = vadd.f32 %v2058_v51, %v1962_v43  ;;  %v17083_v31 = vadd.f32 %v2345_v34, %v2220_v35 }
 0x27b   :  { %3534 = vmatpush.bf16.msrb.mxu3 %v15104_v17  ;;  %v15078_v17 = vld [vmem:[%s19675_s1 + $0x248] sm:$0xff] }
 0x27d   :  { %v2195_v60 = vpop.f32.mrf.mxu2 }
 0x27e   :  { %v2347_v9 = vpop.f32.mrf.mxu3  ;;  %v2221_v7 = vadd.f32 %v2195_v60, %v2059_v28  ;;  %v1965_v43 = vpop.f32.mrf.mxu0  ;;  %v15093_v28 = vld [vmem:[%s19675_s1 + $0x2c0] sm:$0xff]  ;;  %v15079_v60 = vld [vmem:[%s19675_s1 + $0x250] sm:$0xff] }
 0x27f   :  { %v2061_v34 = vpop.f32.mrf.mxu1  ;;  %3385 = vmatpush.bf16.msrb.mxu2 %v15093_v28  ;;  %3079 = vmatpush.bf16.msrb.mxu0 %v15079_v60  ;;  %v15102_v28 = vld [vmem:[%s19675_s1 + $0x308] sm:$0xff] }
 0x280   :  { %v2062_v35 = vadd.f32 %v2061_v34, %v1965_v43  ;;  %v17094_v51 = vadd.f32 %v2347_v9, %v2221_v7  ;;  %3535 = vmatpush.bf16.msrb.mxu3 %v15103_v6 }
 0x281   :  { %2501 = vmatmul.bf16.gmra.mxu0 %v16221_v49  ;;  %2652 = vmatmul.bf16.gmra.mxu1 %v19987_v27 }
 0x282   :  { %2803 = vmatmul.bf16.gmra.mxu2 %v19988_v25 }
 0x283   :  { %2955 = vmatmul.bf16.gmra.mxu3 %v19989_v16  ;;  %3080 = vmatpush.bf16.msrb.mxu0 %v15078_v17  ;;  %v19991_v17 = vld [vmem:[#allocation48_spill] sm:$0xff] }
 0x284   :  { %3536 = vmatpush.bf16.msrb.mxu3 %v15102_v28  ;;  %v19992_v28 = vld [vmem:[#allocation49_spill] sm:$0xff]  ;;  %3986 = vmatpush.bf16.msra.mxu2 %v15132_v10  ;;  %v19994_v10 = vld [vmem:[#allocation58_spill] sm:$0xff] }
 0x285   :  { %v2198_v27 = vpop.f32.mrf.mxu2  ;;  %v2402_v52 = vpack.c.bf16 %v19994_v10, %v19994_v10 }
 0x286   :  { %v2350_v9 = vpop.f32.mrf.mxu3  ;;  %v2222_v7 = vadd.f32 %v2198_v27, %v2062_v35  ;;  %v1967_v43 = vpop.f32.mrf.mxu0  ;;  %v15077_v27 = vld [vmem:[%s19675_s1 + $0x240] sm:$0xff] }
 0x287   :  { %v2063_v34 = vpop.f32.mrf.mxu1  ;;  %3081 = vmatpush.bf16.msrb.mxu0 %v15077_v27 }
 0x288   :  { %v2064_v25 = vadd.f32 %v2063_v34, %v1967_v43  ;;  %v17112_v61 = vadd.f32 %v2350_v9, %v2222_v7  ;;  %v15101_v9 = vld [vmem:[%s19675_s1 + $0x300] sm:$0xff] }
 0x289   :  { %3537 = vmatpush.bf16.msrb.mxu3 %v15101_v9 }
 0x28d   :  { %v2200_v35 = vpop.f32.mrf.mxu2 }
 0x28e   :  { %v2352_v60 = vpop.f32.mrf.mxu3  ;;  %v2223_v6 = vadd.f32 %v2200_v35, %v2064_v25  ;;  %v1970_v7 = vpop.f32.mrf.mxu0 }
 0x28f   :  { %v2066_v43 = vpop.f32.mrf.mxu1 }
 0x290   :  { %v2067_v34 = vadd.f32 %v2066_v43, %v1970_v7  ;;  %v17129_v19 = vadd.f32 %v2352_v60, %v2223_v6  ;;  %v15124_v43 = vld [vmem:[%s19675_s1 + $0x3b8] sm:$0xff] }
 0x291   :  { %2506 = vmatmul.bf16.gmra.mxu0 %v19990_v42  ;;  %2657 = vmatmul.bf16.gmra.mxu1 %v19991_v17 }
 0x292   :  { %2808 = vmatmul.bf16.gmra.mxu2 %v19992_v28  ;;  %3834 = vmatpush.bf16.msra.mxu1 %v15124_v43 }
 0x293   :  { %2960 = vmatmul.bf16.gmra.mxu3 %v19993_v37 }
 0x295   :  { %v2203_v25 = vpop.f32.mrf.mxu2 }
 0x296   :  { %v2355_v35 = vpop.f32.mrf.mxu3  ;;  %v2224_v7 = vadd.f32 %v2203_v25, %v2067_v34  ;;  %v1972_v27 = vpop.f32.mrf.mxu0  ;;  %v19995_v34 = vld [vmem:[#allocation51_spill] sm:$0xff]  ;;  %3835 = vmatpush.bf16.msra.mxu1 %v15123_v22 }
 0x297   :  { %v2068_v9 = vpop.f32.mrf.mxu1  ;;  %v2553_v25 = vpack.c.bf16 %v19995_v34, %v19995_v34  ;;  %v15116_v22 = vld [vmem:[%s19675_s1 + $0x378] sm:$0xff] }
 0x298   :  { %v2069_v60 = vadd.f32 %v2068_v9, %v1972_v27  ;;  %v17138_v6 = vadd.f32 %v2355_v35, %v2224_v7  ;;  %v19996_v35 = vld [vmem:[#allocation52_spill] sm:$0xff]  ;;  %3682 = vmatpush.bf16.msra.mxu0 %v15116_v22 }
 0x299   :  { %v2704_v7 = vpack.c.bf16 %v19996_v35, %v19996_v35  ;;  %v19997_v9 = vld [vmem:[#allocation56_spill] sm:$0xff] }
 0x29a   :  { %v2856_v43 = vpack.c.bf16 %v19997_v9, %v19997_v9 }
 0x29d   :  { %v2205_v1 = vpop.f32.mrf.mxu2 }
 0x29e   :  { %v2357_v33 = vpop.f32.mrf.mxu3  ;;  %v2225_v14 = vadd.f32 %v2205_v1, %v2069_v60  ;;  %v1975_v56 = vpop.f32.mrf.mxu0 }
 0x29f   :  { %v2071_v12 = vpop.f32.mrf.mxu1 }
 0x2a0   :  { %v2072_v55 = vadd.f32 %v2071_v12, %v1975_v56  ;;  %v17147_v27 = vadd.f32 %v2357_v33, %v2225_v14  ;;  %v15131_v12 = vld [vmem:[%s19675_s1 + $0x3f0] sm:$0xff] }
 0x2a1   :  { %2511 = vmatmul.bf16.gmra.mxu0 %v2402_v52  ;;  %2662 = vmatmul.bf16.gmra.mxu1 %v2553_v25 }
 0x2a2   :  { %2813 = vmatmul.bf16.gmra.mxu2 %v2704_v7 }
 0x2a3   :  { %2965 = vmatmul.bf16.gmra.mxu3 %v2856_v43  ;;  %3987 = vmatpush.bf16.msra.mxu2 %v15131_v12  ;;  %v19998_v12 = vld [vmem:[#allocation4_spill] sm:$0xff] }
 0x2a5   :  { %v2208_v1 = vpop.f32.mrf.mxu2 }
 0x2a6   :  { %v2360_v56 = vpop.f32.mrf.mxu3  ;;  %v2226_v60 = vadd.f32 %v2208_v1, %v2072_v55  ;;  %v1977_v33 = vpop.f32.mrf.mxu0  ;;  %v19999_v55 = vld [vmem:[#allocation10_spill] sm:$0xff]  ;;  %v20000_v1 = vld [vmem:[#allocation11_spill] sm:$0xff] }
 0x2a7   :  { %v2073_v14 = vpop.f32.mrf.mxu1 }
 0x2a8   :  { %v17156_v34 = vadd.f32 %v2360_v56, %v2226_v60  ;;  %v15130_v56 = vld [vmem:[%s19675_s1 + $0x3e8] sm:$0xff] }
 0x2a9   :  { %3988 = vmatpush.bf16.msra.mxu2 %v15130_v56 }
 0x2ad   :  { %v2210_v52 = vpop.f32.mrf.mxu2 }
 0x2ae   :  { %v2362_v25 = vpop.f32.mrf.mxu3  ;;  %v2477_v7 = vpop.f32.mrf.mxu0 }
 0x2af   :  { %v2628_v43 = vpop.f32.mrf.mxu1  ;;  %v2516_v23 = vadd.f32 %v2477_v7, %v17009_v30  ;;  %v15122_v25 = vld [vmem:[%s19675_s1 + $0x3a8] sm:$0xff] }
 0x2b0   :  { %3836 = vmatpush.bf16.msra.mxu1 %v15122_v25 }
 0x2b1   :  { %v2667_v29 = vadd.f32 %v2628_v43, %v2516_v23  ;;  %3082 = vmatmul.bf16.vlgmr.msrb.gmra.mxu0 %v19998_v12  ;;  %3234 = vmatmul.bf16.vlgmr.msrb.gmra.mxu1 %v15891_v5 }
 0x2b2   :  { %3386 = vmatmul.bf16.vlgmr.msrb.gmra.mxu2 %v19999_v55 }
 0x2b3   :  { %3538 = vmatmul.bf16.vlgmr.msrb.gmra.mxu3 %v20000_v1 }
 0x2b5   :  { %v2779_v30 = vpop.f32.mrf.mxu2 }
 0x2b6   :  { %v2931_v23 = vpop.f32.mrf.mxu3  ;;  %v2818_v60 = vadd.f32 %v2779_v30, %v2667_v29  ;;  %v2479_v33 = vpop.f32.mrf.mxu0 }
 0x2b7   :  { %v2630_v14 = vpop.f32.mrf.mxu1  ;;  %v2517_v5 = vadd.f32 %v2479_v33, %v17014_v59  ;;  %v20002_v59 = vld [vmem:[#allocation7_spill] sm:$0xff] }
 0x2b8   :  { %v17173_v52 = vadd.f32 %v2931_v23, %v2818_v60  ;;  %v15129_v23 = vld [vmem:[%s19675_s1 + $0x3e0] sm:$0xff]  ;;  %v15115_v60 = vld [vmem:[%s19675_s1 + $0x370] sm:$0xff] }
 0x2b9   :  { %v2668_v7 = vadd.f32 %v2630_v14, %v2517_v5  ;;  %3989 = vmatpush.bf16.msra.mxu2 %v15129_v23  ;;  %3683 = vmatpush.bf16.msra.mxu0 %v15115_v60  ;;  %v20003_v60 = vld [vmem:[#allocation15_spill] sm:$0xff] }
 0x2bd   :  { %v2781_v43 = vpop.f32.mrf.mxu2 }
 0x2be   :  { %v2933_v12 = vpop.f32.mrf.mxu3  ;;  %v2819_v55 = vadd.f32 %v2781_v43, %v2668_v7  ;;  %v2482_v1 = vpop.f32.mrf.mxu0 }
 0x2bf   :  { %v2633_v56 = vpop.f32.mrf.mxu1  ;;  %v2518_v22 = vadd.f32 %v2482_v1, %v17026_v15 }
 0x2c0   :  { %v17179_v29 = vadd.f32 %v2933_v12, %v2819_v55 }
 0x2c1   :  { %v2669_v30 = vadd.f32 %v2633_v56, %v2518_v22  ;;  %3087 = vmatmul.bf16.gmra.mxu0 %v20001_v0  ;;  %3239 = vmatmul.bf16.gmra.mxu1 %v20002_v59 }
 0x2c2   :  { %3391 = vmatmul.bf16.gmra.mxu2 %v16029_v45 }
 0x2c3   :  { %3543 = vmatmul.bf16.gmra.mxu3 %v16031_v20  ;;  %v15121_v20 = vld [vmem:[%s19675_s1 + $0x3a0] sm:$0xff] }
 0x2c4   :  { %3837 = vmatpush.bf16.msra.mxu1 %v15121_v20 }
 0x2c5   :  { %v2784_v15 = vpop.f32.mrf.mxu2 }
 0x2c6   :  { %v2936_v33 = vpop.f32.mrf.mxu3  ;;  %v2820_v14 = vadd.f32 %v2784_v15, %v2669_v30  ;;  %v2484_v0 = vpop.f32.mrf.mxu0  ;;  %v20005_v15 = vld [vmem:[#allocation30_spill] sm:$0xff] }
 0x2c7   :  { %v2635_v5 = vpop.f32.mrf.mxu1  ;;  %v2519_v25 = vadd.f32 %v2484_v0, %v17031_v8  ;;  %v20004_v8 = vld [vmem:[#allocation19_spill] sm:$0xff]  ;;  %v15114_v0 = vld [vmem:[%s19675_s1 + $0x368] sm:$0xff] }
 0x2c8   :  { %v17192_v7 = vadd.f32 %v2936_v33, %v2820_v14  ;;  %v20006_v33 = vld [vmem:[#allocation31_spill] sm:$0xff]  ;;  %3684 = vmatpush.bf16.msra.mxu0 %v15114_v0  ;;  %v20007_v0 = vld [vmem:[#allocation21_spill] sm:$0xff] }
 0x2c9   :  { %v2670_v43 = vadd.f32 %v2635_v5, %v2519_v25  ;;  %v15128_v14 = vld [vmem:[%s19675_s1 + $0x3d8] sm:$0xff] }
 0x2ca   :  { %3990 = vmatpush.bf16.msra.mxu2 %v15128_v14 }
 0x2cd   :  { %v2786_v12 = vpop.f32.mrf.mxu2 }
 0x2ce   :  { %v2938_v55 = vpop.f32.mrf.mxu3  ;;  %v2821_v1 = vadd.f32 %v2786_v12, %v2670_v43  ;;  %v2487_v56 = vpop.f32.mrf.mxu0 }
 0x2cf   :  { %v2638_v22 = vpop.f32.mrf.mxu1  ;;  %v2520_v59 = vadd.f32 %v2487_v56, %v17043_v32 }
 0x2d0   :  { %v17198_v30 = vadd.f32 %v2938_v55, %v2821_v1  ;;  %v15120_v1 = vld [vmem:[%s19675_s1 + $0x398] sm:$0xff] }
 0x2d1   :  { %v2671_v23 = vadd.f32 %v2638_v22, %v2520_v59  ;;  %3092 = vmatmul.bf16.gmra.mxu0 %v20003_v60  ;;  %3244 = vmatmul.bf16.gmra.mxu1 %v20004_v8  ;;  %v15140_v22 = vld [vmem:[%s19675_s1 + $0x438] sm:$0xff] }
 0x2d2   :  { %3396 = vmatmul.bf16.gmra.mxu2 %v20005_v15  ;;  %3838 = vmatpush.bf16.msra.mxu1 %v15120_v1 }
 0x2d3   :  { %3548 = vmatmul.bf16.gmra.mxu3 %v20006_v33 }
 0x2d4   :  { %4138 = vmatpush.bf16.msra.mxu3 %v15140_v22  ;;  %v15119_v22 = vld [vmem:[%s19675_s1 + $0x390] sm:$0xff] }
 0x2d5   :  { %v2789_v32 = vpop.f32.mrf.mxu2 }
 0x2d6   :  { %v2941_v5 = vpop.f32.mrf.mxu3  ;;  %v2822_v25 = vadd.f32 %v2789_v32, %v2671_v23  ;;  %v2489_v20 = vpop.f32.mrf.mxu0  ;;  %v15127_v32 = vld [vmem:[%s19675_s1 + $0x3d0] sm:$0xff]  ;;  %3839 = vmatpush.bf16.msra.mxu1 %v15119_v22 }
 0x2d7   :  { %v2640_v43 = vpop.f32.mrf.mxu1  ;;  %v2521_v12 = vadd.f32 %v2489_v20, %v17051_v47  ;;  %3991 = vmatpush.bf16.msra.mxu2 %v15127_v32 }
 0x2d8   :  { %v17211_v55 = vadd.f32 %v2941_v5, %v2822_v25  ;;  %v15113_v5 = vld [vmem:[%s19675_s1 + $0x360] sm:$0xff] }
 0x2d9   :  { %v2672_v56 = vadd.f32 %v2640_v43, %v2521_v12  ;;  %3685 = vmatpush.bf16.msra.mxu0 %v15113_v5 }
 0x2dd   :  { %v2791_v59 = vpop.f32.mrf.mxu2 }
 0x2de   :  { %v2943_v60 = vpop.f32.mrf.mxu3  ;;  %v2823_v23 = vadd.f32 %v2791_v59, %v2672_v56  ;;  %v2492_v8 = vpop.f32.mrf.mxu0 }
 0x2df   :  { %v2643_v15 = vpop.f32.mrf.mxu1  ;;  %v2522_v47 = vadd.f32 %v2492_v8, %v17063_v54 }
 0x2e0   :  { %v17220_v33 = vadd.f32 %v2943_v60, %v2823_v23  ;;  %v15139_v60 = vld [vmem:[%s19675_s1 + $0x430] sm:$0xff] }
 0x2e1   :  { %v2673_v14 = vadd.f32 %v2643_v15, %v2522_v47  ;;  %3097 = vmatmul.bf16.gmra.mxu0 %v20007_v0  ;;  %3249 = vmatmul.bf16.gmra.mxu1 %v19984_v48 }
 0x2e2   :  { %3401 = vmatmul.bf16.gmra.mxu2 %v16198_v2  ;;  %4139 = vmatpush.bf16.msra.mxu3 %v15139_v60  ;;  %v20017_v2 = vld [vmem:[#allocation60_spill] sm:$0xff] }
 0x2e3   :  { %3553 = vmatmul.bf16.gmra.mxu3 %v16195_v3 }
 0x2e5   :  { %v2794_v54 = vpop.f32.mrf.mxu2 }
 0x2e6   :  { %v2946_v25 = vpop.f32.mrf.mxu3  ;;  %v2824_v20 = vadd.f32 %v2794_v54, %v2673_v14  ;;  %v2494_v43 = vpop.f32.mrf.mxu0  ;;  %v20008_v54 = vld [vmem:[#allocation26_spill] sm:$0xff] }
 0x2e7   :  { %v2645_v12 = vpop.f32.mrf.mxu1  ;;  %v2523_v1 = vadd.f32 %v2494_v43, %v17071_v38  ;;  %v15112_v43 = vld [vmem:[%s19675_s1 + $0x358] sm:$0xff] }
 0x2e8   :  { %v17233_v56 = vadd.f32 %v2946_v25, %v2824_v20  ;;  %v20009_v25 = vld [vmem:[#allocation29_spill] sm:$0xff]  ;;  %3686 = vmatpush.bf16.msra.mxu0 %v15112_v43 }
 0x2e9   :  { %v2674_v59 = vadd.f32 %v2645_v12, %v2523_v1  ;;  %v15126_v20 = vld [vmem:[%s19675_s1 + $0x3c8] sm:$0xff] }
 0x2ea   :  { %3992 = vmatpush.bf16.msra.mxu2 %v15126_v20 }
 0x2ed   :  { %v2796_v23 = vpop.f32.mrf.mxu2 }
 0x2ee   :  { %v2948_v8 = vpop.f32.mrf.mxu3  ;;  %v2825_v15 = vadd.f32 %v2796_v23, %v2674_v59  ;;  %v2497_v47 = vpop.f32.mrf.mxu0 }
 0x2ef   :  { %v2648_v14 = vpop.f32.mrf.mxu1  ;;  %v2524_v38 = vadd.f32 %v2497_v47, %v17083_v31  ;;  %v15138_v47 = vld [vmem:[%s19675_s1 + $0x428] sm:$0xff] }
 0x2f0   :  { %v17242_v32 = vadd.f32 %v2948_v8, %v2825_v15  ;;  %v15118_v8 = vld [vmem:[%s19675_s1 + $0x388] sm:$0xff]  ;;  %4140 = vmatpush.bf16.msra.mxu3 %v15138_v47  ;;  %v15135_v47 = vld [vmem:[%s19675_s1 + $0x410] sm:$0xff] }
 0x2f1   :  { %v2675_v5 = vadd.f32 %v2648_v14, %v2524_v38  ;;  %3102 = vmatmul.bf16.gmra.mxu0 %v20008_v54  ;;  %3254 = vmatmul.bf16.gmra.mxu1 %v20009_v25 }
 0x2f2   :  { %3406 = vmatmul.bf16.gmra.mxu2 %v16256_v58  ;;  %3840 = vmatpush.bf16.msra.mxu1 %v15118_v8 }
 0x2f3   :  { %3558 = vmatmul.bf16.gmra.mxu3 %v16259_v46 }
 0x2f5   :  { %v2799_v31 = vpop.f32.mrf.mxu2 }
 0x2f6   :  { %v2951_v12 = vpop.f32.mrf.mxu3  ;;  %v2826_v1 = vadd.f32 %v2799_v31, %v2675_v5  ;;  %v2499_v22 = vpop.f32.mrf.mxu0  ;;  %v15137_v5 = vld [vmem:[%s19675_s1 + $0x420] sm:$0xff] }
 0x2f7   :  { %v2650_v59 = vpop.f32.mrf.mxu1  ;;  %v2525_v60 = vadd.f32 %v2499_v22, %v17094_v51  ;;  %4141 = vmatpush.bf16.msra.mxu3 %v15137_v5  ;;  %v20011_v22 = vld [vmem:[#allocation65_spill] sm:$0xff] }
 0x2f8   :  { %v17255_v23 = vadd.f32 %v2951_v12, %v2826_v1  ;;  %v20010_v12 = vld [vmem:[#allocation45_spill] sm:$0xff]  ;;  %v15136_v1 = vld [vmem:[%s19675_s1 + $0x418] sm:$0xff] }
 0x2f9   :  { %v2676_v15 = vadd.f32 %v2650_v59, %v2525_v60  ;;  %v20012_v59 = vld [vmem:[#allocation66_spill] sm:$0xff] }
 0x2fa   :  { %v15111_v60 = vld [vmem:[%s19675_s1 + $0x350] sm:$0xff] }
 0x2fb   :  { %4142 = vmatpush.bf16.msra.mxu3 %v15136_v1  ;;  %3687 = vmatpush.bf16.msra.mxu0 %v15111_v60  ;;  %v15134_v1 = vld [vmem:[%s19675_s1 + $0x408] sm:$0xff]  ;;  %v15109_v60 = vld [vmem:[%s19675_s1 + $0x340] sm:$0xff] }
 0x2fd   :  { %v2801_v14 = vpop.f32.mrf.mxu2 }
 0x2fe   :  { %v2953_v38 = vpop.f32.mrf.mxu3  ;;  %v2827_v51 = vadd.f32 %v2801_v14, %v2676_v15  ;;  %v2502_v54 = vpop.f32.mrf.mxu0 }
 0x2ff   :  { %v2653_v25 = vpop.f32.mrf.mxu1  ;;  %v2526_v20 = vadd.f32 %v2502_v54, %v17112_v61  ;;  %v15125_v61 = vld [vmem:[%s19675_s1 + $0x3c0] sm:$0xff]  ;;  %4143 = vmatpush.bf16.msra.mxu3 %v15135_v47 }
 0x300   :  { %v17267_v43 = vadd.f32 %v2953_v38, %v2827_v51  ;;  %3993 = vmatpush.bf16.msra.mxu2 %v15125_v61 }
 0x301   :  { %v2677_v31 = vadd.f32 %v2653_v25, %v2526_v20  ;;  %3107 = vmatmul.bf16.gmra.mxu0 %v20010_v12  ;;  %3259 = vmatmul.bf16.gmra.mxu1 %v19991_v17  ;;  %v15117_v25 = vld [vmem:[%s19675_s1 + $0x380] sm:$0xff]  ;;  %v15110_v20 = vld [vmem:[%s19675_s1 + $0x348] sm:$0xff] }
 0x302   :  { %3411 = vmatmul.bf16.gmra.mxu2 %v20011_v22  ;;  %3841 = vmatpush.bf16.msra.mxu1 %v15117_v25  ;;  %v20013_v25 = vld [vmem:[#allocation54_spill] sm:$0xff]  ;;  %v20016_v22 = vld [vmem:[#allocation75_spill] sm:$0xff] }
 0x303   :  { %3563 = vmatmul.bf16.gmra.mxu3 %v20012_v59  ;;  %3688 = vmatpush.bf16.msra.mxu0 %v15110_v20  ;;  %v20014_v20 = vld [vmem:[#allocation59_spill] sm:$0xff] }
 0x304   :  { %4144 = vmatpush.bf16.msra.mxu3 %v15134_v1  ;;  %v20015_v1 = vld [vmem:[#allocation74_spill] sm:$0xff] }
 0x305   :  { %v2804_v8 = vpop.f32.mrf.mxu2 }
 0x306   :  { %v2956_v15 = vpop.f32.mrf.mxu3  ;;  %v2828_v14 = vadd.f32 %v2804_v8, %v2677_v31  ;;  %v2504_v38 = vpop.f32.mrf.mxu0  ;;  %v15133_v8 = vld [vmem:[%s19675_s1 + $0x400] sm:$0xff] }
 0x307   :  { %v2655_v5 = vpop.f32.mrf.mxu1  ;;  %v2527_v51 = vadd.f32 %v2504_v38, %v17129_v19  ;;  %3689 = vmatpush.bf16.msra.mxu0 %v15109_v60 }
 0x308   :  { %v17286_v54 = vadd.f32 %v2956_v15, %v2828_v14  ;;  %4145 = vmatpush.bf16.msra.mxu3 %v15133_v8 }
 0x309   :  { %v2678_v31 = vadd.f32 %v2655_v5, %v2527_v51 }
 0x30d   :  { %v2806_v19 = vpop.f32.mrf.mxu2 }
 0x30e   :  { %v2958_v61 = vpop.f32.mrf.mxu3  ;;  %v2829_v15 = vadd.f32 %v2806_v19, %v2678_v31  ;;  %v2507_v47 = vpop.f32.mrf.mxu0  ;;  %v15164_v31 = vld [vmem:[%s19675_s1 + $0x4f8] sm:$0xff] }
 0x30f   :  { %v2658_v14 = vpop.f32.mrf.mxu1  ;;  %v2528_v38 = vadd.f32 %v2507_v47, %v17138_v6  ;;  %4594 = vmatpush.bf16.msrb.mxu2 %v15164_v31 }
 0x310   :  { %v17304_v5 = vadd.f32 %v2958_v61, %v2829_v15 }
 0x311   :  { %v2679_v51 = vadd.f32 %v2658_v14, %v2528_v38  ;;  %3112 = vmatmul.bf16.gmra.mxu0 %v20013_v25  ;;  %3264 = vmatmul.bf16.gmra.mxu1 %v20014_v20  ;;  %v15156_v14 = vld [vmem:[%s19675_s1 + $0x4b8] sm:$0xff] }
 0x312   :  { %3416 = vmatmul.bf16.gmra.mxu2 %v20015_v1  ;;  %4442 = vmatpush.bf16.msrb.mxu1 %v15156_v14 }
 0x313   :  { %3568 = vmatmul.bf16.gmra.mxu3 %v20016_v22 }
 0x315   :  { %v2809_v19 = vpop.f32.mrf.mxu2 }
 0x316   :  { %v2961_v6 = vpop.f32.mrf.mxu3  ;;  %v2830_v60 = vadd.f32 %v2809_v19, %v2679_v51  ;;  %v2509_v8 = vpop.f32.mrf.mxu0  ;;  %v3160_v51 = vpack.c.bf16 %v20017_v2, %v20017_v2 }
 0x317   :  { %v2660_v61 = vpop.f32.mrf.mxu1  ;;  %v2529_v15 = vadd.f32 %v2509_v8, %v17147_v27  ;;  %v3008_v27 = vpack.c.bf16 %v20018_v57, %v20018_v57 }
 0x318   :  { %v17314_v47 = vadd.f32 %v2961_v6, %v2830_v60  ;;  %v20019_v60 = vld [vmem:[#allocation76_spill] sm:$0xff] }
 0x319   :  { %v2680_v38 = vadd.f32 %v2660_v61, %v2529_v15  ;;  %v3312_v8 = vpack.c.bf16 %v20019_v60, %v20019_v60  ;;  %v20020_v61 = vld [vmem:[#allocation77_spill] sm:$0xff] }
 0x31a   :  { %v3464_v15 = vpack.c.bf16 %v20020_v61, %v20020_v61 }
 0x31d   :  { %v2811_v59 = vpop.f32.mrf.mxu2 }
 0x31e   :  { %v2963_v22 = vpop.f32.mrf.mxu3  ;;  %v2831_v46 = vadd.f32 %v2811_v59, %v2680_v38  ;;  %v2512_v3 = vpop.f32.mrf.mxu0 }
 0x31f   :  { %v2663_v31 = vpop.f32.mrf.mxu1  ;;  %v2530_v19 = vadd.f32 %v2512_v3, %v17156_v34  ;;  %v15163_v3 = vld [vmem:[%s19675_s1 + $0x4f0] sm:$0xff] }
 0x320   :  { %v17324_v6 = vadd.f32 %v2963_v22, %v2831_v46  ;;  %4595 = vmatpush.bf16.msrb.mxu2 %v15163_v3  ;;  %v15162_v3 = vld [vmem:[%s19675_s1 + $0x4e8] sm:$0xff] }
 0x321   :  { %v2681_v14 = vadd.f32 %v2663_v31, %v2530_v19  ;;  %3117 = vmatmul.bf16.gmra.mxu0 %v3008_v27  ;;  %3269 = vmatmul.bf16.gmra.mxu1 %v3160_v51  ;;  %v15155_v31 = vld [vmem:[%s19675_s1 + $0x4b0] sm:$0xff] }
 0x322   :  { %3421 = vmatmul.bf16.gmra.mxu2 %v3312_v8  ;;  %4443 = vmatpush.bf16.msrb.mxu1 %v15155_v31 }
 0x323   :  { %3573 = vmatmul.bf16.gmra.mxu3 %v3464_v15 }
 0x324   :  { %4596 = vmatpush.bf16.msrb.mxu2 %v15162_v3 }
 0x325   :  { %v2814_v34 = vpop.f32.mrf.mxu2 }
 0x326   :  { %v2966_v59 = vpop.f32.mrf.mxu3  ;;  %v2832_v46 = vadd.f32 %v2814_v34, %v2681_v14  ;;  %v2514_v22 = vpop.f32.mrf.mxu0  ;;  %v20021_v14 = vld [vmem:[#allocation12_spill] sm:$0xff]  ;;  %v15148_v34 = vld [vmem:[%s19675_s1 + $0x478] sm:$0xff] }
 0x327   :  { %v2665_v38 = vpop.f32.mrf.mxu1  ;;  %4290 = vmatpush.bf16.msrb.mxu0 %v15148_v34  ;;  %v15147_v34 = vld [vmem:[%s19675_s1 + $0x470] sm:$0xff] }
 0x328   :  { %v17333_v44 = vadd.f32 %v2966_v59, %v2832_v46  ;;  %v15154_v38 = vld [vmem:[%s19675_s1 + $0x4a8] sm:$0xff] }
 0x329   :  { %4444 = vmatpush.bf16.msrb.mxu1 %v15154_v38 }
 0x32b   :  { %4291 = vmatpush.bf16.msrb.mxu0 %v15147_v34  ;;  %v20026_v34 = vld [vmem:[#allocation43_spill] sm:$0xff] }
 0x32d   :  { %v2816_v51 = vpop.f32.mrf.mxu2 }
 0x32e   :  { %v2968_v19 = vpop.f32.mrf.mxu3  ;;  %v3083_v27 = vpop.f32.mrf.mxu0 }
 0x32f   :  { %v3235_v60 = vpop.f32.mrf.mxu1  ;;  %v3122_v8 = vadd.f32 %v3083_v27, %v17173_v52 }
 0x331   :  { %v3274_v15 = vadd.f32 %v3235_v60, %v3122_v8  ;;  %3690 = vmatmul.bf16.vlgmr.msra.gmra.mxu0 %v16001_v63  ;;  %3842 = vmatmul.bf16.vlgmr.msra.gmra.mxu1 %v15999_v62 }
 0x332   :  { %3994 = vmatmul.bf16.vlgmr.msra.gmra.mxu2 %v16029_v45 }
 0x333   :  { %4146 = vmatmul.bf16.vlgmr.msra.gmra.mxu3 %v20021_v14 }
 0x335   :  { %v3387_v52 = vpop.f32.mrf.mxu2 }
 0x336   :  { %v3539_v59 = vpop.f32.mrf.mxu3  ;;  %v3426_v46 = vadd.f32 %v3387_v52, %v3274_v15  ;;  %v3085_v63 = vpop.f32.mrf.mxu0 }
 0x337   :  { %v3237_v22 = vpop.f32.mrf.mxu1  ;;  %v3123_v62 = vadd.f32 %v3085_v63, %v17179_v29  ;;  %v15161_v29 = vld [vmem:[%s19675_s1 + $0x4e0] sm:$0xff] }
 0x338   :  { %v17350_v45 = vadd.f32 %v3539_v59, %v3426_v46  ;;  %4597 = vmatpush.bf16.msrb.mxu2 %v15161_v29  ;;  %v15153_v63 = vld [vmem:[%s19675_s1 + $0x4a0] sm:$0xff]  ;;  %v20025_v29 = vld [vmem:[#allocation37_spill] sm:$0xff] }
 0x339   :  { %v3275_v31 = vadd.f32 %v3237_v22, %v3123_v62  ;;  %4445 = vmatpush.bf16.msrb.mxu1 %v15153_v63 }
 0x33d   :  { %v3389_v51 = vpop.f32.mrf.mxu2 }
 0x33e   :  { %v3541_v19 = vpop.f32.mrf.mxu3  ;;  %v3427_v27 = vadd.f32 %v3389_v51, %v3275_v31  ;;  %v3088_v60 = vpop.f32.mrf.mxu0 }
 0x33f   :  { %v3240_v8 = vpop.f32.mrf.mxu1  ;;  %v3124_v14 = vadd.f32 %v3088_v60, %v17192_v7 }
 0x340   :  { %v17356_v15 = vadd.f32 %v3541_v19, %v3427_v27 }
 0x341   :  { %v3276_v3 = vadd.f32 %v3240_v8, %v3124_v14  ;;  %3695 = vmatmul.bf16.gmra.mxu0 %v16052_v41  ;;  %3847 = vmatmul.bf16.gmra.mxu1 %v16049_v13  ;;  %v20022_v14 = vld [vmem:[#allocation32_spill] sm:$0xff] }
 0x342   :  { %3999 = vmatmul.bf16.gmra.mxu2 %v16089_v18 }
 0x343   :  { %4151 = vmatmul.bf16.gmra.mxu3 %v19982_v24 }
 0x345   :  { %v3392_v7 = vpop.f32.mrf.mxu2 }
 0x346   :  { %v3544_v52 = vpop.f32.mrf.mxu3  ;;  %v3428_v59 = vadd.f32 %v3392_v7, %v3276_v3  ;;  %v3090_v41 = vpop.f32.mrf.mxu0  ;;  %v20027_v7 = vld [vmem:[#allocation33_spill] sm:$0xff] }
 0x347   :  { %v3242_v46 = vpop.f32.mrf.mxu1  ;;  %v3125_v13 = vadd.f32 %v3090_v41, %v17198_v30  ;;  %v20023_v30 = vld [vmem:[#allocation22_spill] sm:$0xff] }
 0x348   :  { %v17369_v18 = vadd.f32 %v3544_v52, %v3428_v59  ;;  %v20024_v3 = vpack.c.bf16 %v20022_v14, %v20023_v30  ;;  %v15160_v52 = vld [vmem:[%s19675_s1 + $0x4d8] sm:$0xff] }
 0x349   :  { %v3277_v22 = vadd.f32 %v3242_v46, %v3125_v13  ;;  %4598 = vmatpush.bf16.msrb.mxu2 %v15160_v52 }
 0x34d   :  { %v3394_v62 = vpop.f32.mrf.mxu2 }
 0x34e   :  { %v3546_v38 = vpop.f32.mrf.mxu3  ;;  %v3429_v31 = vadd.f32 %v3394_v62, %v3277_v22  ;;  %v3093_v51 = vpop.f32.mrf.mxu0 }
 0x34f   :  { %v3245_v19 = vpop.f32.mrf.mxu1  ;;  %v3126_v27 = vadd.f32 %v3093_v51, %v17211_v55  ;;  %v15146_v55 = vld [vmem:[%s19675_s1 + $0x468] sm:$0xff]  ;;  %v15172_v51 = vld [vmem:[%s19675_s1 + $0x538] sm:$0xff] }
 0x350   :  { %v17375_v60 = vadd.f32 %v3546_v38, %v3429_v31  ;;  %4292 = vmatpush.bf16.msrb.mxu0 %v15146_v55  ;;  %v15152_v38 = vld [vmem:[%s19675_s1 + $0x498] sm:$0xff]  ;;  %4746 = vmatpush.bf16.msrb.mxu3 %v15172_v51 }
 0x351   :  { %v3278_v8 = vadd.f32 %v3245_v19, %v3126_v27  ;;  %3700 = vmatmul.bf16.gmra.mxu0 %v20024_v3  ;;  %3852 = vmatmul.bf16.gmra.mxu1 %v20025_v29 }
 0x352   :  { %4004 = vmatmul.bf16.gmra.mxu2 %v20026_v34  ;;  %4446 = vmatpush.bf16.msrb.mxu1 %v15152_v38  ;;  %v15159_v34 = vld [vmem:[%s19675_s1 + $0x4d0] sm:$0xff] }
 0x353   :  { %4156 = vmatmul.bf16.gmra.mxu3 %v20027_v7  ;;  %v15145_v7 = vld [vmem:[%s19675_s1 + $0x460] sm:$0xff]  ;;  %4599 = vmatpush.bf16.msrb.mxu2 %v15159_v34 }
 0x354   :  { %4293 = vmatpush.bf16.msrb.mxu0 %v15145_v7 }
 0x355   :  { %v3397_v59 = vpop.f32.mrf.mxu2 }
 0x356   :  { %v3549_v41 = vpop.f32.mrf.mxu3  ;;  %v3430_v46 = vadd.f32 %v3397_v59, %v3278_v8  ;;  %v3095_v13 = vpop.f32.mrf.mxu0 }
 0x357   :  { %v3247_v63 = vpop.f32.mrf.mxu1  ;;  %v3127_v22 = vadd.f32 %v3095_v13, %v17220_v33 }
 0x358   :  { %v17390_v62 = vadd.f32 %v3549_v41, %v3430_v46 }
 0x359   :  { %v3279_v31 = vadd.f32 %v3247_v63, %v3127_v22  ;;  %v15171_v22 = vld [vmem:[%s19675_s1 + $0x530] sm:$0xff] }
 0x35a   :  { %4747 = vmatpush.bf16.msrb.mxu3 %v15171_v22 }
 0x35d   :  { %v3399_v19 = vpop.f32.mrf.mxu2 }
 0x35e   :  { %v3551_v27 = vpop.f32.mrf.mxu3  ;;  %v3431_v8 = vadd.f32 %v3399_v19, %v3279_v31  ;;  %v3098_v14 = vpop.f32.mrf.mxu0 }
 0x35f   :  { %v3250_v30 = vpop.f32.mrf.mxu1  ;;  %v3128_v33 = vadd.f32 %v3098_v14, %v17233_v56 }
 0x360   :  { %v17399_v3 = vadd.f32 %v3551_v27, %v3431_v8 }
 0x361   :  { %v3280_v29 = vadd.f32 %v3250_v30, %v3128_v33  ;;  %3705 = vmatmul.bf16.gmra.mxu0 %v16221_v49  ;;  %3857 = vmatmul.bf16.gmra.mxu1 %v16223_v21  ;;  %v20028_v30 = vpack.c.bf16 %v16271_v11, %v16246_v4  ;;  %v20029_v33 = vpack.c.bf16 %v19994_v10, %v16269_v40 }
 0x362   :  { %4009 = vmatmul.bf16.gmra.mxu2 %v16256_v58 }
 0x363   :  { %4161 = vmatmul.bf16.gmra.mxu3 %v19989_v16  ;;  %v15151_v16 = vld [vmem:[%s19675_s1 + $0x490] sm:$0xff] }
 0x364   :  { %4447 = vmatpush.bf16.msrb.mxu1 %v15151_v16  ;;  %v15170_v16 = vld [vmem:[%s19675_s1 + $0x528] sm:$0xff] }
 0x365   :  { %v3402_v56 = vpop.f32.mrf.mxu2  ;;  %4748 = vmatpush.bf16.msrb.mxu3 %v15170_v16  ;;  %v15149_v16 = vld [vmem:[%s19675_s1 + $0x480] sm:$0xff] }
 0x366   :  { %v3554_v52 = vpop.f32.mrf.mxu3  ;;  %v3432_v55 = vadd.f32 %v3402_v56, %v3280_v29  ;;  %v3100_v59 = vpop.f32.mrf.mxu0  ;;  %v15158_v29 = vld [vmem:[%s19675_s1 + $0x4c8] sm:$0xff] }
 0x367   :  { %v3252_v41 = vpop.f32.mrf.mxu1  ;;  %v3129_v46 = vadd.f32 %v3100_v59, %v17242_v32  ;;  %4600 = vmatpush.bf16.msrb.mxu2 %v15158_v29  ;;  %v20032_v29 = vld [vmem:[#allocation68_spill] sm:$0xff] }
 0x368   :  { %v17412_v13 = vadd.f32 %v3554_v52, %v3432_v55 }
 0x369   :  { %v3281_v63 = vadd.f32 %v3252_v41, %v3129_v46  ;;  %v15150_v41 = vld [vmem:[%s19675_s1 + $0x488] sm:$0xff] }
 0x36a   :  { %4448 = vmatpush.bf16.msrb.mxu1 %v15150_v41 }
 0x36d   :  { %v3404_v38 = vpop.f32.mrf.mxu2 }
 0x36e   :  { %v3556_v31 = vpop.f32.mrf.mxu3  ;;  %v3433_v51 = vadd.f32 %v3404_v38, %v3281_v63  ;;  %v3103_v19 = vpop.f32.mrf.mxu0  ;;  %v15169_v38 = vld [vmem:[%s19675_s1 + $0x520] sm:$0xff]  ;;  %4449 = vmatpush.bf16.msrb.mxu1 %v15149_v16 }
 0x36f   :  { %v3255_v27 = vpop.f32.mrf.mxu1  ;;  %v3130_v32 = vadd.f32 %v3103_v19, %v17255_v23  ;;  %v15144_v23 = vld [vmem:[%s19675_s1 + $0x458] sm:$0xff]  ;;  %4749 = vmatpush.bf16.msrb.mxu3 %v15169_v38 }
 0x370   :  { %v17421_v8 = vadd.f32 %v3556_v31, %v3433_v51  ;;  %4294 = vmatpush.bf16.msrb.mxu0 %v15144_v23  ;;  %v15143_v23 = vld [vmem:[%s19675_s1 + $0x450] sm:$0xff] }
 0x371   :  { %v3282_v14 = vadd.f32 %v3255_v27, %v3130_v32  ;;  %3710 = vmatmul.bf16.gmra.mxu0 %v19990_v42  ;;  %3862 = vmatmul.bf16.gmra.mxu1 %v20028_v30  ;;  %v20031_v30 = vld [vmem:[#allocation71_spill] sm:$0xff] }
 0x372   :  { %4014 = vmatmul.bf16.gmra.mxu2 %v20029_v33  ;;  %v15168_v33 = vld [vmem:[%s19675_s1 + $0x518] sm:$0xff] }
 0x373   :  { %4166 = vmatmul.bf16.gmra.mxu3 %v19993_v37 }
 0x374   :  { %4750 = vmatpush.bf16.msrb.mxu3 %v15168_v33  ;;  %4295 = vmatpush.bf16.msrb.mxu0 %v15143_v23 }
 0x375   :  { %v3407_v34 = vpop.f32.mrf.mxu2 }
 0x376   :  { %v3559_v7 = vpop.f32.mrf.mxu3  ;;  %v3434_v4 = vadd.f32 %v3407_v34, %v3282_v14  ;;  %v3105_v56 = vpop.f32.mrf.mxu0  ;;  %v20030_v14 = vld [vmem:[#allocation70_spill] sm:$0xff] }
 0x377   :  { %v3257_v52 = vpop.f32.mrf.mxu1  ;;  %v3131_v55 = vadd.f32 %v3105_v56, %v17267_v43 }
 0x378   :  { %v17438_v59 = vadd.f32 %v3559_v7, %v3434_v4  ;;  %v15167_v4 = vld [vmem:[%s19675_s1 + $0x510] sm:$0xff] }
 0x379   :  { %v3283_v46 = vadd.f32 %v3257_v52, %v3131_v55  ;;  %4751 = vmatpush.bf16.msrb.mxu3 %v15167_v4  ;;  %v20034_v4 = vld [vmem:[#allocation81_spill] sm:$0xff] }
 0x37d   :  { %v3409_v63 = vpop.f32.mrf.mxu2 }
 0x37e   :  { %v3561_v22 = vpop.f32.mrf.mxu3  ;;  %v3435_v43 = vadd.f32 %v3409_v63, %v3283_v46  ;;  %v3108_v31 = vpop.f32.mrf.mxu0  ;;  %v15142_v63 = vld [vmem:[%s19675_s1 + $0x448] sm:$0xff] }
 0x37f   :  { %v3260_v51 = vpop.f32.mrf.mxu1  ;;  %v3132_v19 = vadd.f32 %v3108_v31, %v17286_v54  ;;  %v15157_v54 = vld [vmem:[%s19675_s1 + $0x4c0] sm:$0xff]  ;;  %4296 = vmatpush.bf16.msrb.mxu0 %v15142_v63 }
 0x380   :  { %v17450_v27 = vadd.f32 %v3561_v22, %v3435_v43  ;;  %4601 = vmatpush.bf16.msrb.mxu2 %v15157_v54  ;;  %v15166_v22 = vld [vmem:[%s19675_s1 + $0x508] sm:$0xff]  ;;  %v15141_v31 = vld [vmem:[%s19675_s1 + $0x440] sm:$0xff] }
 0x381   :  { %v3284_v32 = vadd.f32 %v3260_v51, %v3132_v19  ;;  %3715 = vmatmul.bf16.gmra.mxu0 %v20030_v14  ;;  %3867 = vmatmul.bf16.gmra.mxu1 %v20031_v30  ;;  %v15165_v51 = vld [vmem:[%s19675_s1 + $0x500] sm:$0xff] }
 0x382   :  { %4019 = vmatmul.bf16.gmra.mxu2 %v20015_v1  ;;  %4752 = vmatpush.bf16.msrb.mxu3 %v15166_v22 }
 0x383   :  { %4171 = vmatmul.bf16.gmra.mxu3 %v20032_v29  ;;  %4297 = vmatpush.bf16.msrb.mxu0 %v15141_v31  ;;  %v20038_v29 = vld [vmem:[#allocation85_spill] sm:$0xff] }
 0x385   :  { %v3412_v34 = vpop.f32.mrf.mxu2 }
 0x386   :  { %v3564_v7 = vpop.f32.mrf.mxu3  ;;  %v3436_v56 = vadd.f32 %v3412_v34, %v3284_v32  ;;  %v3110_v52 = vpop.f32.mrf.mxu0  ;;  %4753 = vmatpush.bf16.msrb.mxu3 %v15165_v51 }
 0x387   :  { %v3262_v55 = vpop.f32.mrf.mxu1  ;;  %v3133_v41 = vadd.f32 %v3110_v52, %v17304_v5  ;;  %v20036_v52 = vld [vmem:[#allocation78_spill] sm:$0xff] }
 0x388   :  { %v17469_v46 = vadd.f32 %v3564_v7, %v3436_v56  ;;  %v20033_v7 = vld [vmem:[#allocation80_spill] sm:$0xff] }
 0x389   :  { %v3285_v38 = vadd.f32 %v3262_v55, %v3133_v41  ;;  %v20035_v56 = vld [vmem:[#allocation88_spill] sm:$0xff]  ;;  %v15196_v55 = vld [vmem:[%s19675_s1 + $0x5f8] sm:$0xff] }
 0x38a   :  { %5202 = vmatpush.bf16.msra.mxu2 %v15196_v55 }
 0x38d   :  { %v3414_v5 = vpop.f32.mrf.mxu2 }
 0x38e   :  { %v3566_v43 = vpop.f32.mrf.mxu3  ;;  %v3437_v19 = vadd.f32 %v3414_v5, %v3285_v38  ;;  %v3113_v32 = vpop.f32.mrf.mxu0 }
 0x38f   :  { %v3265_v33 = vpop.f32.mrf.mxu1  ;;  %v3134_v54 = vadd.f32 %v3113_v32, %v17314_v47 }
 0x390   :  { %v17487_v23 = vadd.f32 %v3566_v43, %v3437_v19  ;;  %v15188_v43 = vld [vmem:[%s19675_s1 + $0x5b8] sm:$0xff] }
 0x391   :  { %v3286_v34 = vadd.f32 %v3265_v33, %v3134_v54  ;;  %3720 = vmatmul.bf16.gmra.mxu0 %v20033_v7  ;;  %3872 = vmatmul.bf16.gmra.mxu1 %v20034_v4 }
 0x392   :  { %4024 = vmatmul.bf16.gmra.mxu2 %v20035_v56  ;;  %5050 = vmatpush.bf16.msra.mxu1 %v15188_v43 }
 0x393   :  { %4176 = vmatmul.bf16.gmra.mxu3 %v20036_v52 }
 0x395   :  { %v3417_v41 = vpop.f32.mrf.mxu2 }
 0x396   :  { %v3569_v47 = vpop.f32.mrf.mxu3  ;;  %v3438_v16 = vadd.f32 %v3417_v41, %v3286_v34  ;;  %v3115_v63 = vpop.f32.mrf.mxu0  ;;  %v20037_v34 = vld [vmem:[#allocation84_spill] sm:$0xff] }
 0x397   :  { %v3267_v22 = vpop.f32.mrf.mxu1  ;;  %v3135_v38 = vadd.f32 %v3115_v63, %v17324_v6  ;;  %v3616_v41 = vpack.c.bf16 %v20037_v34, %v20037_v34  ;;  %v3768_v6 = vpack.c.bf16 %v20038_v29, %v20038_v29 }
 0x398   :  { %v17497_v5 = vadd.f32 %v3569_v47, %v3438_v16  ;;  %v20039_v16 = vld [vmem:[#allocation90_spill] sm:$0xff] }
 0x399   :  { %v3287_v31 = vadd.f32 %v3267_v22, %v3135_v38  ;;  %v3920_v63 = vpack.c.bf16 %v20039_v16, %v20039_v16  ;;  %v20040_v22 = vld [vmem:[#allocation82_spill] sm:$0xff] }
 0x39a   :  { %v4072_v38 = vpack.c.bf16 %v20040_v22, %v20040_v22 }
 0x39d   :  { %v3419_v51 = vpop.f32.mrf.mxu2 }
 0x39e   :  { %v3571_v19 = vpop.f32.mrf.mxu3  ;;  %v3439_v32 = vadd.f32 %v3419_v51, %v3287_v31  ;;  %v3118_v33 = vpop.f32.mrf.mxu0 }
 0x39f   :  { %v3270_v54 = vpop.f32.mrf.mxu1  ;;  %v3136_v55 = vadd.f32 %v3118_v33, %v17333_v44  ;;  %v15195_v44 = vld [vmem:[%s19675_s1 + $0x5f0] sm:$0xff] }
 0x3a0   :  { %v17507_v47 = vadd.f32 %v3571_v19, %v3439_v32  ;;  %5203 = vmatpush.bf16.msra.mxu2 %v15195_v44  ;;  %v20041_v44 = vld [vmem:[#allocation13_spill] sm:$0xff] }
 0x3a1   :  { %v3288_v43 = vadd.f32 %v3270_v54, %v3136_v55  ;;  %3725 = vmatmul.bf16.gmra.mxu0 %v3616_v41  ;;  %3877 = vmatmul.bf16.gmra.mxu1 %v3768_v6  ;;  %v15187_v54 = vld [vmem:[%s19675_s1 + $0x5b0] sm:$0xff] }
 0x3a2   :  { %4029 = vmatmul.bf16.gmra.mxu2 %v3920_v63  ;;  %5051 = vmatpush.bf16.msra.mxu1 %v15187_v54 }
 0x3a3   :  { %4181 = vmatmul.bf16.gmra.mxu3 %v4072_v38 }
 0x3a5   :  { %v3422_v31 = vpop.f32.mrf.mxu2 }
 0x3a6   :  { %v3574_v51 = vpop.f32.mrf.mxu3  ;;  %v3440_v19 = vadd.f32 %v3422_v31, %v3288_v43  ;;  %v3120_v32 = vpop.f32.mrf.mxu0  ;;  %v15194_v43 = vld [vmem:[%s19675_s1 + $0x5e8] sm:$0xff]  ;;  %v15180_v31 = vld [vmem:[%s19675_s1 + $0x578] sm:$0xff] }
 0x3a7   :  { %v3272_v33 = vpop.f32.mrf.mxu1  ;;  %5204 = vmatpush.bf16.msra.mxu2 %v15194_v43  ;;  %4898 = vmatpush.bf16.msra.mxu0 %v15180_v31  ;;  %v15179_v31 = vld [vmem:[%s19675_s1 + $0x570] sm:$0xff] }
 0x3a8   :  { %v17516_v34 = vadd.f32 %v3574_v51, %v3440_v19 }
 0x3ab   :  { %4899 = vmatpush.bf16.msra.mxu0 %v15179_v31  ;;  %v20047_v31 = vld [vmem:[#allocation47_spill] sm:$0xff] }
 0x3ad   :  { %v3424_v55 = vpop.f32.mrf.mxu2 }
 0x3ae   :  { %v3576_v41 = vpop.f32.mrf.mxu3  ;;  %v3691_v6 = vpop.f32.mrf.mxu0 }
 0x3af   :  { %v3843_v63 = vpop.f32.mrf.mxu1  ;;  %v3730_v22 = vadd.f32 %v3691_v6, %v17350_v45 }
 0x3b1   :  { %v3882_v38 = vadd.f32 %v3843_v63, %v3730_v22  ;;  %4298 = vmatmul.bf16.vlgmr.msrb.gmra.mxu0 %v20041_v44  ;;  %4450 = vmatmul.bf16.vlgmr.msrb.gmra.mxu1 %v19980_v39 }
 0x3b2   :  { %4602 = vmatmul.bf16.vlgmr.msrb.gmra.mxu2 %v19981_v26 }
 0x3b3   :  { %4754 = vmatmul.bf16.vlgmr.msrb.gmra.mxu3 %v19982_v24  ;;  %v15186_v24 = vld [vmem:[%s19675_s1 + $0x5a8] sm:$0xff] }
 0x3b4   :  { %5052 = vmatpush.bf16.msra.mxu1 %v15186_v24 }
 0x3b5   :  { %v3995_v45 = vpop.f32.mrf.mxu2 }
 0x3b6   :  { %v4147_v51 = vpop.f32.mrf.mxu3  ;;  %v4034_v19 = vadd.f32 %v3995_v45, %v3882_v38  ;;  %v3693_v32 = vpop.f32.mrf.mxu0 }
 0x3b7   :  { %v3845_v33 = vpop.f32.mrf.mxu1  ;;  %v3731_v39 = vadd.f32 %v3693_v32, %v17356_v15  ;;  %v15193_v15 = vld [vmem:[%s19675_s1 + $0x5e0] sm:$0xff] }
 0x3b8   :  { %v17533_v26 = vadd.f32 %v4147_v51, %v4034_v19  ;;  %5205 = vmatpush.bf16.msra.mxu2 %v15193_v15  ;;  %v20046_v15 = vld [vmem:[#allocation44_spill] sm:$0xff] }
 0x3b9   :  { %v3883_v54 = vadd.f32 %v3845_v33, %v3731_v39 }
 0x3bd   :  { %v3997_v55 = vpop.f32.mrf.mxu2 }
 0x3be   :  { %v4149_v41 = vpop.f32.mrf.mxu3  ;;  %v4035_v6 = vadd.f32 %v3997_v55, %v3883_v54  ;;  %v3696_v63 = vpop.f32.mrf.mxu0 }
 0x3bf   :  { %v3848_v22 = vpop.f32.mrf.mxu1  ;;  %v3732_v44 = vadd.f32 %v3696_v63, %v17369_v18 }
 0x3c0   :  { %v17539_v38 = vadd.f32 %v4149_v41, %v4035_v6 }
 0x3c1   :  { %v3884_v43 = vadd.f32 %v3848_v22, %v3732_v44  ;;  %4303 = vmatmul.bf16.gmra.mxu0 %v20007_v0  ;;  %4455 = vmatmul.bf16.gmra.mxu1 %v19984_v48  ;;  %v20042_v22 = vld [vmem:[#allocation34_spill] sm:$0xff]  ;;  %v20044_v44 = vld [vmem:[#allocation25_spill] sm:$0xff] }
 0x3c2   :  { %4607 = vmatmul.bf16.gmra.mxu2 %v19985_v50 }
 0x3c3   :  { %4759 = vmatmul.bf16.gmra.mxu3 %v19986_v53  ;;  %v15185_v53 = vld [vmem:[%s19675_s1 + $0x5a0] sm:$0xff] }
 0x3c4   :  { %5053 = vmatpush.bf16.msra.mxu1 %v15185_v53 }
 0x3c5   :  { %v4000_v18 = vpop.f32.mrf.mxu2 }
 0x3c6   :  { %v4152_v45 = vpop.f32.mrf.mxu3  ;;  %v4036_v51 = vadd.f32 %v4000_v18, %v3884_v43  ;;  %v3698_v0 = vpop.f32.mrf.mxu0  ;;  %v15192_v18 = vld [vmem:[%s19675_s1 + $0x5d8] sm:$0xff] }
 0x3c7   :  { %v3850_v19 = vpop.f32.mrf.mxu1  ;;  %v3733_v48 = vadd.f32 %v3698_v0, %v17375_v60  ;;  %v20043_v60 = vld [vmem:[#allocation38_spill] sm:$0xff]  ;;  %5206 = vmatpush.bf16.msra.mxu2 %v15192_v18 }
 0x3c8   :  { %v17552_v50 = vadd.f32 %v4152_v45, %v4036_v51  ;;  %v20045_v43 = vpack.c.bf16 %v20043_v60, %v20044_v44 }
 0x3c9   :  { %v3885_v32 = vadd.f32 %v3850_v19, %v3733_v48 }
 0x3cd   :  { %v4002_v33 = vpop.f32.mrf.mxu2 }
 0x3ce   :  { %v4154_v39 = vpop.f32.mrf.mxu3  ;;  %v4037_v24 = vadd.f32 %v4002_v33, %v3885_v32  ;;  %v3701_v54 = vpop.f32.mrf.mxu0  ;;  %v15184_v33 = vld [vmem:[%s19675_s1 + $0x598] sm:$0xff] }
 0x3cf   :  { %v3853_v55 = vpop.f32.mrf.mxu1  ;;  %v3734_v41 = vadd.f32 %v3701_v54, %v17390_v62  ;;  %v15178_v62 = vld [vmem:[%s19675_s1 + $0x568] sm:$0xff]  ;;  %5054 = vmatpush.bf16.msra.mxu1 %v15184_v33 }
 0x3d0   :  { %v17558_v6 = vadd.f32 %v4154_v39, %v4037_v24  ;;  %4900 = vmatpush.bf16.msra.mxu0 %v15178_v62  ;;  %v15204_v24 = vld [vmem:[%s19675_s1 + $0x638] sm:$0xff] }
 0x3d1   :  { %v3886_v63 = vadd.f32 %v3853_v55, %v3734_v41  ;;  %4308 = vmatmul.bf16.gmra.mxu0 %v20042_v22  ;;  %4460 = vmatmul.bf16.gmra.mxu1 %v20045_v43  ;;  %v15191_v43 = vld [vmem:[%s19675_s1 + $0x5d0] sm:$0xff] }
 0x3d2   :  { %4612 = vmatmul.bf16.gmra.mxu2 %v20046_v15  ;;  %5354 = vmatpush.bf16.msra.mxu3 %v15204_v24  ;;  %v15177_v15 = vld [vmem:[%s19675_s1 + $0x560] sm:$0xff] }
 0x3d3   :  { %4764 = vmatmul.bf16.gmra.mxu3 %v20047_v31  ;;  %5207 = vmatpush.bf16.msra.mxu2 %v15191_v43 }
 0x3d4   :  { %4901 = vmatpush.bf16.msra.mxu0 %v15177_v15 }
 0x3d5   :  { %v4005_v45 = vpop.f32.mrf.mxu2 }
 0x3d6   :  { %v4157_v51 = vpop.f32.mrf.mxu3  ;;  %v4038_v0 = vadd.f32 %v4005_v45, %v3886_v63  ;;  %v3703_v19 = vpop.f32.mrf.mxu0 }
 0x3d7   :  { %v3855_v48 = vpop.f32.mrf.mxu1  ;;  %v3735_v53 = vadd.f32 %v3703_v19, %v17399_v3 }
 0x3d8   :  { %v17573_v32 = vadd.f32 %v4157_v51, %v4038_v0  ;;  %v15203_v51 = vld [vmem:[%s19675_s1 + $0x630] sm:$0xff] }
 0x3d9   :  { %v3887_v39 = vadd.f32 %v3855_v48, %v3735_v53  ;;  %5355 = vmatpush.bf16.msra.mxu3 %v15203_v51  ;;  %v15200_v51 = vld [vmem:[%s19675_s1 + $0x618] sm:$0xff] }
 0x3dd   :  { %v4007_v54 = vpop.f32.mrf.mxu2 }
 0x3de   :  { %v4159_v55 = vpop.f32.mrf.mxu3  ;;  %v4039_v41 = vadd.f32 %v4007_v54, %v3887_v39  ;;  %v3706_v63 = vpop.f32.mrf.mxu0  ;;  %v20048_v54 = vpack.c.bf16 %v20018_v57, %v19996_v35 }
 0x3df   :  { %v3858_v22 = vpop.f32.mrf.mxu1  ;;  %v3736_v3 = vadd.f32 %v3706_v63, %v17412_v13 }
 0x3e0   :  { %v17582_v60 = vadd.f32 %v4159_v55, %v4039_v41  ;;  %v20049_v55 = vpack.c.bf16 %v20017_v2, %v19997_v9  ;;  %v15190_v41 = vld [vmem:[%s19675_s1 + $0x5c8] sm:$0xff] }
 0x3e1   :  { %v3888_v44 = vadd.f32 %v3858_v22, %v3736_v3  ;;  %4313 = vmatmul.bf16.gmra.mxu0 %v20010_v12  ;;  %4465 = vmatmul.bf16.gmra.mxu1 %v19991_v17  ;;  %v15182_v2 = vld [vmem:[%s19675_s1 + $0x588] sm:$0xff] }
 0x3e2   :  { %4617 = vmatmul.bf16.gmra.mxu2 %v19992_v28 }
 0x3e3   :  { %4769 = vmatmul.bf16.gmra.mxu3 %v19993_v37  ;;  %v15183_v37 = vld [vmem:[%s19675_s1 + $0x590] sm:$0xff]  ;;  %5208 = vmatpush.bf16.msra.mxu2 %v15190_v41 }
 0x3e4   :  { %5055 = vmatpush.bf16.msra.mxu1 %v15183_v37  ;;  %v20050_v37 = vld [vmem:[#allocation69_spill] sm:$0xff] }
 0x3e5   :  { %v4010_v13 = vpop.f32.mrf.mxu2 }
 0x3e6   :  { %v4162_v31 = vpop.f32.mrf.mxu3  ;;  %v4040_v18 = vadd.f32 %v4010_v13, %v3888_v44  ;;  %v3708_v12 = vpop.f32.mrf.mxu0  ;;  %v15202_v44 = vld [vmem:[%s19675_s1 + $0x628] sm:$0xff]  ;;  %v15201_v13 = vld [vmem:[%s19675_s1 + $0x620] sm:$0xff] }
 0x3e7   :  { %v3860_v62 = vpop.f32.mrf.mxu1  ;;  %v3737_v17 = vadd.f32 %v3708_v12, %v17421_v8  ;;  %5356 = vmatpush.bf16.msra.mxu3 %v15202_v44 }
 0x3e8   :  { %v17595_v28 = vadd.f32 %v4162_v31, %v4040_v18  ;;  %5056 = vmatpush.bf16.msra.mxu1 %v15182_v2 }
 0x3e9   :  { %v3889_v45 = vadd.f32 %v3860_v62, %v3737_v17 }
 0x3eb   :  { %5357 = vmatpush.bf16.msra.mxu3 %v15201_v13 }
 0x3ed   :  { %v4012_v0 = vpop.f32.mrf.mxu2 }
 0x3ee   :  { %v4164_v19 = vpop.f32.mrf.mxu3  ;;  %v4041_v48 = vadd.f32 %v4012_v0, %v3889_v45  ;;  %v3711_v53 = vpop.f32.mrf.mxu0  ;;  %v20051_v45 = vld [vmem:[#allocation72_spill] sm:$0xff]  ;;  %v20052_v0 = vld [vmem:[#allocation73_spill] sm:$0xff] }
 0x3ef   :  { %v3863_v33 = vpop.f32.mrf.mxu1  ;;  %v3738_v8 = vadd.f32 %v3711_v53, %v17438_v59  ;;  %v15176_v59 = vld [vmem:[%s19675_s1 + $0x558] sm:$0xff]  ;;  %5358 = vmatpush.bf16.msra.mxu3 %v15200_v51 }
 0x3f0   :  { %v17604_v39 = vadd.f32 %v4164_v19, %v4041_v48  ;;  %4902 = vmatpush.bf16.msra.mxu0 %v15176_v59  ;;  %v15175_v19 = vld [vmem:[%s19675_s1 + $0x550] sm:$0xff]  ;;  %v15181_v59 = vld [vmem:[%s19675_s1 + $0x580] sm:$0xff] }
 0x3f1   :  { %v3890_v24 = vadd.f32 %v3863_v33, %v3738_v8  ;;  %4318 = vmatmul.bf16.gmra.mxu0 %v20013_v25  ;;  %4470 = vmatmul.bf16.gmra.mxu1 %v20014_v20  ;;  %v15199_v33 = vld [vmem:[%s19675_s1 + $0x610] sm:$0xff] }
 0x3f2   :  { %4622 = vmatmul.bf16.gmra.mxu2 %v20048_v54  ;;  %5057 = vmatpush.bf16.msra.mxu1 %v15181_v59 }
 0x3f3   :  { %4774 = vmatmul.bf16.gmra.mxu3 %v20049_v55 }
 0x3f4   :  { %4903 = vmatpush.bf16.msra.mxu0 %v15175_v19  ;;  %5359 = vmatpush.bf16.msra.mxu3 %v15199_v33 }
 0x3f5   :  { %v4015_v25 = vpop.f32.mrf.mxu2 }
 0x3f6   :  { %v4167_v20 = vpop.f32.mrf.mxu3  ;;  %v4042_v63 = vadd.f32 %v4015_v25, %v3890_v24  ;;  %v3713_v22 = vpop.f32.mrf.mxu0  ;;  %v15174_v25 = vld [vmem:[%s19675_s1 + $0x548] sm:$0xff] }
 0x3f7   :  { %v3865_v57 = vpop.f32.mrf.mxu1  ;;  %v3739_v35 = vadd.f32 %v3713_v22, %v17450_v27 }
 0x3f8   :  { %v17621_v3 = vadd.f32 %v4167_v20, %v4042_v63  ;;  %v15198_v20 = vld [vmem:[%s19675_s1 + $0x608] sm:$0xff]  ;;  %4904 = vmatpush.bf16.msra.mxu0 %v15174_v25 }
 0x3f9   :  { %v3891_v9 = vadd.f32 %v3865_v57, %v3739_v35  ;;  %5360 = vmatpush.bf16.msra.mxu3 %v15198_v20  ;;  %v15173_v57 = vld [vmem:[%s19675_s1 + $0x540] sm:$0xff] }
 0x3fa   :  { %v15197_v35 = vld [vmem:[%s19675_s1 + $0x600] sm:$0xff] }
 0x3fc   :  { %4905 = vmatpush.bf16.msra.mxu0 %v15173_v57  ;;  %v20058_v57 = vld [vmem:[#allocation89_spill] sm:$0xff] }
 0x3fd   :  { %v4017_v43 = vpop.f32.mrf.mxu2  ;;  %5361 = vmatpush.bf16.msra.mxu3 %v15197_v35  ;;  %v20059_v35 = vld [vmem:[#allocation100_spill] sm:$0xff] }
 0x3fe   :  { %v4169_v15 = vpop.f32.mrf.mxu3  ;;  %v4043_v27 = vadd.f32 %v4017_v43, %v3891_v9  ;;  %v3716_v31 = vpop.f32.mrf.mxu0 }
 0x3ff   :  { %v3868_v18 = vpop.f32.mrf.mxu1  ;;  %v3740_v12 = vadd.f32 %v3716_v31, %v17469_v46  ;;  %v15189_v46 = vld [vmem:[%s19675_s1 + $0x5c0] sm:$0xff]  ;;  %v20054_v31 = vld [vmem:[#allocation86_spill] sm:$0xff] }
 0x400   :  { %v17633_v62 = vadd.f32 %v4169_v15, %v4043_v27  ;;  %5209 = vmatpush.bf16.msra.mxu2 %v15189_v46  ;;  %v20053_v27 = vld [vmem:[#allocation79_spill] sm:$0xff] }
 0x401   :  { %v3892_v17 = vadd.f32 %v3868_v18, %v3740_v12  ;;  %4323 = vmatmul.bf16.gmra.mxu0 %v20050_v37  ;;  %4475 = vmatmul.bf16.gmra.mxu1 %v20051_v45  ;;  %v20055_v18 = vld [vmem:[#allocation87_spill] sm:$0xff] }
 0x402   :  { %4627 = vmatmul.bf16.gmra.mxu2 %v20052_v0  ;;  %v20056_v12 = vld [vmem:[#allocation91_spill] sm:$0xff] }
 0x403   :  { %4779 = vmatmul.bf16.gmra.mxu3 %v20036_v52 }
 0x405   :  { %v4020_v48 = vpop.f32.mrf.mxu2 }
 0x406   :  { %v4172_v53 = vpop.f32.mrf.mxu3  ;;  %v4044_v8 = vadd.f32 %v4020_v48, %v3892_v17  ;;  %v3718_v24 = vpop.f32.mrf.mxu0  ;;  %v15220_v17 = vld [vmem:[%s19675_s1 + $0x78] sm:$0xff] }
 0x407   :  { %v3870_v54 = vpop.f32.mrf.mxu1  ;;  %v3741_v55 = vadd.f32 %v3718_v24, %v17487_v23  ;;  %5811 = vmatpush.bf16.msrb.mxu2 %v15220_v17 }
 0x408   :  { %v17652_v41 = vadd.f32 %v4172_v53, %v4044_v8  ;;  %v15228_v8 = vld [vmem:[%s19675_s1 + $0xb8] sm:$0xff] }
 0x409   :  { %v3893_v63 = vadd.f32 %v3870_v54, %v3741_v55  ;;  %5729 = vmatpush.bf16.msrb.mxu1 %v15228_v8 }
 0x40d   :  { %v4022_v23 = vpop.f32.mrf.mxu2 }
 0x40e   :  { %v4174_v22 = vpop.f32.mrf.mxu3  ;;  %v4045_v2 = vadd.f32 %v4022_v23, %v3893_v63  ;;  %v3721_v9 = vpop.f32.mrf.mxu0  ;;  %v20057_v23 = vld [vmem:[#allocation83_spill] sm:$0xff] }
 0x40f   :  { %v3873_v44 = vpop.f32.mrf.mxu1  ;;  %v3742_v43 = vadd.f32 %v3721_v9, %v17497_v5 }
 0x410   :  { %v17670_v15 = vadd.f32 %v4174_v22, %v4045_v2  ;;  %v4224_v22 = vpack.c.bf16 %v20057_v23, %v20057_v23  ;;  %v4528_v2 = vpack.c.bf16 %v20059_v35, %v20059_v35  ;;  %v20063_v23 = vld [vmem:[#allocation41_spill] sm:$0xff] }
 0x411   :  { %v3894_v13 = vadd.f32 %v3873_v44, %v3742_v43  ;;  %4328 = vmatmul.bf16.gmra.mxu0 %v20053_v27  ;;  %4480 = vmatmul.bf16.gmra.mxu1 %v20054_v31  ;;  %v4680_v44 = vpack.c.bf16 %v16604_v36, %v16604_v36 }
 0x412   :  { %4632 = vmatmul.bf16.gmra.mxu2 %v20055_v18 }
 0x413   :  { %4784 = vmatmul.bf16.gmra.mxu3 %v20056_v12 }
 0x415   :  { %v4025_v51 = vpop.f32.mrf.mxu2 }
 0x416   :  { %v4177_v5 = vpop.f32.mrf.mxu3  ;;  %v4046_v46 = vadd.f32 %v4025_v51, %v3894_v13  ;;  %v3723_v19 = vpop.f32.mrf.mxu0 }
 0x417   :  { %v3875_v48 = vpop.f32.mrf.mxu1  ;;  %v3743_v53 = vadd.f32 %v3723_v19, %v17507_v47  ;;  %v4376_v47 = vpack.c.bf16 %v20058_v57, %v20058_v57 }
 0x418   :  { %v17680_v33 = vadd.f32 %v4177_v5, %v4046_v46 }
 0x419   :  { %v3895_v24 = vadd.f32 %v3875_v48, %v3743_v53  ;;  %v15227_v48 = vld [vmem:[%s19675_s1 + $0xb0] sm:$0xff] }
 0x41a   :  { %5730 = vmatpush.bf16.msrb.mxu1 %v15227_v48 }
 0x41d   :  { %v4027_v54 = vpop.f32.mrf.mxu2 }
 0x41e   :  { %v4179_v55 = vpop.f32.mrf.mxu3  ;;  %v4047_v59 = vadd.f32 %v4027_v54, %v3895_v24  ;;  %v3726_v25 = vpop.f32.mrf.mxu0 }
 0x41f   :  { %v3878_v20 = vpop.f32.mrf.mxu1  ;;  %v3744_v63 = vadd.f32 %v3726_v25, %v17516_v34  ;;  %v15219_v34 = vld [vmem:[%s19675_s1 + $0x70] sm:$0xff]  ;;  %v20060_v25 = vld [vmem:[#allocation36_spill] sm:$0xff] }
 0x420   :  { %v17692_v9 = vadd.f32 %v4179_v55, %v4047_v59  ;;  %5812 = vmatpush.bf16.msrb.mxu2 %v15219_v34 }
 0x421   :  { %v3896_v43 = vadd.f32 %v3878_v20, %v3744_v63  ;;  %4333 = vmatmul.bf16.gmra.mxu0 %v4224_v22  ;;  %4485 = vmatmul.bf16.gmra.mxu1 %v4376_v47  ;;  %v20061_v20 = vld [vmem:[#allocation35_spill] sm:$0xff]  ;;  %v20062_v63 = vld [vmem:[#allocation42_spill] sm:$0xff]  ;;  %v15218_v22 = vld [vmem:[%s19675_s1 + $0x68] sm:$0xff] }
 0x422   :  { %4637 = vmatmul.bf16.gmra.mxu2 %v4528_v2  ;;  %v15212_v47 = vld [vmem:[%s19675_s1 + $0x678] sm:$0xff] }
 0x423   :  { %4789 = vmatmul.bf16.gmra.mxu3 %v4680_v44  ;;  %5506 = vmatpush.bf16.msrb.mxu0 %v15212_v47 }
 0x424   :  { %5813 = vmatpush.bf16.msrb.mxu2 %v15218_v22 }
 0x425   :  { %v4030_v13 = vpop.f32.mrf.mxu2 }
 0x426   :  { %v4182_v17 = vpop.f32.mrf.mxu3  ;;  %v4048_v51 = vadd.f32 %v4030_v13, %v3896_v43  ;;  %v3728_v5 = vpop.f32.mrf.mxu0 }
 0x427   :  { %v3880_v46 = vpop.f32.mrf.mxu1 }
 0x428   :  { %v17699_v19 = vadd.f32 %v4182_v17, %v4048_v51  ;;  %v15226_v51 = vld [vmem:[%s19675_s1 + $0xa8] sm:$0xff] }
 0x429   :  { %5731 = vmatpush.bf16.msrb.mxu1 %v15226_v51 }
 0x42d   :  { %v4032_v53 = vpop.f32.mrf.mxu2 }
 0x42e   :  { %v4184_v8 = vpop.f32.mrf.mxu3  ;;  %v4299_v24 = vpop.f32.mrf.mxu0 }
 0x42f   :  { %v4451_v54 = vpop.f32.mrf.mxu1  ;;  %v4338_v55 = vadd.f32 %v4299_v24, %v17533_v26 }
 0x431   :  { %v4490_v59 = vadd.f32 %v4451_v54, %v4338_v55  ;;  %4906 = vmatmul.bf16.vlgmr.msra.gmra.mxu0 %v20060_v25  ;;  %5058 = vmatmul.bf16.vlgmr.msra.gmra.mxu1 %v20061_v20  ;;  %v15217_v25 = vld [vmem:[%s19675_s1 + $0x60] sm:$0xff]  ;;  %v15211_v20 = vld [vmem:[%s19675_s1 + $0x670] sm:$0xff] }
 0x432   :  { %5210 = vmatmul.bf16.vlgmr.msra.gmra.mxu2 %v20062_v63  ;;  %5507 = vmatpush.bf16.msrb.mxu0 %v15211_v20 }
 0x433   :  { %5362 = vmatmul.bf16.vlgmr.msra.gmra.mxu3 %v20063_v23  ;;  %5814 = vmatpush.bf16.msrb.mxu2 %v15217_v25 }
 0x435   :  { %v4603_v26 = vpop.f32.mrf.mxu2 }
 0x436   :  { %v4755_v2 = vpop.f32.mrf.mxu3  ;;  %v4642_v44 = vadd.f32 %v4603_v26, %v4490_v59  ;;  %v4301_v43 = vpop.f32.mrf.mxu0  ;;  %v15225_v26 = vld [vmem:[%s19675_s1 + $0xa0] sm:$0xff] }
 0x437   :  { %v4453_v34 = vpop.f32.mrf.mxu1  ;;  %v4339_v13 = vadd.f32 %v4301_v43, %v17539_v38  ;;  %v20064_v38 = vld [vmem:[#allocation50_spill] sm:$0xff]  ;;  %5732 = vmatpush.bf16.msrb.mxu1 %v15225_v26 }
 0x438   :  { %v17716_v17 = vadd.f32 %v4755_v2, %v4642_v44 }
 0x439   :  { %v4491_v5 = vadd.f32 %v4453_v34, %v4339_v13 }
 0x43d   :  { %v4605_v46 = vpop.f32.mrf.mxu2 }
 0x43e   :  { %v4757_v48 = vpop.f32.mrf.mxu3  ;;  %v4643_v53 = vadd.f32 %v4605_v46, %v4491_v5  ;;  %v4304_v8 = vpop.f32.mrf.mxu0 }
 0x43f   :  { %v4456_v24 = vpop.f32.mrf.mxu1  ;;  %v4340_v54 = vadd.f32 %v4304_v8, %v17552_v50  ;;  %v20067_v8 = vld [vmem:[#allocation63_spill] sm:$0xff] }
 0x440   :  { %v17722_v55 = vadd.f32 %v4757_v48, %v4643_v53  ;;  %v20065_v53 = vld [vmem:[#allocation61_spill] sm:$0xff] }
 0x441   :  { %v4492_v59 = vadd.f32 %v4456_v24, %v4340_v54  ;;  %4911 = vmatmul.bf16.gmra.mxu0 %v16221_v49  ;;  %5063 = vmatmul.bf16.gmra.mxu1 %v16223_v21  ;;  %v20068_v24 = vpack.c.bf16 %v20067_v8, %v16269_v40  ;;  %v20069_v54 = vld [vmem:[#allocation64_spill] sm:$0xff] }
 0x442   :  { %5215 = vmatmul.bf16.gmra.mxu2 %v16256_v58 }
 0x443   :  { %5367 = vmatmul.bf16.gmra.mxu3 %v20064_v38  ;;  %v15216_v38 = vld [vmem:[%s19675_s1 + $0x58] sm:$0xff] }
 0x444   :  { %5815 = vmatpush.bf16.msrb.mxu2 %v15216_v38 }
 0x445   :  { %v4608_v50 = vpop.f32.mrf.mxu2 }
 0x446   :  { %v4760_v63 = vpop.f32.mrf.mxu3  ;;  %v4644_v23 = vadd.f32 %v4608_v50, %v4492_v59  ;;  %v4306_v22 = vpop.f32.mrf.mxu0  ;;  %v20070_v59 = vpack.c.bf16 %v20069_v54, %v16271_v11  ;;  %v15224_v11 = vld [vmem:[%s19675_s1 + $0x98] sm:$0xff] }
 0x447   :  { %v4458_v47 = vpop.f32.mrf.mxu1  ;;  %v4341_v21 = vadd.f32 %v4306_v22, %v17558_v6  ;;  %v20066_v6 = vld [vmem:[#allocation62_spill] sm:$0xff]  ;;  %5733 = vmatpush.bf16.msrb.mxu1 %v15224_v11 }
 0x448   :  { %v17735_v58 = vadd.f32 %v4760_v63, %v4644_v23 }
 0x449   :  { %v4493_v2 = vadd.f32 %v4458_v47, %v4341_v21  ;;  %v15236_v21 = vld [vmem:[%s19675_s1 + $0xf8] sm:$0xff] }
 0x44a   :  { %5925 = vmatpush.bf16.msrb.mxu3 %v15236_v21 }
 0x44d   :  { %v4610_v44 = vpop.f32.mrf.mxu2 }
 0x44e   :  { %v4762_v43 = vpop.f32.mrf.mxu3  ;;  %v4645_v34 = vadd.f32 %v4610_v44, %v4493_v2  ;;  %v4309_v13 = vpop.f32.mrf.mxu0 }
 0x44f   :  { %v4461_v51 = vpop.f32.mrf.mxu1  ;;  %v4342_v5 = vadd.f32 %v4309_v13, %v17573_v32  ;;  %v15210_v32 = vld [vmem:[%s19675_s1 + $0x668] sm:$0xff] }
 0x450   :  { %v17741_v46 = vadd.f32 %v4762_v43, %v4645_v34  ;;  %5508 = vmatpush.bf16.msrb.mxu0 %v15210_v32  ;;  %v15223_v32 = vld [vmem:[%s19675_s1 + $0x90] sm:$0xff] }
 0x451   :  { %v4494_v48 = vadd.f32 %v4461_v51, %v4342_v5  ;;  %4916 = vmatmul.bf16.gmra.mxu0 %v20065_v53  ;;  %5068 = vmatmul.bf16.gmra.mxu1 %v20066_v6  ;;  %v20071_v5 = vld [vmem:[#allocation75_spill] sm:$0xff]  ;;  %v15209_v53 = vld [vmem:[%s19675_s1 + $0x660] sm:$0xff] }
 0x452   :  { %5220 = vmatmul.bf16.gmra.mxu2 %v20068_v24  ;;  %5734 = vmatpush.bf16.msrb.mxu1 %v15223_v32 }
 0x453   :  { %5372 = vmatmul.bf16.gmra.mxu3 %v20070_v59 }
 0x454   :  { %5509 = vmatpush.bf16.msrb.mxu0 %v15209_v53 }
 0x455   :  { %v4613_v25 = vpop.f32.mrf.mxu2 }
 0x456   :  { %v4765_v20 = vpop.f32.mrf.mxu3  ;;  %v4646_v50 = vadd.f32 %v4613_v25, %v4494_v48  ;;  %v4311_v63 = vpop.f32.mrf.mxu0  ;;  %v15215_v48 = vld [vmem:[%s19675_s1 + $0x50] sm:$0xff] }
 0x457   :  { %v4463_v40 = vpop.f32.mrf.mxu1  ;;  %v4343_v23 = vadd.f32 %v4311_v63, %v17582_v60  ;;  %5816 = vmatpush.bf16.msrb.mxu2 %v15215_v48 }
 0x458   :  { %v17758_v22 = vadd.f32 %v4765_v20, %v4646_v50  ;;  %v15235_v20 = vld [vmem:[%s19675_s1 + $0xf0] sm:$0xff] }
 0x459   :  { %v4495_v47 = vadd.f32 %v4463_v40, %v4343_v23  ;;  %5926 = vmatpush.bf16.msrb.mxu3 %v15235_v20 }
 0x45d   :  { %v4615_v26 = vpop.f32.mrf.mxu2 }
 0x45e   :  { %v4767_v2 = vpop.f32.mrf.mxu3  ;;  %v4647_v44 = vadd.f32 %v4615_v26, %v4495_v47  ;;  %v4314_v43 = vpop.f32.mrf.mxu0  ;;  %v20072_v26 = vpack.c.bf16 %v20038_v29, %v20020_v61  ;;  %v15222_v61 = vld [vmem:[%s19675_s1 + $0x88] sm:$0xff] }
 0x45f   :  { %v4466_v34 = vpop.f32.mrf.mxu1  ;;  %v4344_v60 = vadd.f32 %v4314_v43, %v17595_v28  ;;  %5735 = vmatpush.bf16.msrb.mxu1 %v15222_v61  ;;  %v15206_v61 = vld [vmem:[%s19675_s1 + $0x648] sm:$0xff] }
 0x460   :  { %v17767_v13 = vadd.f32 %v4767_v2, %v4647_v44  ;;  %v15214_v2 = vld [vmem:[%s19675_s1 + $0x48] sm:$0xff] }
 0x461   :  { %v4496_v51 = vadd.f32 %v4466_v34, %v4344_v60  ;;  %4921 = vmatmul.bf16.gmra.mxu0 %v20030_v14  ;;  %5073 = vmatmul.bf16.gmra.mxu1 %v20031_v30 }
 0x462   :  { %5225 = vmatmul.bf16.gmra.mxu2 %v20015_v1 }
 0x463   :  { %5377 = vmatmul.bf16.gmra.mxu3 %v20071_v5  ;;  %5817 = vmatpush.bf16.msrb.mxu2 %v15214_v2 }
 0x465   :  { %v4618_v28 = vpop.f32.mrf.mxu2 }
 0x466   :  { %v4770_v6 = vpop.f32.mrf.mxu3  ;;  %v4648_v8 = vadd.f32 %v4618_v28, %v4496_v51  ;;  %v4316_v24 = vpop.f32.mrf.mxu0 }
 0x467   :  { %v4468_v54 = vpop.f32.mrf.mxu1  ;;  %v4345_v59 = vadd.f32 %v4316_v24, %v17604_v39 }
 0x468   :  { %v17780_v38 = vadd.f32 %v4770_v6, %v4648_v8  ;;  %v15234_v6 = vld [vmem:[%s19675_s1 + $0xe8] sm:$0xff] }
 0x469   :  { %v4497_v25 = vadd.f32 %v4468_v54, %v4345_v59  ;;  %5927 = vmatpush.bf16.msrb.mxu3 %v15234_v6  ;;  %v15233_v54 = vld [vmem:[%s19675_s1 + $0xe0] sm:$0xff] }
 0x46d   :  { %v4620_v50 = vpop.f32.mrf.mxu2  ;;  %5928 = vmatpush.bf16.msrb.mxu3 %v15233_v54  ;;  %v15229_v54 = vld [vmem:[%s19675_s1 + $0xc0] sm:$0xff] }
 0x46e   :  { %v4772_v63 = vpop.f32.mrf.mxu3  ;;  %v4649_v40 = vadd.f32 %v4620_v50, %v4497_v25  ;;  %v4319_v23 = vpop.f32.mrf.mxu0 }
 0x46f   :  { %v4471_v11 = vpop.f32.mrf.mxu1  ;;  %v4346_v39 = vadd.f32 %v4319_v23, %v17621_v3  ;;  %v15208_v3 = vld [vmem:[%s19675_s1 + $0x658] sm:$0xff] }
 0x470   :  { %v17789_v47 = vadd.f32 %v4772_v63, %v4649_v40  ;;  %5510 = vmatpush.bf16.msrb.mxu0 %v15208_v3  ;;  %v20073_v63 = vld [vmem:[#allocation98_spill] sm:$0xff]  ;;  %v20074_v40 = vld [vmem:[#allocation99_spill] sm:$0xff] }
 0x471   :  { %v4498_v21 = vadd.f32 %v4471_v11, %v4346_v39  ;;  %4926 = vmatmul.bf16.gmra.mxu0 %v20033_v7  ;;  %5078 = vmatmul.bf16.gmra.mxu1 %v20034_v4  ;;  %v15232_v23 = vld [vmem:[%s19675_s1 + $0xd8] sm:$0xff]  ;;  %v20076_v39 = vld [vmem:[#allocation106_spill] sm:$0xff] }
 0x472   :  { %5230 = vmatmul.bf16.gmra.mxu2 %v20035_v56  ;;  %v20075_v11 = vld [vmem:[#allocation107_spill] sm:$0xff]  ;;  %5929 = vmatpush.bf16.msrb.mxu3 %v15232_v23  ;;  %v15231_v3 = vld [vmem:[%s19675_s1 + $0xd0] sm:$0xff] }
 0x473   :  { %5382 = vmatmul.bf16.gmra.mxu3 %v20072_v26 }
 0x475   :  { %v4623_v44 = vpop.f32.mrf.mxu2 }
 0x476   :  { %v4775_v43 = vpop.f32.mrf.mxu3  ;;  %v4650_v34 = vadd.f32 %v4623_v44, %v4498_v21  ;;  %v4321_v60 = vpop.f32.mrf.mxu0  ;;  %v15207_v21 = vld [vmem:[%s19675_s1 + $0x650] sm:$0xff]  ;;  %5930 = vmatpush.bf16.msrb.mxu3 %v15231_v3  ;;  %v15252_v3 = vld [vmem:[%s19675_s1 + $0x178] sm:$0xff] }
 0x477   :  { %v4473_v51 = vpop.f32.mrf.mxu1  ;;  %v4347_v48 = vadd.f32 %v4321_v60, %v17633_v62  ;;  %5511 = vmatpush.bf16.msrb.mxu0 %v15207_v21  ;;  %v20078_v21 = vld [vmem:[#allocation112_spill] sm:$0xff] }
 0x478   :  { %v17804_v53 = vadd.f32 %v4775_v43, %v4650_v34 }
 0x479   :  { %v4499_v28 = vadd.f32 %v4473_v51, %v4347_v48  ;;  %v15221_v48 = vld [vmem:[%s19675_s1 + $0x80] sm:$0xff] }
 0x47a   :  { %5736 = vmatpush.bf16.msrb.mxu1 %v15221_v48 }
 0x47b   :  { %5512 = vmatpush.bf16.msrb.mxu0 %v15206_v61 }
 0x47d   :  { %v4625_v8 = vpop.f32.mrf.mxu2 }
 0x47e   :  { %v4777_v24 = vpop.f32.mrf.mxu3  ;;  %v4651_v62 = vadd.f32 %v4625_v8, %v4499_v28  ;;  %v4324_v59 = vpop.f32.mrf.mxu0  ;;  %v15230_v28 = vld [vmem:[%s19675_s1 + $0xc8] sm:$0xff] }
 0x47f   :  { %v4476_v32 = vpop.f32.mrf.mxu1  ;;  %v4348_v25 = vadd.f32 %v4324_v59, %v17652_v41  ;;  %v15213_v41 = vld [vmem:[%s19675_s1 + $0x40] sm:$0xff]  ;;  %5931 = vmatpush.bf16.msrb.mxu3 %v15230_v28  ;;  %v15244_v28 = vld [vmem:[%s19675_s1 + $0x138] sm:$0xff] }
 0x480   :  { %v17816_v20 = vadd.f32 %v4777_v24, %v4651_v62  ;;  %5818 = vmatpush.bf16.msrb.mxu2 %v15213_v41  ;;  %v15205_v24 = vld [vmem:[%s19675_s1 + $0x640] sm:$0xff]  ;;  %v20077_v41 = vld [vmem:[#allocation111_spill] sm:$0xff]  ;;  %6049 = vmatpush.bf16.msra.mxu1 %v15244_v28 }
 0x481   :  { %v4500_v50 = vadd.f32 %v4476_v32, %v4348_v25  ;;  %4931 = vmatmul.bf16.gmra.mxu0 %v20073_v63  ;;  %5083 = vmatmul.bf16.gmra.mxu1 %v20074_v40 }
 0x482   :  { %5235 = vmatmul.bf16.gmra.mxu2 %v20075_v11  ;;  %5513 = vmatpush.bf16.msrb.mxu0 %v15205_v24 }
 0x483   :  { %5387 = vmatmul.bf16.gmra.mxu3 %v20076_v39 }
 0x484   :  { %5932 = vmatpush.bf16.msrb.mxu3 %v15229_v54  ;;  %6173 = vmatpush.bf16.msra.mxu2 %v15252_v3 }
 0x485   :  { %v4628_v26 = vpop.f32.mrf.mxu2 }
 0x486   :  { %v4780_v2 = vpop.f32.mrf.mxu3  ;;  %v4652_v44 = vadd.f32 %v4628_v26, %v4500_v50  ;;  %v4326_v43 = vpop.f32.mrf.mxu0  ;;  %v20079_v26 = vld [vmem:[#allocation117_spill] sm:$0xff] }
 0x487   :  { %v4478_v34 = vpop.f32.mrf.mxu1  ;;  %v4349_v60 = vadd.f32 %v4326_v43, %v17670_v15 }
 0x488   :  { %v17835_v51 = vadd.f32 %v4780_v2, %v4652_v44  ;;  %v20080_v2 = vld [vmem:[#allocation118_spill] sm:$0xff] }
 0x489   :  { %v4501_v6 = vadd.f32 %v4478_v34, %v4349_v60 }
 0x48d   :  { %v4630_v15 = vpop.f32.mrf.mxu2 }
 0x48e   :  { %v4782_v8 = vpop.f32.mrf.mxu3  ;;  %v4653_v62 = vadd.f32 %v4630_v15, %v4501_v6  ;;  %v4329_v59 = vpop.f32.mrf.mxu0  ;;  %v15251_v15 = vld [vmem:[%s19675_s1 + $0x170] sm:$0xff] }
 0x48f   :  { %v4481_v32 = vpop.f32.mrf.mxu1  ;;  %v4350_v25 = vadd.f32 %v4329_v59, %v17680_v33  ;;  %6174 = vmatpush.bf16.msra.mxu2 %v15251_v15 }
 0x490   :  { %v17853_v50 = vadd.f32 %v4782_v8, %v4653_v62 }
 0x491   :  { %v4502_v23 = vadd.f32 %v4481_v32, %v4350_v25  ;;  %4936 = vmatmul.bf16.gmra.mxu0 %v20077_v41  ;;  %5088 = vmatmul.bf16.gmra.mxu1 %v20078_v21  ;;  %v20081_v32 = vld [vmem:[#allocation113_spill] sm:$0xff] }
 0x492   :  { %5240 = vmatmul.bf16.gmra.mxu2 %v20079_v26  ;;  %v4832_v25 = vpack.c.bf16 %v20081_v32, %v20081_v32 }
 0x493   :  { %5392 = vmatmul.bf16.gmra.mxu3 %v20080_v2 }
 0x495   :  { %v4633_v44 = vpop.f32.mrf.mxu2 }
 0x496   :  { %v4785_v33 = vpop.f32.mrf.mxu3  ;;  %v4654_v43 = vadd.f32 %v4633_v44, %v4502_v23  ;;  %v4331_v34 = vpop.f32.mrf.mxu0  ;;  %v20082_v23 = vld [vmem:[#allocation114_spill] sm:$0xff] }
 0x497   :  { %v4483_v60 = vpop.f32.mrf.mxu1  ;;  %v4351_v48 = vadd.f32 %v4331_v34, %v17692_v9  ;;  %v4984_v3 = vpack.c.bf16 %v20082_v23, %v20082_v23  ;;  %v20084_v34 = vld [vmem:[#allocation120_spill] sm:$0xff] }
 0x498   :  { %v17863_v61 = vadd.f32 %v4785_v33, %v4654_v43  ;;  %v20083_v33 = vld [vmem:[#allocation119_spill] sm:$0xff] }
 0x499   :  { %v4503_v6 = vadd.f32 %v4483_v60, %v4351_v48  ;;  %v5136_v43 = vpack.c.bf16 %v20083_v33, %v20083_v33  ;;  %v5288_v60 = vpack.c.bf16 %v20084_v34, %v20084_v34 }
 0x49d   :  { %v4635_v8 = vpop.f32.mrf.mxu2 }
 0x49e   :  { %v4787_v24 = vpop.f32.mrf.mxu3  ;;  %v4655_v54 = vadd.f32 %v4635_v8, %v4503_v6  ;;  %v4334_v62 = vpop.f32.mrf.mxu0 }
 0x49f   :  { %v4486_v59 = vpop.f32.mrf.mxu1  ;;  %v4352_v9 = vadd.f32 %v4334_v62, %v17699_v19  ;;  %v15243_v19 = vld [vmem:[%s19675_s1 + $0x130] sm:$0xff]  ;;  %v15250_v62 = vld [vmem:[%s19675_s1 + $0x168] sm:$0xff] }
 0x4a0   :  { %v17876_v44 = vadd.f32 %v4787_v24, %v4655_v54  ;;  %6050 = vmatpush.bf16.msra.mxu1 %v15243_v19  ;;  %6175 = vmatpush.bf16.msra.mxu2 %v15250_v62  ;;  %v15249_v19 = vld [vmem:[%s19675_s1 + $0x160] sm:$0xff] }
 0x4a1   :  { %v4504_v48 = vadd.f32 %v4486_v59, %v4352_v9  ;;  %4941 = vmatmul.bf16.gmra.mxu0 %v4832_v25  ;;  %5093 = vmatmul.bf16.gmra.mxu1 %v4984_v3  ;;  %v15242_v59 = vld [vmem:[%s19675_s1 + $0x128] sm:$0xff] }
 0x4a2   :  { %5245 = vmatmul.bf16.gmra.mxu2 %v5136_v43 }
 0x4a3   :  { %5397 = vmatmul.bf16.gmra.mxu3 %v5288_v60 }
 0x4a4   :  { %6051 = vmatpush.bf16.msra.mxu1 %v15242_v59  ;;  %6176 = vmatpush.bf16.msra.mxu2 %v15249_v19 }
 0x4a5   :  { %v4638_v28 = vpop.f32.mrf.mxu2 }
 0x4a6   :  { %v4790_v6 = vpop.f32.mrf.mxu3  ;;  %v4656_v15 = vadd.f32 %v4638_v28, %v4504_v48  ;;  %v4336_v8 = vpop.f32.mrf.mxu0  ;;  %v20085_v48 = vld [vmem:[#allocation66_spill] sm:$0xff]  ;;  %v20086_v28 = vld [vmem:[#allocation65_spill] sm:$0xff] }
 0x4a7   :  { %v4488_v24 = vpop.f32.mrf.mxu1 }
 0x4a8   :  { %v17885_v54 = vadd.f32 %v4790_v6, %v4656_v15  ;;  %v15241_v6 = vld [vmem:[%s19675_s1 + $0x120] sm:$0xff] }
 0x4a9   :  { %6052 = vmatpush.bf16.msra.mxu1 %v15241_v6 }
 0x4ad   :  { %v4640_v9 = vpop.f32.mrf.mxu2 }
 0x4ae   :  { %v4792_v32 = vpop.f32.mrf.mxu3  ;;  %v4907_v25 = vpop.f32.mrf.mxu0 }
 0x4af   :  { %v5059_v3 = vpop.f32.mrf.mxu1  ;;  %v4946_v43 = vadd.f32 %v4907_v25, %v17716_v17  ;;  %v15268_v17 = vld [vmem:[%s19675_s1 + $0x1f8] sm:$0xff] }
 0x4b0   :  { %6421 = vmatpush.bf16.msra.mxu0 %v15268_v17  ;;  %v15248_v32 = vld [vmem:[%s19675_s1 + $0x158] sm:$0xff] }
 0x4b1   :  { %v5098_v60 = vadd.f32 %v5059_v3, %v4946_v43  ;;  %5514 = vmatmul.bf16.vlgmr.msrb.gmra.mxu0 %v16221_v49  ;;  %5737 = vmatmul.bf16.vlgmr.msrb.gmra.mxu1 %v20085_v48  ;;  %v15260_v17 = vld [vmem:[%s19675_s1 + $0x1b8] sm:$0xff] }
 0x4b2   :  { %5819 = vmatmul.bf16.vlgmr.msrb.gmra.mxu2 %v20086_v28  ;;  %6297 = vmatpush.bf16.msra.mxu3 %v15260_v17 }
 0x4b3   :  { %5933 = vmatmul.bf16.vlgmr.msrb.gmra.mxu3 %v20030_v14  ;;  %6177 = vmatpush.bf16.msra.mxu2 %v15248_v32 }
 0x4b5   :  { %v5211_v49 = vpop.f32.mrf.mxu2 }
 0x4b6   :  { %v5363_v15 = vpop.f32.mrf.mxu3  ;;  %v5250_v8 = vadd.f32 %v5211_v49, %v5098_v60  ;;  %v4909_v24 = vpop.f32.mrf.mxu0  ;;  %v15267_v49 = vld [vmem:[%s19675_s1 + $0x1f0] sm:$0xff] }
 0x4b7   :  { %v5061_v62 = vpop.f32.mrf.mxu1  ;;  %v4947_v59 = vadd.f32 %v4909_v24, %v17722_v55  ;;  %v15240_v55 = vld [vmem:[%s19675_s1 + $0x118] sm:$0xff]  ;;  %6422 = vmatpush.bf16.msra.mxu0 %v15267_v49 }
 0x4b8   :  { %v17908_v9 = vadd.f32 %v5363_v15, %v5250_v8  ;;  %6053 = vmatpush.bf16.msra.mxu1 %v15240_v55  ;;  %v15259_v15 = vld [vmem:[%s19675_s1 + $0x1b0] sm:$0xff] }
 0x4b9   :  { %v5099_v14 = vadd.f32 %v5061_v62, %v4947_v59  ;;  %6298 = vmatpush.bf16.msra.mxu3 %v15259_v15  ;;  %v20089_v15 = vld [vmem:[#allocation93_spill] sm:$0xff] }
 0x4bd   :  { %v5213_v25 = vpop.f32.mrf.mxu2 }
 0x4be   :  { %v5365_v3 = vpop.f32.mrf.mxu3  ;;  %v5251_v43 = vadd.f32 %v5213_v25, %v5099_v14  ;;  %v4912_v48 = vpop.f32.mrf.mxu0  ;;  %v15239_v25 = vld [vmem:[%s19675_s1 + $0x110] sm:$0xff] }
 0x4bf   :  { %v5064_v19 = vpop.f32.mrf.mxu1  ;;  %v4948_v28 = vadd.f32 %v4912_v48, %v17735_v58  ;;  %v15247_v58 = vld [vmem:[%s19675_s1 + $0x150] sm:$0xff]  ;;  %6054 = vmatpush.bf16.msra.mxu1 %v15239_v25 }
 0x4c0   :  { %v17914_v60 = vadd.f32 %v5365_v3, %v5251_v43  ;;  %6178 = vmatpush.bf16.msra.mxu2 %v15247_v58  ;;  %v15258_v3 = vld [vmem:[%s19675_s1 + $0x1a8] sm:$0xff] }
 0x4c1   :  { %v5100_v6 = vadd.f32 %v5064_v19, %v4948_v28  ;;  %5519 = vmatmul.bf16.gmra.mxu0 %v19990_v42  ;;  %5742 = vmatmul.bf16.gmra.mxu1 %v20071_v5  ;;  %v15246_v58 = vld [vmem:[%s19675_s1 + $0x148] sm:$0xff] }
 0x4c2   :  { %5824 = vmatmul.bf16.gmra.mxu2 %v20015_v1  ;;  %6299 = vmatpush.bf16.msra.mxu3 %v15258_v3 }
 0x4c3   :  { %5938 = vmatmul.bf16.gmra.mxu3 %v20033_v7 }
 0x4c4   :  { %6179 = vmatpush.bf16.msra.mxu2 %v15246_v58  ;;  %v15245_v58 = vld [vmem:[%s19675_s1 + $0x140] sm:$0xff] }
 0x4c5   :  { %v5216_v42 = vpop.f32.mrf.mxu2 }
 0x4c6   :  { %v5368_v5 = vpop.f32.mrf.mxu3  ;;  %v5252_v8 = vadd.f32 %v5216_v42, %v5100_v6  ;;  %v4914_v24 = vpop.f32.mrf.mxu0  ;;  %v20087_v42 = vld [vmem:[#allocation67_spill] sm:$0xff] }
 0x4c7   :  { %v5066_v62 = vpop.f32.mrf.mxu1  ;;  %v4949_v59 = vadd.f32 %v4914_v24, %v17741_v46  ;;  %v15257_v46 = vld [vmem:[%s19675_s1 + $0x1a0] sm:$0xff] }
 0x4c8   :  { %v17936_v14 = vadd.f32 %v5368_v5, %v5252_v8  ;;  %6300 = vmatpush.bf16.msra.mxu3 %v15257_v46  ;;  %v20088_v5 = vpack.c.bf16 %v20087_v42, %v19994_v10  ;;  %v15256_v8 = vld [vmem:[%s19675_s1 + $0x198] sm:$0xff]  ;;  %v20090_v24 = vld [vmem:[#allocation92_spill] sm:$0xff]  ;;  %v15266_v10 = vld [vmem:[%s19675_s1 + $0x1e8] sm:$0xff]  ;;  %6180 = vmatpush.bf16.msra.mxu2 %v15245_v58 }
 0x4c9   :  { %v5101_v32 = vadd.f32 %v5066_v62, %v4949_v59  ;;  %v20092_v62 = vld [vmem:[#allocation84_spill] sm:$0xff]  ;;  %6423 = vmatpush.bf16.msra.mxu0 %v15266_v10  ;;  %v15254_v42 = vld [vmem:[%s19675_s1 + $0x188] sm:$0xff] }
 0x4cc   :  { %6301 = vmatpush.bf16.msra.mxu3 %v15256_v8 }
 0x4cd   :  { %v5218_v43 = vpop.f32.mrf.mxu2 }
 0x4ce   :  { %v5370_v48 = vpop.f32.mrf.mxu3  ;;  %v5253_v19 = vadd.f32 %v5218_v43, %v5101_v32  ;;  %v4917_v28 = vpop.f32.mrf.mxu0  ;;  %v15238_v32 = vld [vmem:[%s19675_s1 + $0x108] sm:$0xff]  ;;  %v15255_v43 = vld [vmem:[%s19675_s1 + $0x190] sm:$0xff] }
 0x4cf   :  { %v5069_v55 = vpop.f32.mrf.mxu1  ;;  %v4950_v6 = vadd.f32 %v4917_v28, %v17758_v22  ;;  %v20091_v22 = vld [vmem:[#allocation94_spill] sm:$0xff]  ;;  %6055 = vmatpush.bf16.msra.mxu1 %v15238_v32 }
 0x4d0   :  { %v17948_v17 = vadd.f32 %v5370_v48, %v5253_v19  ;;  %v20093_v59 = vpack.c.bf16 %v20091_v22, %v20092_v62  ;;  %6302 = vmatpush.bf16.msra.mxu3 %v15255_v43 }
 0x4d1   :  { %v5102_v49 = vadd.f32 %v5069_v55, %v4950_v6  ;;  %5524 = vmatmul.bf16.gmra.mxu0 %v20088_v5  ;;  %5747 = vmatmul.bf16.gmra.mxu1 %v20089_v15  ;;  %v15253_v15 = vld [vmem:[%s19675_s1 + $0x180] sm:$0xff] }
 0x4d2   :  { %5829 = vmatmul.bf16.gmra.mxu2 %v20090_v24 }
 0x4d3   :  { %5943 = vmatmul.bf16.gmra.mxu3 %v20093_v59 }
 0x4d4   :  { %6303 = vmatpush.bf16.msra.mxu3 %v15254_v42  ;;  %v15283_v42 = vld [vmem:[%s19675_s1 + $0x270] sm:$0xff] }
 0x4d5   :  { %v5221_v25 = vpop.f32.mrf.mxu2 }
 0x4d6   :  { %v5373_v3 = vpop.f32.mrf.mxu3  ;;  %v5254_v48 = vadd.f32 %v5221_v25, %v5102_v49  ;;  %v4919_v46 = vpop.f32.mrf.mxu0  ;;  %v15237_v49 = vld [vmem:[%s19675_s1 + $0x100] sm:$0xff]  ;;  %v15284_v25 = vld [vmem:[%s19675_s1 + $0x278] sm:$0xff] }
 0x4d7   :  { %v5071_v19 = vpop.f32.mrf.mxu1  ;;  %v4951_v28 = vadd.f32 %v4919_v46, %v17767_v13  ;;  %6056 = vmatpush.bf16.msra.mxu1 %v15237_v49  ;;  %6669 = vmatpush.bf16.msrb.mxu2 %v15284_v25  ;;  %v20095_v25 = vld [vmem:[#allocation123_spill] sm:$0xff] }
 0x4d8   :  { %v17974_v55 = vadd.f32 %v5373_v3, %v5254_v48  ;;  %6304 = vmatpush.bf16.msra.mxu3 %v15253_v15 }
 0x4d9   :  { %v5103_v6 = vadd.f32 %v5071_v19, %v4951_v28 }
 0x4db   :  { %6670 = vmatpush.bf16.msrb.mxu2 %v15283_v42 }
 0x4dd   :  { %v5223_v13 = vpop.f32.mrf.mxu2 }
 0x4de   :  { %v5375_v5 = vpop.f32.mrf.mxu3  ;;  %v5255_v8 = vadd.f32 %v5223_v13, %v5103_v6  ;;  %v4922_v24 = vpop.f32.mrf.mxu0  ;;  %v15276_v6 = vld [vmem:[%s19675_s1 + $0x238] sm:$0xff] }
 0x4df   :  { %v5074_v22 = vpop.f32.mrf.mxu1  ;;  %v4952_v59 = vadd.f32 %v4922_v24, %v17780_v38  ;;  %v15265_v38 = vld [vmem:[%s19675_s1 + $0x1e0] sm:$0xff]  ;;  %6545 = vmatpush.bf16.msrb.mxu1 %v15276_v6 }
 0x4e0   :  { %v17989_v32 = vadd.f32 %v5375_v5, %v5255_v8  ;;  %6424 = vmatpush.bf16.msra.mxu0 %v15265_v38 }
 0x4e1   :  { %v5104_v10 = vadd.f32 %v5074_v22, %v4952_v59  ;;  %5529 = vmatmul.bf16.gmra.mxu0 %v20033_v7  ;;  %5752 = vmatmul.bf16.gmra.mxu1 %v20076_v39  ;;  %v20094_v59 = vpack.c.bf16 %v20039_v16, %v20092_v62 }
 0x4e2   :  { %5834 = vmatmul.bf16.gmra.mxu2 %v20075_v11 }
 0x4e3   :  { %5948 = vmatmul.bf16.gmra.mxu3 %v20077_v41 }
 0x4e5   :  { %v5226_v3 = vpop.f32.mrf.mxu2 }
 0x4e6   :  { %v5378_v43 = vpop.f32.mrf.mxu3  ;;  %v5256_v48 = vadd.f32 %v5226_v3, %v5104_v10  ;;  %v4924_v7 = vpop.f32.mrf.mxu0  ;;  %v15275_v10 = vld [vmem:[%s19675_s1 + $0x230] sm:$0xff] }
 0x4e7   :  { %v5076_v46 = vpop.f32.mrf.mxu1  ;;  %v4953_v19 = vadd.f32 %v4924_v7, %v17789_v47  ;;  %6546 = vmatpush.bf16.msrb.mxu1 %v15275_v10  ;;  %v15263_v10 = vld [vmem:[%s19675_s1 + $0x1d0] sm:$0xff] }
 0x4e8   :  { %v18002_v28 = vadd.f32 %v5378_v43, %v5256_v48 }
 0x4e9   :  { %v5105_v58 = vadd.f32 %v5076_v46, %v4953_v19  ;;  %v15282_v19 = vld [vmem:[%s19675_s1 + $0x268] sm:$0xff] }
 0x4ea   :  { %6671 = vmatpush.bf16.msrb.mxu2 %v15282_v19 }
 0x4ed   :  { %v5228_v49 = vpop.f32.mrf.mxu2 }
 0x4ee   :  { %v5380_v13 = vpop.f32.mrf.mxu3  ;;  %v5257_v5 = vadd.f32 %v5228_v49, %v5105_v58  ;;  %v4927_v15 = vpop.f32.mrf.mxu0  ;;  %v15274_v58 = vld [vmem:[%s19675_s1 + $0x228] sm:$0xff] }
 0x4ef   :  { %v5079_v8 = vpop.f32.mrf.mxu1  ;;  %v4954_v47 = vadd.f32 %v4927_v15, %v17804_v53  ;;  %v15264_v53 = vld [vmem:[%s19675_s1 + $0x1d8] sm:$0xff]  ;;  %6547 = vmatpush.bf16.msrb.mxu1 %v15274_v58 }
 0x4f0   :  { %v18011_v24 = vadd.f32 %v5380_v13, %v5257_v5  ;;  %6425 = vmatpush.bf16.msra.mxu0 %v15264_v53 }
 0x4f1   :  { %v5106_v22 = vadd.f32 %v5079_v8, %v4954_v47  ;;  %5534 = vmatmul.bf16.gmra.mxu0 %v20094_v59  ;;  %5757 = vmatmul.bf16.gmra.mxu1 %v20080_v2  ;;  %v20096_v59 = vld [vmem:[#allocation68_spill] sm:$0xff] }
 0x4f2   :  { %5839 = vmatmul.bf16.gmra.mxu2 %v20079_v26 }
 0x4f3   :  { %5953 = vmatmul.bf16.gmra.mxu3 %v20095_v25 }
 0x4f4   :  { %6426 = vmatpush.bf16.msra.mxu0 %v15263_v10  ;;  %v15279_v10 = vld [vmem:[%s19675_s1 + $0x250] sm:$0xff] }
 0x4f5   :  { %v5231_v38 = vpop.f32.mrf.mxu2 }
 0x4f6   :  { %v5383_v3 = vpop.f32.mrf.mxu3  ;;  %v5258_v62 = vadd.f32 %v5231_v38, %v5106_v22  ;;  %v4929_v43 = vpop.f32.mrf.mxu0  ;;  %v15281_v22 = vld [vmem:[%s19675_s1 + $0x260] sm:$0xff] }
 0x4f7   :  { %v5081_v48 = vpop.f32.mrf.mxu1  ;;  %v4955_v7 = vadd.f32 %v4929_v43, %v17816_v20  ;;  %6672 = vmatpush.bf16.msrb.mxu2 %v15281_v22  ;;  %v15292_v22 = vld [vmem:[%s19675_s1 + $0x2b8] sm:$0xff] }
 0x4f8   :  { %v18026_v46 = vadd.f32 %v5383_v3, %v5258_v62  ;;  %6793 = vmatpush.bf16.msrb.mxu3 %v15292_v22 }
 0x4f9   :  { %v5107_v6 = vadd.f32 %v5081_v48, %v4955_v7  ;;  %v15280_v48 = vld [vmem:[%s19675_s1 + $0x258] sm:$0xff]  ;;  %v15262_v7 = vld [vmem:[%s19675_s1 + $0x1c8] sm:$0xff] }
 0x4fa   :  { %6427 = vmatpush.bf16.msra.mxu0 %v15262_v7  ;;  %v15271_v7 = vld [vmem:[%s19675_s1 + $0x210] sm:$0xff] }
 0x4fb   :  { %6673 = vmatpush.bf16.msrb.mxu2 %v15280_v48 }
 0x4fd   :  { %v5233_v42 = vpop.f32.mrf.mxu2 }
 0x4fe   :  { %v5385_v49 = vpop.f32.mrf.mxu3  ;;  %v5259_v13 = vadd.f32 %v5233_v42, %v5107_v6  ;;  %v4932_v5 = vpop.f32.mrf.mxu0  ;;  %v15272_v42 = vld [vmem:[%s19675_s1 + $0x218] sm:$0xff] }
 0x4ff   :  { %v5084_v15 = vpop.f32.mrf.mxu1  ;;  %v4956_v20 = vadd.f32 %v4932_v5, %v17835_v51  ;;  %v15273_v51 = vld [vmem:[%s19675_s1 + $0x220] sm:$0xff]  ;;  %6674 = vmatpush.bf16.msrb.mxu2 %v15279_v10 }
 0x500   :  { %v18035_v8 = vadd.f32 %v5385_v49, %v5259_v13  ;;  %6548 = vmatpush.bf16.msrb.mxu1 %v15273_v51  ;;  %v15291_v51 = vld [vmem:[%s19675_s1 + $0x2b0] sm:$0xff]  ;;  %v20102_v10 = vld [vmem:[#allocation96_spill] sm:$0xff] }
 0x501   :  { %v5108_v47 = vadd.f32 %v5084_v15, %v4956_v20  ;;  %5539 = vmatmul.bf16.gmra.mxu0 %v20077_v41  ;;  %6057 = vmatmul.bf16.vlgmr.msra.gmra.mxu1 %v20031_v30 }
 0x502   :  { %6181 = vmatmul.bf16.vlgmr.msra.gmra.mxu2 %v20015_v1  ;;  %6794 = vmatpush.bf16.msrb.mxu3 %v15291_v51 }
 0x503   :  { %6305 = vmatmul.bf16.vlgmr.msra.gmra.mxu3 %v20096_v59 }
 0x504   :  { %6549 = vmatpush.bf16.msrb.mxu1 %v15272_v42 }
 0x505   :  { %v5236_v30 = vpop.f32.mrf.mxu2 }
 0x506   :  { %v5388_v53 = vpop.f32.mrf.mxu3  ;;  %v5260_v38 = vadd.f32 %v5236_v30, %v5108_v47  ;;  %v4934_v3 = vpop.f32.mrf.mxu0 }
 0x507   :  { %v5086_v62 = vpop.f32.mrf.mxu1  ;;  %v4957_v1 = vadd.f32 %v4934_v3, %v17853_v50  ;;  %v15261_v50 = vld [vmem:[%s19675_s1 + $0x1c0] sm:$0xff] }
 0x508   :  { %v18051_v43 = vadd.f32 %v5388_v53, %v5260_v38  ;;  %6428 = vmatpush.bf16.msra.mxu0 %v15261_v50  ;;  %v20097_v50 = vld [vmem:[#allocation124_spill] sm:$0xff]  ;;  %6550 = vmatpush.bf16.msrb.mxu1 %v15271_v7 }
 0x509   :  { %v5109_v19 = vadd.f32 %v5086_v62, %v4957_v1  ;;  %v15290_v62 = vld [vmem:[%s19675_s1 + $0x2a8] sm:$0xff]  ;;  %v15277_v7 = vld [vmem:[%s19675_s1 + $0x240] sm:$0xff] }
 0x50a   :  { %6795 = vmatpush.bf16.msrb.mxu3 %v15290_v62  ;;  %v15286_v62 = vld [vmem:[%s19675_s1 + $0x288] sm:$0xff] }
 0x50d   :  { %v5238_v6 = vpop.f32.mrf.mxu2 }
 0x50e   :  { %v5390_v58 = vpop.f32.mrf.mxu3  ;;  %v5261_v49 = vadd.f32 %v5238_v6, %v5109_v19  ;;  %v4937_v13 = vpop.f32.mrf.mxu0 }
 0x50f   :  { %v5089_v5 = vpop.f32.mrf.mxu1  ;;  %v4958_v15 = vadd.f32 %v4937_v13, %v17863_v61 }
 0x510   :  { %v18066_v20 = vadd.f32 %v5390_v58, %v5261_v49  ;;  %v5440_v49 = vpack.c.bf16 %v20097_v50, %v20097_v50 }
 0x511   :  { %v5110_v47 = vadd.f32 %v5089_v5, %v4958_v15  ;;  %5544 = vmatmul.bf16.gmra.mxu0 %v20095_v25  ;;  %6062 = vmatmul.bf16.gmra.mxu1 %v20034_v4  ;;  %v15278_v5 = vld [vmem:[%s19675_s1 + $0x248] sm:$0xff] }
 0x512   :  { %6186 = vmatmul.bf16.gmra.mxu2 %v20035_v56 }
 0x513   :  { %6310 = vmatmul.bf16.gmra.mxu3 %v20036_v52  ;;  %6675 = vmatpush.bf16.msrb.mxu2 %v15278_v5 }
 0x515   :  { %v5241_v59 = vpop.f32.mrf.mxu2 }
 0x516   :  { %v5393_v61 = vpop.f32.mrf.mxu3  ;;  %v5262_v4 = vadd.f32 %v5241_v59, %v5110_v47  ;;  %v4939_v30 = vpop.f32.mrf.mxu0  ;;  %v20098_v47 = vld [vmem:[#allocation95_spill] sm:$0xff] }
 0x517   :  { %v5091_v53 = vpop.f32.mrf.mxu1  ;;  %v4959_v38 = vadd.f32 %v4939_v30, %v17876_v44  ;;  %v15289_v44 = vld [vmem:[%s19675_s1 + $0x2a0] sm:$0xff]  ;;  %v20099_v22 = vpack.c.bf16 %v20098_v47, %v20038_v29  ;;  %v20100_v59 = vld [vmem:[#allocation103_spill] sm:$0xff]  ;;  %v15270_v30 = vld [vmem:[%s19675_s1 + $0x208] sm:$0xff]  ;;  %6676 = vmatpush.bf16.msrb.mxu2 %v15277_v7 }
 0x518   :  { %v18082_v56 = vadd.f32 %v5393_v61, %v5262_v4  ;;  %6796 = vmatpush.bf16.msrb.mxu3 %v15289_v44  ;;  %v20101_v61 = vpack.c.bf16 %v20100_v59, %v20039_v16  ;;  %v15287_v29 = vld [vmem:[%s19675_s1 + $0x290] sm:$0xff]  ;;  %6551 = vmatpush.bf16.msrb.mxu1 %v15270_v30  ;;  %v15269_v44 = vld [vmem:[%s19675_s1 + $0x200] sm:$0xff]  ;;  %v15316_v47 = vld [vmem:[%s19675_s1 + $0x378] sm:$0xff] }
 0x519   :  { %v5111_v3 = vadd.f32 %v5091_v53, %v4959_v38  ;;  %v15315_v30 = vld [vmem:[%s19675_s1 + $0x370] sm:$0xff]  ;;  %v20106_v7 = vld [vmem:[#allocation121_spill] sm:$0xff] }
 0x51b   :  { %7165 = vmatpush.bf16.msra.mxu2 %v15316_v47  ;;  %v15298_v47 = vld [vmem:[%s19675_s1 + $0x2e8] sm:$0xff] }
 0x51c   :  { %6552 = vmatpush.bf16.msrb.mxu1 %v15269_v44 }
 0x51d   :  { %v5243_v1 = vpop.f32.mrf.mxu2 }
 0x51e   :  { %v5395_v48 = vpop.f32.mrf.mxu3  ;;  %v5263_v19 = vadd.f32 %v5243_v1, %v5111_v3  ;;  %v4942_v6 = vpop.f32.mrf.mxu0 }
 0x51f   :  { %v5094_v58 = vpop.f32.mrf.mxu1  ;;  %v4960_v42 = vadd.f32 %v4942_v6, %v17885_v54  ;;  %v15288_v54 = vld [vmem:[%s19675_s1 + $0x298] sm:$0xff]  ;;  %7166 = vmatpush.bf16.msra.mxu2 %v15315_v30 }
 0x520   :  { %v18096_v13 = vadd.f32 %v5395_v48, %v5263_v19  ;;  %6797 = vmatpush.bf16.msrb.mxu3 %v15288_v54  ;;  %v15285_v19 = vld [vmem:[%s19675_s1 + $0x280] sm:$0xff] }
 0x521   :  { %v5112_v15 = vadd.f32 %v5094_v58, %v4960_v42  ;;  %5549 = vmatmul.bf16.gmra.mxu0 %v5440_v49  ;;  %6067 = vmatmul.bf16.gmra.mxu1 %v20099_v22  ;;  %v20103_v49 = vld [vmem:[#allocation110_spill] sm:$0xff] }
 0x522   :  { %6191 = vmatmul.bf16.gmra.mxu2 %v20101_v61 }
 0x523   :  { %6315 = vmatmul.bf16.gmra.mxu3 %v20102_v10  ;;  %v15308_v10 = vld [vmem:[%s19675_s1 + $0x338] sm:$0xff] }
 0x524   :  { %6798 = vmatpush.bf16.msrb.mxu3 %v15287_v29  ;;  %7041 = vmatpush.bf16.msra.mxu1 %v15308_v10 }
 0x525   :  { %v5246_v51 = vpop.f32.mrf.mxu2 }
 0x526   :  { %v5398_v4 = vpop.f32.mrf.mxu3  ;;  %v5264_v53 = vadd.f32 %v5246_v51, %v5112_v15  ;;  %v4944_v38 = vpop.f32.mrf.mxu0 }
 0x527   :  { %v5096_v3 = vpop.f32.mrf.mxu1 }
 0x528   :  { %v18117_v16 = vadd.f32 %v5398_v4, %v5264_v53  ;;  %6799 = vmatpush.bf16.msrb.mxu3 %v15286_v62  ;;  %v15299_v62 = vld [vmem:[%s19675_s1 + $0x2f0] sm:$0xff] }
 0x52c   :  { %6800 = vmatpush.bf16.msrb.mxu3 %v15285_v19  ;;  %v15307_v19 = vld [vmem:[%s19675_s1 + $0x330] sm:$0xff] }
 0x52d   :  { %v5248_v1 = vpop.f32.mrf.mxu2  ;;  %7042 = vmatpush.bf16.msra.mxu1 %v15307_v19  ;;  %v15294_v19 = vld [vmem:[%s19675_s1 + $0x2c8] sm:$0xff] }
 0x52e   :  { %v5400_v48 = vpop.f32.mrf.mxu3  ;;  %v5515_v6 = vpop.f32.mrf.mxu0  ;;  %v20104_v1 = vpack.c.bf16 %v20084_v34, %v20082_v23 }
 0x52f   :  { %v5738_v58 = vpop.f32.mrf.mxu1  ;;  %v18132_v42 = vadd.f32 %v5515_v6, %v17908_v9  ;;  %v15300_v9 = vld [vmem:[%s19675_s1 + $0x2f8] sm:$0xff]  ;;  %v20105_v48 = vpack.c.bf16 %v20097_v50, %v20083_v33 }
 0x530   :  { %6917 = vmatpush.bf16.msrb.mxu0 %v15300_v9 }
 0x531   :  { %6072 = vmatmul.bf16.gmra.mxu1 %v20078_v21  ;;  %6429 = vmatmul.bf16.vlgmr.msra.gmra.mxu0 %v20050_v37 }
 0x532   :  { %6196 = vmatmul.bf16.gmra.mxu2 %v20079_v26 }
 0x533   :  { %6320 = vmatmul.bf16.gmra.mxu3 %v20103_v49 }
 0x534   :  { %6918 = vmatpush.bf16.msrb.mxu0 %v15299_v62  ;;  %v15313_v62 = vld [vmem:[%s19675_s1 + $0x360] sm:$0xff] }
 0x535   :  { %v5820_v5 = vpop.f32.mrf.mxu2 }
 0x536   :  { %v5934_v15 = vpop.f32.mrf.mxu3  ;;  %v5821_v22 = vadd.f32 %v5820_v5, %v5738_v58  ;;  %v5517_v54 = vpop.f32.mrf.mxu0 }
 0x537   :  { %v5740_v59 = vpop.f32.mrf.mxu1  ;;  %v18145_v61 = vadd.f32 %v5517_v54, %v17914_v60  ;;  %v15297_v54 = vld [vmem:[%s19675_s1 + $0x2e0] sm:$0xff] }
 0x538   :  { %v18147_v37 = vadd.f32 %v5934_v15, %v5821_v22  ;;  %v15314_v15 = vld [vmem:[%s19675_s1 + $0x368] sm:$0xff]  ;;  %6919 = vmatpush.bf16.msrb.mxu0 %v15298_v47 }
 0x539   :  { %7167 = vmatpush.bf16.msra.mxu2 %v15314_v15 }
 0x53c   :  { %6920 = vmatpush.bf16.msrb.mxu0 %v15297_v54  ;;  %v15304_v54 = vld [vmem:[%s19675_s1 + $0x318] sm:$0xff] }
 0x53d   :  { %v5822_v51 = vpop.f32.mrf.mxu2  ;;  %7168 = vmatpush.bf16.msra.mxu2 %v15313_v62 }
 0x53e   :  { %v5936_v4 = vpop.f32.mrf.mxu3  ;;  %v5823_v29 = vadd.f32 %v5822_v51, %v5740_v59  ;;  %v5520_v53 = vpop.f32.mrf.mxu0 }
 0x53f   :  { %v5743_v38 = vpop.f32.mrf.mxu1  ;;  %v18156_v60 = vadd.f32 %v5520_v53, %v17936_v14  ;;  %v15296_v53 = vld [vmem:[%s19675_s1 + $0x2d8] sm:$0xff] }
 0x540   :  { %v18158_v3 = vadd.f32 %v5936_v4, %v5823_v29  ;;  %v20107_v29 = vld [vmem:[#allocation97_spill] sm:$0xff]  ;;  %6921 = vmatpush.bf16.msrb.mxu0 %v15296_v53 }
 0x541   :  { %6077 = vmatmul.bf16.gmra.mxu1 %v20104_v1  ;;  %6434 = vmatmul.bf16.gmra.mxu0 %v20053_v27  ;;  %v15305_v1 = vld [vmem:[%s19675_s1 + $0x320] sm:$0xff] }
 0x542   :  { %6201 = vmatmul.bf16.gmra.mxu2 %v20105_v48 }
 0x543   :  { %6325 = vmatmul.bf16.gmra.mxu3 %v20106_v7 }
 0x545   :  { %v5825_v14 = vpop.f32.mrf.mxu2 }
 0x546   :  { %v5939_v44 = vpop.f32.mrf.mxu3  ;;  %v5826_v6 = vadd.f32 %v5825_v14, %v5743_v38  ;;  %v5522_v58 = vpop.f32.mrf.mxu0 }
 0x547   :  { %v5745_v5 = vpop.f32.mrf.mxu1  ;;  %v18175_v23 = vadd.f32 %v5522_v58, %v17948_v17  ;;  %v15306_v17 = vld [vmem:[%s19675_s1 + $0x328] sm:$0xff] }
 0x548   :  { %v18177_v27 = vadd.f32 %v5939_v44, %v5826_v6  ;;  %7043 = vmatpush.bf16.msra.mxu1 %v15306_v17 }
 0x54c   :  { %7044 = vmatpush.bf16.msra.mxu1 %v15305_v1 }
 0x54d   :  { %v5827_v9 = vpop.f32.mrf.mxu2 }
 0x54e   :  { %v5941_v22 = vpop.f32.mrf.mxu3  ;;  %v5828_v59 = vadd.f32 %v5827_v9, %v5745_v5  ;;  %v5525_v10 = vpop.f32.mrf.mxu0  ;;  %v15312_v5 = vld [vmem:[%s19675_s1 + $0x358] sm:$0xff] }
 0x54f   :  { %v5748_v51 = vpop.f32.mrf.mxu1  ;;  %v18192_v4 = vadd.f32 %v5525_v10, %v17974_v55  ;;  %7169 = vmatpush.bf16.msra.mxu2 %v15312_v5  ;;  %v15324_v10 = vld [vmem:[%s19675_s1 + $0x3b8] sm:$0xff]  ;;  %v15310_v5 = vld [vmem:[%s19675_s1 + $0x348] sm:$0xff] }
 0x550   :  { %v18194_v30 = vadd.f32 %v5941_v22, %v5828_v59  ;;  %v20108_v59 = vld [vmem:[#allocation109_spill] sm:$0xff]  ;;  %7045 = vmatpush.bf16.msra.mxu1 %v15304_v54  ;;  %7289 = vmatpush.bf16.msra.mxu3 %v15324_v10  ;;  %v20114_v10 = vld [vmem:[#allocation108_spill] sm:$0xff] }
 0x551   :  { %6439 = vmatmul.bf16.gmra.mxu0 %v20107_v29  ;;  %6553 = vmatmul.bf16.vlgmr.msrb.gmra.mxu1 %v20051_v45  ;;  %v15295_v45 = vld [vmem:[%s19675_s1 + $0x2d0] sm:$0xff] }
 0x552   :  { %6677 = vmatmul.bf16.vlgmr.msrb.gmra.mxu2 %v20052_v0  ;;  %6922 = vmatpush.bf16.msrb.mxu0 %v15295_v45  ;;  %v15311_v29 = vld [vmem:[%s19675_s1 + $0x350] sm:$0xff] }
 0x553   :  { %6801 = vmatmul.bf16.vlgmr.msrb.gmra.mxu3 %v20036_v52  ;;  %7170 = vmatpush.bf16.msra.mxu2 %v15311_v29 }
 0x555   :  { %v5830_v38 = vpop.f32.mrf.mxu2 }
 0x556   :  { %v5944_v55 = vpop.f32.mrf.mxu3  ;;  %v5831_v48 = vadd.f32 %v5830_v38, %v5748_v51  ;;  %v5527_v14 = vpop.f32.mrf.mxu0  ;;  %6923 = vmatpush.bf16.msrb.mxu0 %v15294_v19 }
 0x557   :  { %v5750_v0 = vpop.f32.mrf.mxu1  ;;  %v18213_v52 = vadd.f32 %v5527_v14, %v17989_v32  ;;  %v15293_v32 = vld [vmem:[%s19675_s1 + $0x2c0] sm:$0xff]  ;;  %7171 = vmatpush.bf16.msra.mxu2 %v15310_v5 }
 0x558   :  { %v18215_v44 = vadd.f32 %v5944_v55, %v5831_v48  ;;  %v15303_v48 = vld [vmem:[%s19675_s1 + $0x310] sm:$0xff] }
 0x559   :  { %7046 = vmatpush.bf16.msra.mxu1 %v15303_v48  ;;  %v15309_v48 = vld [vmem:[%s19675_s1 + $0x340] sm:$0xff] }
 0x55a   :  { %6924 = vmatpush.bf16.msrb.mxu0 %v15293_v32  ;;  %v20109_v32 = vld [vmem:[#allocation122_spill] sm:$0xff] }
 0x55b   :  { %7172 = vmatpush.bf16.msra.mxu2 %v15309_v48 }
 0x55d   :  { %v5832_v6 = vpop.f32.mrf.mxu2 }
 0x55e   :  { %v5946_v58 = vpop.f32.mrf.mxu3  ;;  %v5833_v15 = vadd.f32 %v5832_v6, %v5750_v0  ;;  %v5530_v47 = vpop.f32.mrf.mxu0 }
 0x55f   :  { %v5753_v9 = vpop.f32.mrf.mxu1  ;;  %v18227_v22 = vadd.f32 %v5530_v47, %v18002_v28 }
 0x560   :  { %v18229_v17 = vadd.f32 %v5946_v58, %v5833_v15  ;;  %v20110_v15 = vld [vmem:[#allocation101_spill] sm:$0xff] }
 0x561   :  { %6444 = vmatmul.bf16.gmra.mxu0 %v20108_v59  ;;  %6558 = vmatmul.bf16.gmra.mxu1 %v20054_v31  ;;  %v15323_v31 = vld [vmem:[%s19675_s1 + $0x3b0] sm:$0xff]  ;;  %v20111_v47 = vpack.c.bf16 %v20110_v15, %v20058_v57  ;;  %v15302_v57 = vld [vmem:[%s19675_s1 + $0x308] sm:$0xff] }
 0x562   :  { %6682 = vmatmul.bf16.gmra.mxu2 %v20055_v18  ;;  %7290 = vmatpush.bf16.msra.mxu3 %v15323_v31  ;;  %v15319_v31 = vld [vmem:[%s19675_s1 + $0x390] sm:$0xff] }
 0x563   :  { %6806 = vmatmul.bf16.gmra.mxu3 %v20056_v12  ;;  %v15322_v12 = vld [vmem:[%s19675_s1 + $0x3a8] sm:$0xff]  ;;  %7047 = vmatpush.bf16.msra.mxu1 %v15302_v57 }
 0x565   :  { %v5835_v28 = vpop.f32.mrf.mxu2 }
 0x566   :  { %v5949_v51 = vpop.f32.mrf.mxu3  ;;  %v5836_v53 = vadd.f32 %v5835_v28, %v5753_v9  ;;  %v5532_v38 = vpop.f32.mrf.mxu0  ;;  %7291 = vmatpush.bf16.msra.mxu3 %v15322_v12  ;;  %v15320_v9 = vld [vmem:[%s19675_s1 + $0x398] sm:$0xff]  ;;  %v20115_v28 = vpack.c.bf16 %v20114_v10, %v16604_v36  ;;  %v15318_v12 = vld [vmem:[%s19675_s1 + $0x388] sm:$0xff] }
 0x567   :  { %v5755_v55 = vpop.f32.mrf.mxu1  ;;  %v18248_v62 = vadd.f32 %v5532_v38, %v18011_v24  ;;  %v15321_v24 = vld [vmem:[%s19675_s1 + $0x3a0] sm:$0xff] }
 0x568   :  { %v18250_v18 = vadd.f32 %v5949_v51, %v5836_v53 }
 0x56a   :  { %7292 = vmatpush.bf16.msra.mxu3 %v15321_v24  ;;  %v15317_v24 = vld [vmem:[%s19675_s1 + $0x380] sm:$0xff] }
 0x56d   :  { %v5837_v1 = vpop.f32.mrf.mxu2 }
 0x56e   :  { %v5951_v45 = vpop.f32.mrf.mxu3  ;;  %v5838_v14 = vadd.f32 %v5837_v1, %v5755_v55  ;;  %v5535_v0 = vpop.f32.mrf.mxu0  ;;  %7293 = vmatpush.bf16.msra.mxu3 %v15320_v9  ;;  %v20116_v9 = vld [vmem:[#allocation115_spill] sm:$0xff] }
 0x56f   :  { %v5758_v19 = vpop.f32.mrf.mxu1  ;;  %v18262_v6 = vadd.f32 %v5535_v0, %v18026_v46  ;;  %v20112_v46 = vld [vmem:[#allocation102_spill] sm:$0xff] }
 0x570   :  { %v18264_v58 = vadd.f32 %v5951_v45, %v5838_v14  ;;  %v20113_v54 = vpack.c.bf16 %v20112_v46, %v20059_v35  ;;  %v20117_v46 = vld [vmem:[#allocation116_spill] sm:$0xff] }
 0x571   :  { %6449 = vmatmul.bf16.gmra.mxu0 %v20109_v32  ;;  %6563 = vmatmul.bf16.gmra.mxu1 %v20111_v47 }
 0x572   :  { %6687 = vmatmul.bf16.gmra.mxu2 %v20113_v54  ;;  %7294 = vmatpush.bf16.msra.mxu3 %v15319_v31 }
 0x573   :  { %6811 = vmatmul.bf16.gmra.mxu3 %v20115_v28 }
 0x575   :  { %v5840_v51 = vpop.f32.mrf.mxu2 }
 0x576   :  { %v5954_v29 = vpop.f32.mrf.mxu3  ;;  %v5841_v53 = vadd.f32 %v5840_v51, %v5758_v19  ;;  %v5537_v38 = vpop.f32.mrf.mxu0  ;;  %7295 = vmatpush.bf16.msra.mxu3 %v15318_v12 }
 0x577   :  { %v5760_v35 = vpop.f32.mrf.mxu1  ;;  %v18289_v55 = vadd.f32 %v5537_v38, %v18035_v8  ;;  %v15301_v8 = vld [vmem:[%s19675_s1 + $0x300] sm:$0xff]  ;;  %v15347_v38 = vld [vmem:[%s19675_s1 + $0x470] sm:$0xff] }
 0x578   :  { %v18291_v36 = vadd.f32 %v5954_v29, %v5841_v53  ;;  %7048 = vmatpush.bf16.msra.mxu1 %v15301_v8  ;;  %v15340_v53 = vld [vmem:[%s19675_s1 + $0x438] sm:$0xff] }
 0x57a   :  { %7296 = vmatpush.bf16.msra.mxu3 %v15317_v24  ;;  %v15331_v24 = vld [vmem:[%s19675_s1 + $0x3f0] sm:$0xff] }
 0x57c   :  { %7537 = vmatpush.bf16.msrb.mxu1 %v15340_v53  ;;  %v15338_v53 = vld [vmem:[%s19675_s1 + $0x428] sm:$0xff] }
 0x57d   :  { %v5842_v1 = vpop.f32.mrf.mxu2 }
 0x57e   :  { %v5956_v45 = vpop.f32.mrf.mxu3  ;;  %v5843_v14 = vadd.f32 %v5842_v1, %v5760_v35  ;;  %v5540_v0 = vpop.f32.mrf.mxu0 }
 0x57f   :  { %v6058_v19 = vpop.f32.mrf.mxu1  ;;  %v18306_v5 = vadd.f32 %v5540_v0, %v18051_v43  ;;  %v15348_v43 = vld [vmem:[%s19675_s1 + $0x478] sm:$0xff]  ;;  %v20118_v0 = vld [vmem:[#allocation125_spill] sm:$0xff] }
 0x580   :  { %v6083_v15 = vadd.f32 %v6058_v19, %v18147_v37  ;;  %v18309_v47 = vadd.f32 %v5956_v45, %v5843_v14  ;;  %v15332_v37 = vld [vmem:[%s19675_s1 + $0x3f8] sm:$0xff]  ;;  %7661 = vmatpush.bf16.msrb.mxu2 %v15348_v43  ;;  %v15339_v14 = vld [vmem:[%s19675_s1 + $0x430] sm:$0xff] }
 0x581   :  { %6568 = vmatmul.bf16.gmra.mxu1 %v20116_v9  ;;  %6925 = vmatmul.bf16.vlgmr.msrb.gmra.mxu0 %v20073_v63  ;;  %v20119_v19 = vld [vmem:[#allocation126_spill] sm:$0xff] }
 0x582   :  { %6692 = vmatmul.bf16.gmra.mxu2 %v20117_v46  ;;  %7413 = vmatpush.bf16.msra.mxu0 %v15332_v37 }
 0x583   :  { %6816 = vmatmul.bf16.gmra.mxu3 %v20106_v7  ;;  %7538 = vmatpush.bf16.msrb.mxu1 %v15339_v14  ;;  %v20121_v14 = vld [vmem:[#allocation128_spill] sm:$0xff] }
 0x584   :  { %7662 = vmatpush.bf16.msrb.mxu2 %v15347_v38 }
 0x585   :  { %v6182_v54 = vpop.f32.mrf.mxu2 }
 0x586   :  { %v6306_v10 = vpop.f32.mrf.mxu3  ;;  %v6207_v28 = vadd.f32 %v6182_v54, %v6083_v15  ;;  %v5542_v51 = vpop.f32.mrf.mxu0  ;;  %7414 = vmatpush.bf16.msra.mxu0 %v15331_v24  ;;  %v15345_v24 = vld [vmem:[%s19675_s1 + $0x460] sm:$0xff] }
 0x587   :  { %v6060_v29 = vpop.f32.mrf.mxu1  ;;  %v18322_v57 = vadd.f32 %v5542_v51, %v18066_v20  ;;  %7539 = vmatpush.bf16.msrb.mxu1 %v15338_v53 }
 0x588   :  { %v6084_v63 = vadd.f32 %v6060_v29, %v18158_v3  ;;  %v18325_v31 = vadd.f32 %v6306_v10, %v6207_v28  ;;  %v15346_v29 = vld [vmem:[%s19675_s1 + $0x468] sm:$0xff] }
 0x589   :  { %7663 = vmatpush.bf16.msrb.mxu2 %v15346_v29 }
 0x58d   :  { %v6184_v35 = vpop.f32.mrf.mxu2  ;;  %7664 = vmatpush.bf16.msrb.mxu2 %v15345_v24 }
 0x58e   :  { %v6308_v12 = vpop.f32.mrf.mxu3  ;;  %v6208_v20 = vadd.f32 %v6184_v35, %v6084_v63  ;;  %v5545_v1 = vpop.f32.mrf.mxu0  ;;  %v15330_v63 = vld [vmem:[%s19675_s1 + $0x3e8] sm:$0xff] }
 0x58f   :  { %v6063_v45 = vpop.f32.mrf.mxu1  ;;  %v18334_v3 = vadd.f32 %v5545_v1, %v18082_v56  ;;  %v20120_v56 = vld [vmem:[#allocation127_spill] sm:$0xff]  ;;  %7415 = vmatpush.bf16.msra.mxu0 %v15330_v63  ;;  %v15325_v63 = vld [vmem:[%s19675_s1 + $0x3c0] sm:$0xff] }
 0x590   :  { %v6085_v48 = vadd.f32 %v6063_v45, %v18177_v27  ;;  %v18337_v8 = vadd.f32 %v6308_v12, %v6208_v20 }
 0x591   :  { %6573 = vmatmul.bf16.gmra.mxu1 %v20118_v0  ;;  %6930 = vmatmul.bf16.gmra.mxu0 %v20077_v41 }
 0x592   :  { %6697 = vmatmul.bf16.gmra.mxu2 %v20119_v19  ;;  %v15328_v19 = vld [vmem:[%s19675_s1 + $0x3d8] sm:$0xff] }
 0x593   :  { %6821 = vmatmul.bf16.gmra.mxu3 %v20120_v56 }
 0x595   :  { %v6187_v27 = vpop.f32.mrf.mxu2 }
 0x596   :  { %v6311_v15 = vpop.f32.mrf.mxu3  ;;  %v6209_v54 = vadd.f32 %v6187_v27, %v6085_v48  ;;  %v5547_v10 = vpop.f32.mrf.mxu0 }
 0x597   :  { %v6065_v43 = vpop.f32.mrf.mxu1  ;;  %v18350_v37 = vadd.f32 %v5547_v10, %v18096_v13  ;;  %v15344_v10 = vld [vmem:[%s19675_s1 + $0x458] sm:$0xff] }
 0x598   :  { %v6086_v28 = vadd.f32 %v6065_v43, %v18194_v30  ;;  %v18353_v51 = vadd.f32 %v6311_v15, %v6209_v54  ;;  %v15329_v30 = vld [vmem:[%s19675_s1 + $0x3e0] sm:$0xff]  ;;  %v15326_v43 = vld [vmem:[%s19675_s1 + $0x3c8] sm:$0xff]  ;;  %7665 = vmatpush.bf16.msrb.mxu2 %v15344_v10 }
 0x599   :  { %7416 = vmatpush.bf16.msra.mxu0 %v15329_v30 }
 0x59d   :  { %v6189_v13 = vpop.f32.mrf.mxu2  ;;  %7417 = vmatpush.bf16.msra.mxu0 %v15328_v19 }
 0x59e   :  { %v6313_v38 = vpop.f32.mrf.mxu3  ;;  %v6210_v35 = vadd.f32 %v6189_v13, %v6086_v28  ;;  %v5550_v12 = vpop.f32.mrf.mxu0 }
 0x59f   :  { %v6068_v20 = vpop.f32.mrf.mxu1  ;;  %v18368_v1 = vadd.f32 %v5550_v12, %v18117_v16  ;;  %v15337_v16 = vld [vmem:[%s19675_s1 + $0x420] sm:$0xff]  ;;  %v15336_v12 = vld [vmem:[%s19675_s1 + $0x418] sm:$0xff] }
 0x5a0   :  { %v6087_v45 = vadd.f32 %v6068_v20, %v18215_v44  ;;  %v18371_v48 = vadd.f32 %v6313_v38, %v6210_v35  ;;  %7540 = vmatpush.bf16.msrb.mxu1 %v15337_v16  ;;  %v20122_v20 = vld [vmem:[#allocation139_spill] sm:$0xff] }
 0x5a1   :  { %6935 = vmatmul.bf16.gmra.mxu0 %v20121_v14  ;;  %7049 = vmatmul.bf16.vlgmr.msra.gmra.mxu1 %v20074_v40  ;;  %v15327_v40 = vld [vmem:[%s19675_s1 + $0x3d0] sm:$0xff] }
 0x5a2   :  { %7173 = vmatmul.bf16.vlgmr.msra.gmra.mxu2 %v20075_v11  ;;  %7418 = vmatpush.bf16.msra.mxu0 %v15327_v40  ;;  %v15354_v40 = vld [vmem:[%s19675_s1 + $0x4a8] sm:$0xff] }
 0x5a3   :  { %7297 = vmatmul.bf16.vlgmr.msra.gmra.mxu3 %v20076_v39 }
 0x5a4   :  { %7541 = vmatpush.bf16.msrb.mxu1 %v15336_v12  ;;  %v15334_v12 = vld [vmem:[%s19675_s1 + $0x408] sm:$0xff] }
 0x5a5   :  { %v6192_v44 = vpop.f32.mrf.mxu2 }
 0x5a6   :  { %v6316_v56 = vpop.f32.mrf.mxu3  ;;  %v6211_v27 = vadd.f32 %v6192_v44, %v6087_v45  ;;  %v5552_v15 = vpop.f32.mrf.mxu0  ;;  %7419 = vmatpush.bf16.msra.mxu0 %v15326_v43  ;;  %v15356_v45 = vld [vmem:[%s19675_s1 + $0x4b8] sm:$0xff] }
 0x5a7   :  { %v6070_v54 = vpop.f32.mrf.mxu1  ;;  %7785 = vmatpush.bf16.msrb.mxu3 %v15356_v45 }
 0x5a8   :  { %v6088_v11 = vadd.f32 %v6070_v54, %v18229_v17  ;;  %v18390_v39 = vadd.f32 %v6316_v56, %v6211_v27  ;;  %v15335_v56 = vld [vmem:[%s19675_s1 + $0x410] sm:$0xff] }
 0x5a9   :  { %7542 = vmatpush.bf16.msrb.mxu1 %v15335_v56  ;;  %v15333_v56 = vld [vmem:[%s19675_s1 + $0x400] sm:$0xff] }
 0x5aa   :  { %7420 = vmatpush.bf16.msra.mxu0 %v15325_v63  ;;  %v20123_v63 = vld [vmem:[#allocation148_spill] sm:$0xff] }
 0x5ad   :  { %v6194_v28 = vpop.f32.mrf.mxu2  ;;  %7543 = vmatpush.bf16.msrb.mxu1 %v15334_v12 }
 0x5ae   :  { %v6318_v29 = vpop.f32.mrf.mxu3  ;;  %v6212_v17 = vadd.f32 %v6194_v28, %v6088_v11  ;;  %v6430_v13 = vpop.f32.mrf.mxu0 }
 0x5af   :  { %v6073_v53 = vpop.f32.mrf.mxu1  ;;  %v18403_v30 = vadd.f32 %v6430_v13, %v18325_v31  ;;  %v20125_v13 = vld [vmem:[#allocation130_spill] sm:$0xff] }
 0x5b0   :  { %v6089_v38 = vadd.f32 %v6073_v53, %v18250_v18  ;;  %v18405_v35 = vadd.f32 %v6318_v29, %v6212_v17  ;;  %v15343_v18 = vld [vmem:[%s19675_s1 + $0x450] sm:$0xff]  ;;  %v15342_v29 = vld [vmem:[%s19675_s1 + $0x448] sm:$0xff]  ;;  %v15352_v53 = vld [vmem:[%s19675_s1 + $0x498] sm:$0xff] }
 0x5b1   :  { %6940 = vmatmul.bf16.gmra.mxu0 %v20122_v20  ;;  %7054 = vmatmul.bf16.gmra.mxu1 %v20078_v21  ;;  %v15355_v21 = vld [vmem:[%s19675_s1 + $0x4b0] sm:$0xff]  ;;  %v20124_v17 = vld [vmem:[#allocation129_spill] sm:$0xff] }
 0x5b2   :  { %7178 = vmatmul.bf16.gmra.mxu2 %v20079_v26  ;;  %7786 = vmatpush.bf16.msrb.mxu3 %v15355_v21 }
 0x5b3   :  { %7302 = vmatmul.bf16.gmra.mxu3 %v20080_v2  ;;  %7666 = vmatpush.bf16.msrb.mxu2 %v15343_v18 }
 0x5b4   :  { %7544 = vmatpush.bf16.msrb.mxu1 %v15333_v56  ;;  %v15363_v56 = vld [vmem:[%s19675_s1 + $0x4f0] sm:$0xff] }
 0x5b5   :  { %v6197_v31 = vpop.f32.mrf.mxu2 }
 0x5b6   :  { %v6321_v24 = vpop.f32.mrf.mxu3  ;;  %v6213_v14 = vadd.f32 %v6197_v31, %v6089_v38  ;;  %v6432_v16 = vpop.f32.mrf.mxu0  ;;  %7787 = vmatpush.bf16.msrb.mxu3 %v15354_v40  ;;  %v15351_v31 = vld [vmem:[%s19675_s1 + $0x490] sm:$0xff]  ;;  %v15349_v40 = vld [vmem:[%s19675_s1 + $0x480] sm:$0xff] }
 0x5b7   :  { %v6075_v19 = vpop.f32.mrf.mxu1  ;;  %v18425_v2 = vadd.f32 %v6432_v16, %v18337_v8  ;;  %7667 = vmatpush.bf16.msrb.mxu2 %v15342_v29  ;;  %v15341_v16 = vld [vmem:[%s19675_s1 + $0x440] sm:$0xff] }
 0x5b8   :  { %v6090_v26 = vadd.f32 %v6075_v19, %v18264_v58  ;;  %v18427_v44 = vadd.f32 %v6321_v24, %v6213_v14  ;;  %v15353_v58 = vld [vmem:[%s19675_s1 + $0x4a0] sm:$0xff] }
 0x5b9   :  { %v20130_v29 = vld [vmem:[#allocation144_spill] sm:$0xff] }
 0x5ba   :  { %7788 = vmatpush.bf16.msrb.mxu3 %v15353_v58 }
 0x5bb   :  { %7668 = vmatpush.bf16.msrb.mxu2 %v15341_v16 }
 0x5bd   :  { %v6199_v27 = vpop.f32.mrf.mxu2 }
 0x5be   :  { %v6323_v15 = vpop.f32.mrf.mxu3  ;;  %v6214_v8 = vadd.f32 %v6199_v27, %v6090_v26  ;;  %v6435_v11 = vpop.f32.mrf.mxu0  ;;  %7789 = vmatpush.bf16.msrb.mxu3 %v15352_v53  ;;  %v15350_v26 = vld [vmem:[%s19675_s1 + $0x488] sm:$0xff]  ;;  %v15380_v53 = vld [vmem:[%s19675_s1 + $0x578] sm:$0xff] }
 0x5bf   :  { %v6078_v54 = vpop.f32.mrf.mxu1  ;;  %v18440_v43 = vadd.f32 %v6435_v11, %v18353_v51  ;;  %v20127_v51 = vld [vmem:[#allocation131_spill] sm:$0xff]  ;;  %8157 = vmatpush.bf16.msra.mxu2 %v15380_v53 }
 0x5c0   :  { %v6091_v10 = vadd.f32 %v6078_v54, %v18291_v36  ;;  %v18442_v28 = vadd.f32 %v6323_v15, %v6214_v8  ;;  %v20126_v36 = vpack.c.bf16 %v20125_v13, %v20083_v33  ;;  %v20128_v38 = vpack.c.bf16 %v20127_v51, %v20084_v34 }
 0x5c1   :  { %6945 = vmatmul.bf16.gmra.mxu0 %v20123_v63  ;;  %7059 = vmatmul.bf16.gmra.mxu1 %v20124_v17  ;;  %v20131_v17 = vld [vmem:[#allocation145_spill] sm:$0xff] }
 0x5c2   :  { %7183 = vmatmul.bf16.gmra.mxu2 %v20126_v36  ;;  %7790 = vmatpush.bf16.msrb.mxu3 %v15351_v31  ;;  %v15379_v31 = vld [vmem:[%s19675_s1 + $0x570] sm:$0xff] }
 0x5c3   :  { %7307 = vmatmul.bf16.gmra.mxu3 %v20128_v38  ;;  %8158 = vmatpush.bf16.msra.mxu2 %v15379_v31 }
 0x5c5   :  { %v6202_v45 = vpop.f32.mrf.mxu2 }
 0x5c6   :  { %v6326_v18 = vpop.f32.mrf.mxu3  ;;  %v6215_v24 = vadd.f32 %v6202_v45, %v6091_v10  ;;  %v6437_v21 = vpop.f32.mrf.mxu0  ;;  %7791 = vmatpush.bf16.msrb.mxu3 %v15350_v26  ;;  %v20129_v10 = vld [vmem:[#allocation140_spill] sm:$0xff] }
 0x5c7   :  { %v6080_v33 = vpop.f32.mrf.mxu1  ;;  %v6458_v34 = vadd.f32 %v6437_v21, %v18371_v48 }
 0x5c8   :  { %v6092_v14 = vadd.f32 %v6080_v33, %v18309_v47  ;;  %v18466_v19 = vadd.f32 %v6326_v18, %v6215_v24  ;;  %v15372_v18 = vld [vmem:[%s19675_s1 + $0x538] sm:$0xff] }
 0x5c9   :  { %8033 = vmatpush.bf16.msra.mxu1 %v15372_v18 }
 0x5ca   :  { %7792 = vmatpush.bf16.msrb.mxu3 %v15349_v40  ;;  %v20133_v40 = vld [vmem:[#allocation153_spill] sm:$0xff] }
 0x5cd   :  { %v6204_v47 = vpop.f32.mrf.mxu2 }
 0x5ce   :  { %v6328_v48 = vpop.f32.mrf.mxu3  ;;  %v6216_v27 = vadd.f32 %v6204_v47, %v6092_v14  ;;  %v6440_v15 = vpop.f32.mrf.mxu0  ;;  %v15371_v47 = vld [vmem:[%s19675_s1 + $0x530] sm:$0xff] }
 0x5cf   :  { %v6554_v58 = vpop.f32.mrf.mxu1  ;;  %v6459_v8 = vadd.f32 %v6440_v15, %v18390_v39  ;;  %v15364_v39 = vld [vmem:[%s19675_s1 + $0x4f8] sm:$0xff]  ;;  %8034 = vmatpush.bf16.msra.mxu1 %v15371_v47 }
 0x5d0   :  { %v6579_v54 = vadd.f32 %v6554_v58, %v18403_v30  ;;  %v18482_v11 = vadd.f32 %v6328_v48, %v6216_v27  ;;  %7909 = vmatpush.bf16.msrb.mxu0 %v15364_v39  ;;  %v20132_v48 = vld [vmem:[#allocation149_spill] sm:$0xff] }
 0x5d1   :  { %7064 = vmatmul.bf16.gmra.mxu1 %v20129_v10  ;;  %7421 = vmatmul.bf16.vlgmr.msra.gmra.mxu0 %v20077_v41 }
 0x5d2   :  { %7188 = vmatmul.bf16.gmra.mxu2 %v20130_v29 }
 0x5d3   :  { %7312 = vmatmul.bf16.gmra.mxu3 %v20131_v17 }
 0x5d4   :  { %7910 = vmatpush.bf16.msrb.mxu0 %v15363_v56  ;;  %v15360_v56 = vld [vmem:[%s19675_s1 + $0x4d8] sm:$0xff] }
 0x5d5   :  { %v6678_v30 = vpop.f32.mrf.mxu2 }
 0x5d6   :  { %v6802_v13 = vpop.f32.mrf.mxu3  ;;  %v6703_v36 = vadd.f32 %v6678_v30, %v6579_v54  ;;  %v6442_v51 = vpop.f32.mrf.mxu0 }
 0x5d7   :  { %v6556_v38 = vpop.f32.mrf.mxu1  ;;  %v18495_v41 = vadd.f32 %v6442_v51, %v18405_v35 }
 0x5d8   :  { %v6580_v12 = vadd.f32 %v6556_v38, %v18425_v2  ;;  %v18498_v45 = vadd.f32 %v6802_v13, %v6703_v36  ;;  %v15362_v13 = vld [vmem:[%s19675_s1 + $0x4e8] sm:$0xff] }
 0x5d9   :  { %v15370_v36 = vld [vmem:[%s19675_s1 + $0x528] sm:$0xff]  ;;  %7911 = vmatpush.bf16.msrb.mxu0 %v15362_v13 }
 0x5da   :  { %8035 = vmatpush.bf16.msra.mxu1 %v15370_v36 }
 0x5dd   :  { %v6680_v24 = vpop.f32.mrf.mxu2 }
 0x5de   :  { %v6804_v33 = vpop.f32.mrf.mxu3  ;;  %v6704_v21 = vadd.f32 %v6680_v24, %v6580_v12  ;;  %v6445_v14 = vpop.f32.mrf.mxu0 }
 0x5df   :  { %v6559_v35 = vpop.f32.mrf.mxu1  ;;  %v18507_v16 = vadd.f32 %v6445_v14, %v18427_v44  ;;  %v20134_v44 = vld [vmem:[#allocation152_spill] sm:$0xff] }
 0x5e0   :  { %v6581_v2 = vadd.f32 %v6559_v35, %v18440_v43  ;;  %v18510_v26 = vadd.f32 %v6804_v33, %v6704_v21  ;;  %v15377_v21 = vld [vmem:[%s19675_s1 + $0x560] sm:$0xff] }
 0x5e1   :  { %7069 = vmatmul.bf16.gmra.mxu1 %v20132_v48  ;;  %7426 = vmatmul.bf16.gmra.mxu0 %v20095_v25  ;;  %v15378_v25 = vld [vmem:[%s19675_s1 + $0x568] sm:$0xff]  ;;  %v20135_v14 = vld [vmem:[#allocation136_spill] sm:$0xff] }
 0x5e2   :  { %7193 = vmatmul.bf16.gmra.mxu2 %v20133_v40  ;;  %v20136_v35 = vpack.c.bf16 %v20135_v14, %v20097_v50  ;;  %v15387_v14 = vld [vmem:[%s19675_s1 + $0x5b0] sm:$0xff] }
 0x5e3   :  { %7317 = vmatmul.bf16.gmra.mxu3 %v20134_v44  ;;  %8159 = vmatpush.bf16.msra.mxu2 %v15378_v25  ;;  %v15359_v44 = vld [vmem:[%s19675_s1 + $0x4d0] sm:$0xff]  ;;  %v15358_v25 = vld [vmem:[%s19675_s1 + $0x4c8] sm:$0xff] }
 0x5e5   :  { %v6683_v43 = vpop.f32.mrf.mxu2 }
 0x5e6   :  { %v6807_v27 = vpop.f32.mrf.mxu3  ;;  %v6705_v15 = vadd.f32 %v6683_v43, %v6581_v2  ;;  %v6447_v58 = vpop.f32.mrf.mxu0  ;;  %v20137_v2 = vld [vmem:[#allocation104_spill] sm:$0xff] }
 0x5e7   :  { %v6561_v54 = vpop.f32.mrf.mxu1  ;;  %v18523_v53 = vadd.f32 %v6447_v58, %v18442_v28  ;;  %8160 = vmatpush.bf16.msra.mxu2 %v15377_v21 }
 0x5e8   :  { %v6582_v39 = vadd.f32 %v6561_v54, %v6458_v34  ;;  %v18525_v30 = vadd.f32 %v6807_v27, %v6705_v15  ;;  %v15361_v34 = vld [vmem:[%s19675_s1 + $0x4e0] sm:$0xff] }
 0x5e9   :  { %7912 = vmatpush.bf16.msrb.mxu0 %v15361_v34 }
 0x5ed   :  { %v6685_v28 = vpop.f32.mrf.mxu2  ;;  %7913 = vmatpush.bf16.msrb.mxu0 %v15360_v56 }
 0x5ee   :  { %v6809_v51 = vpop.f32.mrf.mxu3  ;;  %v6706_v38 = vadd.f32 %v6685_v28, %v6582_v39  ;;  %v6450_v12 = vpop.f32.mrf.mxu0  ;;  %v15376_v39 = vld [vmem:[%s19675_s1 + $0x558] sm:$0xff] }
 0x5ef   :  { %v6564_v18 = vpop.f32.mrf.mxu1  ;;  %v18540_v31 = vadd.f32 %v6450_v12, %v18466_v19  ;;  %v20138_v19 = vld [vmem:[#allocation105_spill] sm:$0xff]  ;;  %8161 = vmatpush.bf16.msra.mxu2 %v15376_v39 }
 0x5f0   :  { %v6583_v24 = vadd.f32 %v6564_v18, %v6459_v8  ;;  %v18542_v33 = vadd.f32 %v6809_v51, %v6706_v38  ;;  %v15369_v8 = vld [vmem:[%s19675_s1 + $0x520] sm:$0xff]  ;;  %v15368_v18 = vld [vmem:[%s19675_s1 + $0x518] sm:$0xff] }
 0x5f1   :  { %7431 = vmatmul.bf16.gmra.mxu0 %v20136_v35  ;;  %7545 = vmatmul.bf16.vlgmr.msrb.gmra.mxu1 %v20137_v2 }
 0x5f2   :  { %7669 = vmatmul.bf16.vlgmr.msrb.gmra.mxu2 %v20138_v19  ;;  %8036 = vmatpush.bf16.msra.mxu1 %v15369_v8  ;;  %v15367_v8 = vld [vmem:[%s19675_s1 + $0x510] sm:$0xff] }
 0x5f3   :  { %7793 = vmatmul.bf16.vlgmr.msrb.gmra.mxu3 %v20103_v49  ;;  %7914 = vmatpush.bf16.msrb.mxu0 %v15359_v44 }
 0x5f5   :  { %v6688_v47 = vpop.f32.mrf.mxu2 }
 0x5f6   :  { %v6812_v50 = vpop.f32.mrf.mxu3  ;;  %v6707_v43 = vadd.f32 %v6688_v47, %v6583_v24  ;;  %v6452_v27 = vpop.f32.mrf.mxu0  ;;  %v15388_v24 = vld [vmem:[%s19675_s1 + $0x5b8] sm:$0xff]  ;;  %8037 = vmatpush.bf16.msra.mxu1 %v15368_v18  ;;  %v15386_v47 = vld [vmem:[%s19675_s1 + $0x5a8] sm:$0xff] }
 0x5f7   :  { %v6566_v15 = vpop.f32.mrf.mxu1  ;;  %v18563_v58 = vadd.f32 %v6452_v27, %v18482_v11  ;;  %7915 = vmatpush.bf16.msrb.mxu0 %v15358_v25  ;;  %v15357_v11 = vld [vmem:[%s19675_s1 + $0x4c0] sm:$0xff]  ;;  %8281 = vmatpush.bf16.msra.mxu3 %v15388_v24  ;;  %v15374_v25 = vld [vmem:[%s19675_s1 + $0x548] sm:$0xff] }
 0x5f8   :  { %v6584_v49 = vadd.f32 %v6566_v15, %v18495_v41  ;;  %v18566_v54 = vadd.f32 %v6812_v50, %v6707_v43 }
 0x5fa   :  { %8038 = vmatpush.bf16.msra.mxu1 %v15367_v8 }
 0x5fb   :  { %7916 = vmatpush.bf16.msrb.mxu0 %v15357_v11  ;;  %8282 = vmatpush.bf16.msra.mxu3 %v15387_v14  ;;  %v15384_v11 = vld [vmem:[%s19675_s1 + $0x598] sm:$0xff] }
 0x5fd   :  { %v6690_v13 = vpop.f32.mrf.mxu2 }
 0x5fe   :  { %v6814_v36 = vpop.f32.mrf.mxu3  ;;  %v6708_v41 = vadd.f32 %v6690_v13, %v6584_v49  ;;  %v6926_v51 = vpop.f32.mrf.mxu0  ;;  %v20139_v13 = vld [vmem:[#allocation156_spill] sm:$0xff] }
 0x5ff   :  { %v6569_v28 = vpop.f32.mrf.mxu1  ;;  %v18579_v38 = vadd.f32 %v6926_v51, %v18498_v45  ;;  %v15375_v45 = vld [vmem:[%s19675_s1 + $0x550] sm:$0xff]  ;;  %8283 = vmatpush.bf16.msra.mxu3 %v15386_v47 }
 0x600   :  { %v6585_v34 = vadd.f32 %v6569_v28, %v18507_v16  ;;  %v18581_v12 = vadd.f32 %v6814_v36, %v6708_v41  ;;  %8162 = vmatpush.bf16.msra.mxu2 %v15375_v45  ;;  %v20140_v36 = vld [vmem:[#allocation132_spill] sm:$0xff]  ;;  %v20141_v41 = vld [vmem:[#allocation133_spill] sm:$0xff] }
 0x601   :  { %7436 = vmatmul.bf16.gmra.mxu0 %v20123_v63  ;;  %7550 = vmatmul.bf16.gmra.mxu1 %v20116_v9 }
 0x602   :  { %7674 = vmatmul.bf16.gmra.mxu2 %v20117_v46 }
 0x603   :  { %7798 = vmatmul.bf16.gmra.mxu3 %v20106_v7 }
 0x604   :  { %8163 = vmatpush.bf16.msra.mxu2 %v15374_v25  ;;  %v15412_v25 = vld [vmem:[%s19675_s1 + $0x678] sm:$0xff] }
 0x605   :  { %v6693_v16 = vpop.f32.mrf.mxu2 }
 0x606   :  { %v6817_v21 = vpop.f32.mrf.mxu3  ;;  %v6709_v35 = vadd.f32 %v6693_v16, %v6585_v34  ;;  %v6928_v56 = vpop.f32.mrf.mxu0  ;;  %v15383_v34 = vld [vmem:[%s19675_s1 + $0x590] sm:$0xff] }
 0x607   :  { %v6571_v2 = vpop.f32.mrf.mxu1  ;;  %v18601_v7 = vadd.f32 %v6928_v56, %v18510_v26  ;;  %v15385_v26 = vld [vmem:[%s19675_s1 + $0x5a0] sm:$0xff] }
 0x608   :  { %v6586_v46 = vadd.f32 %v6571_v2, %v18523_v53  ;;  %v18603_v19 = vadd.f32 %v6817_v21, %v6709_v35  ;;  %8284 = vmatpush.bf16.msra.mxu3 %v15385_v26  ;;  %v15373_v35 = vld [vmem:[%s19675_s1 + $0x540] sm:$0xff]  ;;  %v15382_v2 = vld [vmem:[%s19675_s1 + $0x588] sm:$0xff] }
 0x609   :  { %v15365_v56 = vld [vmem:[%s19675_s1 + $0x500] sm:$0xff]  ;;  %8164 = vmatpush.bf16.msra.mxu2 %v15373_v35 }
 0x60c   :  { %8285 = vmatpush.bf16.msra.mxu3 %v15384_v11 }
 0x60d   :  { %v6695_v50 = vpop.f32.mrf.mxu2  ;;  %8653 = vmatpush.bf16.msrb.mxu2 %v15412_v25  ;;  %v15394_v25 = vld [vmem:[%s19675_s1 + $0x5e8] sm:$0xff] }
 0x60e   :  { %v6819_v44 = vpop.f32.mrf.mxu3  ;;  %v6710_v53 = vadd.f32 %v6695_v50, %v6586_v46  ;;  %v6931_v27 = vpop.f32.mrf.mxu0  ;;  %v15381_v46 = vld [vmem:[%s19675_s1 + $0x580] sm:$0xff] }
 0x60f   :  { %v6574_v43 = vpop.f32.mrf.mxu1  ;;  %v18616_v49 = vadd.f32 %v6931_v27, %v18525_v30  ;;  %v15366_v30 = vld [vmem:[%s19675_s1 + $0x508] sm:$0xff]  ;;  %v20144_v27 = vld [vmem:[#allocation142_spill] sm:$0xff] }
 0x610   :  { %v6587_v15 = vadd.f32 %v6574_v43, %v18540_v31  ;;  %v18618_v39 = vadd.f32 %v6819_v44, %v6710_v53  ;;  %v20142_v31 = vld [vmem:[#allocation137_spill] sm:$0xff]  ;;  %8039 = vmatpush.bf16.msra.mxu1 %v15366_v30  ;;  %8286 = vmatpush.bf16.msra.mxu3 %v15383_v34 }
 0x611   :  { %7441 = vmatmul.bf16.gmra.mxu0 %v20139_v13  ;;  %7555 = vmatmul.bf16.gmra.mxu1 %v20140_v36  ;;  %v20143_v43 = vld [vmem:[#allocation141_spill] sm:$0xff] }
 0x612   :  { %7679 = vmatmul.bf16.gmra.mxu2 %v20141_v41 }
 0x613   :  { %7803 = vmatmul.bf16.gmra.mxu3 %v20142_v31 }
 0x614   :  { %8040 = vmatpush.bf16.msra.mxu1 %v15365_v56  ;;  %8287 = vmatpush.bf16.msra.mxu3 %v15382_v2  ;;  %v15395_v2 = vld [vmem:[%s19675_s1 + $0x5f0] sm:$0xff] }
 0x615   :  { %v6698_v28 = vpop.f32.mrf.mxu2  ;;  %v15403_v56 = vld [vmem:[%s19675_s1 + $0x630] sm:$0xff] }
 0x616   :  { %v6822_v51 = vpop.f32.mrf.mxu3  ;;  %v6711_v18 = vadd.f32 %v6698_v28, %v6587_v15  ;;  %v6933_v45 = vpop.f32.mrf.mxu0  ;;  %v20145_v15 = vld [vmem:[#allocation146_spill] sm:$0xff]  ;;  %v15404_v28 = vld [vmem:[%s19675_s1 + $0x638] sm:$0xff] }
 0x617   :  { %v6576_v24 = vpop.f32.mrf.mxu1  ;;  %v6954_v21 = vadd.f32 %v6933_v45, %v18542_v33 }
 0x618   :  { %v6588_v16 = vadd.f32 %v6576_v24, %v18563_v58  ;;  %v18638_v14 = vadd.f32 %v6822_v51, %v6711_v18  ;;  %8288 = vmatpush.bf16.msra.mxu3 %v15381_v46  ;;  %v15411_v51 = vld [vmem:[%s19675_s1 + $0x670] sm:$0xff]  ;;  %8529 = vmatpush.bf16.msrb.mxu1 %v15404_v28 }
 0x619   :  { %8654 = vmatpush.bf16.msrb.mxu2 %v15411_v51 }
 0x61c   :  { %8530 = vmatpush.bf16.msrb.mxu1 %v15403_v56  ;;  %v15391_v56 = vld [vmem:[%s19675_s1 + $0x5d0] sm:$0xff] }
 0x61d   :  { %v6700_v58 = vpop.f32.mrf.mxu2 }
 0x61e   :  { %v6824_v33 = vpop.f32.mrf.mxu3  ;;  %v6712_v8 = vadd.f32 %v6700_v58, %v6588_v16  ;;  %v6936_v47 = vpop.f32.mrf.mxu0  ;;  %v20146_v58 = vld [vmem:[#allocation150_spill] sm:$0xff] }
 0x61f   :  { %v7050_v50 = vpop.f32.mrf.mxu1  ;;  %v18653_v44 = vadd.f32 %v6936_v47, %v18566_v54  ;;  %v15396_v54 = vld [vmem:[%s19675_s1 + $0x5f8] sm:$0xff] }
 0x620   :  { %v7075_v26 = vadd.f32 %v7050_v50, %v18579_v38  ;;  %v18656_v53 = vadd.f32 %v6824_v33, %v6712_v8  ;;  %8405 = vmatpush.bf16.msra.mxu0 %v15396_v54  ;;  %v20147_v33 = vld [vmem:[#allocation151_spill] sm:$0xff]  ;;  %v15402_v54 = vld [vmem:[%s19675_s1 + $0x628] sm:$0xff] }
 0x621   :  { %7560 = vmatmul.bf16.gmra.mxu1 %v20143_v43  ;;  %7917 = vmatmul.bf16.vlgmr.msrb.gmra.mxu0 %v20108_v59 }
 0x622   :  { %7684 = vmatmul.bf16.gmra.mxu2 %v20144_v27  ;;  %8531 = vmatpush.bf16.msrb.mxu1 %v15402_v54 }
 0x623   :  { %7808 = vmatmul.bf16.gmra.mxu3 %v20145_v15  ;;  %v15410_v15 = vld [vmem:[%s19675_s1 + $0x668] sm:$0xff] }
 0x624   :  { %8406 = vmatpush.bf16.msra.mxu0 %v15395_v2  ;;  %8655 = vmatpush.bf16.msrb.mxu2 %v15410_v15  ;;  %v15423_v15 = vld [vmem:[%s19675_s1 + $0x6d0] sm:$0xff] }
 0x625   :  { %v7174_v38 = vpop.f32.mrf.mxu2 }
 0x626   :  { %v7298_v13 = vpop.f32.mrf.mxu3  ;;  %v7199_v36 = vadd.f32 %v7174_v38, %v7075_v26  ;;  %v6938_v11 = vpop.f32.mrf.mxu0  ;;  %v15428_v26 = vld [vmem:[%s19675_s1 + $0x6f8] sm:$0xff] }
 0x627   :  { %v7052_v41 = vpop.f32.mrf.mxu1  ;;  %v18669_v59 = vadd.f32 %v6938_v11, %v18581_v12  ;;  %8813 = vmatpush.bf16.msrb.mxu3 %v15428_v26  ;;  %v15408_v26 = vld [vmem:[%s19675_s1 + $0x658] sm:$0xff] }
 0x628   :  { %v7076_v31 = vadd.f32 %v7052_v41, %v18601_v7  ;;  %v18672_v30 = vadd.f32 %v7298_v13, %v7199_v36  ;;  %8407 = vmatpush.bf16.msra.mxu0 %v15394_v25  ;;  %v15393_v13 = vld [vmem:[%s19675_s1 + $0x5e0] sm:$0xff] }
 0x629   :  { %v15389_v25 = vld [vmem:[%s19675_s1 + $0x5c0] sm:$0xff] }
 0x62c   :  { %8408 = vmatpush.bf16.msra.mxu0 %v15393_v13 }
 0x62d   :  { %v7176_v34 = vpop.f32.mrf.mxu2 }
 0x62e   :  { %v7300_v18 = vpop.f32.mrf.mxu3  ;;  %v7200_v24 = vadd.f32 %v7176_v34, %v7076_v31  ;;  %v6941_v45 = vpop.f32.mrf.mxu0  ;;  %v15426_v31 = vld [vmem:[%s19675_s1 + $0x6e8] sm:$0xff] }
 0x62f   :  { %v7055_v12 = vpop.f32.mrf.mxu1  ;;  %v18681_v16 = vadd.f32 %v6941_v45, %v18603_v19  ;;  %v20148_v19 = vld [vmem:[#allocation154_spill] sm:$0xff]  ;;  %v15392_v45 = vld [vmem:[%s19675_s1 + $0x5d8] sm:$0xff] }
 0x630   :  { %v7077_v7 = vadd.f32 %v7055_v12, %v18616_v49  ;;  %v18684_v35 = vadd.f32 %v7300_v18, %v7200_v24  ;;  %v15409_v18 = vld [vmem:[%s19675_s1 + $0x660] sm:$0xff]  ;;  %v20149_v24 = vld [vmem:[#allocation138_spill] sm:$0xff]  ;;  %v20151_v12 = vld [vmem:[#allocation135_spill] sm:$0xff]  ;;  %8409 = vmatpush.bf16.msra.mxu0 %v15392_v45 }
 0x631   :  { %7565 = vmatmul.bf16.gmra.mxu1 %v20146_v58  ;;  %7922 = vmatmul.bf16.gmra.mxu0 %v20109_v32 }
 0x632   :  { %7689 = vmatmul.bf16.gmra.mxu2 %v20147_v33 }
 0x633   :  { %7813 = vmatmul.bf16.gmra.mxu3 %v20148_v19  ;;  %8656 = vmatpush.bf16.msrb.mxu2 %v15409_v18 }
 0x634   :  { %8410 = vmatpush.bf16.msra.mxu0 %v15391_v56 }
 0x635   :  { %v7179_v49 = vpop.f32.mrf.mxu2 }
 0x636   :  { %v7303_v46 = vpop.f32.mrf.mxu3  ;;  %v7201_v8 = vadd.f32 %v7179_v49, %v7077_v7  ;;  %v6943_v47 = vpop.f32.mrf.mxu0  ;;  %v15425_v7 = vld [vmem:[%s19675_s1 + $0x6e0] sm:$0xff] }
 0x637   :  { %v7057_v50 = vpop.f32.mrf.mxu1  ;;  %v18700_v43 = vadd.f32 %v6943_v47, %v18618_v39  ;;  %v15427_v39 = vld [vmem:[%s19675_s1 + $0x6f0] sm:$0xff]  ;;  %8657 = vmatpush.bf16.msrb.mxu2 %v15408_v26 }
 0x638   :  { %v7078_v27 = vadd.f32 %v7057_v50, %v6954_v21  ;;  %v18702_v32 = vadd.f32 %v7303_v46, %v7201_v8  ;;  %8814 = vmatpush.bf16.msrb.mxu3 %v15427_v39  ;;  %v15424_v46 = vld [vmem:[%s19675_s1 + $0x6d8] sm:$0xff] }
 0x63c   :  { %8815 = vmatpush.bf16.msrb.mxu3 %v15426_v31  ;;  %v20152_v31 = vld [vmem:[#allocation147_spill] sm:$0xff] }
 0x63d   :  { %v7181_v21 = vpop.f32.mrf.mxu2 }
 0x63e   :  { %v7305_v38 = vpop.f32.mrf.mxu3  ;;  %v7202_v36 = vadd.f32 %v7181_v21, %v7078_v27  ;;  %v6946_v11 = vpop.f32.mrf.mxu0  ;;  %v15390_v27 = vld [vmem:[%s19675_s1 + $0x5c8] sm:$0xff] }
 0x63f   :  { %v7060_v41 = vpop.f32.mrf.mxu1  ;;  %v18723_v28 = vadd.f32 %v6946_v11, %v18638_v14  ;;  %v20150_v14 = vld [vmem:[#allocation134_spill] sm:$0xff]  ;;  %8411 = vmatpush.bf16.msra.mxu0 %v15390_v27  ;;  %v15406_v27 = vld [vmem:[%s19675_s1 + $0x648] sm:$0xff] }
 0x640   :  { %v7079_v51 = vadd.f32 %v7060_v41, %v18653_v44  ;;  %v18726_v34 = vadd.f32 %v7305_v38, %v7202_v36  ;;  %v15401_v44 = vld [vmem:[%s19675_s1 + $0x620] sm:$0xff]  ;;  %8816 = vmatpush.bf16.msrb.mxu3 %v15425_v7  ;;  %v15422_v38 = vld [vmem:[%s19675_s1 + $0x6c8] sm:$0xff]  ;;  %v15400_v41 = vld [vmem:[%s19675_s1 + $0x618] sm:$0xff] }
 0x641   :  { %7927 = vmatmul.bf16.gmra.mxu0 %v20149_v24  ;;  %8041 = vmatmul.bf16.vlgmr.msra.gmra.mxu1 %v20116_v9 }
 0x642   :  { %8165 = vmatmul.bf16.vlgmr.msra.gmra.mxu2 %v20150_v14  ;;  %8532 = vmatpush.bf16.msrb.mxu1 %v15401_v44  ;;  %v15419_v44 = vld [vmem:[%s19675_s1 + $0x6b0] sm:$0xff] }
 0x643   :  { %8289 = vmatmul.bf16.vlgmr.msra.gmra.mxu3 %v20151_v12  ;;  %8412 = vmatpush.bf16.msra.mxu0 %v15389_v25  ;;  %v15416_v25 = vld [vmem:[%s19675_s1 + $0x698] sm:$0xff] }
 0x644   :  { %8817 = vmatpush.bf16.msrb.mxu3 %v15424_v46 }
 0x645   :  { %v7184_v9 = vpop.f32.mrf.mxu2 }
 0x646   :  { %v7308_v2 = vpop.f32.mrf.mxu3  ;;  %v7203_v33 = vadd.f32 %v7184_v9, %v7079_v51  ;;  %v6948_v19 = vpop.f32.mrf.mxu0  ;;  %8533 = vmatpush.bf16.msrb.mxu1 %v15400_v41  ;;  %v15420_v51 = vld [vmem:[%s19675_s1 + $0x6b8] sm:$0xff]  ;;  %v15399_v9 = vld [vmem:[%s19675_s1 + $0x610] sm:$0xff] }
 0x647   :  { %v7062_v49 = vpop.f32.mrf.mxu1  ;;  %v18751_v8 = vadd.f32 %v6948_v19, %v18656_v53  ;;  %v15436_v41 = vld [vmem:[%s19675_s1 + $0x738] sm:$0xff] }
 0x648   :  { %v7080_v47 = vadd.f32 %v7062_v49, %v18669_v59  ;;  %v18754_v50 = vadd.f32 %v7308_v2, %v7203_v33  ;;  %8818 = vmatpush.bf16.msrb.mxu3 %v15423_v15  ;;  %v15418_v2 = vld [vmem:[%s19675_s1 + $0x6a8] sm:$0xff]  ;;  %v20153_v15 = vld [vmem:[#allocation155_spill] sm:$0xff]  ;;  %8954 = vmatpush.bf16.msrb.mxu0 %v15436_v41 }
 0x649   :  { %v20159_v41 = vld [vmem:[#allocation157_spill] sm:$0xff] }
 0x64a   :  { %8534 = vmatpush.bf16.msrb.mxu1 %v15399_v9  ;;  %v15434_v9 = vld [vmem:[%s19675_s1 + $0x728] sm:$0xff] }
 0x64c   :  { %8819 = vmatpush.bf16.msrb.mxu3 %v15422_v38 }
 0x64d   :  { %v7186_v53 = vpop.f32.mrf.mxu2 }
 0x64e   :  { %v7310_v59 = vpop.f32.mrf.mxu3  ;;  %v7204_v54 = vadd.f32 %v7186_v53, %v7080_v47  ;;  %v7422_v21 = vpop.f32.mrf.mxu0  ;;  %v15417_v47 = vld [vmem:[%s19675_s1 + $0x6a0] sm:$0xff]  ;;  %v20154_v53 = vld [vmem:[#allocation143_spill] sm:$0xff] }
 0x64f   :  { %v7065_v39 = vpop.f32.mrf.mxu1  ;;  %v18773_v36 = vadd.f32 %v7422_v21, %v18672_v30  ;;  %v15407_v30 = vld [vmem:[%s19675_s1 + $0x650] sm:$0xff] }
 0x650   :  { %v7081_v13 = vadd.f32 %v7065_v39, %v18681_v16  ;;  %v18775_v11 = vadd.f32 %v7310_v59, %v7204_v54  ;;  %v15421_v16 = vld [vmem:[%s19675_s1 + $0x6c0] sm:$0xff]  ;;  %8658 = vmatpush.bf16.msrb.mxu2 %v15407_v30  ;;  %v20155_v59 = vld [vmem:[#allocation158_spill] sm:$0xff] }
 0x651   :  { %7932 = vmatmul.bf16.gmra.mxu0 %v20152_v31  ;;  %8046 = vmatmul.bf16.gmra.mxu1 %v20118_v0 }
 0x652   :  { %8170 = vmatmul.bf16.gmra.mxu2 %v20130_v29  ;;  %8820 = vmatpush.bf16.msrb.mxu3 %v15421_v16  ;;  %v15415_v16 = vld [vmem:[%s19675_s1 + $0x690] sm:$0xff] }
 0x653   :  { %8294 = vmatmul.bf16.gmra.mxu3 %v20131_v17 }
 0x654   :  { %8659 = vmatpush.bf16.msrb.mxu2 %v15406_v27 }
 0x655   :  { %v7189_v0 = vpop.f32.mrf.mxu2 }
 0x656   :  { %v7313_v18 = vpop.f32.mrf.mxu3  ;;  %8874 = vmatpush.bf16.msra.mxu3 %v15420_v51  ;;  %v7205_v24 = vadd.f32 %v7189_v0, %v7081_v13  ;;  %v7424_v45 = vpop.f32.mrf.mxu0  ;;  %v15405_v0 = vld [vmem:[%s19675_s1 + $0x640] sm:$0xff] }
 0x657   :  { %v7067_v17 = vpop.f32.mrf.mxu1  ;;  %v18795_v12 = vadd.f32 %v7424_v45, %v18684_v35 }
 0x658   :  { %v7082_v14 = vadd.f32 %v7067_v17, %v18700_v43  ;;  %v18800_v7 = vadd.f32 %v7313_v18, %v7205_v24  ;;  %v15397_v18 = vld [vmem:[%s19675_s1 + $0x600] sm:$0xff]  ;;  %8660 = vmatpush.bf16.msrb.mxu2 %v15405_v0 }
 0x65a   :  { %8875 = vmatpush.bf16.msra.mxu3 %v15419_v44 }
 0x65d   :  { %v7191_v43 = vpop.f32.mrf.mxu2 }
 0x65e   :  { %v7315_v56 = vpop.f32.mrf.mxu3  ;;  %8876 = vmatpush.bf16.msra.mxu3 %v15418_v2  ;;  %v7206_v35 = vadd.f32 %v7191_v43, %v7082_v14  ;;  %v7427_v19 = vpop.f32.mrf.mxu0 }
 0x65f   :  { %v7070_v33 = vpop.f32.mrf.mxu1  ;;  %v18810_v46 = vadd.f32 %v7427_v19, %v18702_v32  ;;  %v15398_v32 = vld [vmem:[%s19675_s1 + $0x608] sm:$0xff]  ;;  %v20158_v19 = vld [vmem:[#allocation162_spill] sm:$0xff] }
 0x660   :  { %v7083_v49 = vadd.f32 %v7070_v33, %v18723_v28  ;;  %v18815_v26 = vadd.f32 %v7315_v56, %v7206_v35  ;;  %v20156_v28 = vld [vmem:[#allocation159_spill] sm:$0xff]  ;;  %8535 = vmatpush.bf16.msrb.mxu1 %v15398_v32  ;;  %v15413_v56 = vld [vmem:[%s19675_s1 + $0x680] sm:$0xff] }
 0x661   :  { %7937 = vmatmul.bf16.gmra.mxu0 %v20153_v15  ;;  %8051 = vmatmul.bf16.gmra.mxu1 %v20154_v53  ;;  %v20157_v33 = vld [vmem:[#allocation163_spill] sm:$0xff] }
 0x662   :  { %8175 = vmatmul.bf16.gmra.mxu2 %v20155_v59  ;;  %8877 = vmatpush.bf16.msra.mxu3 %v15417_v47 }
 0x663   :  { %8299 = vmatmul.bf16.gmra.mxu3 %v20156_v28  ;;  %v15431_v28 = vld [vmem:[%s19675_s1 + $0x710] sm:$0xff] }
 0x664   :  { %8536 = vmatpush.bf16.msrb.mxu1 %v15397_v18 }
 0x665   :  { %v7194_v54 = vpop.f32.mrf.mxu2 }
 0x666   :  { %v7318_v39 = vpop.f32.mrf.mxu3  ;;  %v7207_v21 = vadd.f32 %v7194_v54, %v7083_v49  ;;  %v7429_v13 = vpop.f32.mrf.mxu0  ;;  %8878 = vmatpush.bf16.msra.mxu3 %v15416_v25 }
 0x667   :  { %v7072_v38 = vpop.f32.mrf.mxu1  ;;  %v18835_v30 = vadd.f32 %v7429_v13, %v18726_v34  ;;  %v15435_v34 = vld [vmem:[%s19675_s1 + $0x730] sm:$0xff] }
 0x668   :  { %v7084_v31 = vadd.f32 %v7072_v38, %v18751_v8  ;;  %v18840_v51 = vadd.f32 %v7318_v39, %v7207_v21  ;;  %v15414_v8 = vld [vmem:[%s19675_s1 + $0x688] sm:$0xff]  ;;  %8955 = vmatpush.bf16.msrb.mxu0 %v15435_v34  ;;  %v18907_v34 = vld [vmem:[%s19676_s2 + $0x1] ss:$0 sm:$0xff] }
 0x669   :  { %v15430_v38 = vld [vmem:[%s19675_s1 + $0x708] sm:$0xff] }
 0x66a   :  { %8879 = vmatpush.bf16.msra.mxu3 %v15415_v16  ;;  %v20161_v16 = vld [vmem:[#allocation168_spill] sm:$0xff] }
 0x66c   :  { %8956 = vmatpush.bf16.msrb.mxu0 %v15434_v9  ;;  %v15451_v9 = vld [vmem:[%s19675_s1 + $0x7b0] sm:$0xff] }
 0x66d   :  { %v7196_v24 = vpop.f32.mrf.mxu2 }
 0x66e   :  { %v7320_v17 = vpop.f32.mrf.mxu3  ;;  %v7208_v45 = vadd.f32 %v7196_v24, %v7084_v31  ;;  %v7432_v14 = vpop.f32.mrf.mxu0  ;;  %8880 = vmatpush.bf16.msra.mxu3 %v15414_v8  ;;  %v20160_v31 = vld [vmem:[#allocation167_spill] sm:$0xff] }
 0x66f   :  { %v7546_v44 = vpop.f32.mrf.mxu1  ;;  %v18858_v2 = vadd.f32 %v7432_v14, %v18754_v50  ;;  %v15433_v50 = vld [vmem:[%s19675_s1 + $0x720] sm:$0xff]  ;;  %v5573_v14 = vadd.f32 %v18907_v34, %v18145_v61  ;;  %v15450_v61 = vld [vmem:[%s19675_s1 + $0x7a8] sm:$0xff] }
 0x670   :  { %v7571_v43 = vadd.f32 %v7546_v44, %v18773_v36  ;;  %v18864_v35 = vadd.f32 %v7320_v17, %v7208_v45  ;;  %8957 = vmatpush.bf16.msrb.mxu0 %v15433_v50 }
 0x671   :  { %8056 = vmatmul.bf16.gmra.mxu1 %v20146_v58  ;;  %8413 = vmatmul.bf16.vlgmr.msra.gmra.mxu0 %v20122_v20  ;;  %v15432_v58 = vld [vmem:[%s19675_s1 + $0x718] sm:$0xff] }
 0x672   :  { %8180 = vmatmul.bf16.gmra.mxu2 %v20157_v33  ;;  %8881 = vmatpush.bf16.msra.mxu3 %v15413_v56  ;;  %v15459_v56 = vld [vmem:[%s19675_s1 + $0x7f0] sm:$0xff] }
 0x673   :  { %8304 = vmatmul.bf16.gmra.mxu3 %v20158_v19  ;;  %v15467_v33 = vld [vmem:[%s19675_s1 + $0x830] sm:$0xff] }
 0x674   :  { %8958 = vmatpush.bf16.msrb.mxu0 %v15432_v58 }
 0x675   :  { %v7670_v36 = vpop.f32.mrf.mxu2 }
 0x676   :  { %v7794_v49 = vpop.f32.mrf.mxu3  ;;  %v7695_v47 = vadd.f32 %v7670_v36, %v7571_v43  ;;  %v7434_v27 = vpop.f32.mrf.mxu0  ;;  %v15460_v43 = vld [vmem:[%s19675_s1 + $0x7f8] sm:$0xff] }
 0x677   :  { %v7548_v15 = vpop.f32.mrf.mxu1  ;;  %v18874_v53 = vadd.f32 %v7434_v27, %v18775_v11  ;;  %9197 = vmatpush.bf16.msra.mxu1 %v15460_v43 }
 0x678   :  { %v7572_v20 = vadd.f32 %v7548_v15, %v18795_v12  ;;  %v18880_v59 = vadd.f32 %v7794_v49, %v7695_v47  ;;  %8959 = vmatpush.bf16.msrb.mxu0 %v15431_v28 }
 0x67b   :  { %9198 = vmatpush.bf16.msra.mxu1 %v15459_v56 }
 0x67c   :  { %8960 = vmatpush.bf16.msrb.mxu0 %v15430_v38 }
 0x67d   :  { %v7672_v32 = vpop.f32.mrf.mxu2 }
 0x67e   :  { %v7796_v25 = vpop.f32.mrf.mxu3  ;;  %v7696_v54 = vadd.f32 %v7672_v32, %v7572_v20  ;;  %v7437_v39 = vpop.f32.mrf.mxu0  ;;  %v15444_v20 = vld [vmem:[%s19675_s1 + $0x778] sm:$0xff]  ;;  %v15449_v32 = vld [vmem:[%s19675_s1 + $0x7a0] sm:$0xff] }
 0x67f   :  { %v7551_v11 = vpop.f32.mrf.mxu1  ;;  %v18886_v21 = vadd.f32 %v7437_v39, %v18800_v7  ;;  %v15429_v7 = vld [vmem:[%s19675_s1 + $0x700] sm:$0xff]  ;;  %v15448_v39 = vld [vmem:[%s19675_s1 + $0x798] sm:$0xff] }
 0x680   :  { %v7573_v12 = vadd.f32 %v7551_v11, %v18810_v46  ;;  %v18892_v13 = vadd.f32 %v7796_v25, %v7696_v54  ;;  %v15452_v46 = vld [vmem:[%s19675_s1 + $0x7b8] sm:$0xff]  ;;  %8961 = vmatpush.bf16.msrb.mxu0 %v15429_v7  ;;  %v15458_v25 = vld [vmem:[%s19675_s1 + $0x7e8] sm:$0xff]  ;;  %v15443_v54 = vld [vmem:[%s19675_s1 + $0x770] sm:$0xff] }
 0x681   :  { %8061 = vmatmul.bf16.gmra.mxu1 %v20159_v41  ;;  %8418 = vmatmul.bf16.gmra.mxu0 %v20123_v63  ;;  %v15457_v11 = vld [vmem:[%s19675_s1 + $0x7e0] sm:$0xff] }
 0x682   :  { %8185 = vmatmul.bf16.gmra.mxu2 %v20160_v31  ;;  %9199 = vmatpush.bf16.msra.mxu1 %v15458_v25  ;;  %v15500_v25 = vld [vmem:[%s19675_s1 + $0x938] sm:$0xff] }
 0x683   :  { %8309 = vmatmul.bf16.gmra.mxu3 %v20161_v16 }
 0x684   :  { %9116 = vmatpush.bf16.msra.mxu0 %v15452_v46 }
 0x685   :  { %v7675_v0 = vpop.f32.mrf.mxu2 }
 0x686   :  { %v7799_v18 = vpop.f32.mrf.mxu3  ;;  %v7697_v63 = vadd.f32 %v7675_v0, %v7573_v12  ;;  %v7439_v8 = vpop.f32.mrf.mxu0  ;;  %v15442_v0 = vld [vmem:[%s19675_s1 + $0x768] sm:$0xff]  ;;  %9200 = vmatpush.bf16.msra.mxu1 %v15457_v11 }
 0x687   :  { %v7553_v24 = vpop.f32.mrf.mxu1  ;;  %v18910_v17 = vadd.f32 %v7439_v8, %v18815_v26  ;;  %v15468_v26 = vld [vmem:[%s19675_s1 + $0x838] sm:$0xff]  ;;  %v15447_v8 = vld [vmem:[%s19675_s1 + $0x790] sm:$0xff] }
 0x688   :  { %v7574_v45 = vadd.f32 %v7553_v24, %v18835_v30  ;;  %v18915_v44 = vadd.f32 %v7799_v18, %v7697_v63  ;;  %9278 = vmatpush.bf16.msra.mxu2 %v15468_v26  ;;  %v5588_v30 = vmax.f32 %v5573_v14, 0.0  ;;  %9117 = vmatpush.bf16.msra.mxu0 %v15451_v9  ;;  %v5572_v18 = vadd.f32 %v18907_v34, %v18132_v42  ;;  %v15441_v42 = vld [vmem:[%s19675_s1 + $0x760] sm:$0xff]  ;;  %v15455_v14 = vld [vmem:[%s19675_s1 + $0x7d0] sm:$0xff] }
 0x689   :  { %v15463_v9 = vld [vmem:[%s19675_s1 + $0x810] sm:$0xff] }
 0x68a   :  { %v8747_v58 = vpack.c.bf16 %v5588_v30, %v5588_v30  ;;  %v5587_v24 = vmax.f32 %v5572_v18, 0.0 }
 0x68c   :  { %9279 = vmatpush.bf16.msra.mxu2 %v15467_v33  ;;  %9118 = vmatpush.bf16.msra.mxu0 %v15450_v61 }
 0x68d   :  { %v7677_v19 = vpop.f32.mrf.mxu2 }
 0x68e   :  { %v7801_v50 = vpop.f32.mrf.mxu3  ;;  %v7698_v36 = vadd.f32 %v7677_v19, %v7574_v45  ;;  %v7442_v49 = vpop.f32.mrf.mxu0  ;;  %v15446_v45 = vld [vmem:[%s19675_s1 + $0x788] sm:$0xff] }
 0x68f   :  { %v7556_v47 = vpop.f32.mrf.mxu1  ;;  %v18936_v27 = vadd.f32 %v7442_v49, %v18840_v51  ;;  %v15466_v51 = vld [vmem:[%s19675_s1 + $0x828] sm:$0xff]  ;;  %v15445_v49 = vld [vmem:[%s19675_s1 + $0x780] sm:$0xff] }
 0x690   :  { %v7575_v15 = vadd.f32 %v7556_v47, %v18858_v2  ;;  %v18942_v28 = vadd.f32 %v7801_v50, %v7698_v36  ;;  %v20162_v2 = vld [vmem:[#allocation160_spill] sm:$0xff]  ;;  %9119 = vmatpush.bf16.msra.mxu0 %v15449_v32  ;;  %9280 = vmatpush.bf16.msra.mxu2 %v15466_v51  ;;  %v15440_v50 = vld [vmem:[%s19675_s1 + $0x758] sm:$0xff]  ;;  %v8728_v36 = vpack.c.bf16 %v5587_v24, %v5587_v24  ;;  %v15454_v47 = vld [vmem:[%s19675_s1 + $0x7c8] sm:$0xff] }
 0x691   :  { %8423 = vmatmul.bf16.gmra.mxu0 %v20162_v2  ;;  %8537 = vmatmul.bf16.vlgmr.msrb.gmra.mxu1 %v20129_v10  ;;  %v15465_v10 = vld [vmem:[%s19675_s1 + $0x820] sm:$0xff]  ;;  %v15498_v24 = vld [vmem:[%s19675_s1 + $0x928] sm:$0xff] }
 0x692   :  { %8661 = vmatmul.bf16.vlgmr.msrb.gmra.mxu2 %v20130_v29 }
 0x693   :  { %8821 = vmatmul.bf16.vlgmr.msrb.gmra.mxu3 %v8747_v58  ;;  %v15461_v58 = vld [vmem:[%s19675_s1 + $0x800] sm:$0xff] }
 0x694   :  { %9035 = vmatpush.bf16.msrb.mxu3 %v15444_v20  ;;  %9120 = vmatpush.bf16.msra.mxu0 %v15448_v39  ;;  %v15453_v20 = vld [vmem:[%s19675_s1 + $0x7c0] sm:$0xff] }
 0x695   :  { %v7680_v29 = vpop.f32.mrf.mxu2  ;;  %9281 = vmatpush.bf16.msra.mxu2 %v15465_v10  ;;  %v15438_v10 = vld [vmem:[%s19675_s1 + $0x748] sm:$0xff] }
 0x696   :  { %v7804_v12 = vpop.f32.mrf.mxu3  ;;  %v7699_v38 = vadd.f32 %v7680_v29, %v7575_v15  ;;  %v7444_v41 = vpop.f32.mrf.mxu0  ;;  %v15439_v15 = vld [vmem:[%s19675_s1 + $0x750] sm:$0xff]  ;;  %v5575_v29 = vadd.f32 %v18907_v34, %v18175_v23  ;;  %v15476_v23 = vld [vmem:[%s19675_s1 + $0x878] sm:$0xff] }
 0x697   :  { %v7558_v16 = vpop.f32.mrf.mxu1  ;;  %v18969_v7 = vadd.f32 %v7444_v41, %v18864_v35  ;;  %v15456_v35 = vld [vmem:[%s19675_s1 + $0x7d8] sm:$0xff] }
 0x698   :  { %9036 = vmatpush.bf16.msrb.mxu3 %v15443_v54  ;;  %v7576_v46 = vadd.f32 %v7558_v16, %v18874_v53  ;;  %v18977_v63 = vadd.f32 %v7804_v12, %v7699_v38  ;;  %v15464_v53 = vld [vmem:[%s19675_s1 + $0x818] sm:$0xff]  ;;  %9201 = vmatpush.bf16.msra.mxu1 %v15456_v35  ;;  %v15437_v38 = vld [vmem:[%s19675_s1 + $0x740] sm:$0xff]  ;;  %v5590_v41 = vmax.f32 %v5575_v29, 0.0 }
 0x699   :  { %9121 = vmatpush.bf16.msra.mxu0 %v15447_v8  ;;  %9282 = vmatpush.bf16.msra.mxu2 %v15464_v53  ;;  %v15484_v29 = vld [vmem:[%s19675_s1 + $0x8b8] sm:$0xff] }
 0x69c   :  { %9037 = vmatpush.bf16.msrb.mxu3 %v15442_v0  ;;  %9202 = vmatpush.bf16.msra.mxu1 %v15455_v14  ;;  %v15490_v0 = vld [vmem:[%s19675_s1 + $0x8e8] sm:$0xff]  ;;  %v15475_v14 = vld [vmem:[%s19675_s1 + $0x870] sm:$0xff] }
 0x69d   :  { %v7682_v43 = vpop.f32.mrf.mxu2  ;;  %9122 = vmatpush.bf16.msra.mxu0 %v15446_v45  ;;  %9283 = vmatpush.bf16.msra.mxu2 %v15463_v9  ;;  %v8969_v45 = vpack.c.bf16 %v5590_v41, %v5590_v41  ;;  %v20164_v9 = vld [vmem:[#allocation169_spill] sm:$0xff] }
 0x69e   :  { %v19000_v26 = vpop.f32.mrf.mxu3  ;;  %v19002_v30 = vadd.f32 %v7682_v43, %v7576_v46  ;;  %v7918_v56 = vpop.f32.mrf.mxu0  ;;  %v20165_v43 = vld [vmem:[#allocation161_spill] sm:$0xff] }
 0x69f   :  { %v7561_v61 = vpop.f32.mrf.mxu1  ;;  %v19006_v19 = vadd.f32 %v7918_v56, %v18880_v59  ;;  %v15462_v59 = vld [vmem:[%s19675_s1 + $0x808] sm:$0xff] }
 0x6a0   :  { %9038 = vmatpush.bf16.msrb.mxu3 %v15441_v42  ;;  %v7577_v33 = vadd.f32 %v7561_v61, %v18886_v21  ;;  %v20163_v21 = vld [vmem:[#allocation165_spill] sm:$0xff]  ;;  %9203 = vmatpush.bf16.msra.mxu1 %v15454_v47  ;;  %v15497_v61 = vld [vmem:[%s19675_s1 + $0x920] sm:$0xff] }
 0x6a1   :  { %8428 = vmatmul.bf16.gmra.mxu0 %v20163_v21  ;;  %8542 = vmatmul.bf16.gmra.mxu1 %v20132_v48  ;;  %v15474_v56 = vld [vmem:[%s19675_s1 + $0x868] sm:$0xff]  ;;  %v5574_v21 = vadd.f32 %v18907_v34, %v18156_v60 }
 0x6a2   :  { %8666 = vmatmul.bf16.gmra.mxu2 %v20133_v40  ;;  %9123 = vmatpush.bf16.msra.mxu0 %v15445_v49  ;;  %v15492_v40 = vld [vmem:[%s19675_s1 + $0x8f8] sm:$0xff]  ;;  %v15494_v41 = vld [vmem:[%s19675_s1 + $0x908] sm:$0xff] }
 0x6a3   :  { %8882 = vmatmul.bf16.vlgmr.msra.gmra.mxu3 %v8728_v36  ;;  %9284 = vmatpush.bf16.msra.mxu2 %v15462_v59  ;;  %v15488_v36 = vld [vmem:[%s19675_s1 + $0x8d8] sm:$0xff]  ;;  %v5589_v60 = vmax.f32 %v5574_v21, 0.0 }
 0x6a4   :  { %9039 = vmatpush.bf16.msrb.mxu3 %v15440_v50  ;;  %9204 = vmatpush.bf16.msra.mxu1 %v15453_v20  ;;  %v15496_v20 = vld [vmem:[%s19675_s1 + $0x918] sm:$0xff] }
 0x6a5   :  { %v7685_v48 = vpop.f32.mrf.mxu2 }
 0x6a6   :  { %v7809_v32 = vpop.f32.mrf.mxu3  ;;  %v7701_v51 = vadd.f32 %v7685_v48, %v7577_v33  ;;  %v7920_v54 = vpop.f32.mrf.mxu0  ;;  %v15473_v48 = vld [vmem:[%s19675_s1 + $0x860] sm:$0xff] }
 0x6a7   :  { %v7563_v2 = vpop.f32.mrf.mxu1  ;;  %v19040_v11 = vadd.f32 %v7920_v54, %v18892_v13  ;;  %9285 = vmatpush.bf16.msra.mxu2 %v15461_v58  ;;  %v15499_v13 = vld [vmem:[%s19675_s1 + $0x930] sm:$0xff] }
 0x6a8   :  { %9040 = vmatpush.bf16.msrb.mxu3 %v15439_v15  ;;  %v7578_v39 = vadd.f32 %v7563_v2, %v18910_v17  ;;  %v19047_v12 = vadd.f32 %v7809_v32, %v7701_v51  ;;  %9521 = vmatpush.bf16.msrb.mxu1 %v15492_v40  ;;  %v15491_v17 = vld [vmem:[%s19675_s1 + $0x8f0] sm:$0xff]  ;;  %v15472_v40 = vld [vmem:[%s19675_s1 + $0x858] sm:$0xff]  ;;  %v15486_v2 = vld [vmem:[%s19675_s1 + $0x8c8] sm:$0xff] }
 0x6a9   :  { %v15487_v32 = vld [vmem:[%s19675_s1 + $0x8d0] sm:$0xff] }
 0x6ab   :  { %9602 = vmatpush.bf16.msrb.mxu2 %v15500_v25 }
 0x6ac   :  { %9041 = vmatpush.bf16.msrb.mxu3 %v15438_v10  ;;  %9522 = vmatpush.bf16.msrb.mxu1 %v15491_v17  ;;  %v8888_v17 = vpack.c.bf16 %v5589_v60, %v5589_v60 }
 0x6ad   :  { %v7687_v16 = vpop.f32.mrf.mxu2 }
 0x6ae   :  { %v19061_v46 = vpop.f32.mrf.mxu3  ;;  %v19066_v18 = vadd.f32 %v7687_v16, %v7578_v39  ;;  %v7923_v35 = vpop.f32.mrf.mxu0  ;;  %v20167_v16 = vld [vmem:[#allocation166_spill] sm:$0xff] }
 0x6af   :  { %9603 = vmatpush.bf16.msrb.mxu2 %v15499_v13  ;;  %v7566_v8 = vpop.f32.mrf.mxu1  ;;  %v19070_v42 = vadd.f32 %v7923_v35, %v18915_v44  ;;  %v15489_v44 = vld [vmem:[%s19675_s1 + $0x8e0] sm:$0xff]  ;;  %v5579_v35 = vadd.f32 %v18907_v34, %v18248_v62 }
 0x6b0   :  { %9042 = vmatpush.bf16.msrb.mxu3 %v15437_v38  ;;  %v7579_v53 = vadd.f32 %v7566_v8, %v18936_v27  ;;  %9523 = vmatpush.bf16.msrb.mxu1 %v15490_v0  ;;  %v20166_v27 = vld [vmem:[#allocation164_spill] sm:$0xff]  ;;  %v15470_v8 = vld [vmem:[%s19675_s1 + $0x848] sm:$0xff] }
 0x6b1   :  { %8433 = vmatmul.bf16.gmra.mxu0 %v20164_v9  ;;  %8547 = vmatmul.bf16.gmra.mxu1 %v20165_v43  ;;  %v15493_v0 = vld [vmem:[%s19675_s1 + $0x900] sm:$0xff]  ;;  %v15482_v9 = vld [vmem:[%s19675_s1 + $0x8a8] sm:$0xff] }
 0x6b2   :  { %8671 = vmatmul.bf16.gmra.mxu2 %v20166_v27  ;;  %v15469_v62 = vld [vmem:[%s19675_s1 + $0x840] sm:$0xff] }
 0x6b3   :  { %9043 = vmatmul.bf16.vlgmr.msrb.gmra.mxu3 %v8969_v45  ;;  %9604 = vmatpush.bf16.msrb.mxu2 %v15498_v24 }
 0x6b4   :  { %9359 = vmatpush.bf16.msra.mxu3 %v15476_v23  ;;  %9524 = vmatpush.bf16.msrb.mxu1 %v15489_v44  ;;  %v15471_v23 = vld [vmem:[%s19675_s1 + $0x850] sm:$0xff]  ;;  %v5576_v44 = vadd.f32 %v18907_v34, %v18192_v4 }
 0x6b5   :  { %v7690_v33 = vpop.f32.mrf.mxu2 }
 0x6b6   :  { %v7814_v50 = vpop.f32.mrf.mxu3  ;;  %v7703_v49 = vadd.f32 %v7690_v33, %v7579_v53  ;;  %v19093_v59 = vpop.f32.mrf.mxu0  ;;  %v5591_v33 = vmax.f32 %v5576_v44, 0.0 }
 0x6b7   :  { %v7568_v47 = vpop.f32.mrf.mxu1  ;;  %9605 = vmatpush.bf16.msrb.mxu2 %v15497_v61  ;;  %v5594_v61 = vmax.f32 %v5579_v35, 0.0 }
 0x6b8   :  { %9360 = vmatpush.bf16.msra.mxu3 %v15475_v14  ;;  %v7580_v15 = vadd.f32 %v7568_v47, %v18969_v7  ;;  %v19101_v58 = vadd.f32 %v7814_v50, %v7703_v49  ;;  %9525 = vmatpush.bf16.msrb.mxu1 %v15488_v36  ;;  %v15495_v7 = vld [vmem:[%s19675_s1 + $0x910] sm:$0xff]  ;;  %v9050_v60 = vpack.c.bf16 %v5591_v33, %v5591_v33 }
 0x6b9   :  { %v9293_v4 = vpack.c.bf16 %v5594_v61, %v5594_v61  ;;  %v15507_v49 = vld [vmem:[%s19675_s1 + $0x970] sm:$0xff]  ;;  %v15524_v61 = vld [vmem:[%s19675_s1 + $0x9f8] sm:$0xff] }
 0x6bb   :  { %9606 = vmatpush.bf16.msrb.mxu2 %v15496_v20 }
 0x6bc   :  { %9361 = vmatpush.bf16.msra.mxu3 %v15474_v56  ;;  %9526 = vmatpush.bf16.msrb.mxu1 %v15487_v32  ;;  %v15508_v56 = vld [vmem:[%s19675_s1 + $0x978] sm:$0xff] }
 0x6bd   :  { %v7692_v25 = vpop.f32.mrf.mxu2  ;;  %v15480_v32 = vld [vmem:[%s19675_s1 + $0x898] sm:$0xff] }
 0x6be   :  { %v19115_v51 = vpop.f32.mrf.mxu3  ;;  %v19120_v54 = vadd.f32 %v7692_v25, %v7580_v15  ;;  %v7928_v39 = vpop.f32.mrf.mxu0  ;;  %v20169_v25 = vld [vmem:[#allocation171_spill] sm:$0xff] }
 0x6bf   :  { %v8042_v10 = vpop.f32.mrf.mxu1  ;;  %v19126_v13 = vadd.f32 %v7928_v39, %v18977_v63  ;;  %9607 = vmatpush.bf16.msrb.mxu2 %v15495_v7  ;;  %v15485_v63 = vld [vmem:[%s19675_s1 + $0x8c0] sm:$0xff]  ;;  %v20168_v7 = vld [vmem:[#allocation170_spill] sm:$0xff] }
 0x6c0   :  { %9362 = vmatpush.bf16.msra.mxu3 %v15473_v48  ;;  %v8067_v38 = vadd.f32 %v8042_v10, %v19006_v19  ;;  %9527 = vmatpush.bf16.msrb.mxu1 %v15486_v2  ;;  %v15483_v19 = vld [vmem:[%s19675_s1 + $0x8b0] sm:$0xff]  ;;  %v15505_v39 = vld [vmem:[%s19675_s1 + $0x960] sm:$0xff] }
 0x6c1   :  { %8552 = vmatmul.bf16.gmra.mxu1 %v20167_v16  ;;  %8962 = vmatmul.bf16.vlgmr.msrb.gmra.mxu0 %v8888_v17  ;;  %v5580_v16 = vadd.f32 %v18907_v34, %v18262_v6  ;;  %v15516_v6 = vld [vmem:[%s19675_s1 + $0x9b8] sm:$0xff] }
 0x6c2   :  { %8676 = vmatmul.bf16.gmra.mxu2 %v20160_v31  ;;  %9440 = vmatpush.bf16.msrb.mxu0 %v15484_v29 }
 0x6c3   :  { %9608 = vmatpush.bf16.msrb.mxu2 %v15494_v41  ;;  %v15478_v41 = vld [vmem:[%s19675_s1 + $0x888] sm:$0xff]  ;;  %v5595_v35 = vmax.f32 %v5580_v16, 0.0  ;;  %v15539_v16 = vld [vmem:[%s19675_s1 + $0xa70] sm:$0xff] }
 0x6c4   :  { %9363 = vmatpush.bf16.msra.mxu3 %v15472_v40  ;;  %9528 = vmatpush.bf16.msrb.mxu1 %v15485_v63  ;;  %v15506_v40 = vld [vmem:[%s19675_s1 + $0x968] sm:$0xff] }
 0x6c5   :  { %v8166_v31 = vpop.f32.mrf.mxu2  ;;  %v9374_v33 = vpack.c.bf16 %v5595_v35, %v5595_v35 }
 0x6c6   :  { %v8290_v53 = vpop.f32.mrf.mxu3  ;;  %v8191_v24 = vadd.f32 %v8166_v31, %v8067_v38  ;;  %9441 = vmatpush.bf16.msrb.mxu0 %v15483_v19  ;;  %v19151_v45 = vpop.f32.mrf.mxu0  ;;  %v5577_v38 = vadd.f32 %v18907_v34, %v18213_v52  ;;  %v15504_v19 = vld [vmem:[%s19675_s1 + $0x958] sm:$0xff]  ;;  %v7946_v52 = vadd.f32 %v19093_v59, %v18942_v28  ;;  %v15503_v28 = vld [vmem:[%s19675_s1 + $0x950] sm:$0xff] }
 0x6c7   :  { %v8044_v14 = vpop.f32.mrf.mxu1  ;;  %9609 = vmatpush.bf16.msrb.mxu2 %v15493_v0 }
 0x6c8   :  { %9364 = vmatpush.bf16.msra.mxu3 %v15471_v23  ;;  %v8068_v43 = vadd.f32 %v8044_v14, %v19040_v11  ;;  %v19159_v27 = vadd.f32 %v8290_v53, %v8191_v24  ;;  %v15481_v11 = vld [vmem:[%s19675_s1 + $0x8a0] sm:$0xff]  ;;  %v5578_v23 = vadd.f32 %v18907_v34, %v18227_v22  ;;  %v5592_v0 = vmax.f32 %v5577_v38, 0.0 }
 0x6ca   :  { %9442 = vmatpush.bf16.msrb.mxu0 %v15482_v9  ;;  %v5593_v22 = vmax.f32 %v5578_v23, 0.0 }
 0x6cc   :  { %9365 = vmatpush.bf16.msra.mxu3 %v15470_v8  ;;  %v15477_v8 = vld [vmem:[%s19675_s1 + $0x880] sm:$0xff] }
 0x6cd   :  { %v8168_v50 = vpop.f32.mrf.mxu2 }
 0x6ce   :  { %v19170_v36 = vpop.f32.mrf.mxu3  ;;  %v19175_v47 = vadd.f32 %v8168_v50, %v8068_v43  ;;  %9443 = vmatpush.bf16.msrb.mxu0 %v15481_v11  ;;  %v7933_v21 = vpop.f32.mrf.mxu0  ;;  %v9131_v43 = vpack.c.bf16 %v5592_v0, %v5592_v0  ;;  %v9212_v11 = vpack.c.bf16 %v5593_v22, %v5593_v22  ;;  %v5583_v50 = vadd.f32 %v18907_v34, %v18322_v57 }
 0x6cf   :  { %v8047_v15 = vpop.f32.mrf.mxu1  ;;  %v19178_v20 = vadd.f32 %v7933_v21, %v19047_v12  ;;  %v15479_v12 = vld [vmem:[%s19675_s1 + $0x890] sm:$0xff] }
 0x6d0   :  { %9366 = vmatpush.bf16.msra.mxu3 %v15469_v62  ;;  %v8069_v48 = vadd.f32 %v8047_v15, %v19070_v42  ;;  %v15531_v21 = vld [vmem:[%s19675_s1 + $0xa30] sm:$0xff]  ;;  %v15514_v15 = vld [vmem:[%s19675_s1 + $0x9a8] sm:$0xff] }
 0x6d1   :  { %8557 = vmatmul.bf16.gmra.mxu1 %v20168_v7  ;;  %9124 = vmatmul.bf16.vlgmr.msra.gmra.mxu0 %v9050_v60  ;;  %v5598_v60 = vmax.f32 %v5583_v50, 0.0 }
 0x6d2   :  { %8681 = vmatmul.bf16.gmra.mxu2 %v20169_v25  ;;  %9444 = vmatpush.bf16.msrb.mxu0 %v15480_v32  ;;  %v15501_v32 = vld [vmem:[%s19675_s1 + $0x940] sm:$0xff] }
 0x6d3   :  { %9367 = vmatmul.bf16.vlgmr.msra.gmra.mxu3 %v9293_v4 }
 0x6d4   :  { %9683 = vmatpush.bf16.msrb.mxu3 %v15508_v56  ;;  %v15532_v56 = vld [vmem:[%s19675_s1 + $0xa38] sm:$0xff] }
 0x6d5   :  { %v8171_v42 = vpop.f32.mrf.mxu2 }
 0x6d6   :  { %v8295_v2 = vpop.f32.mrf.mxu3  ;;  %v8193_v10 = vadd.f32 %v8171_v42, %v8069_v48  ;;  %v19195_v29 = vpop.f32.mrf.mxu0  ;;  %9445 = vmatpush.bf16.msrb.mxu0 %v15479_v12  ;;  %v15540_v12 = vld [vmem:[%s19675_s1 + $0xa78] sm:$0xff]  ;;  %v5581_v42 = vadd.f32 %v18907_v34, %v18289_v55  ;;  %v15513_v55 = vld [vmem:[%s19675_s1 + $0x9a0] sm:$0xff] }
 0x6d7   :  { %v8049_v17 = vpop.f32.mrf.mxu1 }
 0x6d8   :  { %9684 = vmatpush.bf16.msrb.mxu3 %v15507_v49  ;;  %v19206_v63 = vadd.f32 %v8295_v2, %v8193_v10  ;;  %v8070_v31 = vadd.f32 %v8049_v17, %v7946_v52  ;;  %v15523_v49 = vld [vmem:[%s19675_s1 + $0x9f0] sm:$0xff]  ;;  %v15522_v2 = vld [vmem:[%s19675_s1 + $0x9e8] sm:$0xff]  ;;  %v5582_v10 = vadd.f32 %v18907_v34, %v18306_v5  ;;  %v7824_v17 = vadd.f32 %v19000_v26, %v19002_v30  ;;  %v15521_v26 = vld [vmem:[%s19675_s1 + $0x9e0] sm:$0xff] }
 0x6d9   :  { %v5596_v5 = vmax.f32 %v5581_v42, 0.0  ;;  %v15529_v30 = vld [vmem:[%s19675_s1 + $0xa20] sm:$0xff] }
 0x6da   :  { %9446 = vmatpush.bf16.msrb.mxu0 %v15478_v41  ;;  %v9617_v41 = vpack.c.bf16 %v5598_v60, %v5598_v60  ;;  %v7948_v23 = vadd.f32 %v19151_v45, %v7824_v17  ;;  %v15512_v45 = vld [vmem:[%s19675_s1 + $0x998] sm:$0xff]  ;;  %v15509_v60 = vld [vmem:[%s19675_s1 + $0x980] sm:$0xff] }
 0x6dc   :  { %9685 = vmatpush.bf16.msrb.mxu3 %v15506_v40 }
 0x6dd   :  { %v8173_v53 = vpop.f32.mrf.mxu2 }
 0x6de   :  { %v8297_v24 = vpop.f32.mrf.mxu3  ;;  %v8194_v59 = vadd.f32 %v8173_v53, %v8070_v31  ;;  %v7938_v14 = vpop.f32.mrf.mxu0  ;;  %9447 = vmatpush.bf16.msrb.mxu0 %v15477_v8  ;;  %v9455_v53 = vpack.c.bf16 %v5596_v5, %v5596_v5 }
 0x6df   :  { %v8052_v9 = vpop.f32.mrf.mxu1  ;;  %v19223_v44 = vadd.f32 %v7938_v14, %v19101_v58  ;;  %v15515_v58 = vld [vmem:[%s19675_s1 + $0x9b0] sm:$0xff] }
 0x6e0   :  { %9686 = vmatpush.bf16.msrb.mxu3 %v15505_v39  ;;  %v8071_v62 = vadd.f32 %v8052_v9, %v19126_v13  ;;  %v19232_v4 = vadd.f32 %v8297_v24, %v8194_v59  ;;  %v15502_v13 = vld [vmem:[%s19675_s1 + $0x948] sm:$0xff]  ;;  %v15528_v59 = vld [vmem:[%s19675_s1 + $0xa18] sm:$0xff] }
 0x6e1   :  { %9205 = vmatmul.bf16.vlgmr.msra.gmra.mxu1 %v9131_v43  ;;  %9448 = vmatmul.bf16.vlgmr.msrb.gmra.mxu0 %v9374_v33  ;;  %v15530_v39 = vld [vmem:[%s19675_s1 + $0xa28] sm:$0xff]  ;;  %v15511_v43 = vld [vmem:[%s19675_s1 + $0x990] sm:$0xff] }
 0x6e2   :  { %9764 = vmatpush.bf16.msra.mxu0 %v15516_v6  ;;  %9286 = vmatmul.bf16.vlgmr.msra.gmra.mxu2 %v9212_v11  ;;  %v15538_v6 = vld [vmem:[%s19675_s1 + $0xa68] sm:$0xff]  ;;  %v5584_v11 = vadd.f32 %v18907_v34, %v18334_v3 }
 0x6e3   :  { %9845 = vmatpush.bf16.msra.mxu1 %v15524_v61  ;;  %9926 = vmatpush.bf16.msra.mxu2 %v15532_v56  ;;  %v15527_v61 = vld [vmem:[%s19675_s1 + $0xa10] sm:$0xff]  ;;  %v15510_v56 = vld [vmem:[%s19675_s1 + $0x988] sm:$0xff] }
 0x6e4   :  { %9687 = vmatpush.bf16.msrb.mxu3 %v15504_v19  ;;  %v5597_v19 = vmax.f32 %v5582_v10, 0.0  ;;  %v15526_v3 = vld [vmem:[%s19675_s1 + $0xa08] sm:$0xff] }
 0x6e5   :  { %v8176_v48 = vpop.f32.mrf.mxu2 }
 0x6e6   :  { %9765 = vmatpush.bf16.msra.mxu0 %v15515_v58  ;;  %v8300_v57 = vpop.f32.mrf.mxu3  ;;  %v8195_v7 = vadd.f32 %v8176_v48, %v8071_v62  ;;  %v19254_v40 = vpop.f32.mrf.mxu0  ;;  %v9536_v14 = vpack.c.bf16 %v5597_v19, %v5597_v19  ;;  %v15519_v62 = vld [vmem:[%s19675_s1 + $0x9d0] sm:$0xff]  ;;  %v5585_v48 = vadd.f32 %v18907_v34, %v18350_v37 }
 0x6e7   :  { %v8054_v25 = vpop.f32.mrf.mxu1  ;;  %9846 = vmatpush.bf16.msra.mxu1 %v15523_v49  ;;  %9927 = vmatpush.bf16.msra.mxu2 %v15531_v21  ;;  %v15536_v21 = vld [vmem:[%s19675_s1 + $0xa58] sm:$0xff] }
 0x6e8   :  { %9688 = vmatpush.bf16.msrb.mxu3 %v15503_v28  ;;  %v19271_v38 = vadd.f32 %v8300_v57, %v8195_v7  ;;  %v8072_v52 = vadd.f32 %v8054_v25, %v7948_v23  ;;  %v15520_v28 = vld [vmem:[%s19675_s1 + $0x9d8] sm:$0xff]  ;;  %v7826_v57 = vadd.f32 %v19061_v46, %v19066_v18  ;;  %v5599_v7 = vmax.f32 %v5584_v11, 0.0  ;;  %v15535_v46 = vld [vmem:[%s19675_s1 + $0xa50] sm:$0xff]  ;;  %v15517_v18 = vld [vmem:[%s19675_s1 + $0x9c0] sm:$0xff] }
 0x6e9   :  { %v5586_v25 = vadd.f32 %v18907_v34, %v18368_v1  ;;  %v5600_v42 = vmax.f32 %v5585_v48, 0.0  ;;  %v15525_v1 = vld [vmem:[%s19675_s1 + $0xa00] sm:$0xff]  ;;  %v15564_v23 = vld [vmem:[%s19675_s1 + $0xb38] sm:$0xff] }
 0x6ea   :  { %9766 = vmatpush.bf16.msra.mxu0 %v15514_v15  ;;  %v15518_v15 = vld [vmem:[%s19675_s1 + $0x9c8] sm:$0xff]  ;;  %v7950_v37 = vadd.f32 %v19195_v29, %v7826_v57  ;;  %v15556_v29 = vld [vmem:[%s19675_s1 + $0xaf8] sm:$0xff]  ;;  %v15553_v11 = vld [vmem:[%s19675_s1 + $0xae0] sm:$0xff] }
 0x6eb   :  { %9847 = vmatpush.bf16.msra.mxu1 %v15522_v2  ;;  %9928 = vmatpush.bf16.msra.mxu2 %v15530_v39  ;;  %v9698_v39 = vpack.c.bf16 %v5599_v7, %v5599_v7  ;;  %v5601_v10 = vmax.f32 %v5586_v25, 0.0  ;;  %v15560_v48 = vld [vmem:[%s19675_s1 + $0xb18] sm:$0xff]  ;;  %v15569_v25 = vld [vmem:[%s19675_s1 + $0xb60] sm:$0xff] }
 0x6ec   :  { %9689 = vmatpush.bf16.msrb.mxu3 %v15502_v13 }
 0x6ed   :  { %v8178_v0 = vpop.f32.mrf.mxu2 }
 0x6ee   :  { %9767 = vmatpush.bf16.msra.mxu0 %v15513_v55  ;;  %v8302_v8 = vpop.f32.mrf.mxu3  ;;  %v8196_v22 = vadd.f32 %v8178_v0, %v8072_v52  ;;  %v19289_v31 = vpop.f32.mrf.mxu0  ;;  %v9779_v52 = vpack.c.bf16 %v5600_v42, %v5600_v42  ;;  %v15555_v0 = vld [vmem:[%s19675_s1 + $0xaf0] sm:$0xff] }
 0x6ef   :  { %v8057_v35 = vpop.f32.mrf.mxu1  ;;  %9848 = vmatpush.bf16.msra.mxu1 %v15521_v26  ;;  %9929 = vmatpush.bf16.msra.mxu2 %v15529_v30  ;;  %v15534_v30 = vld [vmem:[%s19675_s1 + $0xa48] sm:$0xff]  ;;  %v8439_v42 = vadd.f32 %v19289_v31, %v19159_v27 }
 0x6f0   :  { %9690 = vmatpush.bf16.msrb.mxu3 %v15501_v32  ;;  %v8073_v24 = vadd.f32 %v8057_v35, %v19178_v20  ;;  %v19301_v9 = vadd.f32 %v8302_v8, %v8196_v22  ;;  %v15537_v20 = vld [vmem:[%s19675_s1 + $0xa60] sm:$0xff]  ;;  %v9860_v8 = vpack.c.bf16 %v5601_v10, %v5601_v10  ;;  %v15546_v22 = vld [vmem:[%s19675_s1 + $0xaa8] sm:$0xff] }
 0x6f1   :  { %9529 = vmatmul.bf16.vlgmr.msrb.gmra.mxu1 %v9455_v53  ;;  %v15533_v35 = vld [vmem:[%s19675_s1 + $0xa40] sm:$0xff]  ;;  %v15572_v53 = vld [vmem:[%s19675_s1 + $0xb78] sm:$0xff]  ;;  %v15558_v27 = vld [vmem:[%s19675_s1 + $0xb08] sm:$0xff] }
 0x6f2   :  { %9768 = vmatpush.bf16.msra.mxu0 %v15512_v45  ;;  %9610 = vmatmul.bf16.vlgmr.msrb.gmra.mxu2 %v9536_v14 }
 0x6f3   :  { %9691 = vmatmul.bf16.vlgmr.msrb.gmra.mxu3 %v9617_v41  ;;  %9849 = vmatpush.bf16.msra.mxu1 %v15520_v28  ;;  %v15547_v41 = vld [vmem:[%s19675_s1 + $0xab0] sm:$0xff] }
 0x6f4   :  { %10007 = vmatpush.bf16.msra.mxu3 %v15540_v12  ;;  %9930 = vmatpush.bf16.msra.mxu2 %v15528_v59  ;;  %v15548_v12 = vld [vmem:[%s19675_s1 + $0xab8] sm:$0xff] }
 0x6f5   :  { %v8181_v33 = vpop.f32.mrf.mxu2 }
 0x6f6   :  { %9769 = vmatpush.bf16.msra.mxu0 %v15511_v43  ;;  %v8305_v58 = vpop.f32.mrf.mxu3  ;;  %v8197_v13 = vadd.f32 %v8181_v33, %v8073_v24  ;;  %v19320_v49 = vpop.f32.mrf.mxu0  ;;  %v15554_v24 = vld [vmem:[%s19675_s1 + $0xae8] sm:$0xff]  ;;  %v15545_v43 = vld [vmem:[%s19675_s1 + $0xaa0] sm:$0xff]  ;;  %v15544_v33 = vld [vmem:[%s19675_s1 + $0xa98] sm:$0xff] }
 0x6f7   :  { %v8059_v50 = vpop.f32.mrf.mxu1  ;;  %9850 = vmatpush.bf16.msra.mxu1 %v15519_v62 }
 0x6f8   :  { %10008 = vmatpush.bf16.msra.mxu3 %v15539_v16  ;;  %9931 = vmatpush.bf16.msra.mxu2 %v15527_v61  ;;  %v19335_v32 = vadd.f32 %v8305_v58, %v8197_v13  ;;  %v8074_v2 = vadd.f32 %v8059_v50, %v7950_v37  ;;  %v15561_v58 = vld [vmem:[%s19675_s1 + $0xb20] sm:$0xff]  ;;  %v15570_v13 = vld [vmem:[%s19675_s1 + $0xb68] sm:$0xff]  ;;  %v15552_v50 = vld [vmem:[%s19675_s1 + $0xad8] sm:$0xff] }
 0x6f9   :  { %v15551_v37 = vld [vmem:[%s19675_s1 + $0xad0] sm:$0xff] }
 0x6fa   :  { %9770 = vmatpush.bf16.msra.mxu0 %v15510_v56 }
 0x6fb   :  { %9851 = vmatpush.bf16.msra.mxu1 %v15518_v15 }
 0x6fc   :  { %10009 = vmatpush.bf16.msra.mxu3 %v15538_v6  ;;  %9932 = vmatpush.bf16.msra.mxu2 %v15526_v3  ;;  %v7828_v6 = vadd.f32 %v19115_v51, %v19120_v54  ;;  %v15562_v51 = vld [vmem:[%s19675_s1 + $0xb28] sm:$0xff]  ;;  %v15543_v3 = vld [vmem:[%s19675_s1 + $0xa90] sm:$0xff] }
 0x6fd   :  { %v8183_v17 = vpop.f32.mrf.mxu2 }
 0x6fe   :  { %9771 = vmatpush.bf16.msra.mxu0 %v15509_v60  ;;  %v8307_v55 = vpop.f32.mrf.mxu3  ;;  %v8198_v16 = vadd.f32 %v8183_v17, %v8074_v2  ;;  %v19364_v26 = vpop.f32.mrf.mxu0  ;;  %v7952_v28 = vadd.f32 %v19254_v40, %v7828_v6  ;;  %v15571_v40 = vld [vmem:[%s19675_s1 + $0xb70] sm:$0xff]  ;;  %v15568_v2 = vld [vmem:[%s19675_s1 + $0xb58] sm:$0xff]  ;;  %v15541_v17 = vld [vmem:[%s19675_s1 + $0xa80] sm:$0xff] }
 0x6ff   :  { %v8062_v5 = vpop.f32.mrf.mxu1  ;;  %9852 = vmatpush.bf16.msra.mxu1 %v15517_v18  ;;  %v15559_v18 = vld [vmem:[%s19675_s1 + $0xb10] sm:$0xff] }
 0x700   :  { %10010 = vmatpush.bf16.msra.mxu3 %v15537_v20  ;;  %v8075_v19 = vadd.f32 %v8062_v5, %v19223_v44  ;;  %v19370_v45 = vadd.f32 %v8307_v55, %v8198_v16  ;;  %9933 = vmatpush.bf16.msra.mxu2 %v15525_v1  ;;  %v15563_v44 = vld [vmem:[%s19675_s1 + $0xb30] sm:$0xff]  ;;  %v8316_v5 = vadd.f32 %v19170_v36, %v19175_v47 }
 0x701   :  { %9772 = vmatmul.bf16.vlgmr.msra.gmra.mxu0 %v9698_v39  ;;  %v15567_v16 = vld [vmem:[%s19675_s1 + $0xb50] sm:$0xff] }
 0x702   :  { %10088 = vmatpush.bf16.msrb.mxu0 %v15548_v12  ;;  %9853 = vmatmul.bf16.vlgmr.msra.gmra.mxu1 %v9779_v52  ;;  %v15588_v52 = vld [vmem:[%s19675_s1 + $0xbf8] sm:$0xff]  ;;  %v15579_v47 = vld [vmem:[%s19675_s1 + $0xbb0] sm:$0xff] }
 0x703   :  { %10169 = vmatpush.bf16.msrb.mxu1 %v15556_v29  ;;  %9934 = vmatmul.bf16.vlgmr.msra.gmra.mxu2 %v9860_v8  ;;  %v15550_v29 = vld [vmem:[%s19675_s1 + $0xac8] sm:$0xff]  ;;  %v8440_v8 = vadd.f32 %v19320_v49, %v8316_v5 }
 0x704   :  { %10011 = vmatpush.bf16.msra.mxu3 %v15536_v21  ;;  %10250 = vmatpush.bf16.msrb.mxu2 %v15564_v23  ;;  %v15580_v23 = vld [vmem:[%s19675_s1 + $0xbb8] sm:$0xff] }
 0x705   :  { %v8186_v59 = vpop.f32.mrf.mxu2 }
 0x706   :  { %10089 = vmatpush.bf16.msrb.mxu0 %v15547_v41  ;;  %v8310_v14 = vpop.f32.mrf.mxu3  ;;  %v8199_v54 = vadd.f32 %v8186_v59, %v8075_v19  ;;  %v19399_v62 = vpop.f32.mrf.mxu0  ;;  %v15549_v19 = vld [vmem:[%s19675_s1 + $0xac0] sm:$0xff] }
 0x707   :  { %10170 = vmatpush.bf16.msrb.mxu1 %v15555_v0  ;;  %v8064_v20 = vpop.f32.mrf.mxu1  ;;  %v15557_v0 = vld [vmem:[%s19675_s1 + $0xb00] sm:$0xff] }
 0x708   :  { %10012 = vmatpush.bf16.msra.mxu3 %v15535_v46  ;;  %10251 = vmatpush.bf16.msrb.mxu2 %v15563_v44  ;;  %v8076_v61 = vadd.f32 %v8064_v20, %v7952_v28  ;;  %v19404_v56 = vadd.f32 %v8310_v14, %v8199_v54  ;;  %v15542_v46 = vld [vmem:[%s19675_s1 + $0xa88] sm:$0xff]  ;;  %v15596_v44 = vld [vmem:[%s19675_s1 + $0xc38] sm:$0xff]  ;;  %v15595_v54 = vld [vmem:[%s19675_s1 + $0xc30] sm:$0xff] }
 0x70a   :  { %10090 = vmatpush.bf16.msrb.mxu0 %v15546_v22  ;;  %v15566_v22 = vld [vmem:[%s19675_s1 + $0xb48] sm:$0xff] }
 0x70b   :  { %10171 = vmatpush.bf16.msrb.mxu1 %v15554_v24  ;;  %v15587_v24 = vld [vmem:[%s19675_s1 + $0xbf0] sm:$0xff] }
 0x70c   :  { %10013 = vmatpush.bf16.msra.mxu3 %v15534_v30  ;;  %10252 = vmatpush.bf16.msrb.mxu2 %v15562_v51  ;;  %v15565_v51 = vld [vmem:[%s19675_s1 + $0xb40] sm:$0xff] }
 0x70d   :  { %v8188_v21 = vpop.f32.mrf.mxu2 }
 0x70e   :  { %10091 = vmatpush.bf16.msrb.mxu0 %v15545_v43  ;;  %v8312_v15 = vpop.f32.mrf.mxu3  ;;  %v8200_v57 = vadd.f32 %v8188_v21, %v8076_v61  ;;  %v19427_v60 = vpop.f32.mrf.mxu0  ;;  %v15578_v43 = vld [vmem:[%s19675_s1 + $0xba8] sm:$0xff]  ;;  %v15604_v61 = vld [vmem:[%s19675_s1 + $0xc78] sm:$0xff]  ;;  %v15603_v21 = vld [vmem:[%s19675_s1 + $0xc70] sm:$0xff] }
 0x70f   :  { %10172 = vmatpush.bf16.msrb.mxu1 %v15553_v11  ;;  %v8538_v7 = vpop.f32.mrf.mxu1  ;;  %v8441_v11 = vadd.f32 %v19364_v26, %v19206_v63 }
 0x710   :  { %10014 = vmatpush.bf16.msra.mxu3 %v15533_v35  ;;  %10253 = vmatpush.bf16.msrb.mxu2 %v15561_v58  ;;  %v19432_v12 = vadd.f32 %v8312_v15, %v8200_v57  ;;  %v8563_v1 = vadd.f32 %v8538_v7, %v8439_v42  ;;  %v15577_v58 = vld [vmem:[%s19675_s1 + $0xba0] sm:$0xff]  ;;  %v15602_v42 = vld [vmem:[%s19675_s1 + $0xc68] sm:$0xff] }
 0x711   :  { %v15585_v15 = vld [vmem:[%s19675_s1 + $0xbe0] sm:$0xff] }
 0x712   :  { %10092 = vmatpush.bf16.msrb.mxu0 %v15544_v33 }
 0x713   :  { %10173 = vmatpush.bf16.msrb.mxu1 %v15552_v50 }
 0x714   :  { %10331 = vmatpush.bf16.msrb.mxu3 %v15572_v53  ;;  %10254 = vmatpush.bf16.msrb.mxu2 %v15560_v48 }
 0x715   :  { %v8662_v39 = vpop.f32.mrf.mxu2 }
 0x716   :  { %10093 = vmatpush.bf16.msrb.mxu0 %v15543_v3  ;;  %v19451_v10 = vpop.f32.mrf.mxu3  ;;  %v8687_v31 = vadd.f32 %v8662_v39, %v8563_v1  ;;  %v19459_v55 = vpop.f32.mrf.mxu0  ;;  %v8442_v1 = vadd.f32 %v19399_v62, %v19232_v4  ;;  %v15575_v39 = vld [vmem:[%s19675_s1 + $0xb90] sm:$0xff] }
 0x717   :  { %10174 = vmatpush.bf16.msrb.mxu1 %v15551_v37  ;;  %v8540_v41 = vpop.f32.mrf.mxu1  ;;  %v15593_v37 = vld [vmem:[%s19675_s1 + $0xc20] sm:$0xff]  ;;  %v15583_v62 = vld [vmem:[%s19675_s1 + $0xbd0] sm:$0xff] }
 0x718   :  { %10332 = vmatpush.bf16.msrb.mxu3 %v15571_v40  ;;  %10255 = vmatpush.bf16.msrb.mxu2 %v15559_v18  ;;  %v8697_v30 = vadd.f32 %v18907_v34, %v8687_v31  ;;  %v8564_v6 = vadd.f32 %v8540_v41, %v8440_v8  ;;  %v15586_v40 = vld [vmem:[%s19675_s1 + $0xbe8] sm:$0xff]  ;;  %v15601_v31 = vld [vmem:[%s19675_s1 + $0xc60] sm:$0xff] }
 0x719   :  { %v15582_v8 = vld [vmem:[%s19675_s1 + $0xbc8] sm:$0xff] }
 0x71a   :  { %10094 = vmatpush.bf16.msrb.mxu0 %v15542_v46  ;;  %v8707_v36 = vmax.f32 %v8697_v30, 0.0  ;;  %v19538_v46 = vld [vmem:[%s19676_s2 + $0x1] ss:$0 sm:$0xff]  ;;  %v15574_v30 = vld [vmem:[%s19675_s1 + $0xb88] sm:$0xff] }
 0x71b   :  { %10175 = vmatpush.bf16.msrb.mxu1 %v15550_v29 }
 0x71c   :  { %10333 = vmatpush.bf16.msrb.mxu3 %v15570_v13  ;;  %10256 = vmatpush.bf16.msrb.mxu2 %v15558_v27  ;;  %v9941_v35 = vpack.c.bf16 %v8707_v36, %v8707_v36  ;;  %v8443_v36 = vadd.f32 %v19427_v60, %v19271_v38  ;;  %v15599_v38 = vld [vmem:[%s19675_s1 + $0xc50] sm:$0xff] }
 0x71d   :  { %v8664_v53 = vpop.f32.mrf.mxu2 }
 0x71e   :  { %10095 = vmatpush.bf16.msrb.mxu0 %v15541_v17  ;;  %v8824_v49 = vpop.f32.mrf.mxu3  ;;  %v8688_v28 = vadd.f32 %v8664_v53, %v8564_v6  ;;  %10015 = vmatmul.bf16.vlgmr.msra.gmra.mxu3 %v9941_v35  ;;  %v19492_v59 = vpop.f32.mrf.mxu0  ;;  %v15612_v53 = vld [vmem:[%s19675_s1 + $0xcb8] sm:$0xff] }
 0x71f   :  { %10176 = vmatpush.bf16.msrb.mxu1 %v15549_v19  ;;  %v8543_v14 = vpop.f32.mrf.mxu1  ;;  %v15591_v19 = vld [vmem:[%s19675_s1 + $0xc10] sm:$0xff] }
 0x720   :  { %10334 = vmatpush.bf16.msrb.mxu3 %v15569_v25  ;;  %10257 = vmatpush.bf16.msrb.mxu2 %v15557_v0  ;;  %v8698_v20 = vadd.f32 %v18907_v34, %v8688_v28  ;;  %v15594_v34 = vld [vmem:[%s19675_s1 + $0xc28] sm:$0xff]  ;;  %v8565_v50 = vadd.f32 %v8543_v14, %v8441_v11  ;;  %v15576_v25 = vld [vmem:[%s19675_s1 + $0xb98] sm:$0xff] }
 0x721   :  { %v15600_v0 = vld [vmem:[%s19675_s1 + $0xc58] sm:$0xff] }
 0x722   :  { %10412 = vmatpush.bf16.msra.mxu0 %v15580_v23  ;;  %v8708_v33 = vmax.f32 %v8698_v20, 0.0  ;;  %v15611_v20 = vld [vmem:[%s19675_s1 + $0xcb0] sm:$0xff] }
 0x723   :  { %10493 = vmatpush.bf16.msra.mxu1 %v15588_v52 }
 0x724   :  { %10335 = vmatpush.bf16.msrb.mxu3 %v15568_v2  ;;  %10574 = vmatpush.bf16.msra.mxu2 %v15596_v44  ;;  %v10022_v13 = vpack.c.bf16 %v8708_v33, %v8708_v33  ;;  %v15584_v2 = vld [vmem:[%s19675_s1 + $0xbd8] sm:$0xff]  ;;  %v15590_v44 = vld [vmem:[%s19675_s1 + $0xc08] sm:$0xff] }
 0x725   :  { %v8667_v63 = vpop.f32.mrf.mxu2 }
 0x726   :  { %10413 = vmatpush.bf16.msra.mxu0 %v15579_v47  ;;  %v8883_v26 = vpop.f32.mrf.mxu3  ;;  %v8689_v3 = vadd.f32 %v8667_v63, %v8565_v50  ;;  %v19527_v57 = vpop.f32.mrf.mxu0 }
 0x727   :  { %10494 = vmatpush.bf16.msra.mxu1 %v15587_v24  ;;  %v19525_v48 = vadd.f32 %v8883_v26, %v19451_v10  ;;  %10096 = vmatmul.bf16.vlgmr.msrb.gmra.mxu0 %v10022_v13  ;;  %v8545_v7 = vpop.f32.mrf.mxu1  ;;  %v15592_v10 = vld [vmem:[%s19675_s1 + $0xc18] sm:$0xff]  ;;  %v15581_v24 = vld [vmem:[%s19675_s1 + $0xbc0] sm:$0xff] }
 0x728   :  { %10336 = vmatpush.bf16.msrb.mxu3 %v15567_v16  ;;  %10575 = vmatpush.bf16.msra.mxu2 %v15595_v54  ;;  %v8699_v18 = vadd.f32 %v19538_v46, %v8689_v3  ;;  %v8566_v27 = vadd.f32 %v8545_v7, %v8442_v1  ;;  %v15597_v13 = vld [vmem:[%s19675_s1 + $0xc40] sm:$0xff] }
 0x729   :  { %v15609_v3 = vld [vmem:[%s19675_s1 + $0xca0] sm:$0xff] }
 0x72a   :  { %10414 = vmatpush.bf16.msra.mxu0 %v15578_v43  ;;  %v8709_v29 = vmax.f32 %v8699_v18, 0.0 }
 0x72b   :  { %10495 = vmatpush.bf16.msra.mxu1 %v15586_v40  ;;  %v8444_v40 = vadd.f32 %v19459_v55, %v19301_v9 }
 0x72c   :  { %10337 = vmatpush.bf16.msrb.mxu3 %v15566_v22  ;;  %10576 = vmatpush.bf16.msra.mxu2 %v15594_v34  ;;  %v10103_v17 = vpack.c.bf16 %v8709_v29, %v8709_v29  ;;  %v15573_v22 = vld [vmem:[%s19675_s1 + $0xb80] sm:$0xff]  ;;  %v15610_v34 = vld [vmem:[%s19675_s1 + $0xca8] sm:$0xff] }
 0x72d   :  { %v8669_v41 = vpop.f32.mrf.mxu2 }
 0x72e   :  { %10415 = vmatpush.bf16.msra.mxu0 %v15577_v58  ;;  %v8885_v4 = vpop.f32.mrf.mxu3  ;;  %v8690_v23 = vadd.f32 %v8669_v41, %v8566_v27  ;;  %10177 = vmatmul.bf16.vlgmr.msrb.gmra.mxu1 %v10103_v17  ;;  %v19561_v16 = vpop.f32.mrf.mxu0  ;;  %v15606_v41 = vld [vmem:[%s19675_s1 + $0xc88] sm:$0xff] }
 0x72f   :  { %10496 = vmatpush.bf16.msra.mxu1 %v15585_v15  ;;  %v8548_v5 = vpop.f32.mrf.mxu1 }
 0x730   :  { %10338 = vmatpush.bf16.msrb.mxu3 %v15565_v51  ;;  %10577 = vmatpush.bf16.msra.mxu2 %v15593_v37  ;;  %v8700_v52 = vadd.f32 %v19538_v46, %v8690_v23  ;;  %v8567_v6 = vadd.f32 %v8548_v5, %v8443_v36  ;;  %v15589_v51 = vld [vmem:[%s19675_s1 + $0xc00] sm:$0xff] }
 0x732   :  { %10416 = vmatpush.bf16.msra.mxu0 %v15576_v25  ;;  %v8710_v47 = vmax.f32 %v8700_v52, 0.0  ;;  %v8445_v25 = vadd.f32 %v19492_v59, %v19335_v32  ;;  %v15607_v32 = vld [vmem:[%s19675_s1 + $0xc90] sm:$0xff]  ;;  %v8446_v59 = vadd.f32 %v19527_v57, %v19370_v45  ;;  %v15605_v45 = vld [vmem:[%s19675_s1 + $0xc80] sm:$0xff]  ;;  %v8447_v57 = vadd.f32 %v19561_v16, %v19404_v56 }
 0x733   :  { %10497 = vmatpush.bf16.msra.mxu1 %v15584_v2 }
 0x734   :  { %10655 = vmatpush.bf16.msra.mxu3 %v15604_v61  ;;  %10578 = vmatpush.bf16.msra.mxu2 %v15592_v10  ;;  %v10184_v35 = vpack.c.bf16 %v8710_v47, %v8710_v47  ;;  %v15598_v61 = vld [vmem:[%s19675_s1 + $0xc48] sm:$0xff] }
 0x735   :  { %v8672_v60 = vpop.f32.mrf.mxu2 }
 0x736   :  { %10417 = vmatpush.bf16.msra.mxu0 %v15575_v39  ;;  %v9044_v49 = vpop.f32.mrf.mxu3  ;;  %v8691_v28 = vadd.f32 %v8672_v60, %v8567_v6  ;;  %10258 = vmatmul.bf16.vlgmr.msrb.gmra.mxu2 %v10184_v35  ;;  %v19593_v14 = vpop.f32.mrf.mxu0 }
 0x737   :  { %10498 = vmatpush.bf16.msra.mxu1 %v15583_v62  ;;  %v8550_v43 = vpop.f32.mrf.mxu1 }
 0x738   :  { %10656 = vmatpush.bf16.msra.mxu3 %v15603_v21  ;;  %10579 = vmatpush.bf16.msra.mxu2 %v15591_v19  ;;  %v8701_v54 = vadd.f32 %v19538_v46, %v8691_v28  ;;  %v8568_v58 = vadd.f32 %v8550_v43, %v8444_v40 }
 0x73a   :  { %10418 = vmatpush.bf16.msra.mxu0 %v15574_v30  ;;  %v8711_v11 = vmax.f32 %v8701_v54, 0.0 }
 0x73b   :  { %10499 = vmatpush.bf16.msra.mxu1 %v15582_v8 }
 0x73c   :  { %10657 = vmatpush.bf16.msra.mxu3 %v15602_v42  ;;  %10580 = vmatpush.bf16.msra.mxu2 %v15590_v44  ;;  %v10265_v33 = vpack.c.bf16 %v8711_v11, %v8711_v11 }
 0x73d   :  { %v8674_v50 = vpop.f32.mrf.mxu2 }
 0x73e   :  { %10419 = vmatpush.bf16.msra.mxu0 %v15573_v22  ;;  %v9046_v21 = vpop.f32.mrf.mxu3  ;;  %v8692_v63 = vadd.f32 %v8674_v50, %v8568_v58  ;;  %10339 = vmatmul.bf16.vlgmr.msrb.gmra.mxu3 %v10265_v33  ;;  %v8963_v9 = vpop.f32.mrf.mxu0 }
 0x73f   :  { %10500 = vmatpush.bf16.msra.mxu1 %v15581_v24  ;;  %v8553_v26 = vpop.f32.mrf.mxu1  ;;  %v8967_v55 = vadd.f32 %v8963_v9, %v19525_v48  ;;  %v15608_v48 = vld [vmem:[%s19675_s1 + $0xc98] sm:$0xff] }
 0x740   :  { %10658 = vmatpush.bf16.msra.mxu3 %v15601_v31  ;;  %10581 = vmatpush.bf16.msra.mxu2 %v15589_v51  ;;  %v8702_v15 = vadd.f32 %v19538_v46, %v8692_v63  ;;  %v8569_v42 = vadd.f32 %v8553_v26, %v8445_v25 }
 0x741   :  { %v9048_v7 = vadd.f32 %v9044_v49, %v8967_v55 }
 0x742   :  { %10736 = vmatpush.bf16.msrb.mxu0 %v15612_v53  ;;  %v8712_v37 = vmax.f32 %v8702_v15, 0.0  ;;  %v8448_v53 = vadd.f32 %v19593_v14, %v19432_v12 }
 0x744   :  { %10659 = vmatpush.bf16.msra.mxu3 %v15600_v0  ;;  %v10346_v18 = vpack.c.bf16 %v8712_v37, %v8712_v37 }
 0x745   :  { %v8677_v2 = vpop.f32.mrf.mxu2 }
 0x746   :  { %10737 = vmatpush.bf16.msrb.mxu0 %v15611_v20  ;;  %v8693_v1 = vadd.f32 %v8677_v2, %v8569_v42  ;;  %v8965_v39 = vpop.f32.mrf.mxu0 }
 0x747   :  { %10420 = vmatmul.bf16.vlgmr.msra.gmra.mxu0 %v10346_v18  ;;  %v8555_v29 = vpop.f32.mrf.mxu1 }
 0x748   :  { %10660 = vmatpush.bf16.msra.mxu3 %v15599_v38  ;;  %v8703_v10 = vadd.f32 %v19538_v46, %v8693_v1  ;;  %v8570_v31 = vadd.f32 %v8555_v29, %v8446_v59 }
 0x74a   :  { %10738 = vmatpush.bf16.msrb.mxu0 %v15610_v34  ;;  %v8713_v17 = vmax.f32 %v8703_v10, 0.0 }
 0x74c   :  { %10661 = vmatpush.bf16.msra.mxu3 %v15598_v61  ;;  %v10427_v27 = vpack.c.bf16 %v8713_v17, %v8713_v17  ;;  %v15620_v17 = vld [vmem:[%s19675_s1 + $0xcf8] sm:$0xff] }
 0x74d   :  { %v8679_v4 = vpop.f32.mrf.mxu2  ;;  %10824 = vmatpush.bf16.msrb.mxu1 %v15620_v17 }
 0x74e   :  { %10739 = vmatpush.bf16.msrb.mxu0 %v15609_v3  ;;  %v8694_v62 = vadd.f32 %v8679_v4, %v8570_v31  ;;  %10501 = vmatmul.bf16.vlgmr.msra.gmra.mxu1 %v10427_v27  ;;  %v9125_v5 = vpop.f32.mrf.mxu0  ;;  %v15619_v27 = vld [vmem:[%s19675_s1 + $0xcf0] sm:$0xff]  ;;  %v15617_v4 = vld [vmem:[%s19675_s1 + $0xce0] sm:$0xff] }
 0x74f   :  { %v8558_v23 = vpop.f32.mrf.mxu1  ;;  %v9129_v19 = vadd.f32 %v9125_v5, %v9048_v7  ;;  %v15615_v5 = vld [vmem:[%s19675_s1 + $0xcd0] sm:$0xff] }
 0x750   :  { %10662 = vmatpush.bf16.msra.mxu3 %v15597_v13  ;;  %v8704_v30 = vadd.f32 %v19538_v46, %v8694_v62  ;;  %v8571_v36 = vadd.f32 %v8558_v23, %v8447_v57  ;;  %v15616_v23 = vld [vmem:[%s19675_s1 + $0xcd8] sm:$0xff]  ;;  %v15614_v57 = vld [vmem:[%s19675_s1 + $0xcc8] sm:$0xff] }
 0x751   :  { %10825 = vmatpush.bf16.msrb.mxu1 %v15619_v27 }
 0x752   :  { %10740 = vmatpush.bf16.msrb.mxu0 %v15608_v48  ;;  %v8714_v52 = vmax.f32 %v8704_v30, 0.0 }
 0x754   :  { %v10508_v8 = vpack.c.bf16 %v8714_v52, %v8714_v52  ;;  %v15613_v52 = vld [vmem:[%s19675_s1 + $0xcc0] sm:$0xff] }
 0x755   :  { %v8682_v47 = vpop.f32.mrf.mxu2 }
 0x756   :  { %10741 = vmatpush.bf16.msrb.mxu0 %v15607_v32  ;;  %v9368_v0 = vpop.f32.mrf.mxu3  ;;  %v8695_v22 = vadd.f32 %v8682_v47, %v8571_v36  ;;  %10582 = vmatmul.bf16.vlgmr.msra.gmra.mxu2 %v10508_v8  ;;  %v9127_v35 = vpop.f32.mrf.mxu0 }
 0x757   :  { %v8560_v44 = vpop.f32.mrf.mxu1 }
 0x758   :  { %v8705_v6 = vadd.f32 %v19538_v46, %v8695_v22  ;;  %v8572_v24 = vadd.f32 %v8560_v44, %v8448_v53 }
 0x75a   :  { %10742 = vmatpush.bf16.msrb.mxu0 %v15606_v41  ;;  %v8715_v38 = vmax.f32 %v8705_v6, 0.0  ;;  %v15618_v41 = vld [vmem:[%s19675_s1 + $0xce8] sm:$0xff] }
 0x75b   :  { %10826 = vmatpush.bf16.msrb.mxu1 %v15618_v41 }
 0x75c   :  { %v10589_v49 = vpack.c.bf16 %v8715_v38, %v8715_v38 }
 0x75d   :  { %v8684_v56 = vpop.f32.mrf.mxu2 }
 0x75e   :  { %10743 = vmatpush.bf16.msrb.mxu0 %v15605_v45  ;;  %v9370_v60 = vpop.f32.mrf.mxu3  ;;  %v8696_v16 = vadd.f32 %v8684_v56, %v8572_v24  ;;  %10663 = vmatmul.bf16.vlgmr.msra.gmra.mxu3 %v10589_v49  ;;  %v9449_v51 = vpop.f32.mrf.mxu0 }
 0x75f   :  { %v9206_v28 = vpop.f32.mrf.mxu1  ;;  %10827 = vmatpush.bf16.msrb.mxu1 %v15617_v4 }
 0x760   :  { %v9210_v43 = vadd.f32 %v9206_v28, %v9129_v19  ;;  %v8706_v54 = vadd.f32 %v19538_v46, %v8696_v16 }
 0x762   :  { %v8716_v20 = vmax.f32 %v8706_v54, 0.0 }
 0x763   :  { %10828 = vmatpush.bf16.msrb.mxu1 %v15616_v23 }
 0x764   :  { %v10670_v61 = vpack.c.bf16 %v8716_v20, %v8716_v20 }
 0x765   :  { %v9287_v40 = vpop.f32.mrf.mxu2 }
 0x766   :  { %v9291_v11 = vadd.f32 %v9287_v40, %v9210_v43  ;;  %10744 = vmatmul.bf16.vlgmr.msrb.gmra.mxu0 %v10670_v61  ;;  %v9451_v58 = vpop.f32.mrf.mxu0  ;;  %v15623_v43 = vld [vmem:[%s19676_s2 + $0x2] ss:$0 sm:$0xff] }
 0x767   :  { %v9208_v33 = vpop.f32.mrf.mxu1  ;;  %10829 = vmatpush.bf16.msrb.mxu1 %v15615_v5  ;;  %v15624_v58 = vld [vmem:[%s19676_s2 + $0x3] ss:$0 sm:$0xff] }
 0x768   :  { %v9372_v12 = vadd.f32 %v9368_v0, %v9291_v11 }
 0x76a   :  { %v9453_v14 = vadd.f32 %v9449_v51, %v9372_v12 }
 0x76b   :  { %10830 = vmatpush.bf16.msrb.mxu1 %v15614_v57 }
 0x76d   :  { %v9289_v34 = vpop.f32.mrf.mxu2 }
 0x76f   :  { %v9530_v13 = vpop.f32.mrf.mxu1  ;;  %10831 = vmatpush.bf16.msrb.mxu1 %v15613_v52 }
 0x770   :  { %v9534_v21 = vadd.f32 %v9530_v13, %v9453_v14 }
 0x775   :  { %v9611_v63 = vpop.f32.mrf.mxu2 }
 0x776   :  { %v9692_v50 = vpop.f32.mrf.mxu3  ;;  %v9615_v26 = vadd.f32 %v9611_v63, %v9534_v21 }
 0x777   :  { %v9532_v9 = vpop.f32.mrf.mxu1 }
 0x778   :  { %v9696_v15 = vadd.f32 %v9692_v50, %v9615_v26 }
 0x77d   :  { %v9613_v7 = vpop.f32.mrf.mxu2 }
 0x77e   :  { %v9694_v55 = vpop.f32.mrf.mxu3  ;;  %v9773_v3 = vpop.f32.mrf.mxu0 }
 0x77f   :  { %v9777_v46 = vadd.f32 %v9773_v3, %v9696_v15  ;;  %v9854_v25 = vpop.f32.mrf.mxu1 }
 0x781   :  { %v9858_v37 = vadd.f32 %v9854_v25, %v9777_v46 }
 0x786   :  { %v9775_v18 = vpop.f32.mrf.mxu0  ;;  %v9935_v42 = vpop.f32.mrf.mxu2 }
 0x787   :  { %v9939_v48 = vadd.f32 %v9935_v42, %v9858_v37  ;;  %v9856_v2 = vpop.f32.mrf.mxu1 }
 0x78e   :  { %v9937_v1 = vpop.f32.mrf.mxu2 }
 0x7a1   :  { %v10016_v29 = vpop.f32.mrf.mxu3 }
 0x7a2   :  { %v10020_v47 = vadd.f32 %v10016_v29, %v9939_v48 }
 0x7a4   :  { %v10097_v39 = vpop.f32.mrf.mxu0 }
 0x7a5   :  { %v10101_v22 = vadd.f32 %v10097_v39, %v10020_v47 }
 0x7a9   :  { %v10018_v10 = vpop.f32.mrf.mxu3 }
 0x7ab   :  { %v10178_v59 = vpop.f32.mrf.mxu1 }
 0x7ac   :  { %v10099_v32 = vpop.f32.mrf.mxu0  ;;  %v10182_v35 = vadd.f32 %v10178_v59, %v10101_v22 }
 0x7b3   :  { %v10180_v31 = vpop.f32.mrf.mxu1 }
 0x7b9   :  { %v10259_v62 = vpop.f32.mrf.mxu2 }
 0x7ba   :  { %v10263_v6 = vadd.f32 %v10259_v62, %v10182_v35 }
 0x7c1   :  { %v10261_v30 = vpop.f32.mrf.mxu2  ;;  %v10340_v19 = vpop.f32.mrf.mxu3 }
 0x7c2   :  { %v10344_v53 = vadd.f32 %v10340_v19, %v10263_v6 }
 0x7c4   :  { %v10421_v45 = vpop.f32.mrf.mxu0 }
 0x7c5   :  { %v10425_v60 = vadd.f32 %v10421_v45, %v10344_v53 }
 0x7c9   :  { %v10342_v0 = vpop.f32.mrf.mxu3 }
 0x7cb   :  { %v10502_v36 = vpop.f32.mrf.mxu1 }
 0x7cc   :  { %v10423_v8 = vpop.f32.mrf.mxu0  ;;  %v10506_v49 = vadd.f32 %v10502_v36, %v10425_v60 }
 0x7d3   :  { %v10504_v44 = vpop.f32.mrf.mxu1 }
 0x7d9   :  { %v10583_v38 = vpop.f32.mrf.mxu2 }
 0x7da   :  { %v10587_v24 = vadd.f32 %v10583_v38, %v10506_v49 }
 0x7e1   :  { %v10585_v56 = vpop.f32.mrf.mxu2  ;;  %v10664_v16 = vpop.f32.mrf.mxu3 }
 0x7e2   :  { %v10668_v28 = vadd.f32 %v10664_v16, %v10587_v24 }
 0x7e3   :  { %v10745_v51 = vpop.f32.mrf.mxu0 }
 0x7e4   :  { %v10749_v54 = vadd.f32 %v10745_v51, %v10668_v28 }
 0x7e6   :  { %v10753_v20 = vadd.f32 %v15623_v43, %v10749_v54 }
 0x7e8   :  { %v10754_v61 = vmax.f32 %v10753_v20, 0.0 }
 0x7e9   :  { %v10666_v40 = vpop.f32.mrf.mxu3 }
 0x7ea   :  { %v10755_v11 = vpack.c.bf16 %v10754_v61, %v10754_v61 }
 0x7eb   :  { %v10747_v33 = vpop.f32.mrf.mxu0 }
 0x7ec   :  { %10832 = vmatmul.bf16.vlgmr.msrb.gmra.mxu1 %v10755_v11 }
 0x869   :  { %v10833_v12 = vpop.f32.mrf.mxu1 }
 0x86a   :  { %v10834_v14 = vadd.f32 %v15624_v58, %v10833_v12 }
 0x86c   :  { %10837 = vst [vmem:[%s19678_s3] sm:$0xff] %v10834_v14 }
 0x871   :  { %v10835_v34 = vpop.f32.mrf.mxu1 }

</bundles_post_ra>
